<compile_context>
chip_gen: v7x
topology: tpu7x:2x2x1
jax: 0.10.0
libtpu: 0.0.40
codegen_flags: <defaults>
</compile_context>

<pallas_src>
import functools

import jax
import jax.numpy as jnp
from jax import lax
from jax.experimental import pallas as pl
from jax.experimental.pallas import tpu as pltpu


def _round_up(x, m):
    return (x + m - 1) // m * m


def _largest_divisor_leq(n, cap):
    best = 1
    for d in range(1, min(n, cap) + 1):
        if n % d == 0:
            best = d
    return best


# ------------------------------ Pallas kernel --------------------------------

def _basic_block_kernel(x_ref, w1_ref, s1_ref, b1_ref, w2_ref, s2_ref, b2_ref,
                        o_ref, p1_ref, p2_ref, *, out_w):
    # Block shapes:
    #   x_ref : (1, H+4, Wx, Cp)     zero-padded input, whole image (Wx = w1e+2), f32
    #   w1_ref: (9*Cp, Cm)           conv1 weights, rows ordered (kh, kw, cin), bf16
    #   w2_ref: (9*Cm, Co)           conv2 weights, bf16
    #   s*/b* : (1, Cm|Co)           folded BN scale / bias, f32
    #   o_ref : (1, th, Wp, Co)      output row tile (Wp = width padded to 8)
    #   p1_ref: ((th+2)*w1e, 9*Cp)   bf16 VMEM scratch: conv1 patch matrix
    #   p2_ref: (th*Wp,      9*Cm)   bf16 VMEM scratch: conv2 patch matrix
    th, wp, co = o_ref.shape[1], o_ref.shape[2], o_ref.shape[3]
    hp, wx, cp = x_ref.shape[1], x_ref.shape[2], x_ref.shape[3]
    cm = w1_ref.shape[1]
    H = hp - 4
    w1e = wx - 2          # width of the extended conv1 output (multiple of 8)
    the = th + 2          # rows of the extended conv1 output (1-row halo)

    r0 = pl.program_id(1) * th                 # first output image row of tile
    row0 = pl.multiple_of(r0, 8) if th % 8 == 0 else r0

    # ---------------- conv1 + bn1 + relu on an extended (halo) tile ----------
    # Patch matrix: row = flattened (ext_row, ext_col), col = (kh, kw, cin).
    # Patches are loaded straight from x_ref per (kh, kw) and stored as bf16.
    for kh in range(3):
        for kw in range(3):
            k = kh * 3 + kw
            patch = x_ref[0, pl.ds(row0 + kh, the), kw:kw + w1e, :]  # (the, w1e, cp)
            p1_ref[:, k * cp:(k + 1) * cp] = (
                patch.reshape(the * w1e, cp).astype(p1_ref.dtype))

    y1 = jnp.dot(p1_ref[...], w1_ref[...],
                 preferred_element_type=jnp.float32)           # (the*w1e, cm) f32
    y1 = jnp.maximum(y1 * s1_ref[...] + b1_ref[...], 0.0)
    y1 = y1.reshape(the, w1e, cm)

    # conv2 zero-pads its input, so every out1 position that lies outside the
    # image must be exactly zero. 2-D mask, broadcast over channels.
    img_row = lax.broadcasted_iota(jnp.int32, (the, w1e, 1), 0) + (r0 - 1)
    img_col = lax.broadcasted_iota(jnp.int32, (the, w1e, 1), 1) - 1
    inside = (img_row >= 0) & (img_row < H) & (img_col >= 0) & (img_col < out_w)
    y1 = jnp.where(inside, y1, 0.0)

    # ---------------- conv2 + bn2 + residual add + relu ----------------------
    # TODO(synk): if v5e profiling shows the vst slot saturating, split each
    # conv into 3 K=3*C matmuls to cut im2col store traffic ~3x.
    for kh in range(3):
        for kw in range(3):
            k = kh * 3 + kw
            piece = y1[kh:kh + th, kw:kw + wp, :]              # (th, wp, cm)
            p2_ref[:, k * cm:(k + 1) * cm] = (
                piece.reshape(th * wp, cm).astype(p2_ref.dtype))

    y2 = jnp.dot(p2_ref[...], w2_ref[...],
                 preferred_element_type=jnp.float32)           # (th*wp, co) f32
    residual = x_ref[0, pl.ds(row0 + 2, th), 2:2 + wp, :]      # (th, wp, cp) f32
    y2 = y2 * s2_ref[...] + b2_ref[...] + residual.reshape(th * wp, co)
    y2 = jnp.maximum(y2, 0.0)
    o_ref[0] = y2.reshape(th, wp, co).astype(o_ref.dtype)


# -------------------------------- JAX glue -----------------------------------

def _fold_bn(bn, eps=1e-5):
    scale = bn["gamma"] / jnp.sqrt(bn["var"] + eps)
    bias = bn["beta"] - bn["mean"] * scale
    return scale, bias


def _pad_vec(v, n):
    return jnp.pad(v.astype(jnp.float32), (0, n - v.shape[0])).reshape(1, n)


def _vmem_limit_bytes():
    cap = 128 * 1024 * 1024
    try:
        info = pltpu.get_tpu_info()
        cap = int(getattr(info, "vmem_capacity_bytes", cap))
    except Exception:
        pass
    # ~15% headroom for Mosaic internal scratch; works out to ~109 MiB on
    # v5e/v6e (128 MiB) and ~54 MiB on v7x (64 MiB per TC).
    return max(32 * 1024 * 1024, int(cap * 0.85))


def basic_block_forward(x_nchw, params, *, row_tile_cap=32,
                        single_buffer_constants=True):
    """BasicBlock forward (stride=1, downsample=None; BN uses running stats)."""
    # TODO(synk): stride>1 / downsample branch not implemented (module defaults
    # are stride=1, downsample=None).
    x = jnp.transpose(x_nchw, (0, 2, 3, 1))    # NCHW -> NHWC (module is NCHW)
    N, H, W, C = x.shape
    planes = params["w1"].shape[-1]
    assert params["w1"].shape == (3, 3, C, planes)
    assert params["w2"].shape == (3, 3, planes, planes)
    assert C == planes, "BasicBlock with downsample=None needs inplanes==planes"

    # Lane-dense channel padding (multiple of 128): dense MXU operands,
    # unmasked vector stores; padded channels are zero and sliced off below.
    cp = _round_up(C, 128)        # input / residual / output channels
    cm = _round_up(planes, 128)   # conv1 output channels

    th = _largest_divisor_leq(H, row_tile_cap)   # output rows per grid step
    wp = _round_up(W, 8)          # sublane-aligned conv2 / output width
    w1e = _round_up(wp + 2, 8)    # extended conv1 output width (halo, 8-align)
    wx = w1e + 2                  # padded input width seen by the kernel
    hp = H + 4

    x_pad = jnp.pad(x, ((0, 0), (2, 2), (2, wx - W - 2), (0, cp - C)))

    w1 = jnp.pad(params["w1"],
                 ((0, 0), (0, 0), (0, cp - C), (0, cm - planes)))
    w1 = w1.reshape(9 * cp, cm).astype(jnp.bfloat16)
    w2 = jnp.pad(params["w2"],
                 ((0, 0), (0, 0), (0, cm - planes), (0, cp - planes)))
    w2 = w2.reshape(9 * cm, cp).astype(jnp.bfloat16)

    s1, b1 = _fold_bn(params["bn1"])
    s2, b2 = _fold_bn(params["bn2"])
    s1, b1 = _pad_vec(s1, cm), _pad_vec(b1, cm)
    s2, b2 = _pad_vec(s2, cp), _pad_vec(b2, cp)

    def _const_spec(shape):
        # Constant-index operands: single-buffer them (double-buffering a
        # constant block is pure dead VMEM).
        if single_buffer_constants and hasattr(pl, "Buffered"):
            return pl.BlockSpec(shape, lambda n, i: (0, 0),
                                pipeline_mode=pl.Buffered(1))
        return pl.BlockSpec(shape, lambda n, i: (0, 0))

    kernel = functools.partial(_basic_block_kernel, out_w=W)

    out = pl.pallas_call(
        kernel,
        out_shape=jax.ShapeDtypeStruct((N, H, wp, cp), x.dtype),
        grid_spec=pltpu.PrefetchScalarGridSpec(
            num_scalar_prefetch=0,
            # N outermost: megacore (v7x) splits on batch, preserving the
            # once-per-image x_ref DMA reuse across row tiles.
            grid=(N, H // th),
            in_specs=[
                # Whole padded image; block index depends only on n, so it is
                # DMA'd once per image and reused across that image's row tiles.
                pl.BlockSpec((1, hp, wx, cp), lambda n, i: (n, 0, 0, 0)),
                _const_spec((9 * cp, cm)),
                _const_spec((1, cm)),
                _const_spec((1, cm)),
                _const_spec((9 * cm, cp)),
                _const_spec((1, cp)),
                _const_spec((1, cp)),
            ],
            out_specs=pl.BlockSpec((1, th, wp, cp), lambda n, i: (n, i, 0, 0)),
            scratch_shapes=[
                pltpu.VMEM(((th + 2) * w1e, 9 * cp), jnp.bfloat16),
                pltpu.VMEM((th * wp, 9 * cm), jnp.bfloat16),
            ],
        ),
        compiler_params=pltpu.CompilerParams(
            dimension_semantics=("parallel", "parallel"),
            vmem_limit_bytes=_vmem_limit_bytes(),
        ),
    )(x_pad, w1, s1, b1, w2, s2, b2)

    # TODO(synk): when chaining BasicBlocks, keep the channel-/width-padded
    # NHWC layout between blocks and skip this crop+transpose HBM pass.
    out = out[:, :, :W, :planes]                  # drop width/channel padding
    return jnp.transpose(out, (0, 3, 1, 2))       # NHWC -> NCHW


# ---------------------------- pure-JAX reference ------------------------------

def _ref_forward(x_nchw, params):
    x = jnp.transpose(x_nchw, (0, 2, 3, 1))

    def conv(y, w):
        return lax.conv_general_dilated(
            y, w, (1, 1), "SAME",
            dimension_numbers=("NHWC", "HWIO", "NHWC"))

    s1, b1 = _fold_bn(params["bn1"])
    s2, b2 = _fold_bn(params["bn2"])
    o = jnp.maximum(conv(x, params["w1"]) * s1 + b1, 0.0)
    o = conv(o, params["w2"]) * s2 + b2 + x
    o = jnp.maximum(o, 0.0)
    return jnp.transpose(o, (0, 3, 1, 2))


# ------------------------------------ main ------------------------------------

if __name__ == "__main__":
    key = jax.random.PRNGKey(0)
    ks = jax.random.split(key, 12)

    N, C, H, W = 2, 4, 16, 16     # inplanes == planes (expansion=1, stride=1)
    planes = C

    x = jax.random.normal(ks[0], (N, C, H, W), jnp.float32)

    params = {
        "w1": 0.1 * jax.random.normal(ks[1], (3, 3, C, planes), jnp.float32),
        "w2": 0.1 * jax.random.normal(ks[2], (3, 3, planes, planes), jnp.float32),
        "bn1": {
            "gamma": 1.0 + 0.1 * jax.random.normal(ks[3], (planes,), jnp.float32),
            "beta": 0.1 * jax.random.normal(ks[4], (planes,), jnp.float32),
            "mean": 0.1 * jax.random.normal(ks[5], (planes,), jnp.float32),
            "var": jax.random.uniform(ks[6], (planes,), jnp.float32, 0.5, 1.5),
        },
        "bn2": {
            "gamma": 1.0 + 0.1 * jax.random.normal(ks[7], (planes,), jnp.float32),
            "beta": 0.1 * jax.random.normal(ks[8], (planes,), jnp.float32),
            "mean": 0.1 * jax.random.normal(ks[9], (planes,), jnp.float32),
            "var": jax.random.uniform(ks[10], (planes,), jnp.float32, 0.5, 1.5),
        },
    }

    def _run(single_buffer):
        fn = jax.jit(functools.partial(
            basic_block_forward, single_buffer_constants=single_buffer))
        return jax.block_until_ready(fn(x, params))

    try:
        out = _run(True)
    except Exception:
        # Fallback for JAX builds without pipeline_mode=pl.Buffered support.
        out = _run(False)

    ref = _ref_forward(x, params)
    assert out.shape == x.shape and out.dtype == x.dtype
    # bf16 MXU operands (f32 accumulation): tolerance loosened vs. the f32 path.
    max_err = float(jnp.max(jnp.abs(out - ref)))
    if max_err < 3e-2:
        print("KERNEL_OK")
    else:
        print(f"MISMATCH max_err={max_err}")
</pallas_src>

<mosaic_0001>
module attributes {stable_mosaic.version = 11 : i64} {
  func.func @_basic_block_kernel(%arg0: i32, %arg1: i32, %arg2: memref<1x20x26x128xf32, #tpu.memory_space<vmem>>, %arg3: memref<1152x128xbf16, #tpu.memory_space<vmem>>, %arg4: memref<1x128xf32, #tpu.memory_space<vmem>>, %arg5: memref<1x128xf32, #tpu.memory_space<vmem>>, %arg6: memref<1152x128xbf16, #tpu.memory_space<vmem>>, %arg7: memref<1x128xf32, #tpu.memory_space<vmem>>, %arg8: memref<1x128xf32, #tpu.memory_space<vmem>>, %arg9: memref<1x16x16x128xf32, #tpu.memory_space<vmem>>, %arg10: memref<432x1152xbf16, #tpu.memory_space<vmem>>, %arg11: memref<256x1152xbf16, #tpu.memory_space<vmem>>) attributes {dimension_semantics = [#tpu.dimension_semantics<parallel>, #tpu.dimension_semantics<parallel>], iteration_bounds = array<i64: 2, 1>, scalar_prefetch = 0 : i64, scratch_operands = 2 : i64, tpu.core_type = #tpu.core_type<tc>, window_params = [{transform_indices = @transform_0, window_bounds = array<i64: 1, 20, 26, 128>}, {pipeline_mode = #tpu.pipeline_mode<synchronous>, transform_indices = @transform_1, window_bounds = array<i64: 1152, 128>}, {pipeline_mode = #tpu.pipeline_mode<synchronous>, transform_indices = @transform_2, window_bounds = array<i64: 1, 128>}, {pipeline_mode = #tpu.pipeline_mode<synchronous>, transform_indices = @transform_3, window_bounds = array<i64: 1, 128>}, {pipeline_mode = #tpu.pipeline_mode<synchronous>, transform_indices = @transform_4, window_bounds = array<i64: 1152, 128>}, {pipeline_mode = #tpu.pipeline_mode<synchronous>, transform_indices = @transform_5, window_bounds = array<i64: 1, 128>}, {pipeline_mode = #tpu.pipeline_mode<synchronous>, transform_indices = @transform_6, window_bounds = array<i64: 1, 128>}, {transform_indices = @transform_7, window_bounds = array<i64: 1, 16, 16, 128>}]} {
    %c16_i32 = arith.constant 16 : i32
    %0 = arith.muli %arg1, %c16_i32 : i32
    %1 = tpu.assume_multiple %0, 8 : i32
    %c0_i32 = arith.constant 0 : i32
    %2 = arith.addi %1, %c0_i32 : i32
    %c0 = arith.constant 0 : index
    %3 = arith.index_cast %2 : i32 to index
    %c0_0 = arith.constant 0 : index
    %c0_1 = arith.constant 0 : index
    %4 = vector.load %arg2[%c0, %3, %c0_0, %c0_1] : memref<1x20x26x128xf32, #tpu.memory_space<vmem>>, vector<1x18x24x128xf32>
    %5 = vector.shape_cast %4 : vector<1x18x24x128xf32> to vector<18x24x128xf32>
    %6 = vector.shape_cast %5 : vector<18x24x128xf32> to vector<432x128xf32>
    %7 = arith.truncf %6 : vector<432x128xf32> to vector<432x128xbf16>
    %c0_2 = arith.constant 0 : index
    %c0_3 = arith.constant 0 : index
    %8 = vector.load %arg10[%c0_2, %c0_3] : memref<432x1152xbf16, #tpu.memory_space<vmem>>, vector<432x128xbf16>
    tpu.vector_store %arg10[%c0_2, %c0_3], %7 {strides = array<i32>} : memref<432x1152xbf16, #tpu.memory_space<vmem>>, vector<432x128xbf16>,
    %c0_i32_4 = arith.constant 0 : i32
    %9 = arith.addi %1, %c0_i32_4 : i32
    %c0_5 = arith.constant 0 : index
    %10 = arith.index_cast %9 : i32 to index
    %c1 = arith.constant 1 : index
    %c0_6 = arith.constant 0 : index
    %11 = vector.load %arg2[%c0_5, %10, %c1, %c0_6] : memref<1x20x26x128xf32, #tpu.memory_space<vmem>>, vector<1x18x24x128xf32>
    %12 = vector.shape_cast %11 : vector<1x18x24x128xf32> to vector<18x24x128xf32>
    %13 = vector.shape_cast %12 : vector<18x24x128xf32> to vector<432x128xf32>
    %14 = arith.truncf %13 : vector<432x128xf32> to vector<432x128xbf16>
    %c0_7 = arith.constant 0 : index
    %c128 = arith.constant 128 : index
    %15 = vector.load %arg10[%c0_7, %c128] : memref<432x1152xbf16, #tpu.memory_space<vmem>>, vector<432x128xbf16>
    tpu.vector_store %arg10[%c0_7, %c128], %14 {strides = array<i32>} : memref<432x1152xbf16, #tpu.memory_space<vmem>>, vector<432x128xbf16>,
    %c0_i32_8 = arith.constant 0 : i32
    %16 = arith.addi %1, %c0_i32_8 : i32
    %c0_9 = arith.constant 0 : index
    %17 = arith.index_cast %16 : i32 to index
    %c2 = arith.constant 2 : index
    %c0_10 = arith.constant 0 : index
    %18 = vector.load %arg2[%c0_9, %17, %c2, %c0_10] : memref<1x20x26x128xf32, #tpu.memory_space<vmem>>, vector<1x18x24x128xf32>
    %19 = vector.shape_cast %18 : vector<1x18x24x128xf32> to vector<18x24x128xf32>
    %20 = vector.shape_cast %19 : vector<18x24x128xf32> to vector<432x128xf32>
    %21 = arith.truncf %20 : vector<432x128xf32> to vector<432x128xbf16>
    %c0_11 = arith.constant 0 : index
    %c256 = arith.constant 256 : index
    %22 = vector.load %arg10[%c0_11, %c256] : memref<432x1152xbf16, #tpu.memory_space<vmem>>, vector<432x128xbf16>
    tpu.vector_store %arg10[%c0_11, %c256], %21 {strides = array<i32>} : memref<432x1152xbf16, #tpu.memory_space<vmem>>, vector<432x128xbf16>,
    %c1_i32 = arith.constant 1 : i32
    %23 = arith.addi %1, %c1_i32 : i32
    %c0_12 = arith.constant 0 : index
    %24 = arith.index_cast %23 : i32 to index
    %c0_13 = arith.constant 0 : index
    %c0_14 = arith.constant 0 : index
    %25 = vector.load %arg2[%c0_12, %24, %c0_13, %c0_14] : memref<1x20x26x128xf32, #tpu.memory_space<vmem>>, vector<1x18x24x128xf32>
    %26 = vector.shape_cast %25 : vector<1x18x24x128xf32> to vector<18x24x128xf32>
    %27 = vector.shape_cast %26 : vector<18x24x128xf32> to vector<432x128xf32>
    %28 = arith.truncf %27 : vector<432x128xf32> to vector<432x128xbf16>
    %c0_15 = arith.constant 0 : index
    %c384 = arith.constant 384 : index
    %29 = vector.load %arg10[%c0_15, %c384] : memref<432x1152xbf16, #tpu.memory_space<vmem>>, vector<432x128xbf16>
    tpu.vector_store %arg10[%c0_15, %c384], %28 {strides = array<i32>} : memref<432x1152xbf16, #tpu.memory_space<vmem>>, vector<432x128xbf16>,
    %c1_i32_16 = arith.constant 1 : i32
    %30 = arith.addi %1, %c1_i32_16 : i32
    %c0_17 = arith.constant 0 : index
    %31 = arith.index_cast %30 : i32 to index
    %c1_18 = arith.constant 1 : index
    %c0_19 = arith.constant 0 : index
    %32 = vector.load %arg2[%c0_17, %31, %c1_18, %c0_19] : memref<1x20x26x128xf32, #tpu.memory_space<vmem>>, vector<1x18x24x128xf32>
    %33 = vector.shape_cast %32 : vector<1x18x24x128xf32> to vector<18x24x128xf32>
    %34 = vector.shape_cast %33 : vector<18x24x128xf32> to vector<432x128xf32>
    %35 = arith.truncf %34 : vector<432x128xf32> to vector<432x128xbf16>
    %c0_20 = arith.constant 0 : index
    %c512 = arith.constant 512 : index
    %36 = vector.load %arg10[%c0_20, %c512] : memref<432x1152xbf16, #tpu.memory_space<vmem>>, vector<432x128xbf16>
    tpu.vector_store %arg10[%c0_20, %c512], %35 {strides = array<i32>} : memref<432x1152xbf16, #tpu.memory_space<vmem>>, vector<432x128xbf16>,
    %c1_i32_21 = arith.constant 1 : i32
    %37 = arith.addi %1, %c1_i32_21 : i32
    %c0_22 = arith.constant 0 : index
    %38 = arith.index_cast %37 : i32 to index
    %c2_23 = arith.constant 2 : index
    %c0_24 = arith.constant 0 : index
    %39 = vector.load %arg2[%c0_22, %38, %c2_23, %c0_24] : memref<1x20x26x128xf32, #tpu.memory_space<vmem>>, vector<1x18x24x128xf32>
    %40 = vector.shape_cast %39 : vector<1x18x24x128xf32> to vector<18x24x128xf32>
    %41 = vector.shape_cast %40 : vector<18x24x128xf32> to vector<432x128xf32>
    %42 = arith.truncf %41 : vector<432x128xf32> to vector<432x128xbf16>
    %c0_25 = arith.constant 0 : index
    %c640 = arith.constant 640 : index
    %43 = vector.load %arg10[%c0_25, %c640] : memref<432x1152xbf16, #tpu.memory_space<vmem>>, vector<432x128xbf16>
    tpu.vector_store %arg10[%c0_25, %c640], %42 {strides = array<i32>} : memref<432x1152xbf16, #tpu.memory_space<vmem>>, vector<432x128xbf16>,
    %c2_i32 = arith.constant 2 : i32
    %44 = arith.addi %1, %c2_i32 : i32
    %c0_26 = arith.constant 0 : index
    %45 = arith.index_cast %44 : i32 to index
    %c0_27 = arith.constant 0 : index
    %c0_28 = arith.constant 0 : index
    %46 = vector.load %arg2[%c0_26, %45, %c0_27, %c0_28] : memref<1x20x26x128xf32, #tpu.memory_space<vmem>>, vector<1x18x24x128xf32>
    %47 = vector.shape_cast %46 : vector<1x18x24x128xf32> to vector<18x24x128xf32>
    %48 = vector.shape_cast %47 : vector<18x24x128xf32> to vector<432x128xf32>
    %49 = arith.truncf %48 : vector<432x128xf32> to vector<432x128xbf16>
    %c0_29 = arith.constant 0 : index
    %c768 = arith.constant 768 : index
    %50 = vector.load %arg10[%c0_29, %c768] : memref<432x1152xbf16, #tpu.memory_space<vmem>>, vector<432x128xbf16>
    tpu.vector_store %arg10[%c0_29, %c768], %49 {strides = array<i32>} : memref<432x1152xbf16, #tpu.memory_space<vmem>>, vector<432x128xbf16>,
    %c2_i32_30 = arith.constant 2 : i32
    %51 = arith.addi %1, %c2_i32_30 : i32
    %c0_31 = arith.constant 0 : index
    %52 = arith.index_cast %51 : i32 to index
    %c1_32 = arith.constant 1 : index
    %c0_33 = arith.constant 0 : index
    %53 = vector.load %arg2[%c0_31, %52, %c1_32, %c0_33] : memref<1x20x26x128xf32, #tpu.memory_space<vmem>>, vector<1x18x24x128xf32>
    %54 = vector.shape_cast %53 : vector<1x18x24x128xf32> to vector<18x24x128xf32>
    %55 = vector.shape_cast %54 : vector<18x24x128xf32> to vector<432x128xf32>
    %56 = arith.truncf %55 : vector<432x128xf32> to vector<432x128xbf16>
    %c0_34 = arith.constant 0 : index
    %c896 = arith.constant 896 : index
    %57 = vector.load %arg10[%c0_34, %c896] : memref<432x1152xbf16, #tpu.memory_space<vmem>>, vector<432x128xbf16>
    tpu.vector_store %arg10[%c0_34, %c896], %56 {strides = array<i32>} : memref<432x1152xbf16, #tpu.memory_space<vmem>>, vector<432x128xbf16>,
    %c2_i32_35 = arith.constant 2 : i32
    %58 = arith.addi %1, %c2_i32_35 : i32
    %c0_36 = arith.constant 0 : index
    %59 = arith.index_cast %58 : i32 to index
    %c2_37 = arith.constant 2 : index
    %c0_38 = arith.constant 0 : index
    %60 = vector.load %arg2[%c0_36, %59, %c2_37, %c0_38] : memref<1x20x26x128xf32, #tpu.memory_space<vmem>>, vector<1x18x24x128xf32>
    %61 = vector.shape_cast %60 : vector<1x18x24x128xf32> to vector<18x24x128xf32>
    %62 = vector.shape_cast %61 : vector<18x24x128xf32> to vector<432x128xf32>
    %63 = arith.truncf %62 : vector<432x128xf32> to vector<432x128xbf16>
    %c0_39 = arith.constant 0 : index
    %c1024 = arith.constant 1024 : index
    %64 = vector.load %arg10[%c0_39, %c1024] : memref<432x1152xbf16, #tpu.memory_space<vmem>>, vector<432x128xbf16>
    tpu.vector_store %arg10[%c0_39, %c1024], %63 {strides = array<i32>} : memref<432x1152xbf16, #tpu.memory_space<vmem>>, vector<432x128xbf16>,
    %c0_40 = arith.constant 0 : index
    %c0_41 = arith.constant 0 : index
    %65 = vector.load %arg10[%c0_40, %c0_41] : memref<432x1152xbf16, #tpu.memory_space<vmem>>, vector<432x1152xbf16>
    %c0_42 = arith.constant 0 : index
    %c0_43 = arith.constant 0 : index
    %66 = vector.load %arg3[%c0_42, %c0_43] : memref<1152x128xbf16, #tpu.memory_space<vmem>>, vector<1152x128xbf16>
    %cst = arith.constant dense<0.000000e+00> : vector<432x128xf32>
    %67 = tpu.matmul %65, %66, %cst {dimension_numbers = #tpu.dot_dimension_numbers<[1], [0], [0], [1], [0, 0, 1, 1], [], []>} : vector<432x1152xbf16>, vector<1152x128xbf16>, vector<432x128xf32> -> vector<432x128xf32>
    %c0_44 = arith.constant 0 : index
    %c0_45 = arith.constant 0 : index
    %68 = vector.load %arg4[%c0_44, %c0_45] : memref<1x128xf32, #tpu.memory_space<vmem>>, vector<1x128xf32>
    %69 = vector.broadcast %68 : vector<1x128xf32> to vector<432x128xf32>
    %70 = arith.mulf %67, %69 : vector<432x128xf32>
    %c0_46 = arith.constant 0 : index
    %c0_47 = arith.constant 0 : index
    %71 = vector.load %arg5[%c0_46, %c0_47] : memref<1x128xf32, #tpu.memory_space<vmem>>, vector<1x128xf32>
    %72 = vector.broadcast %71 : vector<1x128xf32> to vector<432x128xf32>
    %73 = arith.addf %70, %72 : vector<432x128xf32>
    %cst_48 = arith.constant 0.000000e+00 : f32
    %74 = vector.broadcast %cst_48 : f32 to vector<432x128xf32>
    %75 = arith.maximumf %73, %74 : vector<432x128xf32>
    %76 = vector.shape_cast %75 : vector<432x128xf32> to vector<18x24x128xf32>
    %77 = tpu.iota {dimensions = array<i32: 0>} : vector<18x24x1xi32>
    %c1_i32_49 = arith.constant 1 : i32
    %78 = arith.subi %0, %c1_i32_49 : i32
    %79 = vector.broadcast %78 : i32 to vector<18x24x1xi32>
    %80 = arith.addi %77, %79 : vector<18x24x1xi32>
    %81 = tpu.iota {dimensions = array<i32: 1>} : vector<18x24x1xi32>
    %c1_i32_50 = arith.constant 1 : i32
    %82 = vector.broadcast %c1_i32_50 : i32 to vector<18x24x1xi32>
    %83 = arith.subi %81, %82 : vector<18x24x1xi32>
    %c0_i32_51 = arith.constant 0 : i32
    %84 = vector.broadcast %c0_i32_51 : i32 to vector<18x24x1xi32>
    %85 = arith.cmpi sge, %80, %84 : vector<18x24x1xi32>
    %c16_i32_52 = arith.constant 16 : i32
    %86 = vector.broadcast %c16_i32_52 : i32 to vector<18x24x1xi32>
    %87 = arith.cmpi slt, %80, %86 : vector<18x24x1xi32>
    %88 = arith.andi %85, %87 : vector<18x24x1xi1>
    %c0_i32_53 = arith.constant 0 : i32
    %89 = vector.broadcast %c0_i32_53 : i32 to vector<18x24x1xi32>
    %90 = arith.cmpi sge, %83, %89 : vector<18x24x1xi32>
    %91 = arith.andi %88, %90 : vector<18x24x1xi1>
    %c16_i32_54 = arith.constant 16 : i32
    %92 = vector.broadcast %c16_i32_54 : i32 to vector<18x24x1xi32>
    %93 = arith.cmpi slt, %83, %92 : vector<18x24x1xi32>
    %94 = arith.andi %91, %93 : vector<18x24x1xi1>
    %cst_55 = arith.constant 0.000000e+00 : f32
    %95 = vector.shape_cast %94 : vector<18x24x1xi1> to vector<18x24x1xi1>
    %96 = vector.broadcast %95 : vector<18x24x1xi1> to vector<18x24x128xi1>
    %97 = vector.broadcast %cst_55 : f32 to vector<18x24x128xf32>
    %98 = arith.select %96, %76, %97 : vector<18x24x128xi1>, vector<18x24x128xf32>
    %99 = vector.extract_strided_slice %98 {offsets = [0, 0, 0], sizes = [16, 16, 128], strides = [1, 1, 1]} : vector<18x24x128xf32> to vector<16x16x128xf32>
    %100 = vector.shape_cast %99 : vector<16x16x128xf32> to vector<256x128xf32>
    %101 = arith.truncf %100 : vector<256x128xf32> to vector<256x128xbf16>
    %c0_56 = arith.constant 0 : index
    %c0_57 = arith.constant 0 : index
    %102 = vector.load %arg11[%c0_56, %c0_57] : memref<256x1152xbf16, #tpu.memory_space<vmem>>, vector<256x128xbf16>
    tpu.vector_store %arg11[%c0_56, %c0_57], %101 {strides = array<i32>} : memref<256x1152xbf16, #tpu.memory_space<vmem>>, vector<256x128xbf16>,
    %103 = vector.extract_strided_slice %98 {offsets = [0, 1, 0], sizes = [16, 16, 128], strides = [1, 1, 1]} : vector<18x24x128xf32> to vector<16x16x128xf32>
    %104 = vector.shape_cast %103 : vector<16x16x128xf32> to vector<256x128xf32>
    %105 = arith.truncf %104 : vector<256x128xf32> to vector<256x128xbf16>
    %c0_58 = arith.constant 0 : index
    %c128_59 = arith.constant 128 : index
    %106 = vector.load %arg11[%c0_58, %c128_59] : memref<256x1152xbf16, #tpu.memory_space<vmem>>, vector<256x128xbf16>
    tpu.vector_store %arg11[%c0_58, %c128_59], %105 {strides = array<i32>} : memref<256x1152xbf16, #tpu.memory_space<vmem>>, vector<256x128xbf16>,
    %107 = vector.extract_strided_slice %98 {offsets = [0, 2, 0], sizes = [16, 16, 128], strides = [1, 1, 1]} : vector<18x24x128xf32> to vector<16x16x128xf32>
    %108 = vector.shape_cast %107 : vector<16x16x128xf32> to vector<256x128xf32>
    %109 = arith.truncf %108 : vector<256x128xf32> to vector<256x128xbf16>
    %c0_60 = arith.constant 0 : index
    %c256_61 = arith.constant 256 : index
    %110 = vector.load %arg11[%c0_60, %c256_61] : memref<256x1152xbf16, #tpu.memory_space<vmem>>, vector<256x128xbf16>
    tpu.vector_store %arg11[%c0_60, %c256_61], %109 {strides = array<i32>} : memref<256x1152xbf16, #tpu.memory_space<vmem>>, vector<256x128xbf16>,
    %111 = vector.extract_strided_slice %98 {offsets = [1, 0, 0], sizes = [16, 16, 128], strides = [1, 1, 1]} : vector<18x24x128xf32> to vector<16x16x128xf32>
    %112 = vector.shape_cast %111 : vector<16x16x128xf32> to vector<256x128xf32>
    %113 = arith.truncf %112 : vector<256x128xf32> to vector<256x128xbf16>
    %c0_62 = arith.constant 0 : index
    %c384_63 = arith.constant 384 : index
    %114 = vector.load %arg11[%c0_62, %c384_63] : memref<256x1152xbf16, #tpu.memory_space<vmem>>, vector<256x128xbf16>
    tpu.vector_store %arg11[%c0_62, %c384_63], %113 {strides = array<i32>} : memref<256x1152xbf16, #tpu.memory_space<vmem>>, vector<256x128xbf16>,
    %115 = vector.extract_strided_slice %98 {offsets = [1, 1, 0], sizes = [16, 16, 128], strides = [1, 1, 1]} : vector<18x24x128xf32> to vector<16x16x128xf32>
    %116 = vector.shape_cast %115 : vector<16x16x128xf32> to vector<256x128xf32>
    %117 = arith.truncf %116 : vector<256x128xf32> to vector<256x128xbf16>
    %c0_64 = arith.constant 0 : index
    %c512_65 = arith.constant 512 : index
    %118 = vector.load %arg11[%c0_64, %c512_65] : memref<256x1152xbf16, #tpu.memory_space<vmem>>, vector<256x128xbf16>
    tpu.vector_store %arg11[%c0_64, %c512_65], %117 {strides = array<i32>} : memref<256x1152xbf16, #tpu.memory_space<vmem>>, vector<256x128xbf16>,
    %119 = vector.extract_strided_slice %98 {offsets = [1, 2, 0], sizes = [16, 16, 128], strides = [1, 1, 1]} : vector<18x24x128xf32> to vector<16x16x128xf32>
    %120 = vector.shape_cast %119 : vector<16x16x128xf32> to vector<256x128xf32>
    %121 = arith.truncf %120 : vector<256x128xf32> to vector<256x128xbf16>
    %c0_66 = arith.constant 0 : index
    %c640_67 = arith.constant 640 : index
    %122 = vector.load %arg11[%c0_66, %c640_67] : memref<256x1152xbf16, #tpu.memory_space<vmem>>, vector<256x128xbf16>
    tpu.vector_store %arg11[%c0_66, %c640_67], %121 {strides = array<i32>} : memref<256x1152xbf16, #tpu.memory_space<vmem>>, vector<256x128xbf16>,
    %123 = vector.extract_strided_slice %98 {offsets = [2, 0, 0], sizes = [16, 16, 128], strides = [1, 1, 1]} : vector<18x24x128xf32> to vector<16x16x128xf32>
    %124 = vector.shape_cast %123 : vector<16x16x128xf32> to vector<256x128xf32>
    %125 = arith.truncf %124 : vector<256x128xf32> to vector<256x128xbf16>
    %c0_68 = arith.constant 0 : index
    %c768_69 = arith.constant 768 : index
    %126 = vector.load %arg11[%c0_68, %c768_69] : memref<256x1152xbf16, #tpu.memory_space<vmem>>, vector<256x128xbf16>
    tpu.vector_store %arg11[%c0_68, %c768_69], %125 {strides = array<i32>} : memref<256x1152xbf16, #tpu.memory_space<vmem>>, vector<256x128xbf16>,
    %127 = vector.extract_strided_slice %98 {offsets = [2, 1, 0], sizes = [16, 16, 128], strides = [1, 1, 1]} : vector<18x24x128xf32> to vector<16x16x128xf32>
    %128 = vector.shape_cast %127 : vector<16x16x128xf32> to vector<256x128xf32>
    %129 = arith.truncf %128 : vector<256x128xf32> to vector<256x128xbf16>
    %c0_70 = arith.constant 0 : index
    %c896_71 = arith.constant 896 : index
    %130 = vector.load %arg11[%c0_70, %c896_71] : memref<256x1152xbf16, #tpu.memory_space<vmem>>, vector<256x128xbf16>
    tpu.vector_store %arg11[%c0_70, %c896_71], %129 {strides = array<i32>} : memref<256x1152xbf16, #tpu.memory_space<vmem>>, vector<256x128xbf16>,
    %131 = vector.extract_strided_slice %98 {offsets = [2, 2, 0], sizes = [16, 16, 128], strides = [1, 1, 1]} : vector<18x24x128xf32> to vector<16x16x128xf32>
    %132 = vector.shape_cast %131 : vector<16x16x128xf32> to vector<256x128xf32>
    %133 = arith.truncf %132 : vector<256x128xf32> to vector<256x128xbf16>
    %c0_72 = arith.constant 0 : index
    %c1024_73 = arith.constant 1024 : index
    %134 = vector.load %arg11[%c0_72, %c1024_73] : memref<256x1152xbf16, #tpu.memory_space<vmem>>, vector<256x128xbf16>
    tpu.vector_store %arg11[%c0_72, %c1024_73], %133 {strides = array<i32>} : memref<256x1152xbf16, #tpu.memory_space<vmem>>, vector<256x128xbf16>,
    %c0_74 = arith.constant 0 : index
    %c0_75 = arith.constant 0 : index
    %135 = vector.load %arg11[%c0_74, %c0_75] : memref<256x1152xbf16, #tpu.memory_space<vmem>>, vector<256x1152xbf16>
    %c0_76 = arith.constant 0 : index
    %c0_77 = arith.constant 0 : index
    %136 = vector.load %arg6[%c0_76, %c0_77] : memref<1152x128xbf16, #tpu.memory_space<vmem>>, vector<1152x128xbf16>
    %cst_78 = arith.constant dense<0.000000e+00> : vector<256x128xf32>
    %137 = tpu.matmul %135, %136, %cst_78 {dimension_numbers = #tpu.dot_dimension_numbers<[1], [0], [0], [1], [0, 0, 1, 1], [], []>} : vector<256x1152xbf16>, vector<1152x128xbf16>, vector<256x128xf32> -> vector<256x128xf32>
    %c2_i32_79 = arith.constant 2 : i32
    %138 = arith.addi %1, %c2_i32_79 : i32
    %c0_80 = arith.constant 0 : index
    %139 = arith.index_cast %138 : i32 to index
    %c2_81 = arith.constant 2 : index
    %c0_82 = arith.constant 0 : index
    %140 = vector.load %arg2[%c0_80, %139, %c2_81, %c0_82] : memref<1x20x26x128xf32, #tpu.memory_space<vmem>>, vector<1x16x16x128xf32>
    %141 = vector.shape_cast %140 : vector<1x16x16x128xf32> to vector<16x16x128xf32>
    %c0_83 = arith.constant 0 : index
    %c0_84 = arith.constant 0 : index
    %142 = vector.load %arg7[%c0_83, %c0_84] : memref<1x128xf32, #tpu.memory_space<vmem>>, vector<1x128xf32>
    %143 = vector.broadcast %142 : vector<1x128xf32> to vector<256x128xf32>
    %144 = arith.mulf %137, %143 : vector<256x128xf32>
    %c0_85 = arith.constant 0 : index
    %c0_86 = arith.constant 0 : index
    %145 = vector.load %arg8[%c0_85, %c0_86] : memref<1x128xf32, #tpu.memory_space<vmem>>, vector<1x128xf32>
    %146 = vector.broadcast %145 : vector<1x128xf32> to vector<256x128xf32>
    %147 = arith.addf %144, %146 : vector<256x128xf32>
    %148 = vector.shape_cast %141 : vector<16x16x128xf32> to vector<256x128xf32>
    %149 = arith.addf %147, %148 : vector<256x128xf32>
    %cst_87 = arith.constant 0.000000e+00 : f32
    %150 = vector.broadcast %cst_87 : f32 to vector<256x128xf32>
    %151 = arith.maximumf %149, %150 : vector<256x128xf32>
    %152 = vector.shape_cast %151 : vector<256x128xf32> to vector<16x16x128xf32>
    %c0_88 = arith.constant 0 : index
    %c0_89 = arith.constant 0 : index
    %c0_90 = arith.constant 0 : index
    %c0_91 = arith.constant 0 : index
    %153 = vector.load %arg9[%c0_88, %c0_89, %c0_90, %c0_91] : memref<1x16x16x128xf32, #tpu.memory_space<vmem>>, vector<1x16x16x128xf32>
    %154 = vector.shape_cast %153 : vector<1x16x16x128xf32> to vector<16x16x128xf32>
    %155 = vector.shape_cast %152 : vector<16x16x128xf32> to vector<1x16x16x128xf32>
    tpu.vector_store %arg9[%c0_88, %c0_89, %c0_90, %c0_91], %155 {strides = array<i32>} : memref<1x16x16x128xf32, #tpu.memory_space<vmem>>, vector<1x16x16x128xf32>,
    return
  }
  func.func @transform_0(%arg0: i32, %arg1: i32) -> (i32, i32, i32, i32) {
    %c0_i32 = arith.constant 0 : i32
    %c0_i32_0 = arith.constant 0 : i32
    %c0_i32_1 = arith.constant 0 : i32
    %c0_i32_2 = arith.constant 0 : i32
    return %arg0, %c0_i32, %c0_i32_0, %c0_i32_1 : i32, i32, i32, i32
  }
  func.func @transform_1(%arg0: i32, %arg1: i32) -> (i32, i32) {
    %c0_i32 = arith.constant 0 : i32
    %c0_i32_0 = arith.constant 0 : i32
    %c0_i32_1 = arith.constant 0 : i32
    return %c0_i32, %c0_i32_0 : i32, i32
  }
  func.func @transform_2(%arg0: i32, %arg1: i32) -> (i32, i32) {
    %c0_i32 = arith.constant 0 : i32
    %c0_i32_0 = arith.constant 0 : i32
    %c0_i32_1 = arith.constant 0 : i32
    return %c0_i32, %c0_i32_0 : i32, i32
  }
  func.func @transform_3(%arg0: i32, %arg1: i32) -> (i32, i32) {
    %c0_i32 = arith.constant 0 : i32
    %c0_i32_0 = arith.constant 0 : i32
    %c0_i32_1 = arith.constant 0 : i32
    return %c0_i32, %c0_i32_0 : i32, i32
  }
  func.func @transform_4(%arg0: i32, %arg1: i32) -> (i32, i32) {
    %c0_i32 = arith.constant 0 : i32
    %c0_i32_0 = arith.constant 0 : i32
    %c0_i32_1 = arith.constant 0 : i32
    return %c0_i32, %c0_i32_0 : i32, i32
  }
  func.func @transform_5(%arg0: i32, %arg1: i32) -> (i32, i32) {
    %c0_i32 = arith.constant 0 : i32
    %c0_i32_0 = arith.constant 0 : i32
    %c0_i32_1 = arith.constant 0 : i32
    return %c0_i32, %c0_i32_0 : i32, i32
  }
  func.func @transform_6(%arg0: i32, %arg1: i32) -> (i32, i32) {
    %c0_i32 = arith.constant 0 : i32
    %c0_i32_0 = arith.constant 0 : i32
    %c0_i32_1 = arith.constant 0 : i32
    return %c0_i32, %c0_i32_0 : i32, i32
  }
  func.func @transform_7(%arg0: i32, %arg1: i32) -> (i32, i32, i32, i32) {
    %c0_i32 = arith.constant 0 : i32
    %c0_i32_0 = arith.constant 0 : i32
    %c0_i32_1 = arith.constant 0 : i32
    return %arg0, %arg1, %c0_i32, %c0_i32_0 : i32, i32, i32, i32
  }
}

module attributes {stable_mosaic.version = 11 : i64} {
  func.func @_basic_block_kernel(%arg0: i32, %arg1: i32, %arg2: memref<1x20x26x128xf32, #tpu.memory_space<vmem>>, %arg3: memref<1152x128xbf16, #tpu.memory_space<vmem>>, %arg4: memref<1x128xf32, #tpu.memory_space<vmem>>, %arg5: memref<1x128xf32, #tpu.memory_space<vmem>>, %arg6: memref<1152x128xbf16, #tpu.memory_space<vmem>>, %arg7: memref<1x128xf32, #tpu.memory_space<vmem>>, %arg8: memref<1x128xf32, #tpu.memory_space<vmem>>, %arg9: memref<1x16x16x128xf32, #tpu.memory_space<vmem>>, %arg10: memref<432x1152xbf16, #tpu.memory_space<vmem>>, %arg11: memref<256x1152xbf16, #tpu.memory_space<vmem>>) attributes {dimension_semantics = [#tpu.dimension_semantics<parallel>, #tpu.dimension_semantics<parallel>], iteration_bounds = array<i64: 2, 1>, scalar_prefetch = 0 : i64, scratch_operands = 2 : i64, tpu.core_type = #tpu.core_type<tc>, window_params = [{transform_indices = @transform_0, window_bounds = array<i64: 1, 20, 26, 128>}, {pipeline_mode = #tpu.pipeline_mode<synchronous>, transform_indices = @transform_1, window_bounds = array<i64: 1152, 128>}, {pipeline_mode = #tpu.pipeline_mode<synchronous>, transform_indices = @transform_2, window_bounds = array<i64: 1, 128>}, {pipeline_mode = #tpu.pipeline_mode<synchronous>, transform_indices = @transform_3, window_bounds = array<i64: 1, 128>}, {pipeline_mode = #tpu.pipeline_mode<synchronous>, transform_indices = @transform_4, window_bounds = array<i64: 1152, 128>}, {pipeline_mode = #tpu.pipeline_mode<synchronous>, transform_indices = @transform_5, window_bounds = array<i64: 1, 128>}, {pipeline_mode = #tpu.pipeline_mode<synchronous>, transform_indices = @transform_6, window_bounds = array<i64: 1, 128>}, {transform_indices = @transform_7, window_bounds = array<i64: 1, 16, 16, 128>}]} {
    %c16_i32 = arith.constant 16 : i32
    %0 = arith.muli %arg1, %c16_i32 : i32
    %1 = tpu.assume_multiple %0, 8 : i32
    %c0_i32 = arith.constant 0 : i32
    %2 = arith.addi %1, %c0_i32 : i32
    %c0 = arith.constant 0 : index
    %3 = arith.index_cast %2 : i32 to index
    %c0_0 = arith.constant 0 : index
    %c0_1 = arith.constant 0 : index
    %4 = vector.load %arg2[%c0, %3, %c0_0, %c0_1] : memref<1x20x26x128xf32, #tpu.memory_space<vmem>>, vector<1x18x24x128xf32>
    %5 = vector.shape_cast %4 : vector<1x18x24x128xf32> to vector<18x24x128xf32>
    %6 = vector.shape_cast %5 : vector<18x24x128xf32> to vector<432x128xf32>
    %7 = arith.truncf %6 : vector<432x128xf32> to vector<432x128xbf16>
    %c0_2 = arith.constant 0 : index
    %c0_3 = arith.constant 0 : index
    %8 = vector.load %arg10[%c0_2, %c0_3] : memref<432x1152xbf16, #tpu.memory_space<vmem>>, vector<432x128xbf16>
    tpu.vector_store %arg10[%c0_2, %c0_3], %7 {strides = array<i32>} : memref<432x1152xbf16, #tpu.memory_space<vmem>>, vector<432x128xbf16>,
    %c0_i32_4 = arith.constant 0 : i32
    %9 = arith.addi %1, %c0_i32_4 : i32
    %c0_5 = arith.constant 0 : index
    %10 = arith.index_cast %9 : i32 to index
    %c1 = arith.constant 1 : index
    %c0_6 = arith.constant 0 : index
    %11 = vector.load %arg2[%c0_5, %10, %c1, %c0_6] : memref<1x20x26x128xf32, #tpu.memory_space<vmem>>, vector<1x18x24x128xf32>
    %12 = vector.shape_cast %11 : vector<1x18x24x128xf32> to vector<18x24x128xf32>
    %13 = vector.shape_cast %12 : vector<18x24x128xf32> to vector<432x128xf32>
    %14 = arith.truncf %13 : vector<432x128xf32> to vector<432x128xbf16>
    %c0_7 = arith.constant 0 : index
    %c128 = arith.constant 128 : index
    %15 = vector.load %arg10[%c0_7, %c128] : memref<432x1152xbf16, #tpu.memory_space<vmem>>, vector<432x128xbf16>
    tpu.vector_store %arg10[%c0_7, %c128], %14 {strides = array<i32>} : memref<432x1152xbf16, #tpu.memory_space<vmem>>, vector<432x128xbf16>,
    %c0_i32_8 = arith.constant 0 : i32
    %16 = arith.addi %1, %c0_i32_8 : i32
    %c0_9 = arith.constant 0 : index
    %17 = arith.index_cast %16 : i32 to index
    %c2 = arith.constant 2 : index
    %c0_10 = arith.constant 0 : index
    %18 = vector.load %arg2[%c0_9, %17, %c2, %c0_10] : memref<1x20x26x128xf32, #tpu.memory_space<vmem>>, vector<1x18x24x128xf32>
    %19 = vector.shape_cast %18 : vector<1x18x24x128xf32> to vector<18x24x128xf32>
    %20 = vector.shape_cast %19 : vector<18x24x128xf32> to vector<432x128xf32>
    %21 = arith.truncf %20 : vector<432x128xf32> to vector<432x128xbf16>
    %c0_11 = arith.constant 0 : index
    %c256 = arith.constant 256 : index
    %22 = vector.load %arg10[%c0_11, %c256] : memref<432x1152xbf16, #tpu.memory_space<vmem>>, vector<432x128xbf16>
    tpu.vector_store %arg10[%c0_11, %c256], %21 {strides = array<i32>} : memref<432x1152xbf16, #tpu.memory_space<vmem>>, vector<432x128xbf16>,
    %c1_i32 = arith.constant 1 : i32
    %23 = arith.addi %1, %c1_i32 : i32
    %c0_12 = arith.constant 0 : index
    %24 = arith.index_cast %23 : i32 to index
    %c0_13 = arith.constant 0 : index
    %c0_14 = arith.constant 0 : index
    %25 = vector.load %arg2[%c0_12, %24, %c0_13, %c0_14] : memref<1x20x26x128xf32, #tpu.memory_space<vmem>>, vector<1x18x24x128xf32>
    %26 = vector.shape_cast %25 : vector<1x18x24x128xf32> to vector<18x24x128xf32>
    %27 = vector.shape_cast %26 : vector<18x24x128xf32> to vector<432x128xf32>
    %28 = arith.truncf %27 : vector<432x128xf32> to vector<432x128xbf16>
    %c0_15 = arith.constant 0 : index
    %c384 = arith.constant 384 : index
    %29 = vector.load %arg10[%c0_15, %c384] : memref<432x1152xbf16, #tpu.memory_space<vmem>>, vector<432x128xbf16>
    tpu.vector_store %arg10[%c0_15, %c384], %28 {strides = array<i32>} : memref<432x1152xbf16, #tpu.memory_space<vmem>>, vector<432x128xbf16>,
    %c1_i32_16 = arith.constant 1 : i32
    %30 = arith.addi %1, %c1_i32_16 : i32
    %c0_17 = arith.constant 0 : index
    %31 = arith.index_cast %30 : i32 to index
    %c1_18 = arith.constant 1 : index
    %c0_19 = arith.constant 0 : index
    %32 = vector.load %arg2[%c0_17, %31, %c1_18, %c0_19] : memref<1x20x26x128xf32, #tpu.memory_space<vmem>>, vector<1x18x24x128xf32>
    %33 = vector.shape_cast %32 : vector<1x18x24x128xf32> to vector<18x24x128xf32>
    %34 = vector.shape_cast %33 : vector<18x24x128xf32> to vector<432x128xf32>
    %35 = arith.truncf %34 : vector<432x128xf32> to vector<432x128xbf16>
    %c0_20 = arith.constant 0 : index
    %c512 = arith.constant 512 : index
    %36 = vector.load %arg10[%c0_20, %c512] : memref<432x1152xbf16, #tpu.memory_space<vmem>>, vector<432x128xbf16>
    tpu.vector_store %arg10[%c0_20, %c512], %35 {strides = array<i32>} : memref<432x1152xbf16, #tpu.memory_space<vmem>>, vector<432x128xbf16>,
    %c1_i32_21 = arith.constant 1 : i32
    %37 = arith.addi %1, %c1_i32_21 : i32
    %c0_22 = arith.constant 0 : index
    %38 = arith.index_cast %37 : i32 to index
    %c2_23 = arith.constant 2 : index
    %c0_24 = arith.constant 0 : index
    %39 = vector.load %arg2[%c0_22, %38, %c2_23, %c0_24] : memref<1x20x26x128xf32, #tpu.memory_space<vmem>>, vector<1x18x24x128xf32>
    %40 = vector.shape_cast %39 : vector<1x18x24x128xf32> to vector<18x24x128xf32>
    %41 = vector.shape_cast %40 : vector<18x24x128xf32> to vector<432x128xf32>
    %42 = arith.truncf %41 : vector<432x128xf32> to vector<432x128xbf16>
    %c0_25 = arith.constant 0 : index
    %c640 = arith.constant 640 : index
    %43 = vector.load %arg10[%c0_25, %c640] : memref<432x1152xbf16, #tpu.memory_space<vmem>>, vector<432x128xbf16>
    tpu.vector_store %arg10[%c0_25, %c640], %42 {strides = array<i32>} : memref<432x1152xbf16, #tpu.memory_space<vmem>>, vector<432x128xbf16>,
    %c2_i32 = arith.constant 2 : i32
    %44 = arith.addi %1, %c2_i32 : i32
    %c0_26 = arith.constant 0 : index
    %45 = arith.index_cast %44 : i32 to index
    %c0_27 = arith.constant 0 : index
    %c0_28 = arith.constant 0 : index
    %46 = vector.load %arg2[%c0_26, %45, %c0_27, %c0_28] : memref<1x20x26x128xf32, #tpu.memory_space<vmem>>, vector<1x18x24x128xf32>
    %47 = vector.shape_cast %46 : vector<1x18x24x128xf32> to vector<18x24x128xf32>
    %48 = vector.shape_cast %47 : vector<18x24x128xf32> to vector<432x128xf32>
    %49 = arith.truncf %48 : vector<432x128xf32> to vector<432x128xbf16>
    %c0_29 = arith.constant 0 : index
    %c768 = arith.constant 768 : index
    %50 = vector.load %arg10[%c0_29, %c768] : memref<432x1152xbf16, #tpu.memory_space<vmem>>, vector<432x128xbf16>
    tpu.vector_store %arg10[%c0_29, %c768], %49 {strides = array<i32>} : memref<432x1152xbf16, #tpu.memory_space<vmem>>, vector<432x128xbf16>,
    %c2_i32_30 = arith.constant 2 : i32
    %51 = arith.addi %1, %c2_i32_30 : i32
    %c0_31 = arith.constant 0 : index
    %52 = arith.index_cast %51 : i32 to index
    %c1_32 = arith.constant 1 : index
    %c0_33 = arith.constant 0 : index
    %53 = vector.load %arg2[%c0_31, %52, %c1_32, %c0_33] : memref<1x20x26x128xf32, #tpu.memory_space<vmem>>, vector<1x18x24x128xf32>
    %54 = vector.shape_cast %53 : vector<1x18x24x128xf32> to vector<18x24x128xf32>
    %55 = vector.shape_cast %54 : vector<18x24x128xf32> to vector<432x128xf32>
    %56 = arith.truncf %55 : vector<432x128xf32> to vector<432x128xbf16>
    %c0_34 = arith.constant 0 : index
    %c896 = arith.constant 896 : index
    %57 = vector.load %arg10[%c0_34, %c896] : memref<432x1152xbf16, #tpu.memory_space<vmem>>, vector<432x128xbf16>
    tpu.vector_store %arg10[%c0_34, %c896], %56 {strides = array<i32>} : memref<432x1152xbf16, #tpu.memory_space<vmem>>, vector<432x128xbf16>,
    %c2_i32_35 = arith.constant 2 : i32
    %58 = arith.addi %1, %c2_i32_35 : i32
    %c0_36 = arith.constant 0 : index
    %59 = arith.index_cast %58 : i32 to index
    %c2_37 = arith.constant 2 : index
    %c0_38 = arith.constant 0 : index
    %60 = vector.load %arg2[%c0_36, %59, %c2_37, %c0_38] : memref<1x20x26x128xf32, #tpu.memory_space<vmem>>, vector<1x18x24x128xf32>
    %61 = vector.shape_cast %60 : vector<1x18x24x128xf32> to vector<18x24x128xf32>
    %62 = vector.shape_cast %61 : vector<18x24x128xf32> to vector<432x128xf32>
    %63 = arith.truncf %62 : vector<432x128xf32> to vector<432x128xbf16>
    %c0_39 = arith.constant 0 : index
    %c1024 = arith.constant 1024 : index
    %64 = vector.load %arg10[%c0_39, %c1024] : memref<432x1152xbf16, #tpu.memory_space<vmem>>, vector<432x128xbf16>
    tpu.vector_store %arg10[%c0_39, %c1024], %63 {strides = array<i32>} : memref<432x1152xbf16, #tpu.memory_space<vmem>>, vector<432x128xbf16>,
    %c0_40 = arith.constant 0 : index
    %c0_41 = arith.constant 0 : index
    %65 = vector.load %arg10[%c0_40, %c0_41] : memref<432x1152xbf16, #tpu.memory_space<vmem>>, vector<432x1152xbf16>
    %c0_42 = arith.constant 0 : index
    %c0_43 = arith.constant 0 : index
    %66 = vector.load %arg3[%c0_42, %c0_43] : memref<1152x128xbf16, #tpu.memory_space<vmem>>, vector<1152x128xbf16>
    %cst = arith.constant dense<0.000000e+00> : vector<432x128xf32>
    %67 = tpu.matmul %65, %66, %cst {dimension_numbers = #tpu.dot_dimension_numbers<[1], [0], [0], [1], [0, 0, 1, 1], [], []>} : vector<432x1152xbf16>, vector<1152x128xbf16>, vector<432x128xf32> -> vector<432x128xf32>
    %c0_44 = arith.constant 0 : index
    %c0_45 = arith.constant 0 : index
    %68 = vector.load %arg4[%c0_44, %c0_45] : memref<1x128xf32, #tpu.memory_space<vmem>>, vector<1x128xf32>
    %69 = vector.broadcast %68 : vector<1x128xf32> to vector<432x128xf32>
    %70 = arith.mulf %67, %69 : vector<432x128xf32>
    %c0_46 = arith.constant 0 : index
    %c0_47 = arith.constant 0 : index
    %71 = vector.load %arg5[%c0_46, %c0_47] : memref<1x128xf32, #tpu.memory_space<vmem>>, vector<1x128xf32>
    %72 = vector.broadcast %71 : vector<1x128xf32> to vector<432x128xf32>
    %73 = arith.addf %70, %72 : vector<432x128xf32>
    %cst_48 = arith.constant 0.000000e+00 : f32
    %74 = vector.broadcast %cst_48 : f32 to vector<432x128xf32>
    %75 = arith.maximumf %73, %74 : vector<432x128xf32>
    %76 = vector.shape_cast %75 : vector<432x128xf32> to vector<18x24x128xf32>
    %77 = tpu.iota {dimensions = array<i32: 0>} : vector<18x24x1xi32>
    %c1_i32_49 = arith.constant 1 : i32
    %78 = arith.subi %0, %c1_i32_49 : i32
    %79 = vector.broadcast %78 : i32 to vector<18x24x1xi32>
    %80 = arith.addi %77, %79 : vector<18x24x1xi32>
    %81 = tpu.iota {dimensions = array<i32: 1>} : vector<18x24x1xi32>
    %c1_i32_50 = arith.constant 1 : i32
    %82 = vector.broadcast %c1_i32_50 : i32 to vector<18x24x1xi32>
    %83 = arith.subi %81, %82 : vector<18x24x1xi32>
    %c0_i32_51 = arith.constant 0 : i32
    %84 = vector.broadcast %c0_i32_51 : i32 to vector<18x24x1xi32>
    %85 = arith.cmpi sge, %80, %84 : vector<18x24x1xi32>
    %c16_i32_52 = arith.constant 16 : i32
    %86 = vector.broadcast %c16_i32_52 : i32 to vector<18x24x1xi32>
    %87 = arith.cmpi slt, %80, %86 : vector<18x24x1xi32>
    %88 = arith.andi %85, %87 : vector<18x24x1xi1>
    %c0_i32_53 = arith.constant 0 : i32
    %89 = vector.broadcast %c0_i32_53 : i32 to vector<18x24x1xi32>
    %90 = arith.cmpi sge, %83, %89 : vector<18x24x1xi32>
    %91 = arith.andi %88, %90 : vector<18x24x1xi1>
    %c16_i32_54 = arith.constant 16 : i32
    %92 = vector.broadcast %c16_i32_54 : i32 to vector<18x24x1xi32>
    %93 = arith.cmpi slt, %83, %92 : vector<18x24x1xi32>
    %94 = arith.andi %91, %93 : vector<18x24x1xi1>
    %cst_55 = arith.constant 0.000000e+00 : f32
    %95 = vector.shape_cast %94 : vector<18x24x1xi1> to vector<18x24x1xi1>
    %96 = vector.broadcast %95 : vector<18x24x1xi1> to vector<18x24x128xi1>
    %97 = vector.broadcast %cst_55 : f32 to vector<18x24x128xf32>
    %98 = arith.select %96, %76, %97 : vector<18x24x128xi1>, vector<18x24x128xf32>
    %99 = vector.extract_strided_slice %98 {offsets = [0, 0, 0], sizes = [16, 16, 128], strides = [1, 1, 1]} : vector<18x24x128xf32> to vector<16x16x128xf32>
    %100 = vector.shape_cast %99 : vector<16x16x128xf32> to vector<256x128xf32>
    %101 = arith.truncf %100 : vector<256x128xf32> to vector<256x128xbf16>
    %c0_56 = arith.constant 0 : index
    %c0_57 = arith.constant 0 : index
    %102 = vector.load %arg11[%c0_56, %c0_57] : memref<256x1152xbf16, #tpu.memory_space<vmem>>, vector<256x128xbf16>
    tpu.vector_store %arg11[%c0_56, %c0_57], %101 {strides = array<i32>} : memref<256x1152xbf16, #tpu.memory_space<vmem>>, vector<256x128xbf16>,
    %103 = vector.extract_strided_slice %98 {offsets = [0, 1, 0], sizes = [16, 16, 128], strides = [1, 1, 1]} : vector<18x24x128xf32> to vector<16x16x128xf32>
    %104 = vector.shape_cast %103 : vector<16x16x128xf32> to vector<256x128xf32>
    %105 = arith.truncf %104 : vector<256x128xf32> to vector<256x128xbf16>
    %c0_58 = arith.constant 0 : index
    %c128_59 = arith.constant 128 : index
    %106 = vector.load %arg11[%c0_58, %c128_59] : memref<256x1152xbf16, #tpu.memory_space<vmem>>, vector<256x128xbf16>
    tpu.vector_store %arg11[%c0_58, %c128_59], %105 {strides = array<i32>} : memref<256x1152xbf16, #tpu.memory_space<vmem>>, vector<256x128xbf16>,
    %107 = vector.extract_strided_slice %98 {offsets = [0, 2, 0], sizes = [16, 16, 128], strides = [1, 1, 1]} : vector<18x24x128xf32> to vector<16x16x128xf32>
    %108 = vector.shape_cast %107 : vector<16x16x128xf32> to vector<256x128xf32>
    %109 = arith.truncf %108 : vector<256x128xf32> to vector<256x128xbf16>
    %c0_60 = arith.constant 0 : index
    %c256_61 = arith.constant 256 : index
    %110 = vector.load %arg11[%c0_60, %c256_61] : memref<256x1152xbf16, #tpu.memory_space<vmem>>, vector<256x128xbf16>
    tpu.vector_store %arg11[%c0_60, %c256_61], %109 {strides = array<i32>} : memref<256x1152xbf16, #tpu.memory_space<vmem>>, vector<256x128xbf16>,
    %111 = vector.extract_strided_slice %98 {offsets = [1, 0, 0], sizes = [16, 16, 128], strides = [1, 1, 1]} : vector<18x24x128xf32> to vector<16x16x128xf32>
    %112 = vector.shape_cast %111 : vector<16x16x128xf32> to vector<256x128xf32>
    %113 = arith.truncf %112 : vector<256x128xf32> to vector<256x128xbf16>
    %c0_62 = arith.constant 0 : index
    %c384_63 = arith.constant 384 : index
    %114 = vector.load %arg11[%c0_62, %c384_63] : memref<256x1152xbf16, #tpu.memory_space<vmem>>, vector<256x128xbf16>
    tpu.vector_store %arg11[%c0_62, %c384_63], %113 {strides = array<i32>} : memref<256x1152xbf16, #tpu.memory_space<vmem>>, vector<256x128xbf16>,
    %115 = vector.extract_strided_slice %98 {offsets = [1, 1, 0], sizes = [16, 16, 128], strides = [1, 1, 1]} : vector<18x24x128xf32> to vector<16x16x128xf32>
    %116 = vector.shape_cast %115 : vector<16x16x128xf32> to vector<256x128xf32>
    %117 = arith.truncf %116 : vector<256x128xf32> to vector<256x128xbf16>
    %c0_64 = arith.constant 0 : index
    %c512_65 = arith.constant 512 : index
    %118 = vector.load %arg11[%c0_64, %c512_65] : memref<256x1152xbf16, #tpu.memory_space<vmem>>, vector<256x128xbf16>
    tpu.vector_store %arg11[%c0_64, %c512_65], %117 {strides = array<i32>} : memref<256x1152xbf16, #tpu.memory_space<vmem>>, vector<256x128xbf16>,
    %119 = vector.extract_strided_slice %98 {offsets = [1, 2, 0], sizes = [16, 16, 128], strides = [1, 1, 1]} : vector<18x24x128xf32> to vector<16x16x128xf32>
    %120 = vector.shape_cast %119 : vector<16x16x128xf32> to vector<256x128xf32>
    %121 = arith.truncf %120 : vector<256x128xf32> to vector<256x128xbf16>
    %c0_66 = arith.constant 0 : index
    %c640_67 = arith.constant 640 : index
    %122 = vector.load %arg11[%c0_66, %c640_67] : memref<256x1152xbf16, #tpu.memory_space<vmem>>, vector<256x128xbf16>
    tpu.vector_store %arg11[%c0_66, %c640_67], %121 {strides = array<i32>} : memref<256x1152xbf16, #tpu.memory_space<vmem>>, vector<256x128xbf16>,
    %123 = vector.extract_strided_slice %98 {offsets = [2, 0, 0], sizes = [16, 16, 128], strides = [1, 1, 1]} : vector<18x24x128xf32> to vector<16x16x128xf32>
    %124 = vector.shape_cast %123 : vector<16x16x128xf32> to vector<256x128xf32>
    %125 = arith.truncf %124 : vector<256x128xf32> to vector<256x128xbf16>
    %c0_68 = arith.constant 0 : index
    %c768_69 = arith.constant 768 : index
    %126 = vector.load %arg11[%c0_68, %c768_69] : memref<256x1152xbf16, #tpu.memory_space<vmem>>, vector<256x128xbf16>
    tpu.vector_store %arg11[%c0_68, %c768_69], %125 {strides = array<i32>} : memref<256x1152xbf16, #tpu.memory_space<vmem>>, vector<256x128xbf16>,
    %127 = vector.extract_strided_slice %98 {offsets = [2, 1, 0], sizes = [16, 16, 128], strides = [1, 1, 1]} : vector<18x24x128xf32> to vector<16x16x128xf32>
    %128 = vector.shape_cast %127 : vector<16x16x128xf32> to vector<256x128xf32>
    %129 = arith.truncf %128 : vector<256x128xf32> to vector<256x128xbf16>
    %c0_70 = arith.constant 0 : index
    %c896_71 = arith.constant 896 : index
    %130 = vector.load %arg11[%c0_70, %c896_71] : memref<256x1152xbf16, #tpu.memory_space<vmem>>, vector<256x128xbf16>
    tpu.vector_store %arg11[%c0_70, %c896_71], %129 {strides = array<i32>} : memref<256x1152xbf16, #tpu.memory_space<vmem>>, vector<256x128xbf16>,
    %131 = vector.extract_strided_slice %98 {offsets = [2, 2, 0], sizes = [16, 16, 128], strides = [1, 1, 1]} : vector<18x24x128xf32> to vector<16x16x128xf32>
    %132 = vector.shape_cast %131 : vector<16x16x128xf32> to vector<256x128xf32>
    %133 = arith.truncf %132 : vector<256x128xf32> to vector<256x128xbf16>
    %c0_72 = arith.constant 0 : index
    %c1024_73 = arith.constant 1024 : index
    %134 = vector.load %arg11[%c0_72, %c1024_73] : memref<256x1152xbf16, #tpu.memory_space<vmem>>, vector<256x128xbf16>
    tpu.vector_store %arg11[%c0_72, %c1024_73], %133 {strides = array<i32>} : memref<256x1152xbf16, #tpu.memory_space<vmem>>, vector<256x128xbf16>,
    %c0_74 = arith.constant 0 : index
    %c0_75 = arith.constant 0 : index
    %135 = vector.load %arg11[%c0_74, %c0_75] : memref<256x1152xbf16, #tpu.memory_space<vmem>>, vector<256x1152xbf16>
    %c0_76 = arith.constant 0 : index
    %c0_77 = arith.constant 0 : index
    %136 = vector.load %arg6[%c0_76, %c0_77] : memref<1152x128xbf16, #tpu.memory_space<vmem>>, vector<1152x128xbf16>
    %cst_78 = arith.constant dense<0.000000e+00> : vector<256x128xf32>
    %137 = tpu.matmul %135, %136, %cst_78 {dimension_numbers = #tpu.dot_dimension_numbers<[1], [0], [0], [1], [0, 0, 1, 1], [], []>} : vector<256x1152xbf16>, vector<1152x128xbf16>, vector<256x128xf32> -> vector<256x128xf32>
    %c2_i32_79 = arith.constant 2 : i32
    %138 = arith.addi %1, %c2_i32_79 : i32
    %c0_80 = arith.constant 0 : index
    %139 = arith.index_cast %138 : i32 to index
    %c2_81 = arith.constant 2 : index
    %c0_82 = arith.constant 0 : index
    %140 = vector.load %arg2[%c0_80, %139, %c2_81, %c0_82] : memref<1x20x26x128xf32, #tpu.memory_space<vmem>>, vector<1x16x16x128xf32>
    %141 = vector.shape_cast %140 : vector<1x16x16x128xf32> to vector<16x16x128xf32>
    %c0_83 = arith.constant 0 : index
    %c0_84 = arith.constant 0 : index
    %142 = vector.load %arg7[%c0_83, %c0_84] : memref<1x128xf32, #tpu.memory_space<vmem>>, vector<1x128xf32>
    %143 = vector.broadcast %142 : vector<1x128xf32> to vector<256x128xf32>
    %144 = arith.mulf %137, %143 : vector<256x128xf32>
    %c0_85 = arith.constant 0 : index
    %c0_86 = arith.constant 0 : index
    %145 = vector.load %arg8[%c0_85, %c0_86] : memref<1x128xf32, #tpu.memory_space<vmem>>, vector<1x128xf32>
    %146 = vector.broadcast %145 : vector<1x128xf32> to vector<256x128xf32>
    %147 = arith.addf %144, %146 : vector<256x128xf32>
    %148 = vector.shape_cast %141 : vector<16x16x128xf32> to vector<256x128xf32>
    %149 = arith.addf %147, %148 : vector<256x128xf32>
    %cst_87 = arith.constant 0.000000e+00 : f32
    %150 = vector.broadcast %cst_87 : f32 to vector<256x128xf32>
    %151 = arith.maximumf %149, %150 : vector<256x128xf32>
    %152 = vector.shape_cast %151 : vector<256x128xf32> to vector<16x16x128xf32>
    %c0_88 = arith.constant 0 : index
    %c0_89 = arith.constant 0 : index
    %c0_90 = arith.constant 0 : index
    %c0_91 = arith.constant 0 : index
    %153 = vector.load %arg9[%c0_88, %c0_89, %c0_90, %c0_91] : memref<1x16x16x128xf32, #tpu.memory_space<vmem>>, vector<1x16x16x128xf32>
    %154 = vector.shape_cast %153 : vector<1x16x16x128xf32> to vector<16x16x128xf32>
    %155 = vector.shape_cast %152 : vector<16x16x128xf32> to vector<1x16x16x128xf32>
    tpu.vector_store %arg9[%c0_88, %c0_89, %c0_90, %c0_91], %155 {strides = array<i32>} : memref<1x16x16x128xf32, #tpu.memory_space<vmem>>, vector<1x16x16x128xf32>,
    return
  }
  func.func @transform_0(%arg0: i32, %arg1: i32) -> (i32, i32, i32, i32) {
    %c0_i32 = arith.constant 0 : i32
    %c0_i32_0 = arith.constant 0 : i32
    %c0_i32_1 = arith.constant 0 : i32
    %c0_i32_2 = arith.constant 0 : i32
    return %arg0, %c0_i32, %c0_i32_0, %c0_i32_1 : i32, i32, i32, i32
  }
  func.func @transform_1(%arg0: i32, %arg1: i32) -> (i32, i32) {
    %c0_i32 = arith.constant 0 : i32
    %c0_i32_0 = arith.constant 0 : i32
    %c0_i32_1 = arith.constant 0 : i32
    return %c0_i32, %c0_i32_0 : i32, i32
  }
  func.func @transform_2(%arg0: i32, %arg1: i32) -> (i32, i32) {
    %c0_i32 = arith.constant 0 : i32
    %c0_i32_0 = arith.constant 0 : i32
    %c0_i32_1 = arith.constant 0 : i32
    return %c0_i32, %c0_i32_0 : i32, i32
  }
  func.func @transform_3(%arg0: i32, %arg1: i32) -> (i32, i32) {
    %c0_i32 = arith.constant 0 : i32
    %c0_i32_0 = arith.constant 0 : i32
    %c0_i32_1 = arith.constant 0 : i32
    return %c0_i32, %c0_i32_0 : i32, i32
  }
  func.func @transform_4(%arg0: i32, %arg1: i32) -> (i32, i32) {
    %c0_i32 = arith.constant 0 : i32
    %c0_i32_0 = arith.constant 0 : i32
    %c0_i32_1 = arith.constant 0 : i32
    return %c0_i32, %c0_i32_0 : i32, i32
  }
  func.func @transform_5(%arg0: i32, %arg1: i32) -> (i32, i32) {
    %c0_i32 = arith.constant 0 : i32
    %c0_i32_0 = arith.constant 0 : i32
    %c0_i32_1 = arith.constant 0 : i32
    return %c0_i32, %c0_i32_0 : i32, i32
  }
  func.func @transform_6(%arg0: i32, %arg1: i32) -> (i32, i32) {
    %c0_i32 = arith.constant 0 : i32
    %c0_i32_0 = arith.constant 0 : i32
    %c0_i32_1 = arith.constant 0 : i32
    return %c0_i32, %c0_i32_0 : i32, i32
  }
  func.func @transform_7(%arg0: i32, %arg1: i32) -> (i32, i32, i32, i32) {
    %c0_i32 = arith.constant 0 : i32
    %c0_i32_0 = arith.constant 0 : i32
    %c0_i32_1 = arith.constant 0 : i32
    return %arg0, %arg1, %c0_i32, %c0_i32_0 : i32, i32, i32, i32
  }
}

</mosaic_0001>

<bundles_post_ra>
// kernel: basic_block_forward.1
= control target key start
LH: loop header
LB: loop body
LE: loop exit
PB: predicated region body
PF: predicated region fallthrough
CT: control target
= control target key end

     0   :  { %s11344_s0 = inlined_call_operand.hbm [shape: f32[2,20,26,128], index: 0, kind: input, shape index: {}]   ;;  %s11345_s1 = inlined_call_operand.hbm [shape: bf16[1152,128], index: 1, kind: input, shape index: {}]   ;;  %s11346_s2 = inlined_call_operand.hbm [shape: f32[1,128], index: 2, kind: input, shape index: {}]   ;;  %s11347_s3 = inlined_call_operand.hbm [shape: f32[1,128], index: 3, kind: input, shape index: {}]   ;;  %s11348_s4 = inlined_call_operand.hbm [shape: bf16[1152,128], index: 4, kind: input, shape index: {}]   ;;  %s11349_s5 = inlined_call_operand.hbm [shape: f32[1,128], index: 5, kind: input, shape index: {}]   ;;  %s11350_s6 = inlined_call_operand.hbm [shape: f32[1,128], index: 6, kind: input, shape index: {}]   ;;  %s11351_s7 = inlined_call_operand.hbm [shape: f32[2,16,16,128], index: 7, kind: output, shape index: {}]  }
   0x1   :  { %11394 = sst [smem:[#allocation56_spill]] %s11345_s1 }
   0x2   :  { %11395 = sst [smem:[#allocation57_spill]] %s11346_s2 }
   0x3   :  { %11396 = sst [smem:[#allocation58_spill]] %s11351_s7 }
   0x4   :  { %12 = vsyncpa [#allocation5], 0 }
   0x5   :  { %14 = vsyncpa [#allocation5 + $0x1], 0 }
   0x6   :  { %15 = vsyncpa [#allocation8], 0 }
   0x7   :  { %16 = vsyncpa [#allocation11], 0 }
   0x8   :  { %17 = vsyncpa [#allocation14], 0 }
   0x9   :  { %18 = vsyncpa [#allocation6], 0 }
   0xa   :  { %20 = vsyncpa [#allocation6 + $0x1], 0  ;;  %s8755_s24 = smov 0   ;;  %s8757_s25 = smov 0  }
   0xb   :  { %s8759_s26 = smov 0   ;;  %s8761_s27 = smov 0  }
   0xc   :  { %s8763_s28 = smov 0   ;;  %s8765_s29 = smov 0  }
   0xd LB: > { %s11352_s30 = sadd.s32 4294967295, %s8694_s29   ;;  %p6376_p0 = scmp.ge.s32.totalorder %s8694_s29, 1  ;;  %s8694_s29 = sphi %s8765_s29, %s26_s29   ;;  %s8690_s28 = sphi %s8763_s28, %s11509_s28   ;;  %s8686_s27 = sphi %s8761_s27, %s11508_s27   ;;  %s8682_s26 = sphi %s8759_s26, %s11507_s26   ;;  %s8678_s25 = sphi %s8757_s25, %s11506_s25   ;;  %s8674_s24 = sphi %s8755_s24, %s11505_s24  }
   0xe   : > { %p8789_p1 = scmp.eq.s32.totalorder %s11352_s30, 0  ;;  %p223_p2 = scmp.lt.s32.totalorder %s8694_s29, 3 }
   0xf   : > { %s8696_s10 = smov [#allocation7]   ;;  %s8697_s13 = smov [#allocation10]  }
  0x10   : > { %s11397_s8 = scalar_select %p8789_p1, 1, 0 }
  0x11   : > { %p8794_p3 = pnand %p6376_p0, %p223_p2  ;;  %s235_s11 = sshll.u32 %s8696_s10, 4  ;;  %s8798_s11 = int_to_ptr.vmem [resolvable:$true] %s235_s11 }
  0x12   : > { %s260_s14 = sshll.u32 %s8697_s13, 4  ;;  %s8698_s15 = smov [#allocation13]   ;;  %s8809_s14 = int_to_ptr.vmem [resolvable:$true] %s260_s14 }
  0x13   : > { %s11398_s9 = scalar_select %p8794_p3, 1, 0 }
  0x14   : > { %p8134_p4 = pneg %p8794_p3  ;;  %s8811_s16 = sshll.u32 %s8698_s15, 4  ;;  %s285_s16 = int_to_ptr.vmem [resolvable:$true] %s8811_s16 }
  0x15   : > { %s11400_s1 = sld [smem:[#allocation56_spill]] }
  0x16   : > { %p8805_p6 = pnand %p8134_p4, %p8789_p1 }
  0x18   : > { %p8821_p8 = pneg %p8805_p6 }
  0x1b   : > { %s8402_s19 = scalar_lea.hbm %s11400_s1, 9216 }
  0x1c   : > { %p8403_p7 = scmp.ne.s32.totalorder %s11400_s1, %s8402_s19  ;;  %p8409_p11 = scmp.lt.u32.totalorder %s8402_s19, %s11400_s1 }
  0x1e   : > { %p8405_p9 = pnand %p8821_p8, %p8403_p7 }
  0x20   : > { %p8406_p10 = pneg %p8405_p9 }
  0x22   : > { %p8411_p12 = pnand %p8409_p11, %p8406_p10 }
  0x24   : > { %8414 = shalt.err (!%p8411_p12)
}
  0x25   : > { %s8415_s13 = scalar_lea.vmem %s8798_s11, 9216  ;;  %p8423_p4 = scmp.lt.s32.totalorder %s8798_s11, %s8798_s11 }
  0x26   : > { %p8416_p13 = scmp.ne.s32.totalorder %s8798_s11, %s8415_s13  ;;  %p8424_p5 = scmp.lt.s32.totalorder %s8415_s13, %s8415_s13 }
  0x28   : > { %p8418_p0 = pnand %p8416_p13, %p8821_p8  ;;  %p8425_p7 = por %p8424_p5, %p8423_p4 }
  0x2a   : > { %p8419_p2 = pneg %p8418_p0 }
  0x2c   : > { %p8426_p9 = pnand %p8425_p7, %p8419_p2 }
  0x2e   : > { %8429 = shalt.err (!%p8426_p9)
}
  0x2f   : > { %s11357_s15 = smov 64   ;;  %s8700_s17 = smov 4  }
  0x30   : > { %8137 = dma.hbm_to_vmem [thread:$0]  (!%p8805_p6), %s11400_s1, 9216, %s8798_s11, [#allocation8], %s11357_s15, %s11357_s15, %s8700_s17  }
  0x31   : > { %s8430_s23 = scalar_lea.hbm %s11347_s3, 16 }
  0x32   : > { %p8431_p5 = scmp.ne.s32.totalorder %s11347_s3, %s8430_s23  ;;  %p8437_p12 = scmp.lt.u32.totalorder %s8430_s23, %s11347_s3 }
  0x34   : > { %p8433_p10 = pnand %p8431_p5, %p8821_p8 }
  0x36   : > { %p8434_p11 = pneg %p8433_p10 }
  0x38   : > { %p8439_p13 = pnand %p8437_p12, %p8434_p11 }
  0x3a   : > { %8442 = shalt.err (!%p8439_p13)
}
  0x3b   : > { %s8443_s11 = scalar_lea.vmem %s8809_s14, 16  ;;  %s8450_s18 = scalar_lea.vmem %s8809_s14, 32 }
  0x3c   : > { %p8444_p0 = scmp.ne.s32.totalorder %s8809_s14, %s8443_s11  ;;  %p8451_p7 = scmp.lt.s32.totalorder %s8809_s14, %s8809_s14 }
  0x3d   : > { %p8452_p9 = scmp.lt.s32.totalorder %s8450_s18, %s8443_s11 }
  0x3e   : > { %p8446_p2 = pnand %p8444_p0, %p8821_p8 }
  0x3f   : > { %p8453_p5 = por %p8452_p9, %p8451_p7 }
  0x40   : > { %p8447_p4 = pneg %p8446_p2 }
  0x42   : > { %p8454_p10 = pnand %p8453_p5, %p8447_p4 }
  0x44   : > { %8457 = shalt.err (!%p8454_p10)
}
  0x45   : > { %8143 = dma.hbm_to_vmem [thread:$0]  (!%p8805_p6), %s11347_s3, 16, %s8809_s14, [#allocation11]  }
  0x46   : > { %s8458_s21 = scalar_lea.hbm %s11349_s5, 16 }
  0x47   : > { %p8459_p11 = scmp.ne.s32.totalorder %s11349_s5, %s8458_s21  ;;  %p8465_p0 = scmp.lt.u32.totalorder %s8458_s21, %s11349_s5 }
  0x49   : > { %p8461_p12 = pnand %p8459_p11, %p8821_p8 }
  0x4b   : > { %p8462_p13 = pneg %p8461_p12 }
  0x4d   : > { %p8467_p2 = pnand %p8465_p0, %p8462_p13 }
  0x4f   : > { %8470 = shalt.err (!%p8467_p2)
}
  0x50   : > { %s8471_s18 = scalar_lea.vmem %s285_s16, 16  ;;  %s8478_s14 = scalar_lea.vmem %s285_s16, 32 }
  0x51   : > { %p8472_p4 = scmp.ne.s32.totalorder %s285_s16, %s8471_s18  ;;  %p8479_p5 = scmp.lt.s32.totalorder %s285_s16, %s285_s16 }
  0x52   : > { %p8480_p10 = scmp.lt.s32.totalorder %s8478_s14, %s8471_s18 }
  0x53   : > { %p8474_p7 = pnand %p8472_p4, %p8821_p8 }
  0x54   : > { %p8481_p3 = por %p8480_p10, %p8479_p5 }
  0x55   : > { %p8475_p9 = pneg %p8474_p7 }
  0x57   : > { %p8482_p1 = pnand %p8481_p3, %p8475_p9 }
  0x59   : > { %8485 = shalt.err (!%p8482_p1)
}
  0x5a   : > { %8149 = dma.hbm_to_vmem [thread:$0]  (!%p8805_p6), %s11349_s5, 16, %s285_s16, [#allocation14]  }
  0x5b   : > { %s8701_s19 = smov [#allocation9]   ;;  %s8702_s21 = smov [#allocation12]  }
  0x5c   : > { %s249_s20 = sshll.u32 %s8701_s19, 4  ;;  %s270_s23 = sshll.u32 %s8702_s21, 4  ;;  %s250_s20 = int_to_ptr.vmem [resolvable:$true] %s249_s20  ;;  %s271_s23 = int_to_ptr.vmem [resolvable:$true] %s270_s23 }
  0x5d   : > { %s11402_s2 = sld [smem:[#allocation57_spill]] }
  0x63   : > { %s8486_s11 = scalar_lea.hbm %s11402_s2, 16 }
  0x64   : > { %p8487_p1 = scmp.ne.s32.totalorder %s11402_s2, %s8486_s11  ;;  %p8493_p12 = scmp.lt.u32.totalorder %s8486_s11, %s11402_s2 }
  0x66   : > { %p8489_p3 = pnand %p8487_p1, %p8821_p8 }
  0x68   : > { %p8490_p11 = pneg %p8489_p3 }
  0x6a   : > { %p8495_p13 = pnand %p8493_p12, %p8490_p11 }
  0x6c   : > { %8498 = shalt.err (!%p8495_p13)
}
  0x6d   : > { %s8499_s16 = scalar_lea.vmem %s250_s20, 16  ;;  %s8506_s30 = scalar_lea.vmem %s250_s20, 32 }
  0x6e   : > { %p8500_p0 = scmp.ne.s32.totalorder %s250_s20, %s8499_s16  ;;  %p8507_p7 = scmp.lt.s32.totalorder %s250_s20, %s250_s20 }
  0x6f   : > { %p8508_p9 = scmp.lt.s32.totalorder %s8506_s30, %s8499_s16 }
  0x70   : > { %p8502_p2 = pnand %p8500_p0, %p8821_p8 }
  0x71   : > { %p8509_p5 = por %p8508_p9, %p8507_p7 }
  0x72   : > { %p8503_p4 = pneg %p8502_p2 }
  0x74   : > { %p8510_p10 = pnand %p8509_p5, %p8503_p4 }
  0x76   : > { %8513 = shalt.err (!%p8510_p10)
}
  0x77   : > { %8140 = dma.hbm_to_vmem [thread:$0]  (!%p8805_p6), %s11402_s2, 16, %s250_s20, [#allocation8]  }
  0x78   : > { %s8514_s13 = scalar_lea.hbm %s11348_s4, 9216 }
  0x79   : > { %p8515_p1 = scmp.ne.s32.totalorder %s11348_s4, %s8514_s13  ;;  %p8521_p12 = scmp.lt.u32.totalorder %s8514_s13, %s11348_s4 }
  0x7b   : > { %p8517_p3 = pnand %p8515_p1, %p8821_p8 }
  0x7d   : > { %p8518_p11 = pneg %p8517_p3 }
  0x7f   : > { %p8523_p13 = pnand %p8521_p12, %p8518_p11 }
  0x81   : > { %8526 = shalt.err (!%p8523_p13)
}
  0x82   : > { %s8527_s16 = scalar_lea.vmem %s271_s23, 9216  ;;  %p8535_p7 = scmp.lt.s32.totalorder %s271_s23, %s271_s23 }
  0x83   : > { %p8528_p0 = scmp.ne.s32.totalorder %s271_s23, %s8527_s16  ;;  %p8536_p9 = scmp.lt.s32.totalorder %s8527_s16, %s8527_s16 }
  0x85   : > { %p8530_p2 = pnand %p8528_p0, %p8821_p8  ;;  %p8537_p5 = por %p8536_p9, %p8535_p7 }
  0x87   : > { %p8531_p4 = pneg %p8530_p2 }
  0x89   : > { %p8538_p10 = pnand %p8537_p5, %p8531_p4 }
  0x8b   : > { %8541 = shalt.err (!%p8538_p10)
}
  0x8c   : > { %s11403_s20 = smov 64   ;;  %s8703_s21 = smov [#allocation15]  }
  0x8d   : > { %8146 = dma.hbm_to_vmem [thread:$0]  (!%p8805_p6), %s11348_s4, 9216, %s271_s23, [#allocation11], %s11403_s20, %s11403_s20, %s8700_s17  }
  0x8e   : > { %s295_s15 = sshll.u32 %s8703_s21, 4  ;;  %s8542_s11 = scalar_lea.hbm %s11350_s6, 16  ;;  %s296_s15 = int_to_ptr.vmem [resolvable:$true] %s295_s15 }
  0x8f   : > { %p8543_p1 = scmp.ne.s32.totalorder %s11350_s6, %s8542_s11  ;;  %p8549_p12 = scmp.lt.u32.totalorder %s8542_s11, %s11350_s6 }
  0x91   : > { %p8545_p3 = pnand %p8543_p1, %p8821_p8 }
  0x93   : > { %p8546_p11 = pneg %p8545_p3 }
  0x95   : > { %p8551_p13 = pnand %p8549_p12, %p8546_p11 }
  0x97   : > { %8554 = shalt.err (!%p8551_p13)
}
  0x98   : > { %s8555_s17 = scalar_lea.vmem %s296_s15, 16  ;;  %s8562_s23 = scalar_lea.vmem %s296_s15, 32 }
  0x99   : > { %p8556_p0 = scmp.ne.s32.totalorder %s296_s15, %s8555_s17  ;;  %p8563_p7 = scmp.lt.s32.totalorder %s296_s15, %s296_s15 }
  0x9a   : > { %p8564_p9 = scmp.lt.s32.totalorder %s8562_s23, %s8555_s17 }
  0x9b   : > { %p8558_p2 = pnand %p8556_p0, %p8821_p8 }
  0x9c   : > { %p8565_p5 = por %p8564_p9, %p8563_p7 }
  0x9d   : > { %p8559_p4 = pneg %p8558_p2 }
  0x9f   : > { %p8566_p10 = pnand %p8565_p5, %p8559_p4 }
  0xa1   : > { %8569 = shalt.err (!%p8566_p10)
}
  0xa2   : > { %8152 = dma.hbm_to_vmem [thread:$0]  (!%p8805_p6), %s11350_s6, 16, %s296_s15, [#allocation14]  }
  0xa3   : > { %s6375_s22 = sadd.s32 4294967294, %s8694_s29   ;;  %s38_s19 = sadd.s32 1, %s8690_s28 }
  0xa4   : > { %p40_p8 = scmp.ge.s32.totalorder %s38_s19, 2  ;;  %s45_s12 = sadd.s32 1, %s8682_s26 }
  0xa5   : > { %p52_p1 = scmp.ne.s32.totalorder %s8682_s26, %s8678_s25  ;;  %p53_p3 = scmp.eq.s32.totalorder %s8694_s29, 0 }
  0xa6   : > { %s11511_s19 = smov (%p40_p8, %s38_s19), 0  ;;  %p58_p12 = scmp.ne.s32.totalorder %s8678_s25, %s8674_s24 }
  0xa7   : > { %p8953_p11 = por %p53_p3, %p52_p1  ;;  %s42_s15 = ssub.s32 %s8690_s28, %s11511_s19 }
  0xa8   : > { %s11405_s10 = sadd.s32 4294967295, %s8694_s29   ;;  %p43_p13 = scmp.eq.s32.totalorder %s42_s15, 0 }
  0xa9   : > { %p210_p6 = scmp.eq.s32.totalorder %s11405_s10, 1  ;;  %p11406_p0 = scmp.ne.s32.totalorder %s11397_s8, 0 }
  0xaa   : > { %p216_p7 = scmp.eq.s32.totalorder %s6375_s22, 1  ;;  %p8167_p5 = scmp.lt.s32.totalorder %s8694_s29, 2 }
  0xab   : > { %p8965_p2 = por %p11406_p0, %p58_p12  ;;  %p8969_p4 = por %p210_p6, %p52_p1 }
  0xac   : > { %s8974_s18 = scalar_select %p43_p13, %s8682_s26, %s45_s12  }
  0xad   : > { %s11408_s11 = scalar_select %p8969_p4, 1, 0 }
  0xae   : > { %p8976_p9 = por %p216_p7, %p58_p12  ;;  %s306_s7 = sand.u32 1, %s8682_s26  }
  0xaf   : > { %s8104_s16 = smul.u32 10240, %s8690_s28  ;;  %p8990_p10 = pnand %p8167_p5, %p8953_p11 }
  0xb0   : > { %s11409_s14 = scalar_select %p8976_p9, 1, 0 }
  0xb1   : > { %s8103_s17 = smul.u32 640, %s306_s7  ;;  %s8986_s30 = scalar_lea.hbm %s11344_s0, %s8104_s16 }
  0xb2   : > { %s8996_s10 = scalar_lea.sflag [#allocation5], %s306_s7  ;;  %s8570_s23 = scalar_lea.hbm %s8986_s30, 10240 }
  0xb3   : > { %s310_s12 = scalar_lea.vmem [#allocation4], %s8103_s17  ;;  %p8571_p8 = scmp.ne.s32.totalorder %s8986_s30, %s8570_s23 }
  0xb4   : > { %s317_s15 = sshll.u32 %s310_s12, 4  ;;  %p8572_p1 = pneg %p8990_p10  ;;  %s8994_s15 = int_to_ptr.vmem [resolvable:$true] %s317_s15 }
  0xb5   : > { %s8575_s20 = scalar_lea.hbm %s11344_s0, 20480  ;;  %p8576_p11 = scmp.lt.u32.totalorder %s8986_s30, %s11344_s0 }
  0xb6   : > { %p8573_p3 = pnand %p8572_p1, %p8571_p8  ;;  %p8577_p6 = scmp.lt.u32.totalorder %s8575_s20, %s8570_s23 }
  0xb7   : > { %p8579_p0 = scmp.lt.u32.totalorder %s8570_s23, %s8986_s30 }
  0xb8   : > { %p8574_p12 = pneg %p8573_p3  ;;  %p8578_p13 = por %p8577_p6, %p8576_p11 }
  0xba   : > { %p8580_p7 = por %p8579_p0, %p8578_p13 }
  0xbc   : > { %p8581_p5 = pnand %p8580_p7, %p8574_p12 }
  0xbe   : > { %8584 = shalt.err (!%p8581_p5)
}
  0xbf   : > { %s8585_s7 = scalar_lea.vmem %s8994_s15, 10240  ;;  %s8704_s17 = smov [#allocation4]  }
  0xc0   : > { %p8586_p8 = scmp.ne.s32.totalorder %s8994_s15, %s8585_s7  ;;  %s8590_s12 = sshll.u32 %s8704_s17, 4  ;;  %s8591_s12 = int_to_ptr.vmem [resolvable:$false] %s8590_s12 }
  0xc1   : > { %s8592_s1 = scalar_lea.vmem %s8591_s12, 20480  ;;  %p8593_p4 = scmp.lt.s32.totalorder %s8994_s15, %s8591_s12 }
  0xc2   : > { %p8588_p3 = pnand %p8586_p8, %p8572_p1  ;;  %p8594_p11 = scmp.lt.s32.totalorder %s8592_s1, %s8585_s7 }
  0xc4   : > { %p8589_p9 = pneg %p8588_p3  ;;  %p8595_p6 = por %p8594_p11, %p8593_p4 }
  0xc6   : > { %p8596_p13 = pnand %p8595_p6, %p8589_p9 }
  0xc8   : > { %8599 = shalt.err (!%p8596_p13)
}
  0xc9   : > { %s8705_s2 = smov 128   ;;  %s8706_s23 = smov 8  }
  0xca   : > { %8156 = dma.hbm_to_vmem [thread:$0]  (!%p8990_p10), %s8986_s30, 10240, %s8994_s15, %s8996_s10, %s8705_s2, %s8705_s2, %s8706_s23  }
  0xcb   : > { %p11411_p1 = scmp.ne.s32.totalorder %s11398_s9, 0 }
  0xcd   : > { %329 = sbr.rel (%p11411_p1) target bundleno = 2006 (0x7d6), region = 48 }
  0xd4   : > { %s9027_s21 = sand.u32 1, %s8678_s25  }
  0xd5   : > { %s8105_s16 = smul.u32 640, %s9027_s21  ;;  %s332_s20 = scalar_lea.sflag [#allocation5], %s9027_s21 }
  0xd7   : > { %s9031_s7 = scalar_lea.vmem [#allocation4], %s8105_s16 }
  0xd8   : > { %8653 = dma.done.wait (%p8965_p2), %s332_s20, 10240  }
  0xd9   : > { %8655 = vsyncadd (%p8965_p2), %s332_s20, 4294957056  ;;  %p11412_p4 = scmp.ne.s32.totalorder %s11397_s8, 0 }
  0xdb   : > { %8657 = dma.done.wait (%p11412_p4), [#allocation8], 9232  }
  0xdc   : > { %8659 = vsyncadd (%p11412_p4), [#allocation8], 4294958064 }
  0xdd   : > { %8661 = dma.done.wait (%p11412_p4), [#allocation11], 9232  }
  0xde   : > { %8663 = vsyncadd (%p11412_p4), [#allocation11], 4294958064 }
  0xdf   : > { %8665 = dma.done.wait (%p11412_p4), [#allocation14], 32  }
  0xe0   : > { %8667 = vsyncadd (%p11412_p4), [#allocation14], 4294967264  ;;  %v8707_v0 = vmov 0   ;;  %v8240_v1 = vld [vmem:[#allocation7 + $0x80] sm:$0xff]   ;;  %v8241_v2 = vld [vmem:[#allocation7 + $0x88] sm:$0xff]   ;;  %vm8709_vm0 = vmmov 0  }
  0xe1   : > { %2441 = vmatprep.subr.bf16.mxu0 %v8707_v0  ;;  %2192 = vmatprep.subr.bf16.mxu1 %v8707_v0  ;;  %v8242_v3 = vld [vmem:[#allocation7 + $0x90] sm:$0xff]   ;;  %v8243_v4 = vld [vmem:[#allocation7 + $0x98] sm:$0xff]   ;;  %v8244_v5 = vld [vmem:[#allocation7 + $0xa0] sm:$0xff]   ;;  %vm4049_vm3 = vcmask 1046528   ;;  %vm4194_vm4 = vcmask 1045504   ;;  %vm8711_vm5 = vmmov 1  }
  0xe2   : > { %2442 = vmatpush1.bf16.msra.mxu0 %v8240_v1  ;;  %v6393_v6 = vld [vmem:[%s9031_s7 + $0x20] sm:$0xff]  ;;  %v6394_v7 = vld [vmem:[%s9031_s7 + $0x28] sm:$0xff]  ;;  %v8246_v10 = vld [vmem:[#allocation7 + $0xb0] sm:$0xff]   ;;  %s6392_s8 = sshll.u32 %s9027_s21, 8  ;;  %s6905_s13 = sshll.u32 %s8686_s27, 12 }
  0xe3   : > { %2443 = vmatprep.subr.bf16.mxu0 %v8707_v0  ;;  %v776_v8 = vpack.c.bf16 %v6394_v7, %v6393_v6  ;;  %v8245_v9 = vld [vmem:[#allocation7 + $0xa8] sm:$0xff]   ;;  %v8247_v11 = vld [vmem:[#allocation7 + $0xb8] sm:$0xff]   ;;  %v8248_v12 = vld [vmem:[#allocation7 + $0xc0] sm:$0xff]   ;;  %s11144_s9 = scalar_lea.vmem [#allocation16], %s6392_s8  ;;  %s11501_s10 = sld [smem:[#allocation58_spill]] }
  0xe4   : > { %v8249_v13 = vld [vmem:[#allocation7 + $0xc8] sm:$0xff]   ;;  %v8250_v14 = vld [vmem:[#allocation7 + $0xd0] sm:$0xff]   ;;  %v8251_v15 = vld [vmem:[#allocation7 + $0xd8] sm:$0xff]   ;;  %s6223_s30 = sshll.u32 %s11144_s9, 4  ;;  %s6207_s27 = scalar_lea.sflag [#allocation6], %s9027_s21  ;;  %s11292_s30 = int_to_ptr.vmem [resolvable:$true] %s6223_s30 }
  0xe5   : > { %2473 = vmatprep.mubr.bf16.mxu0 %v776_v8  ;;  %v8252_v16 = vld [vmem:[#allocation7 + $0xe0] sm:$0xff]   ;;  %v8253_v17 = vld [vmem:[#allocation7 + $0xe8] sm:$0xff]   ;;  %v8254_v18 = vld [vmem:[#allocation7 + $0xf0] sm:$0xff]   ;;  %s8600_s12 = scalar_lea.vmem %s11292_s30, 4096  ;;  %p11502_p9 = scmp.ne.s32.totalorder %s11408_s11, 0 }
  0xe6   : > { %2444 = vmatpush1.bf16.msra.mxu0 %v8241_v2  ;;  %v8255_v19 = vld [vmem:[#allocation7 + $0xf8] sm:$0xff]   ;;  %v611_v20 = vld [vmem:[%s9031_s7 + $0x2] sm:$0xff]  ;;  %v612_v21 = vld [vmem:[%s9031_s7 + $0xa] sm:$0xff]  ;;  %p8601_p2 = scmp.ne.s32.totalorder %s11292_s30, %s8600_s12  ;;  %s8712_s1 = smov [#allocation16]  }
  0xe7   : > { %2445 = vmatprep.subr.bf16.mxu0 %v8707_v0  ;;  %v6395_v22 = vld [vmem:[%s9031_s7 + $0x30] sm:$0xff]  ;;  %v6396_v23 = vld [vmem:[%s9031_s7 + $0x40] sm:$0xff]  ;;  %v665_v25 = vpack.c.bf16 %v612_v21, %v611_v20  ;;  %v8257_v29 = vld [vmem:[#allocation7 + $0x108] sm:$0xff]   ;;  %s8604_s2 = sshll.u32 %s8712_s1, 4  ;;  %s8605_s2 = int_to_ptr.vmem [resolvable:$false] %s8604_s2 }
  0xe8   : > { %v8256_v24 = vld [vmem:[#allocation7 + $0x100] sm:$0xff]   ;;  %v777_v26 = vpack.c.bf16 %v6396_v23, %v6395_v22  ;;  %v613_v27 = vld [vmem:[%s9031_s7 + $0x12] sm:$0xff]  ;;  %v6397_v30 = vld [vmem:[%s9031_s7 + $0x48] sm:$0xff]  ;;  %p8602_p10 = pnand %p8601_p2, %p11502_p9  ;;  %s8606_s23 = scalar_lea.vmem %s8605_s2, 8192 }
  0xe9   : > { %v9075_v28 = vld [vmem:[%s9031_s7 + $0x22] sm:$0xff]  ;;  %v6398_v31 = vld [vmem:[%s9031_s7 + $0x50] sm:$0xff]  ;;  %v8259_v39 = vld [vmem:[#allocation7 + $0x118] sm:$0xff]   ;;  %s11290_s17 = scalar_lea.hbm %s11501_s10, %s6905_s13  ;;  %p8607_p0 = scmp.lt.s32.totalorder %s11292_s30, %s8605_s2 }
  0xea   : > { %2446 = vmatpush1.bf16.msra.mxu0 %v8242_v3  ;;  %v8258_v32 = vld [vmem:[#allocation7 + $0x110] sm:$0xff]   ;;  %v666_v33 = vpack.c.bf16 %v9075_v28, %v613_v27  ;;  %v778_v34 = vpack.c.bf16 %v6398_v31, %v6397_v30  ;;  %v6399_v37 = vld [vmem:[%s9031_s7 + $0x60] sm:$0xff]  ;;  %v6400_v38 = vld [vmem:[%s9031_s7 + $0x68] sm:$0xff]  ;;  %p8603_p12 = pneg %p8602_p10  ;;  %p8608_p7 = scmp.lt.s32.totalorder %s8606_s23, %s8600_s12 }
  0xeb   : > { %2447 = vmatprep.subr.bf16.mxu0 %v8707_v0  ;;  %v9083_v35 = vld [vmem:[%s9031_s7 + $0x2a] sm:$0xff]  ;;  %v9086_v36 = vld [vmem:[%s9031_s7 + $0x32] sm:$0xff]  ;;  %v8260_v40 = vld [vmem:[#allocation7 + $0x120] sm:$0xff]   ;;  %v779_v42 = vpack.c.bf16 %v6400_v38, %v6399_v37 }
  0xec   : > { %v667_v41 = vpack.c.bf16 %v9086_v36, %v9083_v35  ;;  %v9095_v43 = vld [vmem:[%s9031_s7 + $0x42] sm:$0xff]  ;;  %v9098_v44 = vld [vmem:[%s9031_s7 + $0x4a] sm:$0xff]  ;;  %v9107_v51 = vld [vmem:[%s9031_s7 + $0x52] sm:$0xff]  ;;  %p8609_p5 = por %p8608_p7, %p8607_p0 }
  0xed   : > { %v6401_v45 = vld [vmem:[%s9031_s7 + $0x70] sm:$0xff]  ;;  %v6402_v46 = vld [vmem:[%s9031_s7 + $0x80] sm:$0xff]  ;;  %v8261_v47 = vld [vmem:[#allocation7 + $0x128] sm:$0xff]   ;;  %v668_v49 = vpack.c.bf16 %v9098_v44, %v9095_v43 }
  0xee   : > { %2448 = vmatpush1.bf16.msra.mxu0 %v8243_v4  ;;  %v8262_v48 = vld [vmem:[#allocation7 + $0x130] sm:$0xff]   ;;  %v780_v50 = vpack.c.bf16 %v6402_v46, %v6401_v45  ;;  %v9110_v52 = vld [vmem:[%s9031_s7 + $0x62] sm:$0xff]  ;;  %v8263_v55 = vld [vmem:[#allocation7 + $0x138] sm:$0xff]   ;;  %p8610_p8 = pnand %p8609_p5, %p8603_p12 }
  0xef   : > { %2449 = vmatprep.subr.bf16.mxu0 %v8707_v0  ;;  %v6403_v53 = vld [vmem:[%s9031_s7 + $0x88] sm:$0xff]  ;;  %v6404_v54 = vld [vmem:[%s9031_s7 + $0x90] sm:$0xff]  ;;  %v8264_v56 = vld [vmem:[#allocation7 + $0x140] sm:$0xff]   ;;  %v669_v57 = vpack.c.bf16 %v9110_v52, %v9107_v51 }
  0xf0   : > { %v781_v58 = vpack.c.bf16 %v6404_v54, %v6403_v53  ;;  %v9119_v59 = vld [vmem:[%s9031_s7 + $0x6a] sm:$0xff]  ;;  %v9122_v60 = vld [vmem:[%s9031_s7 + $0x72] sm:$0xff]  ;;  %v6405_v61 = vld [vmem:[%s9031_s7 + $0xa0] sm:$0xff] }
  0xf1   : > { %v6406_v62 = vld [vmem:[%s9031_s7 + $0xa8] sm:$0xff]  ;;  %v8266_v1 = vld [vmem:[#allocation7 + $0x150] sm:$0xff]   ;;  %v670_v2 = vpack.c.bf16 %v9122_v60, %v9119_v59  ;;  %v6408_v7 = vld [vmem:[%s9031_s7 + $0xc0] sm:$0xff] }
  0xf2   : > { %2450 = vmatpush1.bf16.msra.mxu0 %v8244_v5  ;;  %v8265_v63 = vld [vmem:[#allocation7 + $0x148] sm:$0xff]   ;;  %v782_v3 = vpack.c.bf16 %v6406_v62, %v6405_v61  ;;  %v6407_v6 = vld [vmem:[%s9031_s7 + $0xb0] sm:$0xff]  ;;  %v8267_v8 = vld [vmem:[#allocation7 + $0x158] sm:$0xff]  }
  0xf3   : > { %2451 = vmatprep.subr.bf16.mxu0 %v8707_v0  ;;  %v9131_v4 = vld [vmem:[%s9031_s7 + $0x82] sm:$0xff]  ;;  %v9134_v5 = vld [vmem:[%s9031_s7 + $0x8a] sm:$0xff]  ;;  %v9158_v21 = vld [vmem:[%s9031_s7 + $0xb2] sm:$0xff] }
  0xf4   : > { %v9155_v20 = vld [vmem:[%s9031_s7 + $0xaa] sm:$0xff]  ;;  %v6411_v22 = vld [vmem:[%s9031_s7 + $0xe0] sm:$0xff]  ;;  %v9190_v45 = vld [vmem:[%s9031_s7 + $0xf2] sm:$0xff] }
  0xf5   : > { %v6412_v23 = vld [vmem:[%s9031_s7 + $0xe8] sm:$0xff]  ;;  %v6413_v30 = vld [vmem:[%s9031_s7 + $0xf0] sm:$0xff]  ;;  %v6414_v31 = vld [vmem:[%s9031_s7 + $0x100] sm:$0xff] }
  0xf6   : > { %2452 = vmatpush1.bf16.msra.mxu0 %v8245_v9  ;;  %v8268_v9 = vld [vmem:[#allocation7 + $0x160] sm:$0xff]   ;;  %v6415_v38 = vld [vmem:[%s9031_s7 + $0x108] sm:$0xff]  ;;  %v6419_v54 = vld [vmem:[%s9031_s7 + $0x130] sm:$0xff] }
  0xf7   : > { %2453 = vmatprep.subr.bf16.mxu0 %v8707_v0  ;;  %v9167_v27 = vld [vmem:[%s9031_s7 + $0xc2] sm:$0xff]  ;;  %v9200_v53 = vld [vmem:[%s9031_s7 + $0x10a] sm:$0xff] }
  0xf8   : > { %v9180_v37 = vld [vmem:[%s9031_s7 + $0xe2] sm:$0xff] }
  0xf9   : > { %v6417_v46 = vld [vmem:[%s9031_s7 + $0x120] sm:$0xff]  ;;  %v6421_v62 = vld [vmem:[%s9031_s7 + $0x148] sm:$0xff] }
  0xfa   : > { %2454 = vmatpush1.bf16.msra.mxu0 %v8246_v10  ;;  %v671_v10 = vpack.c.bf16 %v9134_v5, %v9131_v4  ;;  %v9210_v61 = vld [vmem:[%s9031_s7 + $0x122] sm:$0xff] }
  0xfb   : > { %2455 = vmatprep.subr.bf16.mxu0 %v8707_v0 }
  0xfe   : > { %2456 = vmatpush1.bf16.msra.mxu0 %v8247_v11  ;;  %v783_v11 = vpack.c.bf16 %v6408_v7, %v6407_v6  ;;  %v9220_v6 = vld [vmem:[%s9031_s7 + $0x132] sm:$0xff]  ;;  %v6423_v7 = vld [vmem:[%s9031_s7 + $0x160] sm:$0xff] }
  0xff   : > { %2457 = vmatprep.subr.bf16.mxu0 %v8707_v0 }
 0x102   : > { %2458 = vmatpush1.bf16.msra.mxu0 %v8248_v12  ;;  %v9143_v12 = vld [vmem:[%s9031_s7 + $0x92] sm:$0xff] }
 0x103   : > { %2459 = vmatprep.subr.bf16.mxu0 %v8707_v0 }
 0x106   : > { %2460 = vmatpush1.bf16.msra.mxu0 %v8249_v13  ;;  %v9146_v13 = vld [vmem:[%s9031_s7 + $0xa2] sm:$0xff] }
 0x107   : > { %2461 = vmatprep.subr.bf16.mxu0 %v8707_v0 }
 0x10a   : > { %2462 = vmatpush1.bf16.msra.mxu0 %v8250_v14  ;;  %v6409_v14 = vld [vmem:[%s9031_s7 + $0xc8] sm:$0xff] }
 0x10b   : > { %2463 = vmatprep.subr.bf16.mxu0 %v8707_v0 }
 0x10e   : > { %2464 = vmatpush1.bf16.msra.mxu0 %v8251_v15  ;;  %v6410_v15 = vld [vmem:[%s9031_s7 + $0xd0] sm:$0xff] }
 0x10f   : > { %2465 = vmatprep.subr.bf16.mxu0 %v8707_v0 }
 0x112   : > { %2466 = vmatpush1.bf16.msra.mxu0 %v8252_v16  ;;  %v8269_v16 = vld [vmem:[#allocation7 + $0x168] sm:$0xff]  }
 0x113   : > { %2467 = vmatprep.subr.bf16.mxu0 %v8707_v0 }
 0x116   : > { %2468 = vmatpush1.bf16.msra.mxu0 %v8253_v17  ;;  %v8270_v17 = vld [vmem:[#allocation7 + $0x170] sm:$0xff]  }
 0x117   : > { %2469 = vmatprep.subr.bf16.mxu0 %v8707_v0 }
 0x11a   : > { %2470 = vmatpush1.bf16.msra.mxu0 %v8254_v18  ;;  %v672_v18 = vpack.c.bf16 %v9146_v13, %v9143_v12 }
 0x11b   : > { %2471 = vmatprep.subr.bf16.mxu0 %v8707_v0 }
 0x11e   : > { %2472 = vmatpush1.bf16.msra.mxu0 %v8255_v19  ;;  %v784_v19 = vpack.c.bf16 %v6410_v15, %v6409_v14  ;;  %v9230_v14 = vld [vmem:[%s9031_s7 + $0x14a] sm:$0xff] }
 0x11f   : > { %2690 = vmatprep.subr.bf16.mxu0 %v8707_v0  ;;  %v6425_v15 = vld [vmem:[%s9031_s7 + $0x170] sm:$0xff] }
 0x121   : > { %2474 = vmatmul.mubr.bf16.vlgmr.msra.gmra.mrb[0].mxu0 %v665_v25  ;;  %v673_v25 = vpack.c.bf16 %v9158_v21, %v9155_v20 }
 0x122   : > { %2691 = vmatpush1.bf16.msra.mxu0 %v8256_v24  ;;  %2481 = vmatprep.mubr.bf16.mxu0 %v777_v26  ;;  %v8271_v24 = vld [vmem:[#allocation7 + $0x178] sm:$0xff]   ;;  %v785_v26 = vpack.c.bf16 %v6412_v23, %v6411_v22  ;;  %v9240_v22 = vld [vmem:[%s9031_s7 + $0x162] sm:$0xff] }
 0x123   : > { %2692 = vmatprep.subr.bf16.mxu0 %v8707_v0  ;;  %v6427_v23 = vld [vmem:[%s9031_s7 + $0x188] sm:$0xff] }
 0x126   : > { %2693 = vmatpush1.bf16.msra.mxu0 %v8257_v29  ;;  %v9170_v29 = vld [vmem:[%s9031_s7 + $0xca] sm:$0xff] }
 0x127   : > { %2694 = vmatprep.subr.bf16.mxu0 %v8707_v0 }
 0x129   : > { %2482 = vmatmul.mubr.bf16.gmra.mrb[4].mxu0 %v666_v33  ;;  %v786_v33 = vpack.c.bf16 %v6414_v31, %v6413_v30  ;;  %v9247_v30 = vld [vmem:[%s9031_s7 + $0x16a] sm:$0xff]  ;;  %v9250_v31 = vld [vmem:[%s9031_s7 + $0x172] sm:$0xff] }
 0x12a   : > { %2489 = vmatprep.mubr.bf16.mxu0 %v778_v34  ;;  %2695 = vmatpush1.bf16.msra.mxu0 %v8258_v32  ;;  %v674_v32 = vpack.c.bf16 %v9170_v29, %v9167_v27  ;;  %v9177_v34 = vld [vmem:[%s9031_s7 + $0xd2] sm:$0xff] }
 0x12b   : > { %2696 = vmatprep.subr.bf16.mxu0 %v8707_v0 }
 0x12e   : > { %2697 = vmatpush1.bf16.msra.mxu0 %v8259_v39  ;;  %v6416_v39 = vld [vmem:[%s9031_s7 + $0x110] sm:$0xff] }
 0x12f   : > { %2698 = vmatprep.subr.bf16.mxu0 %v8707_v0 }
 0x131   : > { %2490 = vmatmul.mubr.bf16.gmra.mrb[8].mxu0 %v667_v41  ;;  %v787_v41 = vpack.c.bf16 %v6416_v39, %v6415_v38  ;;  %v682_v38 = vpack.c.bf16 %v9250_v31, %v9247_v30 }
 0x132   : > { %2497 = vmatprep.mubr.bf16.mxu0 %v779_v42  ;;  %2699 = vmatpush1.bf16.msra.mxu0 %v8260_v40  ;;  %v675_v40 = vpack.c.bf16 %v9180_v37, %v9177_v34  ;;  %v9187_v42 = vld [vmem:[%s9031_s7 + $0xea] sm:$0xff] }
 0x133   : > { %2700 = vmatprep.subr.bf16.mxu0 %v8707_v0 }
 0x136   : > { %2701 = vmatpush1.bf16.msra.mxu0 %v8261_v47  ;;  %v6418_v47 = vld [vmem:[%s9031_s7 + $0x128] sm:$0xff] }
 0x137   : > { %2702 = vmatprep.subr.bf16.mxu0 %v8707_v0 }
 0x139   : > { %2498 = vmatmul.mubr.bf16.gmra.mrb[12].mxu0 %v668_v49  ;;  %v788_v49 = vpack.c.bf16 %v6418_v47, %v6417_v46  ;;  %v6431_v46 = vld [vmem:[%s9031_s7 + $0x1b0] sm:$0xff]  ;;  %v6432_v47 = vld [vmem:[%s9031_s7 + $0x1c0] sm:$0xff] }
 0x13a   : > { %2505 = vmatprep.mubr.bf16.mxu0 %v780_v50  ;;  %2703 = vmatpush1.bf16.msra.mxu0 %v8262_v48  ;;  %v676_v48 = vpack.c.bf16 %v9190_v45, %v9187_v42  ;;  %v9197_v50 = vld [vmem:[%s9031_s7 + $0x102] sm:$0xff] }
 0x13b   : > { %2704 = vmatprep.subr.bf16.mxu0 %v8707_v0 }
 0x13e   : > { %2705 = vmatpush1.bf16.msra.mxu0 %v8263_v55  ;;  %v6420_v55 = vld [vmem:[%s9031_s7 + $0x140] sm:$0xff] }
 0x13f   : > { %2706 = vmatprep.subr.bf16.mxu0 %v8707_v0 }
 0x141   : > { %2506 = vmatmul.mubr.bf16.gmra.mrb[16].mxu0 %v669_v57  ;;  %v789_v57 = vpack.c.bf16 %v6420_v55, %v6419_v54  ;;  %v9267_v54 = vld [vmem:[%s9031_s7 + $0x192] sm:$0xff]  ;;  %v9270_v55 = vld [vmem:[%s9031_s7 + $0x1a2] sm:$0xff] }
 0x142   : > { %2513 = vmatprep.mubr.bf16.mxu0 %v781_v58  ;;  %2707 = vmatpush1.bf16.msra.mxu0 %v8264_v56  ;;  %v677_v56 = vpack.c.bf16 %v9200_v53, %v9197_v50  ;;  %v9207_v58 = vld [vmem:[%s9031_s7 + $0x112] sm:$0xff] }
 0x143   : > { %2708 = vmatprep.subr.bf16.mxu0 %v8707_v0 }
 0x146   : > { %2709 = vmatpush1.bf16.msra.mxu0 %v8265_v63  ;;  %v6422_v63 = vld [vmem:[%s9031_s7 + $0x150] sm:$0xff] }
 0x147   : > { %2710 = vmatprep.subr.bf16.mxu0 %v8707_v0 }
 0x149   : > { %2514 = vmatmul.mubr.bf16.gmra.mrb[20].mxu0 %v670_v2  ;;  %v790_v2 = vpack.c.bf16 %v6422_v63, %v6421_v62  ;;  %v684_v62 = vpack.c.bf16 %v9270_v55, %v9267_v54 }
 0x14a   : > { %2521 = vmatprep.mubr.bf16.mxu0 %v782_v3  ;;  %2711 = vmatpush1.bf16.msra.mxu0 %v8266_v1  ;;  %v678_v1 = vpack.c.bf16 %v9210_v61, %v9207_v58  ;;  %v9217_v3 = vld [vmem:[%s9031_s7 + $0x12a] sm:$0xff] }
 0x14b   : > { %2712 = vmatprep.subr.bf16.mxu0 %v8707_v0 }
 0x14e   : > { %2713 = vmatpush1.bf16.msra.mxu0 %v8267_v8  ;;  %v6424_v8 = vld [vmem:[%s9031_s7 + $0x168] sm:$0xff] }
 0x14f   : > { %2714 = vmatprep.subr.bf16.mxu0 %v8707_v0 }
 0x151   : > { %2522 = vmatmul.mubr.bf16.gmra.mrb[24].mxu0 %v671_v10  ;;  %v791_v10 = vpack.c.bf16 %v6424_v8, %v6423_v7  ;;  %v6435_v7 = vld [vmem:[%s9031_s7 + $0x1e0] sm:$0xff]  ;;  %v6436_v8 = vld [vmem:[%s9031_s7 + $0x1e8] sm:$0xff] }
 0x152   : > { %2529 = vmatprep.mubr.bf16.mxu0 %v783_v11  ;;  %2715 = vmatpush1.bf16.msra.mxu0 %v8268_v9  ;;  %v679_v9 = vpack.c.bf16 %v9220_v6, %v9217_v3  ;;  %v9227_v11 = vld [vmem:[%s9031_s7 + $0x142] sm:$0xff] }
 0x153   : > { %2716 = vmatprep.subr.bf16.mxu0 %v8707_v0 }
 0x156   : > { %2717 = vmatpush1.bf16.msra.mxu0 %v8269_v16  ;;  %v6426_v16 = vld [vmem:[%s9031_s7 + $0x180] sm:$0xff] }
 0x157   : > { %2718 = vmatprep.subr.bf16.mxu0 %v8707_v0 }
 0x159   : > { %2530 = vmatmul.mubr.bf16.gmra.mrb[28].mxu0 %v672_v18  ;;  %v792_v18 = vpack.c.bf16 %v6426_v16, %v6425_v15  ;;  %v9287_v15 = vld [vmem:[%s9031_s7 + $0x1c2] sm:$0xff]  ;;  %v9290_v16 = vld [vmem:[%s9031_s7 + $0x1ca] sm:$0xff] }
 0x15a   : > { %2537 = vmatprep.mubr.bf16.mxu0 %v784_v19  ;;  %2719 = vmatpush1.bf16.msra.mxu0 %v8270_v17  ;;  %v680_v17 = vpack.c.bf16 %v9230_v14, %v9227_v11  ;;  %v9237_v19 = vld [vmem:[%s9031_s7 + $0x152] sm:$0xff] }
 0x15b   : > { %2720 = vmatprep.subr.bf16.mxu0 %v8707_v0 }
 0x15e   : > { %2721 = vmatpush1.bf16.msra.mxu0 %v8271_v24  ;;  %v6428_v24 = vld [vmem:[%s9031_s7 + $0x190] sm:$0xff] }
 0x15f   : > { %2939 = vmatprep.subr.bf16.mxu0 %v8707_v0 }
 0x161   : > { %2538 = vmatmul.mubr.bf16.gmra.mrb[32].mxu0 %v673_v25  ;;  %v681_v25 = vpack.c.bf16 %v9240_v22, %v9237_v19 }
 0x162   : > { %2545 = vmatprep.mubr.bf16.mxu0 %v785_v26  ;;  %v793_v26 = vpack.c.bf16 %v6428_v24, %v6427_v23  ;;  %v686_v23 = vpack.c.bf16 %v9290_v16, %v9287_v15 }
 0x169   : > { %2546 = vmatmul.mubr.bf16.gmra.mrb[36].mxu0 %v674_v32  ;;  %v6429_v32 = vld [vmem:[%s9031_s7 + $0x1a0] sm:$0xff] }
 0x16a   : > { %2553 = vmatprep.mubr.bf16.mxu0 %v786_v33  ;;  %v6430_v33 = vld [vmem:[%s9031_s7 + $0x1a8] sm:$0xff] }
 0x16b   : > { %v794_v39 = vpack.c.bf16 %v6430_v33, %v6429_v32  ;;  %v992_v33 = vpack.c.bf16 %v9083_v35, %v9075_v28  ;;  %v994_v35 = vpack.c.bf16 %v9107_v51, %v9098_v44  ;;  %v995_v44 = vpack.c.bf16 %v9119_v59, %v9110_v52  ;;  %v8276_v51 = vld [vmem:[#allocation7 + $0x1a0] sm:$0xff]   ;;  %v8278_v59 = vld [vmem:[#allocation7 + $0x1b0] sm:$0xff]  }
 0x16c   : > { %v996_v52 = vpack.c.bf16 %v9131_v4, %v9122_v60 }
 0x171   : > { %2554 = vmatmul.mubr.bf16.gmra.mrb[40].mxu0 %v675_v40  ;;  %v9257_v40 = vld [vmem:[%s9031_s7 + $0x182] sm:$0xff] }
 0x172   : > { %2561 = vmatprep.mubr.bf16.mxu0 %v787_v41  ;;  %v9260_v41 = vld [vmem:[%s9031_s7 + $0x18a] sm:$0xff] }
 0x179   : > { %2562 = vmatmul.mubr.bf16.gmra.mrb[44].mxu0 %v676_v48  ;;  %v683_v48 = vpack.c.bf16 %v9260_v41, %v9257_v40 }
 0x17a   : > { %2569 = vmatprep.mubr.bf16.mxu0 %v788_v49  ;;  %v795_v49 = vpack.c.bf16 %v6432_v47, %v6431_v46  ;;  %v8272_v47 = vld [vmem:[#allocation7 + $0x180] sm:$0xff]  }
 0x181   : > { %2570 = vmatmul.mubr.bf16.gmra.mrb[48].mxu0 %v677_v56  ;;  %v6433_v56 = vld [vmem:[%s9031_s7 + $0x1c8] sm:$0xff] }
 0x182   : > { %2577 = vmatprep.mubr.bf16.mxu0 %v789_v57  ;;  %v6434_v57 = vld [vmem:[%s9031_s7 + $0x1d0] sm:$0xff] }
 0x183   : > { %v796_v63 = vpack.c.bf16 %v6434_v57, %v6433_v56  ;;  %v9312_v56 = vld [vmem:[%s9031_s7 + $0x41] sm:$0xff] }
 0x184   : > { %v8273_v57 = vld [vmem:[#allocation7 + $0x188] sm:$0xff]  }
 0x189   : > { %2578 = vmatmul.mubr.bf16.gmra.mrb[52].mxu0 %v678_v1  ;;  %v9277_v1 = vld [vmem:[%s9031_s7 + $0x1aa] sm:$0xff] }
 0x18a   : > { %2585 = vmatprep.mubr.bf16.mxu0 %v790_v2  ;;  %v9280_v2 = vld [vmem:[%s9031_s7 + $0x1b2] sm:$0xff] }
 0x191   : > { %2586 = vmatmul.mubr.bf16.gmra.mrb[56].mxu0 %v679_v9  ;;  %v685_v9 = vpack.c.bf16 %v9280_v2, %v9277_v1 }
 0x192   : > { %2593 = vmatprep.mubr.bf16.mxu0 %v791_v10  ;;  %v797_v10 = vpack.c.bf16 %v6436_v8, %v6435_v7  ;;  %v9332_v8 = vld [vmem:[%s9031_s7 + $0x61] sm:$0xff] }
 0x199   : > { %2594 = vmatmul.mubr.bf16.gmra.mrb[60].mxu0 %v680_v17  ;;  %v6437_v17 = vld [vmem:[%s9031_s7 + $0x1f0] sm:$0xff] }
 0x19a   : > { %2601 = vmatprep.mubr.bf16.mxu0 %v792_v18  ;;  %v6438_v18 = vld [vmem:[%s9031_s7 + $0x200] sm:$0xff] }
 0x19b   : > { %v798_v24 = vpack.c.bf16 %v6438_v18, %v6437_v17  ;;  %v9344_v18 = vld [vmem:[%s9031_s7 + $0x71] sm:$0xff] }
 0x1a1   : > { %2602 = vmatmul.mubr.bf16.gmra.mrb[64].mxu0 %v681_v25  ;;  %v9297_v25 = vld [vmem:[%s9031_s7 + $0x1d2] sm:$0xff] }
 0x1a2   : > { %2609 = vmatprep.mubr.bf16.mxu0 %v793_v26  ;;  %v9300_v26 = vld [vmem:[%s9031_s7 + $0x1e2] sm:$0xff] }
 0x1a3   : > { %v687_v32 = vpack.c.bf16 %v9300_v26, %v9297_v25 }
 0x1a9   : > { %2610 = vmatmul.mubr.bf16.gmra.mrb[68].mxu0 %v682_v38  ;;  %v6447_v38 = vld [vmem:[%s9031_s7 + $0x21] sm:$0xff] }
 0x1aa   : > { %2617 = vmatprep.mubr.bf16.mxu0 %v794_v39  ;;  %v6448_v39 = vld [vmem:[%s9031_s7 + $0x29] sm:$0xff] }
 0x1ab   : > { %v884_v46 = vpack.c.bf16 %v6448_v39, %v6447_v38  ;;  %v997_v38 = vpack.c.bf16 %v9143_v12, %v9134_v5  ;;  %v8280_v39 = vld [vmem:[#allocation7 + $0x1c0] sm:$0xff]   ;;  %v998_v12 = vpack.c.bf16 %v9155_v20, %v9146_v13  ;;  %v999_v13 = vpack.c.bf16 %v9167_v27, %v9158_v21 }
 0x1ac   : > { %v8284_v20 = vld [vmem:[#allocation7 + $0x1e0] sm:$0xff]   ;;  %v1000_v27 = vpack.c.bf16 %v9177_v34, %v9170_v29  ;;  %v1001_v29 = vpack.c.bf16 %v9187_v42, %v9180_v37  ;;  %v9413_v37 = vld [vmem:[%s9031_s7 + $0xf1] sm:$0xff] }
 0x1ad   : > { %v9403_v34 = vld [vmem:[%s9031_s7 + $0xe1] sm:$0xff] }
 0x1ae   : > { %v9416_v42 = vld [vmem:[%s9031_s7 + $0x101] sm:$0xff] }
 0x1b1   : > { %2618 = vmatmul.mubr.bf16.gmra.mrb[72].mxu0 %v683_v48  ;;  %v993_v48 = vpack.c.bf16 %v9095_v43, %v9086_v36  ;;  %v9320_v36 = vld [vmem:[%s9031_s7 + $0x49] sm:$0xff]  ;;  %v9323_v43 = vld [vmem:[%s9031_s7 + $0x51] sm:$0xff] }
 0x1b2   : > { %2625 = vmatprep.mubr.bf16.mxu0 %v795_v49  ;;  %v6449_v49 = vld [vmem:[%s9031_s7 + $0x31] sm:$0xff]  ;;  %v886_v7 = vpack.c.bf16 %v9323_v43, %v9320_v36 }
 0x1b3   : > { %v885_v28 = vpack.c.bf16 %v9312_v56, %v6449_v49  ;;  %v8281_v49 = vld [vmem:[#allocation7 + $0x1c8] sm:$0xff]  }
 0x1b9   : > { %2626 = vmatmul.mubr.bf16.gmra.mrb[76].mxu0 %v684_v62  ;;  %v8274_v62 = vld [vmem:[#allocation7 + $0x190] sm:$0xff]  }
 0x1ba   : > { %2633 = vmatprep.mubr.bf16.mxu0 %v796_v63  ;;  %v8275_v63 = vld [vmem:[#allocation7 + $0x198] sm:$0xff]  }
 0x1c1   : > { %2634 = vmatmul.mubr.bf16.gmra.mrb[80].mxu0 %v685_v9  ;;  %v9335_v9 = vld [vmem:[%s9031_s7 + $0x69] sm:$0xff] }
 0x1c2   : > { %2641 = vmatprep.mubr.bf16.mxu0 %v797_v10  ;;  %v8277_v10 = vld [vmem:[#allocation7 + $0x1a8] sm:$0xff]   ;;  %v887_v17 = vpack.c.bf16 %v9335_v9, %v9332_v8 }
 0x1c9   : > { %2642 = vmatmul.mubr.bf16.gmra.mrb[84].mxu0 %v686_v23  ;;  %v9347_v23 = vld [vmem:[%s9031_s7 + $0x81] sm:$0xff] }
 0x1ca   : > { %2649 = vmatprep.mubr.bf16.mxu0 %v798_v24  ;;  %v8279_v24 = vld [vmem:[#allocation7 + $0x1b8] sm:$0xff]   ;;  %v888_v60 = vpack.c.bf16 %v9347_v23, %v9344_v18 }
 0x1d1   : > { %2650 = vmatmul.mubr.bf16.gmra.mrb[88].mxu0 %v687_v32 }
 0x1d2   : > { %2722 = vmatprep.mubr.bf16.mxu0 %v992_v33 }
 0x1d9   : > { %2723 = vmatmul.mubr.bf16.vlgmr.msra.gmra.mrb[92].mxu0 %v884_v46 }
 0x1da   : > { %2940 = vmatpush1.bf16.msra.mxu0 %v8272_v47  ;;  %2730 = vmatprep.mubr.bf16.mxu0 %v993_v48  ;;  %v9356_v47 = vld [vmem:[%s9031_s7 + $0x89] sm:$0xff]  ;;  %v9359_v48 = vld [vmem:[%s9031_s7 + $0x91] sm:$0xff] }
 0x1db   : > { %2941 = vmatprep.subr.bf16.mxu0 %v8707_v0  ;;  %v889_v5 = vpack.c.bf16 %v9359_v48, %v9356_v47 }
 0x1de   : > { %2942 = vmatpush1.bf16.msra.mxu0 %v8273_v57  ;;  %v8282_v57 = vld [vmem:[#allocation7 + $0x1d0] sm:$0xff]  }
 0x1df   : > { %2943 = vmatprep.subr.bf16.mxu0 %v8707_v0 }
 0x1e1   : > { %2731 = vmatmul.mubr.bf16.gmra.mrb[4].mxu0 %v885_v28  ;;  %v9368_v28 = vld [vmem:[%s9031_s7 + $0xa1] sm:$0xff] }
 0x1e2   : > { %2738 = vmatprep.mubr.bf16.mxu0 %v994_v35  ;;  %2944 = vmatpush1.bf16.msra.mxu0 %v8274_v62  ;;  %v9371_v35 = vld [vmem:[%s9031_s7 + $0xa9] sm:$0xff]  ;;  %v8283_v62 = vld [vmem:[#allocation7 + $0x1d8] sm:$0xff]  }
 0x1e3   : > { %2945 = vmatprep.subr.bf16.mxu0 %v8707_v0 }
 0x1e6   : > { %2946 = vmatpush1.bf16.msra.mxu0 %v8275_v63  ;;  %v890_v63 = vpack.c.bf16 %v9371_v35, %v9368_v28 }
 0x1e7   : > { %2947 = vmatprep.subr.bf16.mxu0 %v8707_v0 }
 0x1e9   : > { %2739 = vmatmul.mubr.bf16.gmra.mrb[8].mxu0 %v886_v7  ;;  %v9380_v7 = vld [vmem:[%s9031_s7 + $0xb1] sm:$0xff] }
 0x1ea   : > { %2746 = vmatprep.mubr.bf16.mxu0 %v995_v44  ;;  %2948 = vmatpush1.bf16.msra.mxu0 %v8276_v51  ;;  %v9383_v44 = vld [vmem:[%s9031_s7 + $0xc1] sm:$0xff] }
 0x1eb   : > { %2949 = vmatprep.subr.bf16.mxu0 %v8707_v0  ;;  %v8285_v51 = vld [vmem:[#allocation7 + $0x1e8] sm:$0xff]   ;;  %v891_v21 = vpack.c.bf16 %v9383_v44, %v9380_v7 }
 0x1ee   : > { %2950 = vmatpush1.bf16.msra.mxu0 %v8277_v10  ;;  %v8286_v10 = vld [vmem:[#allocation7 + $0x1f0] sm:$0xff]  }
 0x1ef   : > { %2951 = vmatprep.subr.bf16.mxu0 %v8707_v0 }
 0x1f1   : > { %2747 = vmatmul.mubr.bf16.gmra.mrb[12].mxu0 %v887_v17  ;;  %v9392_v17 = vld [vmem:[%s9031_s7 + $0xc9] sm:$0xff] }
 0x1f2   : > { %2754 = vmatprep.mubr.bf16.mxu0 %v996_v52  ;;  %2952 = vmatpush1.bf16.msra.mxu0 %v8278_v59  ;;  %v9395_v52 = vld [vmem:[%s9031_s7 + $0xd1] sm:$0xff] }
 0x1f3   : > { %2953 = vmatprep.subr.bf16.mxu0 %v8707_v0  ;;  %v892_v59 = vpack.c.bf16 %v9395_v52, %v9392_v17 }
 0x1f4   : > { %v2475_v32 = vpop.f32.mrb[0].mxu0 }
 0x1f5   : > { %v2477_v33 = vpop.f32.mrb[1].mxu0 }
 0x1f6   : > { %v2478_v4 = vpop.f32.mrb[2].mxu0  ;;  %2954 = vmatpush1.bf16.msra.mxu0 %v8279_v24  ;;  %v9406_v24 = vld [vmem:[%s9031_s7 + $0xe9] sm:$0xff]  ;;  %v1002_v33 = vpack.c.bf16 %v9197_v50, %v9190_v45  ;;  %v9426_v50 = vld [vmem:[%s9031_s7 + $0x111] sm:$0xff] }
 0x1f7   : > { %v2480_v46 = vpop.f32.mrb[3].mxu0  ;;  %2955 = vmatprep.subr.bf16.mxu0 %v8707_v0  ;;  %v893_v32 = vpack.c.bf16 %v9406_v24, %v9403_v34  ;;  %v894_v4 = vpack.c.bf16 %v9416_v42, %v9413_v37  ;;  %v9423_v45 = vld [vmem:[%s9031_s7 + $0x109] sm:$0xff] }
 0x1f8   : > { %v1004_v46 = vpack.c.bf16 %v9217_v3, %v9210_v61  ;;  %v9444_v61 = vld [vmem:[%s9031_s7 + $0x131] sm:$0xff]  ;;  %v9447_v3 = vld [vmem:[%s9031_s7 + $0x141] sm:$0xff] }
 0x1f9   : > { %2755 = vmatmul.mubr.bf16.gmra.mrb[16].mxu0 %v888_v60  ;;  %v8287_v60 = vld [vmem:[#allocation7 + $0x1f8] sm:$0xff]  }
 0x1fa   : > { %2762 = vmatprep.mubr.bf16.mxu0 %v997_v38  ;;  %2956 = vmatpush1.bf16.msra.mxu0 %v8280_v39  ;;  %v1003_v38 = vpack.c.bf16 %v9207_v58, %v9200_v53  ;;  %v895_v39 = vpack.c.bf16 %v9426_v50, %v9423_v45  ;;  %v9436_v53 = vld [vmem:[%s9031_s7 + $0x129] sm:$0xff]  ;;  %v11360_v58 = vmov 0.0  }
 0x1fb   : > { %2957 = vmatprep.subr.bf16.mxu0 %v8707_v0 }
 0x1fe   : > { %2958 = vmatpush1.bf16.msra.mxu0 %v8281_v49  ;;  %v9433_v49 = vld [vmem:[%s9031_s7 + $0x121] sm:$0xff] }
 0x1ff   : > { %2959 = vmatprep.subr.bf16.mxu0 %v8707_v0 }
 0x201   : > { %2763 = vmatmul.mubr.bf16.gmra.mrb[20].mxu0 %v889_v5  ;;  %v896_v5 = vpack.c.bf16 %v9436_v53, %v9433_v49 }
 0x202   : > { %2770 = vmatprep.mubr.bf16.mxu0 %v998_v12  ;;  %2960 = vmatpush1.bf16.msra.mxu0 %v8282_v57  ;;  %v1005_v12 = vpack.c.bf16 %v9227_v11, %v9220_v6  ;;  %v897_v57 = vpack.c.bf16 %v9447_v3, %v9444_v61  ;;  %v9457_v6 = vld [vmem:[%s9031_s7 + $0x151] sm:$0xff] }
 0x203   : > { %2961 = vmatprep.subr.bf16.mxu0 %v8707_v0 }
 0x206   : > { %2962 = vmatpush1.bf16.msra.mxu0 %v8283_v62  ;;  %v1006_v62 = vpack.c.bf16 %v9237_v19, %v9230_v14  ;;  %v9467_v14 = vld [vmem:[%s9031_s7 + $0x169] sm:$0xff] }
 0x207   : > { %2963 = vmatprep.subr.bf16.mxu0 %v8707_v0 }
 0x209   : > { %2771 = vmatmul.mubr.bf16.gmra.mrb[24].mxu0 %v890_v63  ;;  %v9454_v63 = vld [vmem:[%s9031_s7 + $0x149] sm:$0xff] }
 0x20a   : > { %2778 = vmatprep.mubr.bf16.mxu0 %v999_v13  ;;  %2964 = vmatpush1.bf16.msra.mxu0 %v8284_v20  ;;  %v898_v11 = vpack.c.bf16 %v9457_v6, %v9454_v63  ;;  %v1007_v13 = vpack.c.bf16 %v9247_v30, %v9240_v22  ;;  %v9464_v20 = vld [vmem:[%s9031_s7 + $0x161] sm:$0xff] }
 0x20b   : > { %2965 = vmatprep.subr.bf16.mxu0 %v8707_v0  ;;  %v899_v19 = vpack.c.bf16 %v9467_v14, %v9464_v20  ;;  %v9477_v22 = vld [vmem:[%s9031_s7 + $0x181] sm:$0xff] }
 0x20e   : > { %2966 = vmatpush1.bf16.msra.mxu0 %v8285_v51  ;;  %v1008_v51 = vpack.c.bf16 %v9257_v40, %v9250_v31  ;;  %v9487_v31 = vld [vmem:[%s9031_s7 + $0x191] sm:$0xff] }
 0x20f   : > { %2967 = vmatprep.subr.bf16.mxu0 %v8707_v0 }
 0x211   : > { %2779 = vmatmul.mubr.bf16.gmra.mrb[28].mxu0 %v891_v21  ;;  %v9474_v21 = vld [vmem:[%s9031_s7 + $0x171] sm:$0xff] }
 0x212   : > { %2786 = vmatprep.mubr.bf16.mxu0 %v1000_v27  ;;  %2968 = vmatpush1.bf16.msra.mxu0 %v8286_v10  ;;  %v900_v30 = vpack.c.bf16 %v9477_v22, %v9474_v21  ;;  %v1009_v27 = vpack.c.bf16 %v9267_v54, %v9260_v41  ;;  %v9484_v10 = vld [vmem:[%s9031_s7 + $0x189] sm:$0xff] }
 0x213   : > { %2969 = vmatprep.subr.bf16.mxu0 %v8707_v0  ;;  %v901_v40 = vpack.c.bf16 %v9487_v31, %v9484_v10  ;;  %v9497_v41 = vld [vmem:[%s9031_s7 + $0x1a9] sm:$0xff] }
 0x216   : > { %2970 = vmatpush1.bf16.msra.mxu0 %v8287_v60  ;;  %v1012_v60 = vpack.c.bf16 %v9297_v25, %v9290_v16  ;;  %v9527_v16 = vld [vmem:[%s9031_s7 + $0x1e9] sm:$0xff]  ;;  %v6545_v25 = vld [vmem:[%s9031_s7 + $0x1f2] sm:$0xff] }
 0x217   : > { %7551 = vmatprep.subr.bf16.mxu0 %v11360_v58 }
 0x219   : > { %2787 = vmatmul.mubr.bf16.gmra.mrb[32].mxu0 %v892_v59  ;;  %v1010_v59 = vpack.c.bf16 %v9277_v1, %v9270_v55  ;;  %v9504_v55 = vld [vmem:[%s9031_s7 + $0x1b1] sm:$0xff]  ;;  %v9507_v1 = vld [vmem:[%s9031_s7 + $0x1c1] sm:$0xff] }
 0x21a   : > { %2794 = vmatprep.mubr.bf16.mxu0 %v1001_v29  ;;  %v9494_v29 = vld [vmem:[%s9031_s7 + $0x1a1] sm:$0xff] }
 0x21b   : > { %v902_v54 = vpack.c.bf16 %v9497_v41, %v9494_v29 }
 0x221   : > { %2795 = vmatmul.mubr.bf16.gmra.mrb[36].mxu0 %v893_v32  ;;  %v1011_v32 = vpack.c.bf16 %v9287_v15, %v9280_v2  ;;  %v9517_v2 = vld [vmem:[%s9031_s7 + $0x1d1] sm:$0xff] }
 0x222   : > { %2802 = vmatprep.mubr.bf16.mxu0 %v1002_v33  ;;  %v903_v33 = vpack.c.bf16 %v9507_v1, %v9504_v55  ;;  %v6544_v15 = vld [vmem:[%s9031_s7 + $0x1ea] sm:$0xff] }
 0x229   : > { %2803 = vmatmul.mubr.bf16.gmra.mrb[40].mxu0 %v894_v4  ;;  %v9514_v4 = vld [vmem:[%s9031_s7 + $0x1c9] sm:$0xff] }
 0x22a   : > { %2810 = vmatprep.mubr.bf16.mxu0 %v1003_v38  ;;  %v904_v38 = vpack.c.bf16 %v9517_v2, %v9514_v4 }
 0x231   : > { %2811 = vmatmul.mubr.bf16.gmra.mrb[44].mxu0 %v895_v39  ;;  %v1013_v39 = vpack.c.bf16 %v6544_v15, %v9300_v26  ;;  %v9534_v26 = vld [vmem:[%s9031_s7 + $0x1f1] sm:$0xff] }
 0x232   : > { %2818 = vmatprep.mubr.bf16.mxu0 %v1004_v46  ;;  %v9524_v46 = vld [vmem:[%s9031_s7 + $0x1e1] sm:$0xff] }
 0x239   : > { %2819 = vmatmul.mubr.bf16.gmra.mrb[48].mxu0 %v896_v5  ;;  %v6546_v5 = vld [vmem:[%s9031_s7 + $0x202] sm:$0xff] }
 0x23a   : > { %2826 = vmatprep.mubr.bf16.mxu0 %v1005_v12  ;;  %v905_v12 = vpack.c.bf16 %v9527_v16, %v9524_v46 }
 0x241   : > { %2827 = vmatmul.mubr.bf16.gmra.mrb[52].mxu0 %v897_v57  ;;  %v1014_v57 = vpack.c.bf16 %v6546_v5, %v6545_v25  ;;  %v9560_v25 = vld [vmem:[%s9031_s7 + $0x229] sm:$0xff]  ;;  %v6551_v5 = vld [vmem:[%s9031_s7 + $0x232] sm:$0xff] }
 0x242   : > { %2834 = vmatprep.mubr.bf16.mxu0 %v1006_v62  ;;  %v8292_v62 = vld [vmem:[#allocation7] sm:$0xff]  }
 0x243   : > { %2193 = vmatpush1.bf16.msra.mxu1 %v8292_v62 }
 0x244   : > { %2194 = vmatprep.subr.bf16.mxu1 %v8707_v0 }
 0x249   : > { %2835 = vmatmul.mubr.bf16.gmra.mrb[56].mxu0 %v898_v11  ;;  %v9537_v11 = vld [vmem:[%s9031_s7 + $0x201] sm:$0xff] }
 0x24a   : > { %2842 = vmatprep.mubr.bf16.mxu0 %v1007_v13  ;;  %v6547_v13 = vld [vmem:[%s9031_s7 + $0x20a] sm:$0xff] }
 0x251   : > { %2843 = vmatmul.mubr.bf16.gmra.mrb[60].mxu0 %v899_v19  ;;  %v6548_v19 = vld [vmem:[%s9031_s7 + $0x212] sm:$0xff] }
 0x252   : > { %2850 = vmatprep.mubr.bf16.mxu0 %v1008_v51  ;;  %v906_v51 = vpack.c.bf16 %v9537_v11, %v9534_v26 }
 0x259   : > { %2851 = vmatmul.mubr.bf16.gmra.mrb[64].mxu0 %v900_v30  ;;  %v1015_v30 = vpack.c.bf16 %v6548_v19, %v6547_v13  ;;  %v8297_v19 = vld [vmem:[#allocation7 + $0x28] sm:$0xff]  }
 0x25a   : > { %2858 = vmatprep.mubr.bf16.mxu0 %v1009_v27  ;;  %v8293_v27 = vld [vmem:[#allocation7 + $0x8] sm:$0xff]  }
 0x25b   : > { %2195 = vmatpush1.bf16.msra.mxu1 %v8293_v27  ;;  %v6553_v27 = vld [vmem:[%s9031_s7 + $0x24a] sm:$0xff] }
 0x25c   : > { %2196 = vmatprep.subr.bf16.mxu1 %v8707_v0 }
 0x261   : > { %2859 = vmatmul.mubr.bf16.gmra.mrb[68].mxu0 %v901_v40  ;;  %v9545_v40 = vld [vmem:[%s9031_s7 + $0x209] sm:$0xff] }
 0x262   : > { %2866 = vmatprep.mubr.bf16.mxu0 %v1010_v59  ;;  %v9548_v59 = vld [vmem:[%s9031_s7 + $0x211] sm:$0xff] }
 0x269   : > { %2867 = vmatmul.mubr.bf16.gmra.mrb[72].mxu0 %v902_v54  ;;  %v6549_v54 = vld [vmem:[%s9031_s7 + $0x222] sm:$0xff] }
 0x26a   : > { %2874 = vmatprep.mubr.bf16.mxu0 %v1011_v32  ;;  %v6550_v32 = vld [vmem:[%s9031_s7 + $0x22a] sm:$0xff] }
 0x26b   : > { %v1016_v15 = vpack.c.bf16 %v6550_v32, %v6549_v54  ;;  %v6554_v54 = vld [vmem:[%s9031_s7 + $0x252] sm:$0xff] }
 0x26c   : > { %v8299_v32 = vld [vmem:[#allocation7 + $0x30] sm:$0xff]  }
 0x271   : > { %2875 = vmatmul.mubr.bf16.gmra.mrb[76].mxu0 %v903_v33  ;;  %v8294_v33 = vld [vmem:[#allocation7 + $0x10] sm:$0xff]  }
 0x272   : > { %2882 = vmatprep.mubr.bf16.mxu0 %v1012_v60  ;;  %v907_v60 = vpack.c.bf16 %v9548_v59, %v9545_v40  ;;  %2197 = vmatpush1.bf16.msra.mxu1 %v8294_v33 }
 0x273   : > { %2198 = vmatprep.subr.bf16.mxu1 %v8707_v0 }
 0x279   : > { %2883 = vmatmul.mubr.bf16.gmra.mrb[80].mxu0 %v904_v38  ;;  %v8295_v38 = vld [vmem:[#allocation7 + $0x18] sm:$0xff]  }
 0x27a   : > { %2890 = vmatprep.mubr.bf16.mxu0 %v1013_v39  ;;  %v9557_v39 = vld [vmem:[%s9031_s7 + $0x221] sm:$0xff]  ;;  %2199 = vmatpush1.bf16.msra.mxu1 %v8295_v38  ;;  %v9581_v38 = vld [vmem:[%s9031_s7 + $0x249] sm:$0xff] }
 0x27b   : > { %2200 = vmatprep.subr.bf16.mxu1 %v8707_v0  ;;  %v908_v62 = vpack.c.bf16 %v9560_v25, %v9557_v39 }
 0x281   : > { %2891 = vmatmul.mubr.bf16.gmra.mrb[84].mxu0 %v905_v12  ;;  %v6552_v12 = vld [vmem:[%s9031_s7 + $0x242] sm:$0xff] }
 0x282   : > { %2898 = vmatprep.mubr.bf16.mxu0 %v1014_v57  ;;  %v8296_v57 = vld [vmem:[#allocation7 + $0x20] sm:$0xff]   ;;  %v1017_v13 = vpack.c.bf16 %v6552_v12, %v6551_v5  ;;  %v9584_v5 = vld [vmem:[%s9031_s7 + $0x251] sm:$0xff] }
 0x283   : > { %2201 = vmatpush1.bf16.msra.mxu1 %v8296_v57  ;;  %v8301_v12 = vld [vmem:[#allocation7 + $0x40] sm:$0xff]   ;;  %v910_v57 = vpack.c.bf16 %v9584_v5, %v9581_v38 }
 0x284   : > { %2202 = vmatprep.subr.bf16.mxu1 %v8707_v0 }
 0x287   : > { %2203 = vmatpush1.bf16.msra.mxu1 %v8297_v19  ;;  %v6555_v19 = vld [vmem:[%s9031_s7 + $0x40] sm:$0xff] }
 0x288   : > { %2204 = vmatprep.subr.bf16.mxu1 %v8707_v0 }
 0x289   : > { %2899 = vmatmul.mubr.bf16.gmra.mrb[88].mxu0 %v906_v51  ;;  %v9569_v51 = vld [vmem:[%s9031_s7 + $0x231] sm:$0xff] }
 0x28a   : > { %2906 = vmatprep.mubr.bf16.mxu0 %v1015_v30  ;;  %v9572_v30 = vld [vmem:[%s9031_s7 + $0x241] sm:$0xff] }
 0x28b   : > { %v909_v33 = vpack.c.bf16 %v9572_v30, %v9569_v51  ;;  %2205 = vmatpush1.bf16.msra.mxu1 %v8299_v32 }
 0x28c   : > { %2206 = vmatprep.subr.bf16.mxu1 %v8707_v0 }
 0x291   : > { %2907 = vmatmul.mubr.bf16.gmra.mrb[96].mxu0 %v907_v60  ;;  %v1018_v60 = vpack.c.bf16 %v6554_v54, %v6553_v27  ;;  %v6556_v27 = vld [vmem:[%s9031_s7 + $0x48] sm:$0xff]  ;;  %v8303_v54 = vld [vmem:[#allocation7 + $0x50] sm:$0xff]  }
 0x292   : > { %2914 = vmatprep.mubr.bf16.mxu0 %v1016_v15  ;;  %v8300_v15 = vld [vmem:[#allocation7 + $0x38] sm:$0xff]  }
 0x293   : > { %2207 = vmatpush1.bf16.msra.mxu1 %v8300_v15 }
 0x294   : > { %2208 = vmatprep.subr.bf16.mxu1 %v8707_v0 }
 0x297   : > { %2209 = vmatpush1.bf16.msra.mxu1 %v8301_v12 }
 0x298   : > { %2210 = vmatprep.subr.bf16.mxu1 %v8707_v0 }
 0x299   : > { %2915 = vmatmul.mubr.bf16.gmra.mrb[100].mxu0 %v908_v62  ;;  %v1211_v62 = vpack.c.bf16 %v9320_v36, %v9312_v56  ;;  %v8288_v56 = vld [vmem:[#allocation7 + $0x200] sm:$0xff]   ;;  %v1212_v36 = vpack.c.bf16 %v9332_v8, %v9323_v43  ;;  %v1213_v8 = vpack.c.bf16 %v9344_v18, %v9335_v9  ;;  %v8308_v9 = vld [vmem:[#allocation7 + $0x70] sm:$0xff]  }
 0x29a   : > { %2922 = vmatprep.mubr.bf16.mxu0 %v1017_v13  ;;  %v8302_v13 = vld [vmem:[#allocation7 + $0x48] sm:$0xff]  }
 0x29b   : > { %2211 = vmatpush1.bf16.msra.mxu1 %v8302_v13  ;;  %v6558_v13 = vld [vmem:[%s9031_s7 + $0x60] sm:$0xff] }
 0x29c   : > { %2212 = vmatprep.subr.bf16.mxu1 %v8707_v0 }
 0x29f   : > { %2213 = vmatpush1.bf16.msra.mxu1 %v8303_v54  ;;  %v8307_v54 = vld [vmem:[#allocation7 + $0x68] sm:$0xff]  }
 0x2a0   : > { %2214 = vmatprep.subr.bf16.mxu1 %v8707_v0 }
 0x2a1   : > { %2923 = vmatmul.mubr.bf16.gmra.mrb[104].mxu0 %v909_v33 }
 0x2a2   : > { %2930 = vmatprep.mubr.bf16.mxu0 %v1018_v60  ;;  %v9595_v60 = vpack.c.bf16 %v6556_v27, %v6555_v19  ;;  %v8305_v19 = vld [vmem:[#allocation7 + $0x60] sm:$0xff]   ;;  %v8290_v27 = vld [vmem:[#allocation7 + $0x210] sm:$0xff]  }
 0x2a9   : > { %2931 = vmatmul.mubr.bf16.gmra.mrb[108].mxu0 %v910_v57  ;;  %v8304_v57 = vld [vmem:[#allocation7 + $0x58] sm:$0xff]  }
 0x2aa   : > { %2971 = vmatprep.mubr.bf16.mxu0 %v1211_v62  ;;  %v6557_v62 = vld [vmem:[%s9031_s7 + $0x50] sm:$0xff]  ;;  %2215 = vmatpush1.bf16.msra.mxu1 %v8304_v57  ;;  %v6561_v57 = vld [vmem:[%s9031_s7 + $0x80] sm:$0xff] }
 0x2ab   : > { %2216 = vmatprep.subr.bf16.mxu1 %v8707_v0  ;;  %v9605_v43 = vpack.c.bf16 %v6558_v13, %v6557_v62  ;;  %v6562_v62 = vld [vmem:[%s9031_s7 + $0x88] sm:$0xff]  ;;  %v8309_v13 = vld [vmem:[#allocation7 + $0x78] sm:$0xff]  }
 0x2ac   : > { %v2724_v32 = vpop.f32.mrb[92].mxu0 }
 0x2ad   : > { %v2726_v33 = vpop.f32.mrb[93].mxu0  ;;  %v8289_v32 = vld [vmem:[#allocation7 + $0x208] sm:$0xff]  }
 0x2ae   : > { %v2727_v15 = vpop.f32.mrb[94].mxu0  ;;  %2217 = vmatpush1.bf16.msra.mxu1 %v8305_v19  ;;  %v6559_v33 = vld [vmem:[%s9031_s7 + $0x68] sm:$0xff] }
 0x2af   : > { %v2729_v12 = vpop.f32.mrb[95].mxu0  ;;  %2218 = vmatprep.subr.bf16.mxu1 %v8707_v0  ;;  %v6560_v15 = vld [vmem:[%s9031_s7 + $0x70] sm:$0xff] }
 0x2b0   : > { %v9616_v18 = vpack.c.bf16 %v6560_v15, %v6559_v33  ;;  %v8298_v12 = vld [vmem:[#allocation7 + $0x220] sm:$0xff]   ;;  %v504_v19 = vld [vmem:[%s9031_s7 + $0x9] sm:$0xff]  ;;  %v9631_v33 = vpack.c.bf16 %v6562_v62, %v6561_v57  ;;  %v1215_v15 = vpack.c.bf16 %v9368_v28, %v9359_v48 }
 0x2b1   : > { %2972 = vmatmul.mubr.bf16.vlgmr.msra.gmra.mrb[112].mxu0 %v9595_v60  ;;  %v6563_v57 = vld [vmem:[%s9031_s7 + $0x90] sm:$0xff]  ;;  %v6564_v62 = vld [vmem:[%s9031_s7 + $0xa0] sm:$0xff] }
 0x2b2   : > { %7552 = vmatpush3.bf16.msra.mxu0 %v8288_v56  ;;  %2979 = vmatprep.mubr.bf16.mxu0 %v1212_v36  ;;  %v8291_v56 = vld [vmem:[#allocation7 + $0x218] sm:$0xff]   ;;  %v1214_v36 = vpack.c.bf16 %v9356_v47, %v9347_v23  ;;  %v395_v47 = vld [vmem:[%s9031_s7] sm:$0xff] }
 0x2b3   : > { %7553 = vmatprep.subr.bf16.mxu0 %v11360_v58  ;;  %2219 = vmatpush1.bf16.msra.mxu1 %v8307_v54  ;;  %v398_v48 = vld [vmem:[%s9031_s7 + $0x20] sm:$0xff] }
 0x2b4   : > { %2220 = vmatprep.subr.bf16.mxu1 %v8707_v0 }
 0x2b6   : > { %7554 = vmatpush3.bf16.msra.mxu0 %v8289_v32  ;;  %v503_v32 = vld [vmem:[%s9031_s7 + $0x1] sm:$0xff] }
 0x2b7   : > { %7555 = vmatprep.subr.bf16.mxu0 %v11360_v58  ;;  %2221 = vmatpush1.bf16.msra.mxu1 %v8308_v9  ;;  %v557_v23 = vpack.c.bf16 %v504_v19, %v503_v32  ;;  %v505_v9 = vld [vmem:[%s9031_s7 + $0x11] sm:$0xff]  ;;  %v8385_v32 = vld [vmem:[#allocation7 + $0x88] sm:$0xff]   ;;  %v9645_v19 = vpack.c.bf16 %v6564_v62, %v6563_v57  ;;  %v1217_v62 = vpack.c.bf16 %v9392_v17, %v9383_v44 }
 0x2b8   : > { %2222 = vmatprep.subr.bf16.mxu1 %v8707_v0  ;;  %v1218_v17 = vpack.c.bf16 %v9403_v34, %v9395_v52  ;;  %v1219_v34 = vpack.c.bf16 %v9413_v37, %v9406_v24  ;;  %v8393_v24 = vld [vmem:[#allocation7 + $0xc8] sm:$0xff]  }
 0x2b9   : > { %2980 = vmatmul.mubr.bf16.gmra.mrb[4].mxu0 %v9605_v43  ;;  %2224 = vmatprep.mubr.bf16.mxu1 %v557_v23  ;;  %v8386_v23 = vld [vmem:[#allocation7 + $0x90] sm:$0xff]  }
 0x2ba   : > { %2987 = vmatprep.mubr.bf16.mxu0 %v1213_v8  ;;  %7556 = vmatpush3.bf16.msra.mxu0 %v8290_v27  ;;  %v8306_v8 = vld [vmem:[#allocation7 + $0x228] sm:$0xff]  }
 0x2bb   : > { %7557 = vmatprep.subr.bf16.mxu0 %v11360_v58  ;;  %v396_v27 = vld [vmem:[%s9031_s7 + $0x8] sm:$0xff]  ;;  %2223 = vmatpush1.bf16.msra.mxu1 %v8309_v13 }
 0x2bc   : > { %v449_v54 = vpack.c.bf16 %v396_v27, %v395_v47  ;;  %7723 = vmatprep.subr.bf16.mxu1 %v8707_v0  ;;  %v6565_v47 = vld [vmem:[%s9031_s7 + $0xa8] sm:$0xff]  ;;  %v8310_v27 = vld [vmem:[#allocation7 + $0x230] sm:$0xff]  }
 0x2be   : > { %7558 = vmatpush3.bf16.msra.mxu0 %v8291_v56  ;;  %2225 = vmatmul.mubr.bf16.vlgmr.msra.gmra.mrb[0].mxu1 %v449_v54  ;;  %v8384_v56 = vld [vmem:[#allocation7 + $0x80] sm:$0xff]   ;;  %v507_v54 = vld [vmem:[%s9031_s7 + $0x29] sm:$0xff] }
 0x2bf   : > { %7559 = vmatprep.subr.bf16.mxu0 %v11360_v58  ;;  %7739 = vmatpush1.bf16.msra.mxu1 %v8384_v56  ;;  %v6566_v56 = vld [vmem:[%s9031_s7 + $0xb0] sm:$0xff] }
 0x2c0   : > { %7724 = vmatprep.subr.bf16.mxu1 %v8707_v0  ;;  %v9658_v57 = vpack.c.bf16 %v6566_v56, %v6565_v47  ;;  %v8389_v47 = vld [vmem:[#allocation7 + $0xa8] sm:$0xff]   ;;  %v6569_v56 = vld [vmem:[%s9031_s7 + $0xd0] sm:$0xff] }
 0x2c1   : > { %2988 = vmatmul.mubr.bf16.gmra.mrb[8].mxu0 %v9616_v18 }
 0x2c2   : > { %2995 = vmatprep.mubr.bf16.mxu0 %v1214_v36  ;;  %7560 = vmatpush3.bf16.msra.mxu0 %v8298_v12  ;;  %v506_v36 = vld [vmem:[%s9031_s7 + $0x21] sm:$0xff]  ;;  %v397_v12 = vld [vmem:[%s9031_s7 + $0x10] sm:$0xff] }
 0x2c3   : > { %7561 = vmatprep.subr.bf16.mxu0 %v11360_v58  ;;  %v558_v13 = vpack.c.bf16 %v506_v36, %v505_v9  ;;  %v450_v28 = vpack.c.bf16 %v398_v48, %v397_v12  ;;  %7740 = vmatpush1.bf16.msra.mxu1 %v8385_v32  ;;  %v399_v36 = vld [vmem:[%s9031_s7 + $0x28] sm:$0xff]  ;;  %v400_v12 = vld [vmem:[%s9031_s7 + $0x30] sm:$0xff]  ;;  %v6567_v32 = vld [vmem:[%s9031_s7 + $0xc0] sm:$0xff] }
 0x2c4   : > { %7725 = vmatprep.subr.bf16.mxu1 %v8707_v0  ;;  %v509_v48 = vld [vmem:[%s9031_s7 + $0x41] sm:$0xff] }
 0x2c5   : > { %2232 = vmatprep.mubr.bf16.mxu1 %v558_v13  ;;  %v8388_v13 = vld [vmem:[#allocation7 + $0xa0] sm:$0xff]  }
 0x2c6   : > { %7562 = vmatpush3.bf16.msra.mxu0 %v8306_v8  ;;  %v1216_v8 = vpack.c.bf16 %v9380_v7, %v9371_v35  ;;  %2233 = vmatmul.mubr.bf16.gmra.mrb[4].mxu1 %v450_v28  ;;  %v451_v35 = vpack.c.bf16 %v400_v12, %v399_v36  ;;  %v8387_v7 = vld [vmem:[#allocation7 + $0x98] sm:$0xff]   ;;  %v510_v28 = vld [vmem:[%s9031_s7 + $0x49] sm:$0xff] }
 0x2c7   : > { %7563 = vmatprep.subr.bf16.mxu0 %v11360_v58  ;;  %7741 = vmatpush1.bf16.msra.mxu1 %v8386_v23  ;;  %v560_v23 = vpack.c.bf16 %v510_v28, %v509_v48  ;;  %v8391_v12 = vld [vmem:[#allocation7 + $0xb8] sm:$0xff]   ;;  %v6572_v48 = vld [vmem:[%s9031_s7 + $0xf0] sm:$0xff] }
 0x2c8   : > { %7726 = vmatprep.subr.bf16.mxu1 %v8707_v0 }
 0x2c9   : > { %2996 = vmatmul.mubr.bf16.gmra.mrb[12].mxu0 %v9631_v33 }
 0x2ca   : > { %3003 = vmatprep.mubr.bf16.mxu0 %v1215_v15  ;;  %v508_v15 = vld [vmem:[%s9031_s7 + $0x31] sm:$0xff]  ;;  %7564 = vmatpush3.bf16.msra.mxu0 %v8310_v27 }
 0x2cb   : > { %v559_v9 = vpack.c.bf16 %v508_v15, %v507_v54  ;;  %7742 = vmatpush1.bf16.msra.mxu1 %v8387_v7  ;;  %7565 = vmatprep.subr.bf16.mxu0 %v11360_v58  ;;  %v8390_v27 = vld [vmem:[#allocation7 + $0xb0] sm:$0xff]   ;;  %v512_v15 = vld [vmem:[%s9031_s7 + $0x61] sm:$0xff] }
 0x2cc   : > { %7727 = vmatprep.subr.bf16.mxu1 %v8707_v0  ;;  %v511_v54 = vld [vmem:[%s9031_s7 + $0x51] sm:$0xff] }
 0x2cd   : > { %2240 = vmatprep.mubr.bf16.mxu1 %v559_v9  ;;  %v6570_v9 = vld [vmem:[%s9031_s7 + $0xe0] sm:$0xff]  ;;  %v561_v36 = vpack.c.bf16 %v512_v15, %v511_v54  ;;  %v514_v7 = vld [vmem:[%s9031_s7 + $0x71] sm:$0xff] }
 0x2ce   : > { %2241 = vmatmul.mubr.bf16.gmra.mrb[8].mxu1 %v451_v35  ;;  %v9682_v52 = vpack.c.bf16 %v6570_v9, %v6569_v56  ;;  %v513_v35 = vld [vmem:[%s9031_s7 + $0x69] sm:$0xff]  ;;  %v8395_v54 = vld [vmem:[#allocation7 + $0xd8] sm:$0xff]   ;;  %v6576_v56 = vld [vmem:[%s9031_s7 + $0x120] sm:$0xff] }
 0x2cf   : > { %7743 = vmatpush1.bf16.msra.mxu1 %v8388_v13  ;;  %2248 = vmatprep.mubr.bf16.mxu1 %v560_v23  ;;  %v6571_v13 = vld [vmem:[%s9031_s7 + $0xe8] sm:$0xff]  ;;  %v562_v28 = vpack.c.bf16 %v514_v7, %v513_v35  ;;  %v6575_v15 = vld [vmem:[%s9031_s7 + $0x110] sm:$0xff] }
 0x2d0   : > { %7728 = vmatprep.subr.bf16.mxu1 %v8707_v0  ;;  %v9694_v37 = vpack.c.bf16 %v6572_v48, %v6571_v13  ;;  %v516_v23 = vld [vmem:[%s9031_s7 + $0x89] sm:$0xff]  ;;  %v517_v9 = vld [vmem:[%s9031_s7 + $0x91] sm:$0xff] }
 0x2d1   : > { %3004 = vmatmul.mubr.bf16.gmra.mrb[16].mxu0 %v9645_v19  ;;  %v6578_v35 = vld [vmem:[%s9031_s7 + $0x130] sm:$0xff]  ;;  %v8399_v48 = vld [vmem:[#allocation7 + $0xf8] sm:$0xff]  }
 0x2d2   : > { %3011 = vmatprep.mubr.bf16.mxu0 %v1216_v8  ;;  %v6568_v8 = vld [vmem:[%s9031_s7 + $0xc8] sm:$0xff] }
 0x2d3   : > { %7744 = vmatpush1.bf16.msra.mxu1 %v8389_v47  ;;  %v9670_v44 = vpack.c.bf16 %v6568_v8, %v6567_v32  ;;  %v8394_v32 = vld [vmem:[#allocation7 + $0xd0] sm:$0xff]   ;;  %v515_v8 = vld [vmem:[%s9031_s7 + $0x81] sm:$0xff] }
 0x2d4   : > { %7729 = vmatprep.subr.bf16.mxu1 %v8707_v0  ;;  %v6573_v47 = vld [vmem:[%s9031_s7 + $0x100] sm:$0xff]  ;;  %v519_v7 = vld [vmem:[%s9031_s7 + $0xa9] sm:$0xff] }
 0x2d6   : > { %2249 = vmatmul.mubr.bf16.gmra.mrb[12].mxu1 %v9595_v60  ;;  %v8392_v60 = vld [vmem:[#allocation7 + $0xc0] sm:$0xff]  }
 0x2d7   : > { %7745 = vmatpush1.bf16.msra.mxu1 %v8390_v27  ;;  %2256 = vmatprep.mubr.bf16.mxu1 %v561_v36  ;;  %v563_v27 = vpack.c.bf16 %v516_v23, %v515_v8  ;;  %v518_v36 = vld [vmem:[%s9031_s7 + $0xa1] sm:$0xff]  ;;  %v6581_v8 = vld [vmem:[%s9031_s7 + $0x150] sm:$0xff] }
 0x2d8   : > { %7730 = vmatprep.subr.bf16.mxu1 %v8707_v0  ;;  %v6582_v23 = vld [vmem:[%s9031_s7 + $0x160] sm:$0xff] }
 0x2d9   : > { %3012 = vmatmul.mubr.bf16.gmra.mrb[20].mxu0 %v9658_v57 }
 0x2da   : > { %3019 = vmatprep.mubr.bf16.mxu0 %v1217_v62  ;;  %v8311_v62 = vld [vmem:[#allocation7 + $0x238] sm:$0xff]  }
 0x2db   : > { %7746 = vmatpush1.bf16.msra.mxu1 %v8391_v12  ;;  %7566 = vmatpush3.bf16.msra.mxu0 %v8311_v62  ;;  %v564_v12 = vpack.c.bf16 %v518_v36, %v517_v9  ;;  %v520_v62 = vld [vmem:[%s9031_s7 + $0xb1] sm:$0xff] }
 0x2dc   : > { %7731 = vmatprep.subr.bf16.mxu1 %v8707_v0  ;;  %v565_v13 = vpack.c.bf16 %v520_v62, %v519_v7 }
 0x2de   : > { %2257 = vmatmul.mubr.bf16.gmra.mrb[16].mxu1 %v9605_v43  ;;  %v1220_v43 = vpack.c.bf16 %v9423_v45, %v9416_v42  ;;  %v1221_v45 = vpack.c.bf16 %v9433_v49, %v9426_v50  ;;  %v9718_v50 = vpack.c.bf16 %v6576_v56, %v6575_v15  ;;  %v1222_v49 = vpack.c.bf16 %v9444_v61, %v9436_v53  ;;  %v521_v61 = vld [vmem:[%s9031_s7 + $0xc1] sm:$0xff] }
 0x2df   : > { %7747 = vmatpush1.bf16.msra.mxu1 %v8392_v60  ;;  %2264 = vmatprep.mubr.bf16.mxu1 %v562_v28  ;;  %v6577_v60 = vld [vmem:[%s9031_s7 + $0x128] sm:$0xff]  ;;  %v6579_v28 = vld [vmem:[%s9031_s7 + $0x140] sm:$0xff] }
 0x2e0   : > { %7732 = vmatprep.subr.bf16.mxu1 %v8707_v0  ;;  %v9729_v53 = vpack.c.bf16 %v6578_v35, %v6577_v60  ;;  %v6585_v15 = vld [vmem:[%s9031_s7 + $0x180] sm:$0xff]  ;;  %v6586_v56 = vld [vmem:[%s9031_s7 + $0x188] sm:$0xff]  ;;  %v6590_v35 = vld [vmem:[%s9031_s7 + $0x1b0] sm:$0xff] }
 0x2e1   : > { %3020 = vmatmul.mubr.bf16.gmra.mrb[24].mxu0 %v9670_v44  ;;  %v9769_v36 = vpack.c.bf16 %v6586_v56, %v6585_v15  ;;  %v6589_v60 = vld [vmem:[%s9031_s7 + $0x1a8] sm:$0xff] }
 0x2e2   : > { %3027 = vmatprep.mubr.bf16.mxu0 %v1218_v17  ;;  %v6574_v17 = vld [vmem:[%s9031_s7 + $0x108] sm:$0xff]  ;;  %v9789_v62 = vpack.c.bf16 %v6590_v35, %v6589_v60 }
 0x2e3   : > { %7748 = vmatpush1.bf16.msra.mxu1 %v8393_v24  ;;  %v9706_v42 = vpack.c.bf16 %v6574_v17, %v6573_v47  ;;  %v6580_v24 = vld [vmem:[%s9031_s7 + $0x148] sm:$0xff]  ;;  %v9749_v17 = vpack.c.bf16 %v6582_v23, %v6581_v8 }
 0x2e4   : > { %7733 = vmatprep.subr.bf16.mxu1 %v8707_v0  ;;  %v540_v23 = vld [vmem:[%s9031_s7 + $0x189] sm:$0xff] }
 0x2e5   : > { %v549_v35 = vld [vmem:[%s9031_s7 + $0x1e9] sm:$0xff] }
 0x2e6   : > { %2265 = vmatmul.mubr.bf16.gmra.mrb[20].mxu1 %v9616_v18  ;;  %v8396_v18 = vld [vmem:[#allocation7 + $0xe0] sm:$0xff]  }
 0x2e7   : > { %7749 = vmatpush1.bf16.msra.mxu1 %v8394_v32  ;;  %2272 = vmatprep.mubr.bf16.mxu1 %v563_v27  ;;  %v9739_v32 = vpack.c.bf16 %v6580_v24, %v6579_v28  ;;  %v6583_v27 = vld [vmem:[%s9031_s7 + $0x168] sm:$0xff]  ;;  %v6594_v28 = vld [vmem:[%s9031_s7 + $0x1e0] sm:$0xff] }
 0x2e8   : > { %7734 = vmatprep.subr.bf16.mxu1 %v8707_v0 }
 0x2e9   : > { %3028 = vmatmul.mubr.bf16.gmra.mrb[28].mxu0 %v9682_v52 }
 0x2ea   : > { %3035 = vmatprep.mubr.bf16.mxu0 %v1219_v34  ;;  %v8397_v34 = vld [vmem:[#allocation7 + $0xe8] sm:$0xff]  }
 0x2eb   : > { %7750 = vmatpush1.bf16.msra.mxu1 %v8395_v54  ;;  %v6584_v54 = vld [vmem:[%s9031_s7 + $0x170] sm:$0xff] }
 0x2ec   : > { %7735 = vmatprep.subr.bf16.mxu1 %v8707_v0 }
 0x2ee   : > { %2273 = vmatmul.mubr.bf16.gmra.mrb[24].mxu1 %v9631_v33  ;;  %v8398_v33 = vld [vmem:[#allocation7 + $0xf0] sm:$0xff]  }
 0x2ef   : > { %7751 = vmatpush1.bf16.msra.mxu1 %v8396_v18  ;;  %2280 = vmatprep.mubr.bf16.mxu1 %v564_v12  ;;  %v9759_v18 = vpack.c.bf16 %v6584_v54, %v6583_v27  ;;  %v6587_v12 = vld [vmem:[%s9031_s7 + $0x190] sm:$0xff]  ;;  %v9844_v54 = vld [vmem:[%s9031_s7 + $0x220] sm:$0xff] }
 0x2f0   : > { %7736 = vmatprep.subr.bf16.mxu1 %v8707_v0  ;;  %v9841_v27 = vld [vmem:[%s9031_s7 + $0x210] sm:$0xff] }
 0x2f1   : > { %3036 = vmatmul.mubr.bf16.gmra.mrb[32].mxu0 %v9694_v37 }
 0x2f2   : > { %3043 = vmatprep.mubr.bf16.mxu0 %v1220_v43 }
 0x2f3   : > { %7752 = vmatpush1.bf16.msra.mxu1 %v8397_v34  ;;  %v6588_v34 = vld [vmem:[%s9031_s7 + $0x1a0] sm:$0xff] }
 0x2f4   : > { %7737 = vmatprep.subr.bf16.mxu1 %v8707_v0 }
 0x2f6   : > { %2281 = vmatmul.mubr.bf16.gmra.mrb[28].mxu1 %v9645_v19  ;;  %v522_v19 = vld [vmem:[%s9031_s7 + $0xc9] sm:$0xff] }
 0x2f7   : > { %7753 = vmatpush1.bf16.msra.mxu1 %v8398_v33  ;;  %2288 = vmatprep.mubr.bf16.mxu1 %v565_v13  ;;  %v566_v43 = vpack.c.bf16 %v522_v19, %v521_v61  ;;  %v9779_v33 = vpack.c.bf16 %v6588_v34, %v6587_v12  ;;  %v6591_v13 = vld [vmem:[%s9031_s7 + $0x1c0] sm:$0xff]  ;;  %v6593_v19 = vld [vmem:[%s9031_s7 + $0x1d0] sm:$0xff] }
 0x2f8   : > { %7738 = vmatprep.subr.bf16.mxu1 %v8707_v0  ;;  %v1223_v0 = vpack.c.bf16 %v9454_v63, %v9447_v3  ;;  %v1224_v3 = vpack.c.bf16 %v9464_v20, %v9457_v6  ;;  %v523_v63 = vld [vmem:[%s9031_s7 + $0xd1] sm:$0xff]  ;;  %v1225_v6 = vpack.c.bf16 %v9474_v21, %v9467_v14  ;;  %v525_v20 = vld [vmem:[%s9031_s7 + $0xe9] sm:$0xff]  ;;  %v1226_v14 = vpack.c.bf16 %v9484_v10, %v9477_v22  ;;  %v527_v21 = vld [vmem:[%s9031_s7 + $0x101] sm:$0xff] }
 0x2f9   : > { %3044 = vmatmul.mubr.bf16.gmra.mrb[36].mxu0 %v9706_v42  ;;  %v1227_v22 = vpack.c.bf16 %v9494_v29, %v9487_v31  ;;  %v529_v10 = vld [vmem:[%s9031_s7 + $0x111] sm:$0xff]  ;;  %v1228_v31 = vpack.c.bf16 %v9504_v55, %v9497_v41  ;;  %v531_v29 = vld [vmem:[%s9031_s7 + $0x129] sm:$0xff]  ;;  %v1229_v41 = vpack.c.bf16 %v9514_v4, %v9507_v1  ;;  %v533_v55 = vld [vmem:[%s9031_s7 + $0x141] sm:$0xff]  ;;  %v1230_v1 = vpack.c.bf16 %v9524_v46, %v9517_v2 }
 0x2fa   : > { %3051 = vmatprep.mubr.bf16.mxu0 %v1221_v45  ;;  %v535_v4 = vld [vmem:[%s9031_s7 + $0x151] sm:$0xff]  ;;  %v1231_v2 = vpack.c.bf16 %v9534_v26, %v9527_v16  ;;  %v537_v46 = vld [vmem:[%s9031_s7 + $0x169] sm:$0xff]  ;;  %v1232_v16 = vpack.c.bf16 %v9545_v40, %v9537_v11  ;;  %v539_v26 = vld [vmem:[%s9031_s7 + $0x181] sm:$0xff]  ;;  %v1233_v11 = vpack.c.bf16 %v9557_v39, %v9548_v59  ;;  %v1234_v59 = vpack.c.bf16 %v9569_v51, %v9560_v25 }
 0x2fb   : > { %7754 = vmatpush1.bf16.msra.mxu1 %v8399_v48  ;;  %v6592_v48 = vld [vmem:[%s9031_s7 + $0x1c8] sm:$0xff]  ;;  %v541_v40 = vld [vmem:[%s9031_s7 + $0x191] sm:$0xff]  ;;  %v1235_v25 = vpack.c.bf16 %v9581_v38, %v9572_v30 }
 0x2fc   : > { %v9799_v61 = vpack.c.bf16 %v6592_v48, %v6591_v13  ;;  %v543_v39 = vld [vmem:[%s9031_s7 + $0x1a9] sm:$0xff]  ;;  %v545_v51 = vld [vmem:[%s9031_s7 + $0x1c1] sm:$0xff]  ;;  %v547_v12 = vld [vmem:[%s9031_s7 + $0x1d1] sm:$0xff] }
 0x2fd   : > { %v548_v34 = vld [vmem:[%s9031_s7 + $0x1e1] sm:$0xff] }
 0x2fe   : > { %2289 = vmatmul.mubr.bf16.gmra.mrb[32].mxu1 %v9658_v57  ;;  %v524_v57 = vld [vmem:[%s9031_s7 + $0xe1] sm:$0xff] }
 0x2ff   : > { %2296 = vmatprep.mubr.bf16.mxu1 %v566_v43  ;;  %v567_v47 = vpack.c.bf16 %v524_v57, %v523_v63  ;;  %v9809_v43 = vpack.c.bf16 %v6594_v28, %v6593_v19  ;;  %v6596_v63 = vld [vmem:[%s9031_s7 + $0x1f0] sm:$0xff] }
 0x300   : > { %v6664_v19 = vld [vmem:[%s9031_s7 + $0x4a] sm:$0xff] }
 0x301   : > { %3052 = vmatmul.mubr.bf16.gmra.mrb[40].mxu0 %v9718_v50 }
 0x302   : > { %3059 = vmatprep.mubr.bf16.mxu0 %v1222_v49 }
 0x306   : > { %2297 = vmatmul.mubr.bf16.gmra.mrb[36].mxu1 %v9670_v44  ;;  %v526_v44 = vld [vmem:[%s9031_s7 + $0xf1] sm:$0xff] }
 0x307   : > { %2304 = vmatprep.mubr.bf16.mxu1 %v567_v47  ;;  %v568_v45 = vpack.c.bf16 %v526_v44, %v525_v20  ;;  %v6597_v47 = vld [vmem:[%s9031_s7 + $0x200] sm:$0xff] }
 0x308   : > { %v542_v44 = vld [vmem:[%s9031_s7 + $0x1a1] sm:$0xff] }
 0x309   : > { %3060 = vmatmul.mubr.bf16.gmra.mrb[44].mxu0 %v9729_v53 }
 0x30a   : > { %3067 = vmatprep.mubr.bf16.mxu0 %v1223_v0 }
 0x30e   : > { %2305 = vmatmul.mubr.bf16.gmra.mrb[40].mxu1 %v9682_v52  ;;  %v528_v52 = vld [vmem:[%s9031_s7 + $0x109] sm:$0xff] }
 0x30f   : > { %2312 = vmatprep.mubr.bf16.mxu1 %v568_v45  ;;  %v569_v9 = vpack.c.bf16 %v528_v52, %v527_v21  ;;  %v576_v45 = vpack.c.bf16 %v542_v44, %v541_v40  ;;  %v9857_v21 = vld [vmem:[%s9031_s7 + $0x228] sm:$0xff]  ;;  %v9860_v52 = vld [vmem:[%s9031_s7 + $0x230] sm:$0xff] }
 0x310   : > { %v9864_v56 = vpack.c.bf16 %v9860_v52, %v9857_v21 }
 0x311   : > { %3068 = vmatmul.mubr.bf16.gmra.mrb[48].mxu0 %v9739_v32 }
 0x312   : > { %3075 = vmatprep.mubr.bf16.mxu0 %v1224_v3  ;;  %v6595_v3 = vld [vmem:[%s9031_s7 + $0x1e8] sm:$0xff] }
 0x313   : > { %v9819_v8 = vpack.c.bf16 %v6596_v63, %v6595_v3  ;;  %v553_v3 = vld [vmem:[%s9031_s7 + $0x211] sm:$0xff]  ;;  %v554_v63 = vld [vmem:[%s9031_s7 + $0x221] sm:$0xff] }
 0x316   : > { %2313 = vmatmul.mubr.bf16.gmra.mrb[44].mxu1 %v9694_v37  ;;  %v530_v37 = vld [vmem:[%s9031_s7 + $0x121] sm:$0xff] }
 0x317   : > { %2320 = vmatprep.mubr.bf16.mxu1 %v569_v9  ;;  %v570_v49 = vpack.c.bf16 %v530_v37, %v529_v10  ;;  %v546_v9 = vld [vmem:[%s9031_s7 + $0x1c9] sm:$0xff]  ;;  %v6660_v37 = vld [vmem:[%s9031_s7 + $0x261] sm:$0xff] }
 0x318   : > { %v578_v10 = vpack.c.bf16 %v546_v9, %v545_v51  ;;  %v1236_v38 = vpack.c.bf16 %v6660_v37, %v9584_v5 }
 0x319   : > { %3076 = vmatmul.mubr.bf16.gmra.mrb[52].mxu0 %v9749_v17 }
 0x31a   : > { %3083 = vmatprep.mubr.bf16.mxu0 %v1225_v6  ;;  %v575_v6 = vpack.c.bf16 %v540_v23, %v539_v26  ;;  %v555_v23 = vld [vmem:[%s9031_s7 + $0x229] sm:$0xff] }
 0x31e   : > { %2321 = vmatmul.mubr.bf16.gmra.mrb[48].mxu1 %v9706_v42  ;;  %v532_v42 = vld [vmem:[%s9031_s7 + $0x131] sm:$0xff] }
 0x31f   : > { %2328 = vmatprep.mubr.bf16.mxu1 %v570_v49  ;;  %v571_v7 = vpack.c.bf16 %v532_v42, %v531_v29  ;;  %v9886_v49 = vld [vmem:[%s9031_s7 + $0x250] sm:$0xff] }
 0x320   : > { %v6661_v29 = vld [vmem:[%s9031_s7 + $0x269] sm:$0xff]  ;;  %v6662_v42 = vld [vmem:[%s9031_s7 + $0x271] sm:$0xff] }
 0x321   : > { %3084 = vmatmul.mubr.bf16.gmra.mrb[56].mxu0 %v9759_v18  ;;  %v1237_v5 = vpack.c.bf16 %v6662_v42, %v6661_v29  ;;  %v6673_v29 = vld [vmem:[%s9031_s7 + $0xaa] sm:$0xff]  ;;  %v6674_v42 = vld [vmem:[%s9031_s7 + $0xb2] sm:$0xff] }
 0x322   : > { %3091 = vmatprep.mubr.bf16.mxu0 %v1226_v14  ;;  %v544_v14 = vld [vmem:[%s9031_s7 + $0x1b1] sm:$0xff] }
 0x323   : > { %v577_v15 = vpack.c.bf16 %v544_v14, %v543_v39  ;;  %v6669_v39 = vld [vmem:[%s9031_s7 + $0x82] sm:$0xff]  ;;  %v6670_v14 = vld [vmem:[%s9031_s7 + $0x8a] sm:$0xff] }
 0x324   : > { %v1322_v9 = vpack.c.bf16 %v6670_v14, %v6669_v39  ;;  %v8318_v14 = vld [vmem:[#allocation12 + $0x58] sm:$0xff]  }
 0x326   : > { %2329 = vmatmul.mubr.bf16.gmra.mrb[52].mxu1 %v9718_v50  ;;  %v534_v50 = vld [vmem:[%s9031_s7 + $0x149] sm:$0xff] }
 0x327   : > { %2336 = vmatprep.mubr.bf16.mxu1 %v571_v7  ;;  %v572_v0 = vpack.c.bf16 %v534_v50, %v533_v55  ;;  %v550_v7 = vld [vmem:[%s9031_s7 + $0x1f1] sm:$0xff] }
 0x328   : > { %v580_v55 = vpack.c.bf16 %v550_v7, %v549_v35  ;;  %v6677_v7 = vld [vmem:[%s9031_s7 + $0xd2] sm:$0xff] }
 0x329   : > { %3092 = vmatmul.mubr.bf16.gmra.mrb[60].mxu0 %v9769_v36 }
 0x32a   : > { %3099 = vmatprep.mubr.bf16.mxu0 %v1227_v22  ;;  %v9876_v22 = vld [vmem:[%s9031_s7 + $0x248] sm:$0xff] }
 0x32e   : > { %2337 = vmatmul.mubr.bf16.gmra.mrb[56].mxu1 %v9729_v53  ;;  %v536_v53 = vld [vmem:[%s9031_s7 + $0x161] sm:$0xff] }
 0x32f   : > { %2344 = vmatprep.mubr.bf16.mxu1 %v572_v0  ;;  %v573_v24 = vpack.c.bf16 %v536_v53, %v535_v4  ;;  %v552_v4 = vld [vmem:[%s9031_s7 + $0x209] sm:$0xff] }
 0x330   : > { %v6663_v53 = vld [vmem:[%s9031_s7 + $0x42] sm:$0xff] }
 0x331   : > { %3100 = vmatmul.mubr.bf16.gmra.mrb[64].mxu0 %v9779_v33 }
 0x332   : > { %3107 = vmatprep.mubr.bf16.mxu0 %v1228_v31  ;;  %v579_v31 = vpack.c.bf16 %v548_v34, %v547_v12 }
 0x336   : > { %2345 = vmatmul.mubr.bf16.gmra.mrb[60].mxu1 %v9739_v32  ;;  %v538_v32 = vld [vmem:[%s9031_s7 + $0x171] sm:$0xff] }
 0x337   : > { %2352 = vmatprep.mubr.bf16.mxu1 %v573_v24  ;;  %v574_v57 = vpack.c.bf16 %v538_v32, %v537_v46 }
 0x339   : > { %3108 = vmatmul.mubr.bf16.gmra.mrb[68].mxu0 %v9789_v62 }
 0x33a   : > { %3115 = vmatprep.mubr.bf16.mxu0 %v1229_v41  ;;  %v6608_v41 = vld [vmem:[%s9031_s7 + $0x270] sm:$0xff] }
 0x33e   : > { %2353 = vmatmul.mubr.bf16.gmra.mrb[64].mxu1 %v9749_v17  ;;  %v9829_v17 = vld [vmem:[%s9031_s7 + $0x208] sm:$0xff] }
 0x33f   : > { %2360 = vmatprep.mubr.bf16.mxu1 %v574_v57  ;;  %v9832_v20 = vpack.c.bf16 %v9829_v17, %v6597_v47  ;;  %v6665_v57 = vld [vmem:[%s9031_s7 + $0x52] sm:$0xff]  ;;  %v799_v44 = vpack.c.bf16 %v9841_v27, %v9829_v17  ;;  %v800_v17 = vpack.c.bf16 %v9857_v21, %v9844_v54 }
 0x340   : > { %v556_v47 = vld [vmem:[%s9031_s7 + $0x231] sm:$0xff] }
 0x341   : > { %3116 = vmatmul.mubr.bf16.gmra.mrb[72].mxu0 %v9799_v61  ;;  %v661_v21 = vld [vmem:[%s9031_s7 + $0x212] sm:$0xff] }
 0x342   : > { %3123 = vmatprep.mubr.bf16.mxu0 %v1230_v1  ;;  %v551_v1 = vld [vmem:[%s9031_s7 + $0x201] sm:$0xff] }
 0x343   : > { %v581_v28 = vpack.c.bf16 %v552_v4, %v551_v1  ;;  %v6681_v1 = vld [vmem:[%s9031_s7 + $0x102] sm:$0xff]  ;;  %v6682_v4 = vld [vmem:[%s9031_s7 + $0x10a] sm:$0xff] }
 0x346   : > { %2361 = vmatmul.mubr.bf16.gmra.mrb[68].mxu1 %v9759_v18  ;;  %v9848_v18 = vpack.c.bf16 %v9844_v54, %v9841_v27  ;;  %v659_v27 = vld [vmem:[%s9031_s7 + $0x202] sm:$0xff] }
 0x347   : > { %2368 = vmatprep.mubr.bf16.mxu1 %v575_v6  ;;  %v6667_v6 = vld [vmem:[%s9031_s7 + $0x6a] sm:$0xff] }
 0x349   : > { %3124 = vmatmul.mubr.bf16.gmra.mrb[76].mxu0 %v9809_v43 }
 0x34a   : > { %3131 = vmatprep.mubr.bf16.mxu0 %v1231_v2  ;;  %v1319_v2 = vpack.c.bf16 %v6664_v19, %v6663_v53 }
 0x34e   : > { %2369 = vmatmul.mubr.bf16.gmra.mrb[72].mxu1 %v9769_v36  ;;  %v9873_v36 = vld [vmem:[%s9031_s7 + $0x240] sm:$0xff] }
 0x34f   : > { %2376 = vmatprep.mubr.bf16.mxu1 %v576_v45  ;;  %v1127_v30 = vpack.c.bf16 %v9876_v22, %v9873_v36  ;;  %v657_v45 = vld [vmem:[%s9031_s7 + $0x1ea] sm:$0xff]  ;;  %v801_v54 = vpack.c.bf16 %v9873_v36, %v9860_v52  ;;  %v6675_v52 = vld [vmem:[%s9031_s7 + $0xc2] sm:$0xff] }
 0x350   : > { %v6676_v36 = vld [vmem:[%s9031_s7 + $0xca] sm:$0xff] }
 0x351   : > { %3132 = vmatmul.mubr.bf16.gmra.mrb[80].mxu0 %v9819_v8  ;;  %v1325_v35 = vpack.c.bf16 %v6676_v36, %v6675_v52  ;;  %v802_v52 = vpack.c.bf16 %v9886_v49, %v9876_v22  ;;  %v4050_v22 = vrot.slane %v11360_v58, 1 }
 0x352   : > { %3139 = vmatprep.mubr.bf16.mxu0 %v1232_v16  ;;  %v582_v16 = vpack.c.bf16 %v554_v63, %v553_v3 }
 0x356   : > { %2377 = vmatmul.mubr.bf16.gmra.mrb[76].mxu1 %v9779_v33  ;;  %v6606_v33 = vld [vmem:[%s9031_s7 + $0x260] sm:$0xff] }
 0x357   : > { %2384 = vmatprep.mubr.bf16.mxu1 %v577_v15  ;;  %v1128_v60 = vpack.c.bf16 %v6606_v33, %v9886_v49  ;;  %v6691_v49 = vld [vmem:[%s9031_s7 + $0x16a] sm:$0xff] }
 0x359   : > { %3140 = vmatmul.mubr.bf16.gmra.mrb[84].mxu0 %v9832_v20 }
 0x35a   : > { %3147 = vmatprep.mubr.bf16.mxu0 %v1233_v11  ;;  %v583_v11 = vpack.c.bf16 %v556_v47, %v555_v23  ;;  %v8314_v23 = vld [vmem:[#allocation12 + $0x48] sm:$0xff]  }
 0x35b   : > { %v8315_v47 = vld [vmem:[#allocation12 + $0x8] sm:$0xff]  }
 0x35e   : > { %2385 = vmatmul.mubr.bf16.gmra.mrb[80].mxu1 %v9789_v62  ;;  %v6607_v62 = vld [vmem:[%s9031_s7 + $0x268] sm:$0xff] }
 0x35f   : > { %2392 = vmatprep.mubr.bf16.mxu1 %v578_v10  ;;  %v1129_v48 = vpack.c.bf16 %v6608_v41, %v6607_v62  ;;  %v660_v10 = vld [vmem:[%s9031_s7 + $0x20a] sm:$0xff]  ;;  %v6678_v62 = vld [vmem:[%s9031_s7 + $0xe2] sm:$0xff] }
 0x360   : > { %v9938_v12 = vpack.c.bf16 %v660_v10, %v659_v27  ;;  %v1326_v41 = vpack.c.bf16 %v6678_v62, %v6677_v7  ;;  %v8320_v10 = vld [vmem:[#allocation12 + $0x60] sm:$0xff]   ;;  %v8324_v7 = vld [vmem:[#allocation12 + $0x70] sm:$0xff]  }
 0x361   : > { %3148 = vmatmul.mubr.bf16.gmra.mrb[88].mxu0 %v9848_v18 }
 0x362   : > { %3155 = vmatprep.mubr.bf16.mxu0 %v1234_v59 }
 0x366   : > { %2393 = vmatmul.mubr.bf16.gmra.mrb[84].mxu1 %v9799_v61 }
 0x367   : > { %2400 = vmatprep.mubr.bf16.mxu1 %v579_v31  ;;  %v662_v31 = vld [vmem:[%s9031_s7 + $0x222] sm:$0xff] }
 0x369   : > { %3156 = vmatmul.mubr.bf16.gmra.mrb[96].mxu0 %v9864_v56 }
 0x36a   : > { %3163 = vmatprep.mubr.bf16.mxu0 %v1235_v25 }
 0x36e   : > { %2401 = vmatmul.mubr.bf16.gmra.mrb[88].mxu1 %v9809_v43 }
 0x36f   : > { %2408 = vmatprep.mubr.bf16.mxu1 %v580_v55 }
 0x371   : > { %3164 = vmatmul.mubr.bf16.gmra.mrb[100].mxu0 %v1127_v30  ;;  %v6671_v30 = vld [vmem:[%s9031_s7 + $0x92] sm:$0xff] }
 0x372   : > { %3171 = vmatprep.mubr.bf16.mxu0 %v1236_v38  ;;  %v6672_v38 = vld [vmem:[%s9031_s7 + $0xa2] sm:$0xff] }
 0x373   : > { %v1323_v33 = vpack.c.bf16 %v6672_v38, %v6671_v30  ;;  %v8321_v30 = vld [vmem:[#allocation12 + $0x20] sm:$0xff]   ;;  %v8322_v38 = vld [vmem:[#allocation12 + $0x68] sm:$0xff]  }
 0x376   : > { %2409 = vmatmul.mubr.bf16.gmra.mrb[92].mxu1 %v9819_v8  ;;  %v6666_v8 = vld [vmem:[%s9031_s7 + $0x62] sm:$0xff] }
 0x377   : > { %2416 = vmatprep.mubr.bf16.mxu1 %v581_v28  ;;  %v1320_v26 = vpack.c.bf16 %v6666_v8, %v6665_v57  ;;  %v8312_v57 = vld [vmem:[#allocation12 + $0x40] sm:$0xff]  }
 0x378   : > { %7079 = vmatprep.subr.bf16.mxu1 %v8312_v57 }
 0x379   : > { %3172 = vmatmul.mubr.bf16.gmra.mrb[104].mxu0 %v1128_v60  ;;  %v9949_v60 = vpack.c.bf16 %v662_v31, %v661_v21  ;;  %v8323_v21 = vld [vmem:[#allocation12 + $0x28] sm:$0xff]  }
 0x37a   : > { %3179 = vmatprep.mubr.bf16.mxu0 %v1237_v5  ;;  %v1324_v5 = vpack.c.bf16 %v6674_v42, %v6673_v29  ;;  %v6689_v31 = vld [vmem:[%s9031_s7 + $0x152] sm:$0xff]  ;;  %v6690_v29 = vld [vmem:[%s9031_s7 + $0x162] sm:$0xff] }
 0x37b   : > { %v1332_v62 = vpack.c.bf16 %v6690_v29, %v6689_v31  ;;  %v6701_v29 = vld [vmem:[%s9031_s7 + $0x1d2] sm:$0xff] }
 0x37c   : > { %v2932_v50 = vpop.f32.mrb[108].mxu0 }
 0x37d   : > { %v2934_v13 = vpop.f32.mrb[109].mxu0  ;;  %v6679_v50 = vld [vmem:[%s9031_s7 + $0xea] sm:$0xff] }
 0x37e   : > { %v2935_v0 = vpop.f32.mrb[110].mxu0  ;;  %2417 = vmatmul.mubr.bf16.gmra.mrb[96].mxu1 %v9832_v20  ;;  %v6668_v20 = vld [vmem:[%s9031_s7 + $0x72] sm:$0xff] }
 0x37f   : > { %v2937_v61 = vpop.f32.mrb[111].mxu0  ;;  %2424 = vmatprep.mubr.bf16.mxu1 %v582_v16  ;;  %v1321_v40 = vpack.c.bf16 %v6668_v20, %v6667_v6  ;;  %v6680_v13 = vld [vmem:[%s9031_s7 + $0xf2] sm:$0xff]  ;;  %v8313_v16 = vld [vmem:[#allocation12] sm:$0xff]  }
 0x380   : > { %v1327_v0 = vpack.c.bf16 %v6680_v13, %v6679_v50  ;;  %v8326_v50 = vld [vmem:[#allocation12 + $0x78] sm:$0xff]  }
 0x381   : > { %3180 = vmatmul.mubr.bf16.gmra.mrb[116].mxu0 %v1129_v48 }
 0x382   : > { %7567 = vmatprep.mubr.msk.bf16.mxu0 %vm8709_vm0, %v11360_v58 }
 0x384   : > { %v2973_v24 = vpop.f32.mrb[112].mxu0 }
 0x385   : > { %v2975_v43 = vpop.f32.mrb[113].mxu0  ;;  %v1328_v24 = vpack.c.bf16 %v6682_v4, %v6681_v1 }
 0x386   : > { %v2976_v46 = vpop.f32.mrb[114].mxu0  ;;  %2425 = vmatmul.mubr.bf16.gmra.mrb[100].mxu1 %v9848_v18  ;;  %v658_v18 = vld [vmem:[%s9031_s7 + $0x1f2] sm:$0xff] }
 0x387   : > { %v2978_v32 = vpop.f32.mrb[115].mxu0  ;;  %2432 = vmatprep.mubr.bf16.mxu1 %v583_v11  ;;  %v9927_v15 = vpack.c.bf16 %v658_v18, %v657_v45  ;;  %v6684_v46 = vld [vmem:[%s9031_s7 + $0x122] sm:$0xff]  ;;  %v6685_v11 = vld [vmem:[%s9031_s7 + $0x12a] sm:$0xff]  ;;  %v8316_v45 = vld [vmem:[#allocation12 + $0x50] sm:$0xff]  }
 0x389   : > { %7568 = vmatmul.mubr.bf16.vlgmr.msra.gmra.mrb[120].mxu0 %v1319_v2  ;;  %v6683_v2 = vld [vmem:[%s9031_s7 + $0x112] sm:$0xff] }
 0x38a   : > { %7571 = vmatprep.mubr.msk.bf16.mxu0 %vm8709_vm0, %v11360_v58  ;;  %v1329_v8 = vpack.c.bf16 %v6684_v46, %v6683_v2  ;;  %v11359_v2 = vmov 0.0|0.0  }
 0x38e   : > { %2433 = vmatmul.mubr.bf16.gmra.mrb[104].mxu1 %v9864_v56 }
 0x38f   : > { %2657 = vmatprep.mubr.bf16.mxu1 %v799_v44 }
 0x391   : > { %7572 = vmatmul.mubr.bf16.gmra.mrb[4].mxu0 %v1320_v26  ;;  %v2226_v59 = vpop.f32.mrb[0].mxu1 }
 0x392   : > { %7575 = vmatprep.mubr.msk.bf16.mxu0 %vm8709_vm0, %v11360_v58  ;;  %v2228_v25 = vpop.f32.mrb[1].mxu1  ;;  %v8317_v59 = vld [vmem:[#allocation12 + $0x10] sm:$0xff]  }
 0x393   : > { %v2229_v56 = vpop.f32.mrb[2].mxu1  ;;  %v8319_v25 = vld [vmem:[#allocation12 + $0x18] sm:$0xff]  }
 0x394   : > { %v2231_v51 = vpop.f32.mrb[3].mxu1 }
 0x396   : > { %2658 = vmatmul.mubr.bf16.vlgmr.msra.gmra.mrb[92].mxu1 %v9927_v15 }
 0x397   : > { %2665 = vmatprep.mubr.bf16.mxu1 %v800_v17  ;;  %7080 = vmatpush3.bf16.msra.mxu1 %v8313_v16  ;;  %v6688_v17 = vld [vmem:[%s9031_s7 + $0x14a] sm:$0xff] }
 0x398   : > { %7081 = vmatprep.subr.bf16.mxu1 %v8314_v23 }
 0x399   : > { %7576 = vmatmul.mubr.bf16.gmra.mrb[8].mxu0 %v1321_v40  ;;  %v2234_v37 = vpop.f32.mrb[4].mxu1  ;;  %v6686_v40 = vld [vmem:[%s9031_s7 + $0x132] sm:$0xff] }
 0x39a   : > { %7579 = vmatprep.mubr.msk.bf16.mxu0 %vm8709_vm0, %v11360_v58  ;;  %v2236_v34 = vpop.f32.mrb[5].mxu1  ;;  %v1330_v18 = vpack.c.bf16 %v6686_v40, %v6685_v11  ;;  %v6696_v11 = vld [vmem:[%s9031_s7 + $0x1a2] sm:$0xff] }
 0x39b   : > { %v9960_v55 = vpop.f32.mrb[6].mxu1  ;;  %7082 = vmatpush3.bf16.msra.mxu1 %v8315_v47  ;;  %v6709_v34 = vld [vmem:[%s9031_s7 + $0x22a] sm:$0xff] }
 0x39c   : > { %v2239_v48 = vpop.f32.mrb[7].mxu1  ;;  %7083 = vmatprep.subr.bf16.mxu1 %v8316_v45 }
 0x39d   : > { %v8327_v48 = vld [vmem:[#allocation12 + $0x38] sm:$0xff]  }
 0x39e   : > { %2666 = vmatmul.mubr.bf16.gmra.mrb[96].mxu1 %v9938_v12 }
 0x39f   : > { %2673 = vmatprep.mubr.bf16.mxu1 %v801_v54  ;;  %7084 = vmatpush3.bf16.msra.mxu1 %v8317_v59 }
 0x3a0   : > { %7085 = vmatprep.subr.bf16.mxu1 %v8318_v14  ;;  %v6697_v14 = vld [vmem:[%s9031_s7 + $0x1aa] sm:$0xff] }
 0x3a1   : > { %7580 = vmatmul.mubr.bf16.gmra.mrb[12].mxu0 %v1322_v9  ;;  %v9966_v61 = vpop.f32.mrb[8].mxu1  ;;  %v6687_v9 = vld [vmem:[%s9031_s7 + $0x142] sm:$0xff] }
 0x3a2   : > { %7583 = vmatprep.mubr.msk.bf16.mxu0 %vm8709_vm0, %v11360_v58  ;;  %v2244_v53 = vpop.f32.mrb[9].mxu1  ;;  %v1331_v37 = vpack.c.bf16 %v6688_v17, %v6687_v9 }
 0x3a3   : > { %v9972_v19 = vpop.f32.mrb[10].mxu1  ;;  %7086 = vmatpush3.bf16.msra.mxu1 %v8319_v25  ;;  %v10022_v53 = vpack.c.bf16 %v4050_v22, %v4050_v22  ;;  %v6698_v25 = vld [vmem:[%s9031_s7 + $0x1b2] sm:$0xff] }
 0x3a4   : > { %v2247_v28 = vpop.f32.mrb[11].mxu1  ;;  %7087 = vmatprep.subr.bf16.mxu1 %v8320_v10 }
 0x3a5   : > { %11413 = vst [vmem:[#allocation22_spill] sm:$0xff] %v10022_v53 }
 0x3a6   : > { %2674 = vmatmul.mubr.bf16.gmra.mrb[100].mxu1 %v9949_v60 }
 0x3a7   : > { %7088 = vmatpush3.bf16.msra.mxu1 %v8321_v30  ;;  %2681 = vmatprep.mubr.bf16.mxu1 %v802_v52  ;;  %v6700_v30 = vld [vmem:[%s9031_s7 + $0x1ca] sm:$0xff] }
 0x3a8   : > { %7089 = vmatprep.subr.bf16.mxu1 %v8322_v38 }
 0x3a9   : > { %7584 = vmatmul.mubr.bf16.gmra.mrb[16].mxu0 %v1323_v33  ;;  %v9974_v43 = vpop.f32.mrb[12].mxu1  ;;  %v6710_v33 = vld [vmem:[%s9031_s7 + $0x232] sm:$0xff] }
 0x3aa   : > { %7587 = vmatprep.mubr.msk.bf16.mxu0 %vm8709_vm0, %v11360_v58  ;;  %v2252_v32 = vpop.f32.mrb[13].mxu1  ;;  %v10010_v36 = vpack.c.bf16 %v6710_v33, %v6709_v34 }
 0x3ab   : > { %v9980_v3 = vpop.f32.mrb[14].mxu1  ;;  %7090 = vmatpush3.bf16.msra.mxu1 %v8323_v21  ;;  %v6693_v32 = vld [vmem:[%s9031_s7 + $0x182] sm:$0xff] }
 0x3ac   : > { %v2255_v63 = vpop.f32.mrb[15].mxu1  ;;  %7091 = vmatprep.subr.bf16.mxu1 %v8324_v7 }
 0x3ad   : > { %v6694_v63 = vld [vmem:[%s9031_s7 + $0x18a] sm:$0xff] }
 0x3ae   : > { %2682 = vmatmul.mubr.bf16.gmra.mrb[108].mxu1 %v10010_v36  ;;  %v1334_v23 = vpack.c.bf16 %v6694_v63, %v6693_v32 }
 0x3af   : > { %5227 = vmatprep.mubr.bf16.mxu1 %v10022_v53 }
 0x3b1   : > { %7588 = vmatmul.mubr.bf16.gmra.mrb[20].mxu0 %v1324_v5  ;;  %v9982_v26 = vpop.f32.mrb[16].mxu1 }
 0x3b2   : > { %7591 = vmatprep.mubr.msk.bf16.mxu0 %vm8709_vm0, %v11360_v58  ;;  %v2260_v6 = vpop.f32.mrb[17].mxu1 }
 0x3b3   : > { %v9984_v20 = vpop.f32.mrb[18].mxu1  ;;  %v6695_v6 = vld [vmem:[%s9031_s7 + $0x192] sm:$0xff] }
 0x3b4   : > { %v2263_v44 = vpop.f32.mrb[19].mxu1 }
 0x3b9   : > { %7592 = vmatmul.mubr.bf16.gmra.mrb[24].mxu0 %v1325_v35  ;;  %v9990_v39 = vpop.f32.mrb[20].mxu1 }
 0x3ba   : > { %7595 = vmatprep.mubr.msk.bf16.mxu0 %vm8709_vm0, %v11360_v58  ;;  %v2268_v56 = vpop.f32.mrb[21].mxu1 }
 0x3bb   : > { %v9992_v51 = vpop.f32.mrb[22].mxu1 }
 0x3bc   : > { %v2271_v27 = vpop.f32.mrb[23].mxu1 }
 0x3bd   : > { %v1336_v27 = vpack.c.bf16 %v6698_v25, %v6697_v14 }
 0x3c1   : > { %7596 = vmatmul.mubr.bf16.gmra.mrb[28].mxu0 %v1326_v41  ;;  %v10000_v54 = vpop.f32.mrb[24].mxu1  ;;  %v8325_v41 = vld [vmem:[#allocation12 + $0x30] sm:$0xff]  }
 0x3c2   : > { %7599 = vmatprep.mubr.msk.bf16.mxu0 %vm8709_vm0, %v11360_v58  ;;  %v2276_v42 = vpop.f32.mrb[25].mxu1  ;;  %7092 = vmatpush3.bf16.msra.mxu1 %v8325_v41 }
 0x3c3   : > { %v10006_v5 = vpop.f32.mrb[26].mxu1  ;;  %7093 = vmatprep.subr.bf16.mxu1 %v8326_v50  ;;  %v6702_v42 = vld [vmem:[%s9031_s7 + $0x1e2] sm:$0xff] }
 0x3c4   : > { %v2279_v35 = vpop.f32.mrb[27].mxu1 }
 0x3c6   : > { %7094 = vmatpush3.bf16.msra.mxu1 %v8327_v48 }
 0x3c9   : > { %7600 = vmatmul.mubr.bf16.gmra.mrb[32].mxu0 %v1327_v0  ;;  %v10013_v13 = vpop.f32.mrb[28].mxu1  ;;  %v6692_v0 = vld [vmem:[%s9031_s7 + $0x172] sm:$0xff]  ;;  %5228 = vmatmul.mubr.bf16.vlgmr.msra.gmra.mrb[112].mxu1 %v11359_v2 }
 0x3ca   : > { %7603 = vmatprep.mubr.msk.bf16.mxu0 %vm8709_vm0, %v11360_v58  ;;  %v2284_v1 = vpop.f32.mrb[29].mxu1 }
 0x3cb   : > { %v10020_v4 = vpop.f32.mrb[30].mxu1 }
 0x3cc   : > { %v2287_v28 = vpop.f32.mrb[31].mxu1 }
 0x3d1   : > { %7604 = vmatmul.mubr.bf16.gmra.mrb[36].mxu0 %v1328_v24  ;;  %v1333_v24 = vpack.c.bf16 %v6692_v0, %v6691_v49  ;;  %v10026_v46 = vpop.f32.mrb[32].mxu1 }
 0x3d2   : > { %7607 = vmatprep.mubr.msk.bf16.mxu0 %vm8709_vm0, %v11360_v58  ;;  %v2292_v57 = vpop.f32.mrb[33].mxu1 }
 0x3d3   : > { %v8328_v57 = vld [vmem:[#allocation12 + $0xc0] sm:$0xff]  }
 0x3d4   : > { %7191 = vmatprep.subr.bf16.mxu1 %v8328_v57 }
 0x3d9   : > { %7608 = vmatmul.mubr.bf16.gmra.mrb[40].mxu0 %v1329_v8  ;;  %v10032_v8 = vpop.f32.mrb[34].mxu1 }
 0x3da   : > { %7611 = vmatprep.mubr.msk.bf16.mxu0 %vm8709_vm0, %v11360_v58  ;;  %v2295_v16 = vpop.f32.mrb[35].mxu1 }
 0x3db   : > { %v10034_v47 = vpop.f32.mrb[36].mxu1  ;;  %v8329_v16 = vld [vmem:[#allocation12 + $0x80] sm:$0xff]  }
 0x3dc   : > { %v2300_v40 = vpop.f32.mrb[37].mxu1  ;;  %7192 = vmatpush3.bf16.msra.mxu1 %v8329_v16 }
 0x3dd   : > { %v10040_v44 = vpop.f32.mrb[38].mxu1 }
 0x3de   : > { %v2303_v45 = vpop.f32.mrb[39].mxu1 }
 0x3df   : > { %v6712_v45 = vld [vmem:[%s9031_s7 + $0x24a] sm:$0xff] }
 0x3e1   : > { %7612 = vmatmul.mubr.bf16.gmra.mrb[44].mxu0 %v1330_v18  ;;  %v1335_v18 = vpack.c.bf16 %v6696_v11, %v6695_v6  ;;  %v10042_v59 = vpop.f32.mrb[40].mxu1 }
 0x3e2   : > { %7615 = vmatprep.mubr.msk.bf16.mxu0 %vm8709_vm0, %v11360_v58  ;;  %v2308_v56 = vpop.f32.mrb[41].mxu1 }
 0x3e3   : > { %v10048_v9 = vpop.f32.mrb[42].mxu1 }
 0x3e4   : > { %v2311_v17 = vpop.f32.mrb[43].mxu1 }
 0x3e5   : > { %v8330_v17 = vld [vmem:[#allocation12 + $0xc8] sm:$0xff]  }
 0x3e6   : > { %7193 = vmatprep.subr.bf16.mxu1 %v8330_v17  ;;  %v3632_v17 = vlaneseq }
 0x3e9   : > { %7616 = vmatmul.mubr.bf16.gmra.mrb[48].mxu0 %v1331_v37  ;;  %v10050_v10 = vpop.f32.mrb[44].mxu1  ;;  %v6699_v37 = vld [vmem:[%s9031_s7 + $0x1c2] sm:$0xff] }
 0x3ea   : > { %7619 = vmatprep.mubr.msk.bf16.mxu0 %vm8709_vm0, %v11360_v58  ;;  %v2316_v38 = vpop.f32.mrb[45].mxu1  ;;  %v1337_v21 = vpack.c.bf16 %v6700_v30, %v6699_v37  ;;  %v6713_v37 = vld [vmem:[%s9031_s7 + $0x252] sm:$0xff]  ;;  %v6714_v30 = vld [vmem:[%s9031_s7 + $0x262] sm:$0xff] }
 0x3eb   : > { %v10056_v34 = vpop.f32.mrb[46].mxu1 }
 0x3ec   : > { %v2319_v33 = vpop.f32.mrb[47].mxu1 }
 0x3f1   : > { %7620 = vmatmul.mubr.bf16.gmra.mrb[52].mxu0 %v1332_v62  ;;  %v10058_v31 = vpop.f32.mrb[48].mxu1  ;;  %v1338_v62 = vpack.c.bf16 %v6702_v42, %v6701_v29  ;;  %v1344_v29 = vpack.c.bf16 %v6714_v30, %v6713_v37 }
 0x3f2   : > { %7623 = vmatprep.mubr.msk.bf16.mxu0 %vm8709_vm0, %v11360_v58  ;;  %v2324_v52 = vpop.f32.mrb[49].mxu1 }
 0x3f3   : > { %v10064_v35 = vpop.f32.mrb[50].mxu1 }
 0x3f4   : > { %v2327_v7 = vpop.f32.mrb[51].mxu1 }
 0x3f9   : > { %7624 = vmatmul.mubr.bf16.gmra.mrb[56].mxu0 %v1333_v24  ;;  %v10066_v41 = vpop.f32.mrb[52].mxu1 }
 0x3fa   : > { %7627 = vmatprep.mubr.msk.bf16.mxu0 %vm8709_vm0, %v11360_v58  ;;  %v2332_v50 = vpop.f32.mrb[53].mxu1 }
 0x3fb   : > { %v10070_v48 = vpop.f32.mrb[54].mxu1 }
 0x3fc   : > { %v2335_v22 = vpop.f32.mrb[55].mxu1 }
 0x401   : > { %7628 = vmatmul.mubr.bf16.gmra.mrb[60].mxu0 %v1334_v23  ;;  %v10073_v49 = vpop.f32.mrb[56].mxu1 }
 0x402   : > { %7631 = vmatprep.mubr.msk.bf16.mxu0 %vm8709_vm0, %v11360_v58  ;;  %v2340_v0 = vpop.f32.mrb[57].mxu1 }
 0x403   : > { %v10077_v1 = vpop.f32.mrb[58].mxu1 }
 0x404   : > { %v2343_v28 = vpop.f32.mrb[59].mxu1 }
 0x409   : > { %7632 = vmatmul.mubr.bf16.gmra.mrb[64].mxu0 %v1335_v18  ;;  %v10080_v24 = vpop.f32.mrb[60].mxu1 }
 0x40a   : > { %7635 = vmatprep.mubr.msk.bf16.mxu0 %vm8709_vm0, %v11360_v58  ;;  %v2348_v32 = vpop.f32.mrb[61].mxu1 }
 0x40b   : > { %v10084_v63 = vpop.f32.mrb[62].mxu1  ;;  %v8332_v32 = vld [vmem:[#allocation12 + $0xd0] sm:$0xff]  }
 0x411   : > { %7636 = vmatmul.mubr.bf16.gmra.mrb[68].mxu0 %v1336_v27  ;;  %v8331_v27 = vld [vmem:[#allocation12 + $0x88] sm:$0xff]  }
 0x412   : > { %7639 = vmatprep.mubr.msk.bf16.mxu0 %vm8709_vm0, %v11360_v58  ;;  %7194 = vmatpush3.bf16.msra.mxu1 %v8331_v27 }
 0x413   : > { %7195 = vmatprep.subr.bf16.mxu1 %v8332_v32  ;;  %v8335_v32 = vld [vmem:[#allocation12 + $0x98] sm:$0xff]  }
 0x419   : > { %7640 = vmatmul.mubr.bf16.gmra.mrb[72].mxu0 %v1337_v21 }
 0x41a   : > { %7643 = vmatprep.mubr.msk.bf16.mxu0 %vm8709_vm0, %v11360_v58 }
 0x421   : > { %7644 = vmatmul.mubr.bf16.gmra.mrb[76].mxu0 %v1338_v62 }
 0x422   : > { %7647 = vmatprep.mubr.msk.bf16.mxu0 %vm8709_vm0, %v11360_v58 }
 0x429   : > { %7648 = vmatmul.mubr.bf16.gmra.mrb[80].mxu0 %v9927_v15  ;;  %v2351_v15 = vpop.f32.mrb[63].mxu1 }
 0x42a   : > { %7651 = vmatprep.mubr.msk.bf16.mxu0 %vm8709_vm0, %v11360_v58  ;;  %v10087_v23 = vpop.f32.mrb[64].mxu1  ;;  %v8333_v15 = vld [vmem:[#allocation12 + $0x90] sm:$0xff]  }
 0x42b   : > { %7196 = vmatpush3.bf16.msra.mxu1 %v8333_v15 }
 0x431   : > { %7652 = vmatmul.mubr.bf16.gmra.mrb[84].mxu0 %v9938_v12  ;;  %v2356_v12 = vpop.f32.mrb[65].mxu1 }
 0x432   : > { %7655 = vmatprep.mubr.msk.bf16.mxu0 %vm8709_vm0, %v11360_v58  ;;  %v10091_v6 = vpop.f32.mrb[66].mxu1 }
 0x433   : > { %v2359_v11 = vpop.f32.mrb[67].mxu1 }
 0x434   : > { %v10094_v40 = vpop.f32.mrb[68].mxu1 }
 0x435   : > { %v2364_v18 = vpop.f32.mrb[69].mxu1 }
 0x436   : > { %v10100_v14 = vpop.f32.mrb[70].mxu1 }
 0x437   : > { %v2367_v25 = vpop.f32.mrb[71].mxu1 }
 0x439   : > { %7656 = vmatmul.mubr.bf16.gmra.mrb[88].mxu0 %v9949_v60  ;;  %v6711_v60 = vld [vmem:[%s9031_s7 + $0x242] sm:$0xff] }
 0x43a   : > { %7659 = vmatprep.mubr.msk.bf16.mxu0 %vm8709_vm0, %v11360_v58  ;;  %v1343_v56 = vpack.c.bf16 %v6712_v45, %v6711_v60 }
 0x441   : > { %7660 = vmatmul.mubr.bf16.gmra.mrb[96].mxu0 %v10010_v36  ;;  %v10102_v36 = vpop.f32.mrb[72].mxu1 }
 0x442   : > { %7663 = vmatprep.mubr.msk.bf16.mxu0 %vm8709_vm0, %v11360_v58  ;;  %v2372_v38 = vpop.f32.mrb[73].mxu1 }
 0x443   : > { %v10108_v33 = vpop.f32.mrb[74].mxu1 }
 0x444   : > { %v2375_v21 = vpop.f32.mrb[75].mxu1 }
 0x445   : > { %v10110_v42 = vpop.f32.mrb[76].mxu1 }
 0x446   : > { %v2380_v52 = vpop.f32.mrb[77].mxu1 }
 0x447   : > { %v10114_v7 = vpop.f32.mrb[78].mxu1  ;;  %v10124_v52 = vld [vmem:[#allocation9] ss:$0 sm:$0xff] }
 0x448   : > { %v2383_v50 = vpop.f32.mrb[79].mxu1 }
 0x449   : > { %7664 = vmatmul.mubr.bf16.gmra.mrb[100].mxu0 %v1343_v56  ;;  %v10116_v57 = vpop.f32.mrb[80].mxu1 }
 0x44a   : > { %7667 = vmatprep.mubr.msk.bf16.mxu0 %vm8709_vm0, %v11360_v58  ;;  %v2388_v16 = vpop.f32.mrb[81].mxu1 }
 0x44b   : > { %v10118_v12 = vpop.f32.mrb[82].mxu1 }
 0x44c   : > { %v2391_v60 = vpop.f32.mrb[83].mxu1 }
 0x44d   : > { %v10120_v56 = vpop.f32.mrb[84].mxu1 }
 0x44e   : > { %v2396_v27 = vpop.f32.mrb[85].mxu1 }
 0x44f   : > { %v10122_v37 = vpop.f32.mrb[86].mxu1 }
 0x450   : > { %v2399_v38 = vpop.f32.mrb[87].mxu1 }
 0x451   : > { %7668 = vmatmul.mubr.bf16.gmra.mrb[104].mxu0 %v1344_v29  ;;  %v10130_v16 = vpop.f32.mrb[88].mxu1 }
 0x452   : > { %7671 = vmatprep.mubr.msk.bf16.mxu0 %vm8709_vm0, %v11360_v58  ;;  %v2404_v60 = vpop.f32.mrb[89].mxu1 }
 0x454   : > { %v3181_v62 = vpop.f32.mrb[116].mxu0 }
 0x455   : > { %v3183_v22 = vpop.f32.mrb[117].mxu0  ;;  %v3633_v62 = vshrl.u32 %v3632_v17, 7 }
 0x456   : > { %v3184_v0 = vpop.f32.mrb[118].mxu0 }
 0x457   : > { %v3186_v28 = vpop.f32.mrb[119].mxu0  ;;  %v10127_v0 = vld [vmem:[#allocation10] ss:$0 sm:$0xff] }
 0x458   : > { %v8334_v28 = vld [vmem:[#allocation12 + $0xd8] sm:$0xff]  }
 0x459   : > { %7197 = vmatprep.subr.bf16.mxu1 %v8334_v28 }
 0x45a   : > { %7198 = vmatpush3.bf16.msra.mxu1 %v8335_v32 }
 0x45c   : > { %v3222_v11 = vpop.f32.mrb[120].mxu0 }
 0x45d   : > { %v7569_v45 = vpop.f32.mrb[121].mxu0  ;;  %v10132_v11 = vadd.s32 4294967295, %v3633_v62 }
 0x45e   : > { %v3225_v18 = vpop.f32.mrb[122].mxu0 }
 0x45f   : > { %v7570_v25 = vpop.f32.mrb[123].mxu0  ;;  %v10135_v18 = vpop.f32.mrb[90].mxu1  ;;  %vm3693_vm1 = vcmp.ge.s32.totalorder %v10132_v11, 0 }
 0x460   : > { %v2407_v17 = vpop.f32.mrb[91].mxu1  ;;  %vm10173_vm6 = vmpackc.low %vm8711_vm5, %vm3693_vm1 }
 0x464   : > { %v3230_v30 = vpop.f32.mrb[4].mxu0 }
 0x465   : > { %v7573_v21 = vpop.f32.mrb[5].mxu0 }
 0x466   : > { %v3233_v29 = vpop.f32.mrb[6].mxu0  ;;  %v2434_v21 = vpop.f32.mrb[104].mxu1 }
 0x467   : > { %v7755_v50 = vadd.f32 %v3233_v29, %v9960_v55  ;;  %v7574_v22 = vpop.f32.mrb[7].mxu0  ;;  %v3635_v55 = vadd.s32 16, %v3633_v62 }
 0x469   : > { %v3447_v15 = vmul.f32 %v7755_v50, %v10124_v52  ;;  %v2436_v50 = vpop.f32.mrb[105].mxu1  ;;  %v10141_v60 = vadd.s32 4294967295, %v3635_v55 }
 0x46a   : > { %v2437_v32 = vpop.f32.mrb[106].mxu1 }
 0x46b   : > { %v3508_v45 = vadd.f32 %v10127_v0, %v3447_v15  ;;  %v2439_v2 = vpop.f32.mrb[107].mxu1  ;;  %vm3752_vm2 = vcmp.lt.s32.totalorder %v10141_v60, 16 }
 0x46c   : > { %v3238_v25 = vpop.f32.mrb[8].mxu0 }
 0x46d   : > { %v3562_v27 = vmax.f32 %v3508_v45, 0.0  ;;  %v7756_v30 = vadd.f32 %v3238_v25, %v9966_v61  ;;  %v7577_v38 = vpop.f32.mrb[9].mxu0  ;;  %v10147_v25 = vpop.f32.mrb[92].mxu1 }
 0x46e   : > { %v3241_v29 = vpop.f32.mrb[10].mxu0  ;;  %11414 = vst [vmem:[#allocation23_spill] sm:$0xff] %v10147_v25  ;;  %v2661_v17 = vpop.f32.mrb[93].mxu1 }
 0x46f   : > { %v3448_v22 = vmul.f32 %v7756_v30, %v10124_v52  ;;  %v7757_v28 = vadd.f32 %v3241_v29, %v9972_v19  ;;  %v7578_v15 = vpop.f32.mrb[11].mxu0  ;;  %v3918_v62 = vsel %vm3693_vm1, %v3562_v27, 0.0  ;;  %v10150_v21 = vpop.f32.mrb[94].mxu1  ;;  %v8336_v17 = vld [vmem:[#allocation12 + $0xe0] sm:$0xff]  }
 0x470   : > { %11415 = vst [vmem:[#allocation24_spill] sm:$0xff] %v10150_v21  ;;  %v4055_v19 = vrot.slane %v3918_v62, 1  ;;  %v2664_v2 = vpop.f32.mrb[95].mxu1  ;;  %v4200_v32 = vrot.slane %v3918_v62, 2  ;;  %7199 = vmatprep.subr.bf16.mxu1 %v8336_v17 }
 0x471   : > { %v3509_v61 = vadd.f32 %v10127_v0, %v3448_v22  ;;  %v3449_v45 = vmul.f32 %v7757_v28, %v10124_v52 }
 0x473   : > { %v3563_v38 = vmax.f32 %v3509_v61, 0.0  ;;  %v3510_v30 = vadd.f32 %v10127_v0, %v3449_v45  ;;  %v8337_v45 = vld [vmem:[#allocation12 + $0xa0] sm:$0xff]  }
 0x474   : > { %v3246_v55 = vpop.f32.mrb[12].mxu0  ;;  %7200 = vmatpush3.bf16.msra.mxu1 %v8337_v45 }
 0x475   : > { %v3564_v29 = vmax.f32 %v3510_v30, 0.0  ;;  %v7758_v50 = vadd.f32 %v3246_v55, %v9974_v43  ;;  %v7581_v22 = vpop.f32.mrb[13].mxu0  ;;  %v4056_v28 = vrot.slane %v3563_v38, 1  ;;  %v10154_v15 = vpack.c.bf16 %v3563_v38, %v3562_v27 }
 0x476   : > { %v3249_v61 = vpop.f32.mrb[14].mxu0  ;;  %v4201_v58 = vrot.slane %v3563_v38, 2  ;;  %v10164_v38 = vpop.f32.mrb[96].mxu1 }
 0x477   : > { %11416 = vst [vmem:[#allocation25_spill] sm:$0xff] %v10154_v15  ;;  %v3920_v53 = vsel %vm3752_vm2, %v3564_v29, 0.0  ;;  %v3450_v21 = vmul.f32 %v7758_v50, %v10124_v52  ;;  %v7759_v2 = vadd.f32 %v3249_v61, %v9980_v3  ;;  %v7582_v25 = vpop.f32.mrb[15].mxu0  ;;  %v4057_v30 = vsel %vm4049_vm3, %v4055_v19, %v4056_v28  ;;  %v2669_v50 = vpop.f32.mrb[97].mxu1 }
 0x478   : > { %v4058_v43 = vrot.slane %v3920_v53, 1  ;;  %v4203_v55 = vrot.slane %v3920_v53, 2  ;;  %v4202_v27 = vsel %vm4194_vm4, %v4200_v32, %v4201_v58 }
 0x479   : > { %v3511_v62 = vadd.f32 %v10127_v0, %v3450_v21  ;;  %v3451_v22 = vmul.f32 %v7759_v2, %v10124_v52  ;;  %v10177_v21 = vpop.f32.mrb[98].mxu1 }
 0x47a   : > { %v4059_v29 = vsel %vm4049_vm3, %v4056_v28, %v4058_v43  ;;  %v4204_v3 = vsel %vm4194_vm4, %v4201_v58, %v4203_v55  ;;  %11420 = vst [vmem:[#allocation27_spill] sm:$0xff] %v10177_v21  ;;  %v2672_v17 = vpop.f32.mrb[99].mxu1 }
 0x47b   : > { %v3565_v25 = vmax.f32 %v3511_v62, 0.0  ;;  %v3512_v19 = vadd.f32 %v10127_v0, %v3451_v22  ;;  %v10169_v61 = vpack.c.bf16 %v4059_v29, %v4057_v30  ;;  %v10179_v32 = vpack.c.bf16 %v4204_v3, %v4202_v27 }
 0x47c   : > { %v3254_v28 = vpop.f32.mrb[16].mxu0 }
 0x47d   : > { %11417 = vst [vmem:[#allocation26_spill] sm:$0xff] %v10169_v61  ;;  %11421 = vst [vmem:[#allocation28_spill] sm:$0xff] %v10179_v32  ;;  %v3921_v58 = vsel %vm3693_vm1, %v3565_v25, 0.0  ;;  %v3566_v45 = vmax.f32 %v3512_v19, 0.0  ;;  %v7760_v2 = vadd.f32 %v3254_v28, %v9982_v26  ;;  %v7585_v30 = vpop.f32.mrb[17].mxu0  ;;  %5235 = vmatprep.mubr.bf16.mxu1 %v10169_v61 }
 0x47e   : > { %v4060_v43 = vrot.slane %v3921_v58, 1  ;;  %v4205_v55 = vrot.slane %v3921_v58, 2  ;;  %v3257_v62 = vpop.f32.mrb[18].mxu0  ;;  %6908 = vmatmul.mubr.msk.bf16.gmra.mrb[116].mxu1 %vm10173_vm6, %v10154_v15  ;;  %v10195_v58 = vpop.f32.mrb[100].mxu1 }
 0x47f   : > { %v3452_v27 = vmul.f32 %v7760_v2, %v10124_v52  ;;  %v7761_v22 = vadd.f32 %v3257_v62, %v9984_v20  ;;  %v7586_v29 = vpop.f32.mrb[19].mxu0  ;;  %v4061_v50 = vrot.slane %v3566_v45, 1  ;;  %v10190_v3 = vpack.c.bf16 %v3566_v45, %v3565_v25  ;;  %11422 = vst [vmem:[#allocation29_spill] sm:$0xff] %v10195_v58  ;;  %v2677_v30 = vpop.f32.mrb[101].mxu1  ;;  %v8339_v58 = vld [vmem:[#allocation12 + $0xa8] sm:$0xff]  }
 0x480   : > { %v4206_v19 = vrot.slane %v3566_v45, 2  ;;  %v2678_v20 = vpop.f32.mrb[102].mxu1 }
 0x481   : > { %v3513_v26 = vadd.f32 %v10127_v0, %v3452_v27  ;;  %v3453_v28 = vmul.f32 %v7761_v22, %v10124_v52  ;;  %v4062_v17 = vsel %vm4049_vm3, %v4060_v43, %v4061_v50  ;;  %v2680_v29 = vpop.f32.mrb[103].mxu1 }
 0x482   : > { %v4207_v61 = vsel %vm4194_vm4, %v4205_v55, %v4206_v19  ;;  %v8338_v29 = vld [vmem:[#allocation12 + $0xe8] sm:$0xff]  }
 0x483   : > { %v3567_v32 = vmax.f32 %v3513_v26, 0.0  ;;  %v3514_v2 = vadd.f32 %v10127_v0, %v3453_v28  ;;  %7201 = vmatprep.subr.bf16.mxu1 %v8338_v29 }
 0x484   : > { %v3262_v62 = vpop.f32.mrb[20].mxu0  ;;  %7202 = vmatpush3.bf16.msra.mxu1 %v8339_v58 }
 0x485   : > { %v3923_v25 = vsel %vm3752_vm2, %v3567_v32, 0.0  ;;  %v3568_v45 = vmax.f32 %v3514_v2, 0.0  ;;  %v7762_v27 = vadd.f32 %v3262_v62, %v9990_v39  ;;  %v7589_v22 = vpop.f32.mrb[21].mxu0 }
 0x486   : > { %v4063_v15 = vrot.slane %v3923_v25, 1  ;;  %v4208_v43 = vrot.slane %v3923_v25, 2  ;;  %v3265_v21 = vpop.f32.mrb[22].mxu0 }
 0x487   : > { %v3454_v30 = vmul.f32 %v7762_v27, %v10124_v52  ;;  %v7763_v55 = vadd.f32 %v3265_v21, %v9992_v51  ;;  %v7590_v26 = vpop.f32.mrb[23].mxu0  ;;  %v3924_v28 = vsel %vm3693_vm1, %v3568_v45, 0.0 }
 0x488   : > { %v4064_v20 = vsel %vm4049_vm3, %v4061_v50, %v4063_v15  ;;  %v4209_v32 = vsel %vm4194_vm4, %v4206_v19, %v4208_v43  ;;  %v4065_v15 = vrot.slane %v3924_v28, 1  ;;  %v4210_v43 = vrot.slane %v3924_v28, 2 }
 0x489   : > { %v3515_v39 = vadd.f32 %v10127_v0, %v3454_v30  ;;  %v3455_v2 = vmul.f32 %v7763_v55, %v10124_v52  ;;  %v10210_v62 = vpack.c.bf16 %v4064_v20, %v4062_v17  ;;  %v10212_v25 = vpack.c.bf16 %v4209_v32, %v4207_v61 }
 0x48b   : > { %11423 = vst [vmem:[#allocation30_spill] sm:$0xff] %v10212_v25  ;;  %v3569_v51 = vmax.f32 %v3515_v39, 0.0  ;;  %v3516_v21 = vadd.f32 %v10127_v0, %v3455_v2  ;;  %5243 = vmatprep.mubr.bf16.mxu1 %v10210_v62 }
 0x48c   : > { %v3270_v50 = vpop.f32.mrb[24].mxu0  ;;  %6911 = vmatmul.mubr.msk.bf16.gmra.mrb[120].mxu1 %vm10173_vm6, %v10190_v3 }
 0x48d   : > { %v3570_v19 = vmax.f32 %v3516_v21, 0.0  ;;  %v7764_v27 = vadd.f32 %v3270_v50, %v10000_v54  ;;  %v7593_v17 = vpop.f32.mrb[25].mxu0  ;;  %v4066_v22 = vrot.slane %v3569_v51, 1  ;;  %v10220_v61 = vpack.c.bf16 %v3569_v51, %v3568_v45 }
 0x48e   : > { %v3273_v30 = vpop.f32.mrb[26].mxu0  ;;  %v4211_v55 = vrot.slane %v3569_v51, 2 }
 0x48f   : > { %v3926_v26 = vsel %vm3752_vm2, %v3570_v19, 0.0  ;;  %v3456_v58 = vmul.f32 %v7764_v27, %v10124_v52  ;;  %v7765_v20 = vadd.f32 %v3273_v30, %v10006_v5  ;;  %v7594_v29 = vpop.f32.mrb[27].mxu0  ;;  %v4067_v32 = vsel %vm4049_vm3, %v4065_v15, %v4066_v22 }
 0x490   : > { %v4068_v39 = vrot.slane %v3926_v26, 1  ;;  %v4213_v2 = vrot.slane %v3926_v26, 2  ;;  %v4212_v54 = vsel %vm4194_vm4, %v4210_v43, %v4211_v55 }
 0x491   : > { %v3517_v45 = vadd.f32 %v10127_v0, %v3456_v58  ;;  %v3457_v28 = vmul.f32 %v7765_v20, %v10124_v52 }
 0x492   : > { %v4069_v51 = vsel %vm4049_vm3, %v4066_v22, %v4068_v39  ;;  %v4214_v21 = vsel %vm4194_vm4, %v4211_v55, %v4213_v2  ;;  %v11487_v53 = vld [vmem:[#allocation30_spill] sm:$0xff] }
 0x493   : > { %v3571_v50 = vmax.f32 %v3517_v45, 0.0  ;;  %v3518_v19 = vadd.f32 %v10127_v0, %v3457_v28  ;;  %v10233_v27 = vpack.c.bf16 %v4069_v51, %v4067_v32  ;;  %v10235_v5 = vpack.c.bf16 %v4214_v21, %v4212_v54  ;;  %v8340_v54 = vld [vmem:[#allocation12 + $0xf0] sm:$0xff]  }
 0x494   : > { %v3278_v15 = vpop.f32.mrb[28].mxu0  ;;  %7203 = vmatprep.subr.bf16.mxu1 %v8340_v54 }
 0x495   : > { %11424 = vst [vmem:[#allocation31_spill] sm:$0xff] %v10235_v5  ;;  %v3927_v17 = vsel %vm3693_vm1, %v3571_v50, 0.0  ;;  %v3572_v43 = vmax.f32 %v3518_v19, 0.0  ;;  %v7766_v30 = vadd.f32 %v3278_v15, %v10013_v13  ;;  %v7597_v26 = vpop.f32.mrb[29].mxu0  ;;  %5251 = vmatprep.mubr.bf16.mxu1 %v10233_v27  ;;  %v8341_v13 = vld [vmem:[#allocation12 + $0xb0] sm:$0xff]  }
 0x496   : > { %v4070_v22 = vrot.slane %v3927_v17, 1  ;;  %v4215_v58 = vrot.slane %v3927_v17, 2  ;;  %v3281_v55 = vpop.f32.mrb[30].mxu0  ;;  %6914 = vmatmul.mubr.msk.bf16.gmra.mrb[124].mxu1 %vm10173_vm6, %v10220_v61 }
 0x497   : > { %v3458_v20 = vmul.f32 %v7766_v30, %v10124_v52  ;;  %v7767_v29 = vadd.f32 %v3281_v55, %v10020_v4  ;;  %v7598_v32 = vpop.f32.mrb[31].mxu0  ;;  %v4071_v39 = vrot.slane %v3572_v43, 1  ;;  %v10246_v2 = vpack.c.bf16 %v3572_v43, %v3571_v50  ;;  %7204 = vmatpush3.bf16.msra.mxu1 %v8341_v13 }
 0x498   : > { %v4216_v45 = vrot.slane %v3572_v43, 2 }
 0x499   : > { %v3519_v28 = vadd.f32 %v10127_v0, %v3458_v20  ;;  %v3459_v51 = vmul.f32 %v7767_v29, %v10124_v52  ;;  %v4072_v21 = vsel %vm4049_vm3, %v4070_v22, %v4071_v39 }
 0x49a   : > { %v4217_v19 = vsel %vm4194_vm4, %v4215_v58, %v4216_v45 }
 0x49b   : > { %v3573_v15 = vmax.f32 %v3519_v28, 0.0  ;;  %v3520_v17 = vadd.f32 %v10127_v0, %v3459_v51 }
 0x49c   : > { %v3286_v4 = vpop.f32.mrb[32].mxu0 }
 0x49d   : > { %v3929_v50 = vsel %vm3752_vm2, %v3573_v15, 0.0  ;;  %v3574_v30 = vmax.f32 %v3520_v17, 0.0  ;;  %v7768_v43 = vadd.f32 %v3286_v4, %v10026_v46  ;;  %v7601_v26 = vpop.f32.mrb[33].mxu0 }
 0x49e   : > { %v4073_v55 = vrot.slane %v3929_v50, 1  ;;  %v4218_v20 = vrot.slane %v3929_v50, 2  ;;  %v3289_v29 = vpop.f32.mrb[34].mxu0 }
 0x49f   : > { %v3460_v22 = vmul.f32 %v7768_v43, %v10124_v52  ;;  %v7769_v32 = vadd.f32 %v3289_v29, %v10032_v8  ;;  %v7602_v58 = vpop.f32.mrb[35].mxu0  ;;  %v3930_v54 = vsel %vm3693_vm1, %v3574_v30, 0.0 }
 0x4a0   : > { %v4074_v13 = vsel %vm4049_vm3, %v4071_v39, %v4073_v55  ;;  %v4219_v28 = vsel %vm4194_vm4, %v4216_v45, %v4218_v20  ;;  %v4075_v8 = vrot.slane %v3930_v54, 1 }
 0x4a1   : > { %v3521_v51 = vadd.f32 %v10127_v0, %v3460_v22  ;;  %v3461_v46 = vmul.f32 %v7769_v32, %v10124_v52  ;;  %v10264_v15 = vpack.c.bf16 %v4074_v13, %v4072_v21  ;;  %v10266_v17 = vpack.c.bf16 %v4219_v28, %v4217_v19 }
 0x4a2   : > { %v4220_v19 = vrot.slane %v3930_v54, 2 }
 0x4a3   : > { %11425 = vst [vmem:[#allocation32_spill] sm:$0xff] %v10266_v17  ;;  %v3575_v4 = vmax.f32 %v3521_v51, 0.0  ;;  %v3522_v50 = vadd.f32 %v10127_v0, %v3461_v46  ;;  %5259 = vmatprep.mubr.bf16.mxu1 %v10264_v15 }
 0x4a4   : > { %v3294_v43 = vpop.f32.mrb[36].mxu0  ;;  %6917 = vmatmul.mubr.msk.bf16.gmra.mrb[128].mxu1 %vm10173_vm6, %v10246_v2 }
 0x4a5   : > { %v3576_v39 = vmax.f32 %v3522_v50, 0.0  ;;  %v7770_v45 = vadd.f32 %v3294_v43, %v10034_v47  ;;  %v7605_v26 = vpop.f32.mrb[37].mxu0  ;;  %v4076_v55 = vrot.slane %v3575_v4, 1  ;;  %v10274_v21 = vpack.c.bf16 %v3575_v4, %v3574_v30  ;;  %v8342_v47 = vld [vmem:[#allocation12 + $0xf8] sm:$0xff]  }
 0x4a6   : > { %v3297_v20 = vpop.f32.mrb[38].mxu0  ;;  %v4221_v29 = vrot.slane %v3575_v4, 2  ;;  %v8343_v4 = vld [vmem:[#allocation12 + $0xb8] sm:$0xff]   ;;  %7205 = vmatprep.subr.bf16.mxu1 %v8342_v47 }
 0x4a7   : > { %v3932_v22 = vsel %vm3752_vm2, %v3576_v39, 0.0  ;;  %v3462_v32 = vmul.f32 %v7770_v45, %v10124_v52  ;;  %v7771_v58 = vadd.f32 %v3297_v20, %v10040_v44  ;;  %v7606_v13 = vpop.f32.mrb[39].mxu0  ;;  %v4077_v28 = vsel %vm4049_vm3, %v4075_v8, %v4076_v55  ;;  %7206 = vmatpush3.bf16.msra.mxu1 %v8343_v4 }
 0x4a8   : > { %v4078_v51 = vrot.slane %v3932_v22, 1  ;;  %v4223_v46 = vrot.slane %v3932_v22, 2  ;;  %v4222_v50 = vsel %vm4194_vm4, %v4220_v19, %v4221_v29 }
 0x4a9   : > { %v3523_v30 = vadd.f32 %v10127_v0, %v3462_v32  ;;  %v3463_v54 = vmul.f32 %v7771_v58, %v10124_v52 }
 0x4aa   : > { %v4079_v43 = vsel %vm4049_vm3, %v4076_v55, %v4078_v51  ;;  %v4224_v39 = vsel %vm4194_vm4, %v4221_v29, %v4223_v46 }
 0x4ab   : > { %v3577_v45 = vmax.f32 %v3523_v30, 0.0  ;;  %v3524_v44 = vadd.f32 %v10127_v0, %v3463_v54  ;;  %v10287_v26 = vpack.c.bf16 %v4079_v43, %v4077_v28  ;;  %v10289_v8 = vpack.c.bf16 %v4224_v39, %v4222_v50  ;;  %v8344_v43 = vld [vmem:[#allocation12 + $0x140] sm:$0xff]  }
 0x4ac   : > { %v3302_v20 = vpop.f32.mrb[40].mxu0  ;;  %7303 = vmatprep.subr.bf16.mxu1 %v8344_v43 }
 0x4ad   : > { %11426 = vst [vmem:[#allocation33_spill] sm:$0xff] %v10289_v8  ;;  %v3933_v19 = vsel %vm3693_vm1, %v3577_v45, 0.0  ;;  %v3578_v22 = vmax.f32 %v3524_v44, 0.0  ;;  %v7772_v32 = vadd.f32 %v3302_v20, %v10042_v59  ;;  %v7609_v58 = vpop.f32.mrb[41].mxu0  ;;  %5267 = vmatprep.mubr.bf16.mxu1 %v10287_v26 }
 0x4ae   : > { %v4080_v55 = vrot.slane %v3933_v19, 1  ;;  %v4225_v29 = vrot.slane %v3933_v19, 2  ;;  %v3305_v13 = vpop.f32.mrb[42].mxu0  ;;  %6920 = vmatmul.mubr.msk.bf16.gmra.mrb[132].mxu1 %vm10173_vm6, %v10274_v21 }
 0x4af   : > { %v3464_v28 = vmul.f32 %v7772_v32, %v10124_v52  ;;  %v7773_v51 = vadd.f32 %v3305_v13, %v10048_v9  ;;  %v7610_v46 = vpop.f32.mrb[43].mxu0  ;;  %v4081_v47 = vrot.slane %v3578_v22, 1  ;;  %v10300_v50 = vpack.c.bf16 %v3578_v22, %v3577_v45 }
 0x4b0   : > { %v4226_v30 = vrot.slane %v3578_v22, 2 }
 0x4b1   : > { %v3525_v59 = vadd.f32 %v10127_v0, %v3464_v28  ;;  %v3465_v54 = vmul.f32 %v7773_v51, %v10124_v52  ;;  %v4082_v4 = vsel %vm4049_vm3, %v4080_v55, %v4081_v47 }
 0x4b2   : > { %v4227_v39 = vsel %vm4194_vm4, %v4225_v29, %v4226_v30 }
 0x4b3   : > { %v3579_v44 = vmax.f32 %v3525_v59, 0.0  ;;  %v3526_v20 = vadd.f32 %v10127_v0, %v3465_v54 }
 0x4b4   : > { %v3310_v19 = vpop.f32.mrb[44].mxu0 }
 0x4b5   : > { %v3935_v9 = vsel %vm3752_vm2, %v3579_v44, 0.0  ;;  %v3580_v45 = vmax.f32 %v3526_v20, 0.0  ;;  %v7774_v22 = vadd.f32 %v3310_v19, %v10050_v10  ;;  %v7613_v32 = vpop.f32.mrb[45].mxu0 }
 0x4b6   : > { %v4083_v58 = vrot.slane %v3935_v9, 1  ;;  %v4228_v13 = vrot.slane %v3935_v9, 2  ;;  %v3313_v28 = vpop.f32.mrb[46].mxu0 }
 0x4b7   : > { %v3466_v55 = vmul.f32 %v7774_v22, %v10124_v52  ;;  %v7775_v51 = vadd.f32 %v3313_v28, %v10056_v34  ;;  %v7614_v29 = vpop.f32.mrb[47].mxu0  ;;  %v3936_v46 = vsel %vm3693_vm1, %v3580_v45, 0.0 }
 0x4b8   : > { %v4084_v59 = vsel %vm4049_vm3, %v4081_v47, %v4083_v58  ;;  %v4229_v54 = vsel %vm4194_vm4, %v4226_v30, %v4228_v13  ;;  %v4085_v34 = vrot.slane %v3936_v46, 1 }
 0x4b9   : > { %v3527_v43 = vadd.f32 %v10127_v0, %v3466_v55  ;;  %v3467_v10 = vmul.f32 %v7775_v51, %v10124_v52  ;;  %v10318_v44 = vpack.c.bf16 %v4084_v59, %v4082_v4  ;;  %v10320_v20 = vpack.c.bf16 %v4229_v54, %v4227_v39 }
 0x4ba   : > { %v4230_v39 = vrot.slane %v3936_v46, 2 }
 0x4bb   : > { %11427 = vst [vmem:[#allocation34_spill] sm:$0xff] %v10320_v20  ;;  %v3581_v19 = vmax.f32 %v3527_v43, 0.0  ;;  %v3528_v9 = vadd.f32 %v10127_v0, %v3467_v10  ;;  %5275 = vmatprep.mubr.bf16.mxu1 %v10318_v44 }
 0x4bc   : > { %v3318_v22 = vpop.f32.mrb[48].mxu0  ;;  %6923 = vmatmul.mubr.msk.bf16.gmra.mrb[136].mxu1 %vm10173_vm6, %v10300_v50 }
 0x4bd   : > { %v3582_v47 = vmax.f32 %v3528_v9, 0.0  ;;  %v7776_v30 = vadd.f32 %v3318_v22, %v10058_v31  ;;  %v7617_v32 = vpop.f32.mrb[49].mxu0  ;;  %v4086_v58 = vrot.slane %v3581_v19, 1  ;;  %v10328_v4 = vpack.c.bf16 %v3581_v19, %v3580_v45  ;;  %v2683_v9 = vpop.f32.mrb[108].mxu1 }
 0x4be   : > { %v3321_v13 = vpop.f32.mrb[50].mxu0  ;;  %v4231_v28 = vrot.slane %v3581_v19, 2  ;;  %v2685_v22 = vpop.f32.mrb[109].mxu1 }
 0x4bf   : > { %v3938_v55 = vsel %vm3752_vm2, %v3582_v47, 0.0  ;;  %v3468_v51 = vmul.f32 %v7776_v30, %v10124_v52  ;;  %v7777_v29 = vadd.f32 %v3321_v13, %v10064_v35  ;;  %v7618_v59 = vpop.f32.mrb[51].mxu0  ;;  %v4087_v54 = vsel %vm4049_vm3, %v4085_v34, %v4086_v58  ;;  %v2686_v34 = vpop.f32.mrb[110].mxu1 }
 0x4c0   : > { %v4088_v43 = vrot.slane %v3938_v55, 1  ;;  %v4233_v10 = vrot.slane %v3938_v55, 2  ;;  %v4232_v31 = vsel %vm4194_vm4, %v4230_v39, %v4231_v28  ;;  %v2688_v39 = vpop.f32.mrb[111].mxu1 }
 0x4c1   : > { %v3529_v45 = vadd.f32 %v10127_v0, %v3468_v51  ;;  %v3469_v46 = vmul.f32 %v7777_v29, %v10124_v52 }
 0x4c2   : > { %v4089_v19 = vsel %vm4049_vm3, %v4086_v58, %v4088_v43  ;;  %v4234_v47 = vsel %vm4194_vm4, %v4231_v28, %v4233_v10 }
 0x4c3   : > { %v3583_v30 = vmax.f32 %v3529_v45, 0.0  ;;  %v3530_v35 = vadd.f32 %v10127_v0, %v3469_v46  ;;  %v10341_v32 = vpack.c.bf16 %v4089_v19, %v4087_v54  ;;  %v10343_v13 = vpack.c.bf16 %v4234_v47, %v4232_v31 }
 0x4c4   : > { %v3326_v55 = vpop.f32.mrb[52].mxu0 }
 0x4c5   : > { %11428 = vst [vmem:[#allocation35_spill] sm:$0xff] %v10341_v32  ;;  %11429 = vst [vmem:[#allocation36_spill] sm:$0xff] %v10343_v13  ;;  %v3939_v51 = vsel %vm3693_vm1, %v3583_v30, 0.0  ;;  %v3584_v29 = vmax.f32 %v3530_v35, 0.0  ;;  %v7778_v59 = vadd.f32 %v3326_v55, %v10066_v41  ;;  %v7621_v58 = vpop.f32.mrb[53].mxu0  ;;  %5283 = vmatprep.mubr.bf16.mxu1 %v10341_v32  ;;  %v7095_v35 = vpop.f32.mrb[112].mxu1 }
 0x4c6   : > { %v4090_v28 = vrot.slane %v3939_v51, 1  ;;  %v4235_v43 = vrot.slane %v3939_v51, 2  ;;  %v3329_v10 = vpop.f32.mrb[54].mxu0  ;;  %6926 = vmatmul.mubr.msk.bf16.gmra.mrb[140].mxu1 %vm10173_vm6, %v10328_v4  ;;  %v7096_v34 = vpop.f32.mrb[113].mxu1 }
 0x4c7   : > { %v3470_v54 = vmul.f32 %v7778_v59, %v10124_v52  ;;  %v7779_v31 = vadd.f32 %v3329_v10, %v10070_v48  ;;  %v7622_v45 = vpop.f32.mrb[55].mxu0  ;;  %v4091_v46 = vrot.slane %v3584_v29, 1  ;;  %v10354_v9 = vpack.c.bf16 %v3584_v29, %v3583_v30 }
 0x4c8   : > { %v4236_v19 = vrot.slane %v3584_v29, 2  ;;  %v10361_v59 = vadd.f32 %v7096_v34, %v7095_v35  ;;  %v7098_v45 = vpop.f32.mrb[114].mxu1 }
 0x4c9   : > { %11430 = vst [vmem:[#allocation37_spill] sm:$0xff] %v10354_v9  ;;  %v3531_v41 = vadd.f32 %v10127_v0, %v3470_v54  ;;  %v3471_v22 = vmul.f32 %v7779_v31, %v10124_v52  ;;  %v4092_v47 = vsel %vm4049_vm3, %v4090_v28, %v4091_v46 }
 0x4ca   : > { %v4237_v55 = vsel %vm4194_vm4, %v4235_v43, %v4236_v19 }
 0x4cb   : > { %v3585_v39 = vmax.f32 %v3531_v41, 0.0  ;;  %v3532_v51 = vadd.f32 %v10127_v0, %v3471_v22  ;;  %v7099_v22 = vpop.f32.mrb[115].mxu1 }
 0x4cc   : > { %v3334_v48 = vpop.f32.mrb[56].mxu0 }
 0x4cd   : > { %v3941_v30 = vsel %vm3752_vm2, %v3585_v39, 0.0  ;;  %v3586_v29 = vmax.f32 %v3532_v51, 0.0  ;;  %v7780_v58 = vadd.f32 %v3334_v48, %v10073_v49  ;;  %v7625_v10 = vpop.f32.mrb[57].mxu0  ;;  %v10371_v39 = vadd.f32 %v7099_v22, %v7098_v45 }
 0x4ce   : > { %v4093_v54 = vrot.slane %v3941_v30, 1  ;;  %v4238_v31 = vrot.slane %v3941_v30, 2  ;;  %v3337_v28 = vpop.f32.mrb[58].mxu0 }
 0x4cf   : > { %v3472_v32 = vmul.f32 %v7780_v58, %v10124_v52  ;;  %v7781_v43 = vadd.f32 %v3337_v28, %v10077_v1  ;;  %v7626_v41 = vpop.f32.mrb[59].mxu0  ;;  %v3942_v35 = vsel %vm3693_vm1, %v3586_v29, 0.0  ;;  %11431 = vst [vmem:[#allocation38_spill] sm:$0xff] %v10371_v39 }
 0x4d0   : > { %v4094_v34 = vsel %vm4049_vm3, %v4091_v46, %v4093_v54  ;;  %v4239_v30 = vsel %vm4194_vm4, %v4236_v19, %v4238_v31  ;;  %v4095_v28 = vrot.slane %v3942_v35, 1  ;;  %v4240_v19 = vrot.slane %v3942_v35, 2 }
 0x4d1   : > { %v3533_v49 = vadd.f32 %v10127_v0, %v3472_v32  ;;  %v3473_v51 = vmul.f32 %v7781_v43, %v10124_v52  ;;  %v10375_v48 = vpack.c.bf16 %v4094_v34, %v4092_v47  ;;  %v10378_v58 = vpack.c.bf16 %v4239_v30, %v4237_v55 }
 0x4d3   : > { %11432 = vst [vmem:[#allocation39_spill] sm:$0xff] %v10378_v58  ;;  %v3587_v1 = vmax.f32 %v3533_v49, 0.0  ;;  %v3534_v10 = vadd.f32 %v10127_v0, %v3473_v51  ;;  %5291 = vmatprep.mubr.bf16.mxu1 %v10375_v48 }
 0x4d4   : > { %v3342_v41 = vpop.f32.mrb[60].mxu0  ;;  %6929 = vmatmul.mubr.msk.bf16.gmra.mrb[144].mxu1 %vm10173_vm6, %v10354_v9 }
 0x4d5   : > { %v3588_v32 = vmax.f32 %v3534_v10, 0.0  ;;  %v7782_v46 = vadd.f32 %v3342_v41, %v10080_v24  ;;  %v7629_v47 = vpop.f32.mrb[61].mxu0  ;;  %v4096_v54 = vrot.slane %v3587_v1, 1  ;;  %v10386_v45 = vpack.c.bf16 %v3587_v1, %v3586_v29 }
 0x4d6   : > { %v3345_v55 = vpop.f32.mrb[62].mxu0  ;;  %v4241_v31 = vrot.slane %v3587_v1, 2 }
 0x4d7   : > { %11433 = vst [vmem:[#allocation40_spill] sm:$0xff] %v10386_v45  ;;  %v3944_v43 = vsel %vm3752_vm2, %v3588_v32, 0.0  ;;  %v3474_v22 = vmul.f32 %v7782_v46, %v10124_v52  ;;  %v7783_v34 = vadd.f32 %v3345_v55, %v10084_v63  ;;  %v7630_v49 = vpop.f32.mrb[63].mxu0  ;;  %v4097_v51 = vsel %vm4049_vm3, %v4095_v28, %v4096_v54 }
 0x4d8   : > { %v4098_v30 = vrot.slane %v3944_v43, 1  ;;  %v4243_v10 = vrot.slane %v3944_v43, 2  ;;  %v4242_v24 = vsel %vm4194_vm4, %v4240_v19, %v4241_v31 }
 0x4d9   : > { %v3535_v29 = vadd.f32 %v10127_v0, %v3474_v22  ;;  %v3475_v35 = vmul.f32 %v7783_v34, %v10124_v52 }
 0x4da   : > { %v4099_v1 = vsel %vm4049_vm3, %v4096_v54, %v4098_v30  ;;  %v4244_v41 = vsel %vm4194_vm4, %v4241_v31, %v4243_v10 }
 0x4db   : > { %v3589_v32 = vmax.f32 %v3535_v29, 0.0  ;;  %v3536_v46 = vadd.f32 %v10127_v0, %v3475_v35  ;;  %v10399_v47 = vpack.c.bf16 %v4099_v1, %v4097_v51  ;;  %v10401_v63 = vpack.c.bf16 %v4244_v41, %v4242_v24 }
 0x4dc   : > { %v3350_v28 = vpop.f32.mrb[64].mxu0 }
 0x4dd   : > { %11434 = vst [vmem:[#allocation41_spill] sm:$0xff] %v10401_v63  ;;  %v3945_v55 = vsel %vm3693_vm1, %v3589_v32, 0.0  ;;  %v3590_v19 = vmax.f32 %v3536_v46, 0.0  ;;  %v7784_v43 = vadd.f32 %v3350_v28, %v10087_v23  ;;  %v7633_v22 = vpop.f32.mrb[65].mxu0  ;;  %5299 = vmatprep.mubr.bf16.mxu1 %v10399_v47 }
 0x4de   : > { %v4100_v54 = vrot.slane %v3945_v55, 1  ;;  %v4245_v34 = vrot.slane %v3945_v55, 2  ;;  %v3353_v31 = vpop.f32.mrb[66].mxu0  ;;  %6932 = vmatmul.mubr.msk.bf16.gmra.mrb[148].mxu1 %vm10173_vm6, %v10386_v45 }
 0x4df   : > { %v3476_v49 = vmul.f32 %v7784_v43, %v10124_v52  ;;  %v7785_v51 = vadd.f32 %v3353_v31, %v10091_v6  ;;  %v7634_v30 = vpop.f32.mrb[67].mxu0  ;;  %v4101_v10 = vrot.slane %v3590_v19, 1  ;;  %v10412_v24 = vpack.c.bf16 %v3590_v19, %v3589_v32 }
 0x4e0   : > { %v4246_v29 = vrot.slane %v3590_v19, 2 }
 0x4e1   : > { %11435 = vst [vmem:[#allocation42_spill] sm:$0xff] %v10412_v24  ;;  %v3537_v23 = vadd.f32 %v10127_v0, %v3476_v49  ;;  %v3477_v35 = vmul.f32 %v7785_v51, %v10124_v52  ;;  %v4102_v1 = vsel %vm4049_vm3, %v4100_v54, %v4101_v10 }
 0x4e2   : > { %v4247_v41 = vsel %vm4194_vm4, %v4245_v34, %v4246_v29 }
 0x4e3   : > { %v3591_v46 = vmax.f32 %v3537_v23, 0.0  ;;  %v3538_v28 = vadd.f32 %v10127_v0, %v3477_v35 }
 0x4e4   : > { %v3358_v55 = vpop.f32.mrb[68].mxu0 }
 0x4e5   : > { %v3947_v6 = vsel %vm3752_vm2, %v3591_v46, 0.0  ;;  %v3592_v43 = vmax.f32 %v3538_v28, 0.0  ;;  %v7786_v32 = vadd.f32 %v3358_v55, %v10094_v40  ;;  %v7637_v22 = vpop.f32.mrb[69].mxu0 }
 0x4e6   : > { %v4103_v19 = vrot.slane %v3947_v6, 1  ;;  %v4248_v31 = vrot.slane %v3947_v6, 2  ;;  %v3361_v49 = vpop.f32.mrb[70].mxu0 }
 0x4e7   : > { %v3478_v51 = vmul.f32 %v7786_v32, %v10124_v52  ;;  %v7787_v54 = vadd.f32 %v3361_v49, %v10100_v14  ;;  %v7638_v30 = vpop.f32.mrb[71].mxu0  ;;  %v3948_v34 = vsel %vm3693_vm1, %v3592_v43, 0.0 }
 0x4e8   : > { %v4104_v23 = vsel %vm4049_vm3, %v4101_v10, %v4103_v19  ;;  %v4249_v35 = vsel %vm4194_vm4, %v4246_v29, %v4248_v31  ;;  %v4105_v14 = vrot.slane %v3948_v34, 1 }
 0x4e9   : > { %v3539_v46 = vadd.f32 %v10127_v0, %v3478_v51  ;;  %v3479_v40 = vmul.f32 %v7787_v54, %v10124_v52  ;;  %v10430_v28 = vpack.c.bf16 %v4104_v23, %v4102_v1  ;;  %v10432_v55 = vpack.c.bf16 %v4249_v35, %v4247_v41 }
 0x4ea   : > { %v4250_v41 = vrot.slane %v3948_v34, 2 }
 0x4eb   : > { %11436 = vst [vmem:[#allocation43_spill] sm:$0xff] %v10432_v55  ;;  %v3593_v6 = vmax.f32 %v3539_v46, 0.0  ;;  %v3540_v32 = vadd.f32 %v10127_v0, %v3479_v40  ;;  %5307 = vmatprep.mubr.bf16.mxu1 %v10430_v28 }
 0x4ec   : > { %v3366_v22 = vpop.f32.mrb[72].mxu0  ;;  %6935 = vmatmul.mubr.msk.bf16.gmra.mrb[152].mxu1 %vm10173_vm6, %v10412_v24 }
 0x4ed   : > { %v3594_v10 = vmax.f32 %v3540_v32, 0.0  ;;  %v7788_v29 = vadd.f32 %v3366_v22, %v10102_v36  ;;  %v7641_v19 = vpop.f32.mrb[73].mxu0  ;;  %v4106_v31 = vrot.slane %v3593_v6, 1  ;;  %v10440_v1 = vpack.c.bf16 %v3593_v6, %v3592_v43 }
 0x4ee   : > { %v3369_v49 = vpop.f32.mrb[74].mxu0  ;;  %v4251_v51 = vrot.slane %v3593_v6, 2 }
 0x4ef   : > { %11437 = vst [vmem:[#allocation44_spill] sm:$0xff] %v10440_v1  ;;  %v3950_v54 = vsel %vm3752_vm2, %v3594_v10, 0.0  ;;  %v3480_v30 = vmul.f32 %v7788_v29, %v10124_v52  ;;  %v7789_v23 = vadd.f32 %v3369_v49, %v10108_v33  ;;  %v7642_v35 = vpop.f32.mrb[75].mxu0  ;;  %v4107_v46 = vsel %vm4049_vm3, %v4105_v14, %v4106_v31 }
 0x4f0   : > { %v4108_v40 = vrot.slane %v3950_v54, 1  ;;  %v4253_v32 = vrot.slane %v3950_v54, 2  ;;  %v4252_v36 = vsel %vm4194_vm4, %v4250_v41, %v4251_v51 }
 0x4f1   : > { %v3541_v43 = vadd.f32 %v10127_v0, %v3480_v30  ;;  %v3481_v34 = vmul.f32 %v7789_v23, %v10124_v52 }
 0x4f2   : > { %v4109_v6 = vsel %vm4049_vm3, %v4106_v31, %v4108_v40  ;;  %v4254_v22 = vsel %vm4194_vm4, %v4251_v51, %v4253_v32 }
 0x4f3   : > { %v3595_v10 = vmax.f32 %v3541_v43, 0.0  ;;  %v3542_v29 = vadd.f32 %v10127_v0, %v3481_v34  ;;  %v10453_v19 = vpack.c.bf16 %v4109_v6, %v4107_v46  ;;  %v10455_v33 = vpack.c.bf16 %v4254_v22, %v4252_v36 }
 0x4f4   : > { %v3374_v14 = vpop.f32.mrb[76].mxu0 }
 0x4f5   : > { %11438 = vst [vmem:[#allocation45_spill] sm:$0xff] %v10455_v33  ;;  %v3951_v49 = vsel %vm3693_vm1, %v3595_v10, 0.0  ;;  %v3596_v41 = vmax.f32 %v3542_v29, 0.0  ;;  %v7790_v54 = vadd.f32 %v3374_v14, %v10110_v42  ;;  %v7645_v30 = vpop.f32.mrb[77].mxu0  ;;  %5315 = vmatprep.mubr.bf16.mxu1 %v10453_v19 }
 0x4f6   : > { %v4110_v31 = vrot.slane %v3951_v49, 1  ;;  %v4255_v23 = vrot.slane %v3951_v49, 2  ;;  %v3377_v51 = vpop.f32.mrb[78].mxu0  ;;  %6938 = vmatmul.mubr.msk.bf16.gmra.mrb[156].mxu1 %vm10173_vm6, %v10440_v1 }
 0x4f7   : > { %v3482_v35 = vmul.f32 %v7790_v54, %v10124_v52  ;;  %v7791_v46 = vadd.f32 %v3377_v51, %v10114_v7  ;;  %v7646_v40 = vpop.f32.mrb[79].mxu0  ;;  %v4111_v32 = vrot.slane %v3596_v41, 1  ;;  %v10466_v36 = vpack.c.bf16 %v3596_v41, %v3595_v10 }
 0x4f8   : > { %v4256_v43 = vrot.slane %v3596_v41, 2 }
 0x4f9   : > { %11439 = vst [vmem:[#allocation46_spill] sm:$0xff] %v10466_v36  ;;  %v3543_v42 = vadd.f32 %v10127_v0, %v3482_v35  ;;  %v3483_v34 = vmul.f32 %v7791_v46, %v10124_v52  ;;  %v4112_v6 = vsel %vm4049_vm3, %v4110_v31, %v4111_v32 }
 0x4fa   : > { %v4257_v22 = vsel %vm4194_vm4, %v4255_v23, %v4256_v43 }
 0x4fb   : > { %v3597_v29 = vmax.f32 %v3543_v42, 0.0  ;;  %v3544_v14 = vadd.f32 %v10127_v0, %v3483_v34 }
 0x4fc   : > { %v3382_v49 = vpop.f32.mrb[80].mxu0 }
 0x4fd   : > { %v3953_v7 = vsel %vm3752_vm2, %v3597_v29, 0.0  ;;  %v3598_v54 = vmax.f32 %v3544_v14, 0.0  ;;  %v7792_v10 = vadd.f32 %v3382_v49, %v10116_v57  ;;  %v7649_v30 = vpop.f32.mrb[81].mxu0 }
 0x4fe   : > { %v4113_v41 = vrot.slane %v3953_v7, 1  ;;  %v4258_v51 = vrot.slane %v3953_v7, 2  ;;  %v3385_v35 = vpop.f32.mrb[82].mxu0 }
 0x4ff   : > { %v3484_v46 = vmul.f32 %v7792_v10, %v10124_v52  ;;  %v7793_v31 = vadd.f32 %v3385_v35, %v10118_v12  ;;  %v7650_v40 = vpop.f32.mrb[83].mxu0  ;;  %v3954_v23 = vsel %vm3693_vm1, %v3598_v54, 0.0 }
 0x500   : > { %v4114_v42 = vsel %vm4049_vm3, %v4111_v32, %v4113_v41  ;;  %v4259_v34 = vsel %vm4194_vm4, %v4256_v43, %v4258_v51  ;;  %v4115_v12 = vrot.slane %v3954_v23, 1 }
 0x501   : > { %v3545_v29 = vadd.f32 %v10127_v0, %v3484_v46  ;;  %v3485_v57 = vmul.f32 %v7793_v31, %v10124_v52  ;;  %v10484_v14 = vpack.c.bf16 %v4114_v42, %v4112_v6  ;;  %v10486_v49 = vpack.c.bf16 %v4259_v34, %v4257_v22  ;;  %v10498_v46 = vld [vmem:[#allocation9] ss:$0 sm:$0xff] }
 0x502   : > { %v4260_v22 = vrot.slane %v3954_v23, 2 }
 0x503   : > { %11440 = vst [vmem:[#allocation47_spill] sm:$0xff] %v10486_v49  ;;  %v3599_v7 = vmax.f32 %v3545_v29, 0.0  ;;  %v3546_v10 = vadd.f32 %v10127_v0, %v3485_v57  ;;  %5323 = vmatprep.mubr.bf16.mxu1 %v10484_v14  ;;  %v10504_v57 = vld [vmem:[#allocation10] ss:$0 sm:$0xff] }
 0x504   : > { %v3390_v30 = vpop.f32.mrb[84].mxu0  ;;  %6941 = vmatmul.mubr.msk.bf16.gmra.mrb[160].mxu1 %vm10173_vm6, %v10466_v36 }
 0x505   : > { %v3600_v32 = vmax.f32 %v3546_v10, 0.0  ;;  %v7794_v43 = vadd.f32 %v3390_v30, %v10120_v56  ;;  %v7653_v41 = vpop.f32.mrb[85].mxu0  ;;  %v4116_v52 = vrot.slane %v3599_v7, 1  ;;  %v10494_v6 = vpack.c.bf16 %v3599_v7, %v3598_v54 }
 0x506   : > { %v3393_v51 = vpop.f32.mrb[86].mxu0  ;;  %v4261_v35 = vrot.slane %v3599_v7, 2 }
 0x507   : > { %11441 = vst [vmem:[#allocation48_spill] sm:$0xff] %v10494_v6  ;;  %v3956_v0 = vsel %vm3752_vm2, %v3600_v32, 0.0  ;;  %v3486_v31 = vmul.f32 %v10498_v46, %v7794_v43  ;;  %v7795_v40 = vadd.f32 %v3393_v51, %v10122_v37  ;;  %v7654_v42 = vpop.f32.mrb[87].mxu0  ;;  %v4117_v34 = vsel %vm4049_vm3, %v4115_v12, %v4116_v52 }
 0x508   : > { %v4118_v56 = vrot.slane %v3956_v0, 1  ;;  %v4263_v29 = vrot.slane %v3956_v0, 2  ;;  %v4262_v54 = vsel %vm4194_vm4, %v4260_v22, %v4261_v35 }
 0x509   : > { %v3547_v23 = vadd.f32 %v10504_v57, %v3486_v31  ;;  %v3487_v7 = vmul.f32 %v10498_v46, %v7795_v40 }
 0x50a   : > { %v4119_v10 = vsel %vm4049_vm3, %v4116_v52, %v4118_v56  ;;  %v4264_v30 = vsel %vm4194_vm4, %v4261_v35, %v4263_v29 }
 0x50b   : > { %v3601_v32 = vmax.f32 %v3547_v23, 0.0  ;;  %v3548_v37 = vadd.f32 %v10504_v57, %v3487_v7  ;;  %v10511_v43 = vpack.c.bf16 %v4119_v10, %v4117_v34  ;;  %v10513_v12 = vpack.c.bf16 %v4264_v30, %v4262_v54 }
 0x50c   : > { %v3398_v41 = vpop.f32.mrb[88].mxu0 }
 0x50d   : > { %11442 = vst [vmem:[#allocation49_spill] sm:$0xff] %v10511_v43  ;;  %11443 = vst [vmem:[#allocation50_spill] sm:$0xff] %v10513_v12  ;;  %v3957_v22 = vsel %vm3693_vm1, %v3601_v32, 0.0  ;;  %v3602_v51 = vmax.f32 %v3548_v37, 0.0  ;;  %v7796_v0 = vadd.f32 %v3398_v41, %v10130_v16  ;;  %v7657_v31 = vpop.f32.mrb[89].mxu0  ;;  %5331 = vmatprep.mubr.bf16.mxu1 %v10511_v43  ;;  %v11446_v43 = vld [vmem:[#allocation24_spill] sm:$0xff] }
 0x50e   : > { %v4120_v52 = vrot.slane %v3957_v22, 1  ;;  %v4265_v40 = vrot.slane %v3957_v22, 2  ;;  %v3401_v35 = vpop.f32.mrb[90].mxu0  ;;  %6944 = vmatmul.mubr.msk.bf16.gmra.mrb[164].mxu1 %vm10173_vm6, %v10494_v6  ;;  %v11445_v31 = vld [vmem:[#allocation23_spill] sm:$0xff] }
 0x50f   : > { %v3488_v42 = vmul.f32 %v10498_v46, %v7796_v0  ;;  %v7797_v34 = vadd.f32 %v3401_v35, %v10135_v18  ;;  %v7658_v56 = vpop.f32.mrb[91].mxu0  ;;  %v4121_v29 = vrot.slane %v3602_v51, 1  ;;  %v10524_v54 = vpack.c.bf16 %v3602_v51, %v3601_v32 }
 0x510   : > { %v4266_v23 = vrot.slane %v3602_v51, 2 }
 0x511   : > { %11444 = vst [vmem:[#allocation51_spill] sm:$0xff] %v10524_v54  ;;  %v3549_v16 = vadd.f32 %v10504_v57, %v3488_v42  ;;  %v3489_v7 = vmul.f32 %v10498_v46, %v7797_v34  ;;  %v4122_v10 = vsel %vm4049_vm3, %v4120_v52, %v4121_v29 }
 0x512   : > { %v4267_v30 = vsel %vm4194_vm4, %v4265_v40, %v4266_v23 }
 0x513   : > { %v3603_v37 = vmax.f32 %v3549_v16, 0.0  ;;  %v3550_v41 = vadd.f32 %v10504_v57, %v3489_v7 }
 0x514   : > { %v3406_v22 = vpop.f32.mrb[96].mxu0 }
 0x515   : > { %v3959_v18 = vsel %vm3752_vm2, %v3603_v37, 0.0  ;;  %v3604_v0 = vmax.f32 %v3550_v41, 0.0  ;;  %v7798_v32 = vadd.f32 %v3406_v22, %v11445_v31  ;;  %v7661_v35 = vpop.f32.mrb[97].mxu0 }
 0x516   : > { %v4123_v51 = vrot.slane %v3959_v18, 1  ;;  %v4268_v56 = vrot.slane %v3959_v18, 2  ;;  %v3409_v42 = vpop.f32.mrb[98].mxu0 }
 0x517   : > { %v3490_v34 = vmul.f32 %v10498_v46, %v7798_v32  ;;  %v7799_v52 = vadd.f32 %v3409_v42, %v11446_v43  ;;  %v7662_v39 = vpop.f32.mrb[99].mxu0  ;;  %v3960_v40 = vsel %vm3693_vm1, %v3604_v0, 0.0 }
 0x518   : > { %v4124_v16 = vsel %vm4049_vm3, %v4121_v29, %v4123_v51  ;;  %v4269_v7 = vsel %vm4194_vm4, %v4266_v23, %v4268_v56  ;;  %v4125_v39 = vrot.slane %v3960_v40, 1 }
 0x519   : > { %v3551_v37 = vadd.f32 %v10504_v57, %v3490_v34  ;;  %v3491_v41 = vmul.f32 %v10498_v46, %v7799_v52  ;;  %v10542_v22 = vpack.c.bf16 %v4124_v16, %v4122_v10  ;;  %v10544_v18 = vpack.c.bf16 %v4269_v7, %v4267_v30  ;;  %v11449_v16 = vld [vmem:[#allocation27_spill] sm:$0xff] }
 0x51a   : > { %v4270_v30 = vrot.slane %v3960_v40, 2 }
 0x51b   : > { %11447 = vst [vmem:[#allocation23_spill] sm:$0xff] %v10542_v22  ;;  %v3605_v31 = vmax.f32 %v3551_v37, 0.0  ;;  %v3552_v32 = vadd.f32 %v10504_v57, %v3491_v41  ;;  %5339 = vmatprep.mubr.bf16.mxu1 %v10542_v22 }
 0x51c   : > { %v3414_v43 = vpop.f32.mrb[100].mxu0  ;;  %6947 = vmatmul.mubr.msk.bf16.gmra.mrb[168].mxu1 %vm10173_vm6, %v10524_v54 }
 0x51d   : > { %v3606_v29 = vmax.f32 %v3552_v32, 0.0  ;;  %v7800_v23 = vadd.f32 %v3414_v43, %v10164_v38  ;;  %v7665_v35 = vpop.f32.mrb[101].mxu0  ;;  %v4126_v51 = vrot.slane %v3605_v31, 1  ;;  %v10552_v10 = vpack.c.bf16 %v3605_v31, %v3604_v0 }
 0x51e   : > { %v3417_v56 = vpop.f32.mrb[102].mxu0  ;;  %v4271_v42 = vrot.slane %v3605_v31, 2 }
 0x51f   : > { %11448 = vst [vmem:[#allocation24_spill] sm:$0xff] %v10552_v10  ;;  %v3962_v34 = vsel %vm3752_vm2, %v3606_v29, 0.0  ;;  %v3492_v52 = vmul.f32 %v10498_v46, %v7800_v23  ;;  %v7801_v7 = vadd.f32 %v3417_v56, %v11449_v16  ;;  %v7666_v37 = vpop.f32.mrb[103].mxu0  ;;  %v4127_v41 = vsel %vm4049_vm3, %v4125_v39, %v4126_v51  ;;  %v11450_v16 = vld [vmem:[#allocation29_spill] sm:$0xff] }
 0x520   : > { %v4128_v32 = vrot.slane %v3962_v34, 1  ;;  %v4273_v22 = vrot.slane %v3962_v34, 2  ;;  %v4272_v38 = vsel %vm4194_vm4, %v4270_v30, %v4271_v42 }
 0x521   : > { %v3553_v0 = vadd.f32 %v10504_v57, %v3492_v52  ;;  %v3493_v40 = vmul.f32 %v10498_v46, %v7801_v7 }
 0x522   : > { %v4129_v31 = vsel %vm4049_vm3, %v4126_v51, %v4128_v32  ;;  %v4274_v43 = vsel %vm4194_vm4, %v4271_v42, %v4273_v22  ;;  %v11451_v42 = vmov 0.0  }
 0x523   : > { %v3607_v29 = vmax.f32 %v3553_v0, 0.0  ;;  %v3554_v23 = vadd.f32 %v10504_v57, %v3493_v40  ;;  %v10565_v35 = vpack.c.bf16 %v4129_v31, %v4127_v41  ;;  %v10567_v56 = vpack.c.bf16 %v4274_v43, %v4272_v38  ;;  %v11452_v0 = vld [vmem:[#allocation25_spill] sm:$0xff] }
 0x524   : > { %v3422_v39 = vpop.f32.mrb[104].mxu0  ;;  %v4195_v41 = vrot.slane %v11451_v42, 2 }
 0x525   : > { %v3963_v34 = vsel %vm3693_vm1, %v3607_v29, 0.0  ;;  %v3608_v30 = vmax.f32 %v3554_v23, 0.0  ;;  %v7802_v52 = vadd.f32 %v3422_v39, %v11450_v16  ;;  %v7669_v37 = vpop.f32.mrb[105].mxu0  ;;  %5347 = vmatprep.mubr.bf16.mxu1 %v10565_v35 }
 0x526   : > { %v4359_v51 = vrot.slane %v3963_v34, 1  ;;  %v4383_v7 = vrot.slane %v3963_v34, 2  ;;  %v3425_v22 = vpop.f32.mrb[106].mxu0  ;;  %6950 = vmatmul.mubr.msk.bf16.gmra.mrb[172].mxu1 %vm10173_vm6, %v10552_v10  ;;  %v10586_v34 = vpack.c.bf16 %v4195_v41, %v4195_v41  ;;  %v8345_v37 = vld [vmem:[#allocation12 + $0x100] sm:$0xff]   ;;  %v8349_v41 = vld [vmem:[#allocation12 + $0x110] sm:$0xff]  }
 0x527   : > { %v4360_v32 = vrot.slane %v3608_v30, 1  ;;  %v3494_v38 = vmul.f32 %v10498_v46, %v7802_v52  ;;  %v7670_v11 = vpop.f32.mrb[107].mxu0  ;;  %6953 = vmatprep.mubr.msk.bf16.mxu1 %vm10173_vm6, %v11452_v0  ;;  %v10581_v40 = vpack.c.bf16 %v3608_v30, %v3607_v29  ;;  %v4384_v31 = vrot.slane %v3608_v30, 2  ;;  %v8346_v22 = vld [vmem:[#allocation12 + $0x148] sm:$0xff]   ;;  %v8348_v30 = vld [vmem:[#allocation12 + $0x150] sm:$0xff]   ;;  %v8352_v0 = vld [vmem:[#allocation12 + $0x160] sm:$0xff]  }
 0x528   : > { %11454 = vst [vmem:[#allocation29_spill] sm:$0xff] %v10586_v34  ;;  %v11456_v11 = vld [vmem:[#allocation28_spill] sm:$0xff] }
 0x529   : > { %11453 = vst [vmem:[#allocation27_spill] sm:$0xff] %v10581_v40  ;;  %v4361_v43 = vsel %vm4049_vm3, %v4359_v51, %v4360_v32  ;;  %v3555_v23 = vadd.f32 %v10504_v57, %v3494_v38  ;;  %v4385_v39 = vsel %vm4194_vm4, %v4383_v7, %v4384_v31  ;;  %v8347_v57 = vld [vmem:[#allocation12 + $0x108] sm:$0xff]   ;;  %v8350_v38 = vld [vmem:[#allocation12 + $0x158] sm:$0xff]  }
 0x52b   : > { %v3609_v16 = vmax.f32 %v3555_v23, 0.0  ;;  %v8355_v23 = vld [vmem:[#allocation12 + $0x128] sm:$0xff]  }
 0x52d   : > { %v3965_v46 = vsel %vm3752_vm2, %v3609_v16, 0.0  ;;  %v8357_v16 = vld [vmem:[#allocation12 + $0x130] sm:$0xff]  }
 0x52e   : > { %v4362_v52 = vrot.slane %v3965_v46, 1  ;;  %v4386_v42 = vrot.slane %v3965_v46, 2  ;;  %5389 = vmatmul.mubr.bf16.vlgmr.msra.gmra.mrb[176].mxu1 %v10586_v34  ;;  %v8360_v46 = vld [vmem:[#allocation12 + $0x1c0] sm:$0xff]  }
 0x52f   : > { %6956 = vmatprep.mubr.msk.bf16.mxu1 %vm10173_vm6, %v10190_v3  ;;  %7304 = vmatpush3.bf16.msra.mxu1 %v8345_v37  ;;  %v8358_v37 = vld [vmem:[#allocation12 + $0x178] sm:$0xff]  }
 0x530   : > { %v4363_v29 = vsel %vm4049_vm3, %v4360_v32, %v4362_v52  ;;  %7305 = vmatprep.subr.bf16.mxu1 %v8346_v22  ;;  %v4387_v51 = vsel %vm4194_vm4, %v4384_v31, %v4386_v42  ;;  %v8351_v32 = vld [vmem:[#allocation12 + $0x118] sm:$0xff]   ;;  %v8353_v31 = vld [vmem:[#allocation12 + $0x120] sm:$0xff]  }
 0x531   : > { %v10596_v7 = vpack.c.bf16 %v4363_v29, %v4361_v43  ;;  %v10598_v60 = vpack.c.bf16 %v4387_v51, %v4385_v39  ;;  %v8354_v43 = vld [vmem:[#allocation12 + $0x168] sm:$0xff]   ;;  %v8356_v39 = vld [vmem:[#allocation12 + $0x170] sm:$0xff]   ;;  %v8359_v22 = vld [vmem:[#allocation12 + $0x138] sm:$0xff]  }
 0x533   : > { %11455 = vst [vmem:[#allocation25_spill] sm:$0xff] %v10598_v60  ;;  %7306 = vmatpush3.bf16.msra.mxu1 %v8347_v57 }
 0x534   : > { %7307 = vmatprep.subr.bf16.mxu1 %v8348_v30 }
 0x536   : > { %5397 = vmatmul.mubr.bf16.gmra.mrb[180].mxu1 %v11456_v11 }
 0x537   : > { %6959 = vmatprep.mubr.msk.bf16.mxu1 %vm10173_vm6, %v10220_v61  ;;  %7308 = vmatpush3.bf16.msra.mxu1 %v8349_v41 }
 0x538   : > { %7309 = vmatprep.subr.bf16.mxu1 %v8350_v38 }
 0x53b   : > { %7310 = vmatpush3.bf16.msra.mxu1 %v8351_v32 }
 0x53c   : > { %7311 = vmatprep.subr.bf16.mxu1 %v8352_v0 }
 0x53e   : > { %5405 = vmatmul.mubr.bf16.gmra.mrb[184].mxu1 %v10212_v25 }
 0x53f   : > { %6962 = vmatprep.mubr.msk.bf16.mxu1 %vm10173_vm6, %v10246_v2  ;;  %7312 = vmatpush3.bf16.msra.mxu1 %v8353_v31 }
 0x540   : > { %7313 = vmatprep.subr.bf16.mxu1 %v8354_v43 }
 0x543   : > { %7314 = vmatpush3.bf16.msra.mxu1 %v8355_v23 }
 0x544   : > { %7315 = vmatprep.subr.bf16.mxu1 %v8356_v39 }
 0x546   : > { %5413 = vmatmul.mubr.bf16.gmra.mrb[188].mxu1 %v10235_v5 }
 0x547   : > { %6965 = vmatprep.mubr.msk.bf16.mxu1 %vm10173_vm6, %v10274_v21  ;;  %7316 = vmatpush3.bf16.msra.mxu1 %v8357_v16 }
 0x548   : > { %7317 = vmatprep.subr.bf16.mxu1 %v8358_v37 }
 0x54b   : > { %7318 = vmatpush3.bf16.msra.mxu1 %v8359_v22 }
 0x54c   : > { %7415 = vmatprep.subr.bf16.mxu1 %v8360_v46 }
 0x54e   : > { %5421 = vmatmul.mubr.bf16.gmra.mrb[192].mxu1 %v10266_v17 }
 0x54f   : > { %6968 = vmatprep.mubr.msk.bf16.mxu1 %vm10173_vm6, %v10300_v50 }
 0x551   : > { %v7101_v52 = vpop.f32.mrb[116].mxu1 }
 0x552   : > { %v7102_v42 = vpop.f32.mrb[117].mxu1 }
 0x553   : > { %v10616_v57 = vadd.f32 %v7102_v42, %v7101_v52  ;;  %v7104_v29 = vpop.f32.mrb[118].mxu1 }
 0x554   : > { %v7105_v30 = vpop.f32.mrb[119].mxu1 }
 0x555   : > { %v10618_v51 = vadd.f32 %v7105_v30, %v7104_v29 }
 0x556   : > { %5429 = vmatmul.mubr.bf16.gmra.mrb[196].mxu1 %v10289_v8 }
 0x557   : > { %6971 = vmatprep.mubr.msk.bf16.mxu1 %vm10173_vm6, %v10328_v4 }
 0x55e   : > { %5437 = vmatmul.mubr.bf16.gmra.mrb[200].mxu1 %v10320_v20 }
 0x55f   : > { %v7107_v41 = vpop.f32.mrb[120].mxu1  ;;  %6974 = vmatprep.mubr.msk.bf16.mxu1 %vm10173_vm6, %v10354_v9 }
 0x560   : > { %v7108_v38 = vpop.f32.mrb[121].mxu1 }
 0x561   : > { %v10628_v32 = vadd.f32 %v7108_v38, %v7107_v41  ;;  %v7110_v0 = vpop.f32.mrb[122].mxu1 }
 0x562   : > { %v7111_v31 = vpop.f32.mrb[123].mxu1 }
 0x563   : > { %v10630_v43 = vadd.f32 %v7111_v31, %v7110_v0 }
 0x566   : > { %5445 = vmatmul.mubr.bf16.gmra.mrb[204].mxu1 %v10343_v13 }
 0x567   : > { %6977 = vmatprep.mubr.msk.bf16.mxu1 %vm10173_vm6, %v10386_v45 }
 0x569   : > { %v7113_v23 = vpop.f32.mrb[124].mxu1 }
 0x56a   : > { %v7114_v39 = vpop.f32.mrb[125].mxu1 }
 0x56b   : > { %v10636_v16 = vadd.f32 %v7114_v39, %v7113_v23  ;;  %v7116_v37 = vpop.f32.mrb[126].mxu1 }
 0x56c   : > { %v7117_v22 = vpop.f32.mrb[127].mxu1 }
 0x56d   : > { %v10638_v46 = vadd.f32 %v7117_v22, %v7116_v37 }
 0x56e   : > { %5453 = vmatmul.mubr.bf16.gmra.mrb[208].mxu1 %v10378_v58 }
 0x56f   : > { %6980 = vmatprep.mubr.msk.bf16.mxu1 %vm10173_vm6, %v10412_v24 }
 0x576   : > { %5461 = vmatmul.mubr.bf16.gmra.mrb[212].mxu1 %v10401_v63 }
 0x577   : > { %v7119_v52 = vpop.f32.mrb[128].mxu1  ;;  %6983 = vmatprep.mubr.msk.bf16.mxu1 %vm10173_vm6, %v10440_v1  ;;  %v8364_v1 = vld [vmem:[#allocation12 + $0x1d0] sm:$0xff]  }
 0x578   : > { %v7120_v42 = vpop.f32.mrb[129].mxu1 }
 0x579   : > { %v10648_v29 = vadd.f32 %v7120_v42, %v7119_v52  ;;  %v7122_v30 = vpop.f32.mrb[130].mxu1 }
 0x57a   : > { %v7123_v41 = vpop.f32.mrb[131].mxu1 }
 0x57b   : > { %v10650_v38 = vadd.f32 %v7123_v41, %v7122_v30 }
 0x57e   : > { %5469 = vmatmul.mubr.bf16.gmra.mrb[216].mxu1 %v10432_v55 }
 0x57f   : > { %6986 = vmatprep.mubr.msk.bf16.mxu1 %vm10173_vm6, %v10466_v36 }
 0x581   : > { %v7125_v0 = vpop.f32.mrb[132].mxu1 }
 0x582   : > { %v7126_v31 = vpop.f32.mrb[133].mxu1 }
 0x583   : > { %v10656_v23 = vadd.f32 %v7126_v31, %v7125_v0  ;;  %v7128_v39 = vpop.f32.mrb[134].mxu1 }
 0x584   : > { %v7129_v37 = vpop.f32.mrb[135].mxu1 }
 0x585   : > { %v10658_v22 = vadd.f32 %v7129_v37, %v7128_v39 }
 0x586   : > { %5477 = vmatmul.mubr.bf16.gmra.mrb[220].mxu1 %v10455_v33 }
 0x587   : > { %6989 = vmatprep.mubr.msk.bf16.mxu1 %vm10173_vm6, %v10494_v6 }
 0x58e   : > { %5485 = vmatmul.mubr.bf16.gmra.mrb[224].mxu1 %v10486_v49 }
 0x58f   : > { %v7131_v52 = vpop.f32.mrb[136].mxu1  ;;  %6992 = vmatprep.mubr.msk.bf16.mxu1 %vm10173_vm6, %v10524_v54 }
 0x590   : > { %v7132_v42 = vpop.f32.mrb[137].mxu1 }
 0x591   : > { %v10668_v30 = vadd.f32 %v7132_v42, %v7131_v52  ;;  %v7134_v41 = vpop.f32.mrb[138].mxu1 }
 0x592   : > { %v7135_v0 = vpop.f32.mrb[139].mxu1 }
 0x593   : > { %v10670_v31 = vadd.f32 %v7135_v0, %v7134_v41 }
 0x596   : > { %5493 = vmatmul.mubr.bf16.gmra.mrb[228].mxu1 %v10513_v12 }
 0x597   : > { %6995 = vmatprep.mubr.msk.bf16.mxu1 %vm10173_vm6, %v10552_v10  ;;  %v11457_v10 = vld [vmem:[#allocation26_spill] sm:$0xff] }
 0x599   : > { %v7137_v39 = vpop.f32.mrb[140].mxu1 }
 0x59a   : > { %v7138_v37 = vpop.f32.mrb[141].mxu1 }
 0x59b   : > { %v10676_v34 = vadd.f32 %v7138_v37, %v7137_v39  ;;  %v7140_v6 = vpop.f32.mrb[142].mxu1 }
 0x59c   : > { %v7141_v36 = vpop.f32.mrb[143].mxu1 }
 0x59d   : > { %v10678_v54 = vadd.f32 %v7141_v36, %v7140_v6  ;;  %v8361_v36 = vld [vmem:[#allocation12 + $0x180] sm:$0xff]   ;;  %v8362_v6 = vld [vmem:[#allocation12 + $0x1c8] sm:$0xff]  }
 0x59e   : > { %5501 = vmatmul.mubr.bf16.gmra.mrb[232].mxu1 %v10544_v18 }
 0x59f   : > { %6998 = vmatprep.mubr.msk.bf16.mxu1 %vm10173_vm6, %v10581_v40  ;;  %v8363_v40 = vld [vmem:[#allocation12 + $0x188] sm:$0xff]  }
 0x5a6   : > { %5509 = vmatmul.mubr.bf16.gmra.mrb[236].mxu1 %v10567_v56 }
 0x5a7   : > { %v7143_v52 = vpop.f32.mrb[144].mxu1  ;;  %5549 = vmatprep.mubr.bf16.mxu1 %v11456_v11 }
 0x5a8   : > { %v7144_v42 = vpop.f32.mrb[145].mxu1 }
 0x5a9   : > { %v10686_v41 = vadd.f32 %v7144_v42, %v7143_v52  ;;  %v7146_v0 = vpop.f32.mrb[146].mxu1  ;;  %v8365_v42 = vld [vmem:[#allocation12 + $0x190] sm:$0xff]  }
 0x5aa   : > { %v7147_v39 = vpop.f32.mrb[147].mxu1 }
 0x5ab   : > { %v10688_v37 = vadd.f32 %v7147_v39, %v7146_v0  ;;  %v8366_v0 = vld [vmem:[#allocation12 + $0x1d8] sm:$0xff]  }
 0x5ae   : > { %5550 = vmatmul.mubr.bf16.vlgmr.msra.gmra.mrb[240].mxu1 %v11457_v10  ;;  %v8367_v10 = vld [vmem:[#allocation12 + $0x198] sm:$0xff]  }
 0x5af   : > { %5557 = vmatprep.mubr.bf16.mxu1 %v10212_v25  ;;  %7416 = vmatpush3.bf16.msra.mxu1 %v8361_v36  ;;  %v8368_v36 = vld [vmem:[#allocation12 + $0x1e0] sm:$0xff]  }
 0x5b0   : > { %7417 = vmatprep.subr.bf16.mxu1 %v8362_v6  ;;  %v8369_v6 = vld [vmem:[#allocation12 + $0x1a0] sm:$0xff]  }
 0x5b1   : > { %v7149_v24 = vpop.f32.mrb[148].mxu1 }
 0x5b2   : > { %v7150_v45 = vpop.f32.mrb[149].mxu1 }
 0x5b3   : > { %v10692_v11 = vadd.f32 %v7150_v45, %v7149_v24  ;;  %v7152_v52 = vpop.f32.mrb[150].mxu1  ;;  %7418 = vmatpush3.bf16.msra.mxu1 %v8363_v40  ;;  %v8370_v45 = vld [vmem:[#allocation12 + $0x1e8] sm:$0xff]   ;;  %v8372_v40 = vld [vmem:[#allocation12 + $0x1f0] sm:$0xff]  }
 0x5b4   : > { %v7153_v9 = vpop.f32.mrb[151].mxu1  ;;  %7419 = vmatprep.subr.bf16.mxu1 %v8364_v1 }
 0x5b5   : > { %v10694_v39 = vadd.f32 %v7153_v9, %v7152_v52  ;;  %v8371_v9 = vld [vmem:[#allocation12 + $0x1a8] sm:$0xff]  }
 0x5b6   : > { %5558 = vmatmul.mubr.bf16.gmra.mrb[244].mxu1 %v10210_v62 }
 0x5b7   : > { %5565 = vmatprep.mubr.bf16.mxu1 %v10235_v5  ;;  %7420 = vmatpush3.bf16.msra.mxu1 %v8365_v42 }
 0x5b8   : > { %7421 = vmatprep.subr.bf16.mxu1 %v8366_v0 }
 0x5bb   : > { %7422 = vmatpush3.bf16.msra.mxu1 %v8367_v10  ;;  %v8373_v10 = vld [vmem:[#allocation12 + $0x1b0] sm:$0xff]  }
 0x5bc   : > { %7423 = vmatprep.subr.bf16.mxu1 %v8368_v36  ;;  %v8374_v36 = vld [vmem:[#allocation12 + $0x1f8] sm:$0xff]  }
 0x5be   : > { %5566 = vmatmul.mubr.bf16.gmra.mrb[248].mxu1 %v10233_v27 }
 0x5bf   : > { %v7155_v24 = vpop.f32.mrb[152].mxu1  ;;  %5573 = vmatprep.mubr.bf16.mxu1 %v10266_v17  ;;  %7424 = vmatpush3.bf16.msra.mxu1 %v8369_v6  ;;  %v8375_v6 = vld [vmem:[#allocation12 + $0x1b8] sm:$0xff]   ;;  %v10706_v17 = vld [vmem:[#allocation12 + $0x200] sm:$0xff]  }
 0x5c0   : > { %v7156_v1 = vpop.f32.mrb[153].mxu1  ;;  %7425 = vmatprep.subr.bf16.mxu1 %v8370_v45 }
 0x5c1   : > { %v10700_v52 = vadd.f32 %v7156_v1, %v7155_v24  ;;  %v7158_v42 = vpop.f32.mrb[154].mxu1 }
 0x5c2   : > { %v7159_v5 = vpop.f32.mrb[155].mxu1 }
 0x5c3   : > { %v10702_v0 = vadd.f32 %v7159_v5, %v7158_v42  ;;  %7426 = vmatpush3.bf16.msra.mxu1 %v8371_v9 }
 0x5c4   : > { %7427 = vmatprep.subr.bf16.mxu1 %v8372_v40 }
 0x5c6   : > { %5574 = vmatmul.mubr.bf16.gmra.mrb[252].mxu1 %v10264_v15 }
 0x5c7   : > { %5581 = vmatprep.mubr.bf16.mxu1 %v10289_v8  ;;  %7428 = vmatpush3.bf16.msra.mxu1 %v8373_v10 }
 0x5c8   : > { %7429 = vmatprep.subr.bf16.mxu1 %v8374_v36 }
 0x5c9   : > { %v7161_v45 = vpop.f32.mrb[156].mxu1 }
 0x5ca   : > { %v7162_v24 = vpop.f32.mrb[157].mxu1 }
 0x5cb   : > { %v10708_v1 = vadd.f32 %v7162_v24, %v7161_v45  ;;  %v7164_v25 = vpop.f32.mrb[158].mxu1  ;;  %7430 = vmatpush3.bf16.msra.mxu1 %v8375_v6  ;;  %v11460_v24 = vld [vmem:[#allocation35_spill] sm:$0xff] }
 0x5cc   : > { %v7165_v5 = vpop.f32.mrb[159].mxu1  ;;  %7675 = vmatprep.subr.bf16.mxu1 %v10706_v17 }
 0x5cd   : > { %11458 = vst [vmem:[#allocation28_spill] sm:$0xff] %v10708_v1  ;;  %v10711_v9 = vadd.f32 %v7165_v5, %v7164_v25 }
 0x5ce   : > { %5582 = vmatmul.mubr.bf16.gmra.mrb[0].mxu1 %v10287_v26 }
 0x5cf   : > { %11459 = vst [vmem:[#allocation26_spill] sm:$0xff] %v10711_v9  ;;  %5589 = vmatprep.mubr.bf16.mxu1 %v10320_v20 }
 0x5d6   : > { %5590 = vmatmul.mubr.bf16.gmra.mrb[104].mxu1 %v10318_v44 }
 0x5d7   : > { %v7167_v40 = vpop.f32.mrb[160].mxu1  ;;  %5597 = vmatprep.mubr.bf16.mxu1 %v10343_v13 }
 0x5d8   : > { %v7168_v42 = vpop.f32.mrb[161].mxu1 }
 0x5d9   : > { %v10717_v10 = vadd.f32 %v7168_v42, %v7167_v40  ;;  %v7170_v36 = vpop.f32.mrb[162].mxu1 }
 0x5da   : > { %v7171_v45 = vpop.f32.mrb[163].mxu1 }
 0x5db   : > { %v10719_v6 = vadd.f32 %v7171_v45, %v7170_v36 }
 0x5de   : > { %5598 = vmatmul.mubr.bf16.gmra.mrb[4].mxu1 %v11460_v24 }
 0x5df   : > { %5605 = vmatprep.mubr.bf16.mxu1 %v10378_v58 }
 0x5e1   : > { %v7173_v25 = vpop.f32.mrb[164].mxu1 }
 0x5e2   : > { %v7174_v5 = vpop.f32.mrb[165].mxu1 }
 0x5e3   : > { %v10723_v8 = vadd.f32 %v7174_v5, %v7173_v25  ;;  %v7176_v20 = vpop.f32.mrb[166].mxu1 }
 0x5e4   : > { %v7177_v9 = vpop.f32.mrb[167].mxu1 }
 0x5e5   : > { %v10725_v1 = vadd.f32 %v7177_v9, %v7176_v20 }
 0x5e6   : > { %5606 = vmatmul.mubr.bf16.gmra.mrb[8].mxu1 %v10375_v48 }
 0x5e7   : > { %11461 = vst [vmem:[#allocation35_spill] sm:$0xff] %v10725_v1  ;;  %5613 = vmatprep.mubr.bf16.mxu1 %v10401_v63 }
 0x5ee   : > { %5614 = vmatmul.mubr.bf16.gmra.mrb[12].mxu1 %v10399_v47 }
 0x5ef   : > { %v7179_v40 = vpop.f32.mrb[168].mxu1  ;;  %5621 = vmatprep.mubr.bf16.mxu1 %v10432_v55 }
 0x5f0   : > { %v7180_v42 = vpop.f32.mrb[169].mxu1 }
 0x5f1   : > { %v10731_v36 = vadd.f32 %v7180_v42, %v7179_v40  ;;  %v7182_v45 = vpop.f32.mrb[170].mxu1 }
 0x5f2   : > { %v7183_v58 = vpop.f32.mrb[171].mxu1 }
 0x5f3   : > { %11462 = vst [vmem:[#allocation52_spill] sm:$0xff] %v10731_v36  ;;  %v10733_v25 = vadd.f32 %v7183_v58, %v7182_v45  ;;  %v11467_v36 = vld [vmem:[#allocation49_spill] sm:$0xff] }
 0x5f5   : > { %11463 = vst [vmem:[#allocation53_spill] sm:$0xff] %v10733_v25 }
 0x5f6   : > { %5622 = vmatmul.mubr.bf16.gmra.mrb[16].mxu1 %v10430_v28 }
 0x5f7   : > { %5629 = vmatprep.mubr.bf16.mxu1 %v10455_v33 }
 0x5f9   : > { %v7185_v20 = vpop.f32.mrb[172].mxu1 }
 0x5fa   : > { %v7186_v9 = vpop.f32.mrb[173].mxu1 }
 0x5fb   : > { %v10737_v5 = vadd.f32 %v7186_v9, %v7185_v20  ;;  %v7188_v63 = vpop.f32.mrb[174].mxu1  ;;  %v11466_v20 = vld [vmem:[#allocation38_spill] sm:$0xff] }
 0x5fc   : > { %v7189_v13 = vpop.f32.mrb[175].mxu1 }
 0x5fd   : > { %11464 = vst [vmem:[#allocation54_spill] sm:$0xff] %v10737_v5  ;;  %v10739_v1 = vadd.f32 %v7189_v13, %v7188_v63 }
 0x5fe   : > { %5630 = vmatmul.mubr.bf16.gmra.mrb[20].mxu1 %v10453_v19 }
 0x5ff   : > { %11465 = vst [vmem:[#allocation55_spill] sm:$0xff] %v10739_v1  ;;  %5637 = vmatprep.mubr.bf16.mxu1 %v10486_v49 }
 0x601   : > { %v7207_v40 = vpop.f32.mrb[176].mxu1 }
 0x602   : > { %v7208_v42 = vpop.f32.mrb[177].mxu1 }
 0x603   : > { %v7209_v58 = vadd.f32 %v7208_v42, %v7207_v40  ;;  %v7210_v45 = vpop.f32.mrb[178].mxu1 }
 0x604   : > { %v7211_v55 = vpop.f32.mrb[179].mxu1 }
 0x605   : > { %v10744_v25 = vadd.f32 %v7209_v58, %v10361_v59  ;;  %v7212_v33 = vadd.f32 %v7211_v55, %v7210_v45 }
 0x606   : > { %5638 = vmatmul.mubr.bf16.gmra.mrb[24].mxu1 %v10484_v14 }
 0x607   : > { %v10748_v9 = vadd.f32 %v7212_v33, %v11466_v20  ;;  %5645 = vmatprep.mubr.bf16.mxu1 %v10513_v12  ;;  %v11468_v12 = vld [vmem:[#allocation23_spill] sm:$0xff] }
 0x609   : > { %v7213_v13 = vpop.f32.mrb[180].mxu1 }
 0x60a   : > { %v7214_v63 = vpop.f32.mrb[181].mxu1 }
 0x60b   : > { %v7215_v1 = vadd.f32 %v7214_v63, %v7213_v13  ;;  %v7216_v49 = vpop.f32.mrb[182].mxu1 }
 0x60c   : > { %v7217_v5 = vpop.f32.mrb[183].mxu1 }
 0x60d   : > { %v10752_v40 = vadd.f32 %v7215_v1, %v10616_v57  ;;  %v7218_v42 = vadd.f32 %v7217_v5, %v7216_v49 }
 0x60e   : > { %5646 = vmatmul.mubr.bf16.gmra.mrb[28].mxu1 %v11467_v36 }
 0x60f   : > { %v10756_v59 = vadd.f32 %v7218_v42, %v10618_v51  ;;  %5653 = vmatprep.mubr.bf16.mxu1 %v10544_v18 }
 0x611   : > { %v7219_v55 = vpop.f32.mrb[184].mxu1 }
 0x612   : > { %v7220_v33 = vpop.f32.mrb[185].mxu1 }
 0x613   : > { %v7221_v58 = vadd.f32 %v7220_v33, %v7219_v55  ;;  %v7222_v45 = vpop.f32.mrb[186].mxu1 }
 0x614   : > { %v7223_v20 = vpop.f32.mrb[187].mxu1 }
 0x615   : > { %v10760_v13 = vadd.f32 %v7221_v58, %v10628_v32  ;;  %v7224_v63 = vadd.f32 %v7223_v20, %v7222_v45 }
 0x616   : > { %5654 = vmatmul.mubr.bf16.gmra.mrb[32].mxu1 %v11468_v12 }
 0x617   : > { %v10764_v49 = vadd.f32 %v7224_v63, %v10630_v43  ;;  %5661 = vmatprep.mubr.bf16.mxu1 %v10567_v56 }
 0x619   : > { %v7225_v57 = vpop.f32.mrb[188].mxu1 }
 0x61a   : > { %v7226_v51 = vpop.f32.mrb[189].mxu1 }
 0x61b   : > { %v7227_v1 = vadd.f32 %v7226_v51, %v7225_v57  ;;  %v7228_v5 = vpop.f32.mrb[190].mxu1 }
 0x61c   : > { %v7229_v42 = vpop.f32.mrb[191].mxu1 }
 0x61d   : > { %v10768_v55 = vadd.f32 %v7227_v1, %v10636_v16  ;;  %v7230_v33 = vadd.f32 %v7229_v42, %v7228_v5 }
 0x61e   : > { %5662 = vmatmul.mubr.bf16.gmra.mrb[36].mxu1 %v10565_v35 }
 0x61f   : > { %v10772_v32 = vadd.f32 %v7230_v33, %v10638_v46  ;;  %5669 = vmatprep.mubr.bf16.mxu1 %v10598_v60  ;;  %v8377_v60 = vld [vmem:[#allocation12 + $0x208] sm:$0xff]  }
 0x621   : > { %v7231_v43 = vpop.f32.mrb[192].mxu1 }
 0x622   : > { %v7232_v58 = vpop.f32.mrb[193].mxu1 }
 0x623   : > { %v7233_v45 = vadd.f32 %v7232_v58, %v7231_v43  ;;  %v7234_v20 = vpop.f32.mrb[194].mxu1 }
 0x624   : > { %v7235_v63 = vpop.f32.mrb[195].mxu1 }
 0x625   : > { %v10776_v57 = vadd.f32 %v7233_v45, %v10648_v29  ;;  %v7236_v51 = vadd.f32 %v7235_v63, %v7234_v20 }
 0x626   : > { %5670 = vmatmul.mubr.bf16.gmra.mrb[40].mxu1 %v10596_v7 }
 0x627   : > { %v10780_v16 = vadd.f32 %v7236_v51, %v10650_v38  ;;  %5710 = vmatprep.mubr.bf16.mxu1 %v10210_v62  ;;  %v8378_v62 = vld [vmem:[#allocation12 + $0x210] sm:$0xff]   ;;  %v8379_v51 = vld [vmem:[#allocation12 + $0x218] sm:$0xff]  }
 0x629   : > { %v7237_v46 = vpop.f32.mrb[196].mxu1 }
 0x62a   : > { %v7238_v1 = vpop.f32.mrb[197].mxu1 }
 0x62b   : > { %v7239_v5 = vadd.f32 %v7238_v1, %v7237_v46  ;;  %v7240_v42 = vpop.f32.mrb[198].mxu1 }
 0x62c   : > { %v7241_v33 = vpop.f32.mrb[199].mxu1 }
 0x62d   : > { %v10784_v43 = vadd.f32 %v7239_v5, %v10656_v23  ;;  %v7242_v58 = vadd.f32 %v7241_v33, %v7240_v42  ;;  %v8381_v42 = vld [vmem:[#allocation12 + $0x228] sm:$0xff]  }
 0x62e   : > { %7001 = vmatmul.mubr.msk.bf16.vlgmr.msra.gmra.mrb[44].mxu1 %vm10173_vm6, %v10190_v3 }
 0x62f   : > { %v10790_v29 = vadd.f32 %v7242_v58, %v10658_v22  ;;  %5718 = vmatprep.mubr.bf16.mxu1 %v10233_v27  ;;  %7676 = vmatpush3.bf16.msra.mxu1 %v10706_v17  ;;  %v8380_v17 = vld [vmem:[#allocation12 + $0x220] sm:$0xff]  }
 0x630   : > { %7677 = vmatprep.subr.bf16.mxu1 %v8377_v60 }
 0x631   : > { %v7243_v38 = vpop.f32.mrb[200].mxu1 }
 0x632   : > { %v7244_v45 = vpop.f32.mrb[201].mxu1 }
 0x633   : > { %v7245_v20 = vadd.f32 %v7244_v45, %v7243_v38  ;;  %v7246_v63 = vpop.f32.mrb[202].mxu1  ;;  %7678 = vmatpush3.bf16.msra.mxu1 %v8377_v60 }
 0x634   : > { %v7247_v23 = vpop.f32.mrb[203].mxu1  ;;  %7679 = vmatprep.subr.bf16.mxu1 %v8378_v62 }
 0x635   : > { %v10795_v46 = vadd.f32 %v7245_v20, %v10668_v30  ;;  %v7248_v3 = vadd.f32 %v7247_v23, %v7246_v63  ;;  %v8383_v20 = vld [vmem:[#allocation12 + $0x238] sm:$0xff]  }
 0x636   : > { %7004 = vmatmul.mubr.msk.bf16.gmra.mrb[48].mxu1 %vm10173_vm6, %v10220_v61 }
 0x637   : > { %v10801_v27 = vadd.f32 %v7248_v3, %v10670_v31  ;;  %5726 = vmatprep.mubr.bf16.mxu1 %v10264_v15  ;;  %7680 = vmatpush3.bf16.msra.mxu1 %v8378_v62  ;;  %v8382_v31 = vld [vmem:[#allocation12 + $0x230] sm:$0xff]  }
 0x638   : > { %7681 = vmatprep.subr.bf16.mxu1 %v8379_v51 }
 0x639   : > { %v7249_v60 = vpop.f32.mrb[204].mxu1 }
 0x63a   : > { %v7250_v22 = vpop.f32.mrb[205].mxu1 }
 0x63b   : > { %v7251_v1 = vadd.f32 %v7250_v22, %v7249_v60  ;;  %v7252_v5 = vpop.f32.mrb[206].mxu1  ;;  %7682 = vmatpush3.bf16.msra.mxu1 %v8379_v51 }
 0x63c   : > { %v7253_v30 = vpop.f32.mrb[207].mxu1  ;;  %7683 = vmatprep.subr.bf16.mxu1 %v8380_v17 }
 0x63d   : > { %v10805_v33 = vadd.f32 %v7251_v1, %v10676_v34  ;;  %v7254_v61 = vadd.f32 %v7253_v30, %v7252_v5 }
 0x63e   : > { %7007 = vmatmul.mubr.msk.bf16.gmra.mrb[52].mxu1 %vm10173_vm6, %v10246_v2 }
 0x63f   : > { %v10811_v15 = vadd.f32 %v7254_v61, %v10678_v54  ;;  %5734 = vmatprep.mubr.bf16.mxu1 %v10287_v26  ;;  %7684 = vmatpush3.bf16.msra.mxu1 %v8380_v17 }
 0x640   : > { %7685 = vmatprep.subr.bf16.mxu1 %v8381_v42 }
 0x641   : > { %v7255_v58 = vpop.f32.mrb[208].mxu1 }
 0x642   : > { %v7256_v62 = vpop.f32.mrb[209].mxu1 }
 0x643   : > { %v7257_v38 = vadd.f32 %v7256_v62, %v7255_v58  ;;  %v7258_v45 = vpop.f32.mrb[210].mxu1  ;;  %7686 = vmatpush3.bf16.msra.mxu1 %v8381_v42  ;;  %v11469_v58 = vld [vmem:[#allocation28_spill] sm:$0xff] }
 0x644   : > { %v7259_v34 = vpop.f32.mrb[211].mxu1  ;;  %7687 = vmatprep.subr.bf16.mxu1 %v8382_v31 }
 0x645   : > { %v10815_v63 = vadd.f32 %v7257_v38, %v10686_v41  ;;  %v7260_v2 = vadd.f32 %v7259_v34, %v7258_v45  ;;  %v11470_v38 = vld [vmem:[#allocation37_spill] sm:$0xff]  ;;  %v11471_v45 = vld [vmem:[#allocation26_spill] sm:$0xff] }
 0x646   : > { %7010 = vmatmul.mubr.msk.bf16.gmra.mrb[56].mxu1 %vm10173_vm6, %v10274_v21 }
 0x647   : > { %v10821_v26 = vadd.f32 %v7260_v2, %v10688_v37  ;;  %5742 = vmatprep.mubr.bf16.mxu1 %v10318_v44  ;;  %7688 = vmatpush3.bf16.msra.mxu1 %v8382_v31 }
 0x648   : > { %7689 = vmatprep.subr.bf16.mxu1 %v8383_v20 }
 0x649   : > { %v7261_v54 = vpop.f32.mrb[212].mxu1 }
 0x64a   : > { %v7262_v23 = vpop.f32.mrb[213].mxu1 }
 0x64b   : > { %v7263_v51 = vadd.f32 %v7262_v23, %v7261_v54  ;;  %v7264_v3 = vpop.f32.mrb[214].mxu1  ;;  %7690 = vmatpush3.bf16.msra.mxu1 %v8383_v20 }
 0x64c   : > { %v7265_v17 = vpop.f32.mrb[215].mxu1 }
 0x64d   : > { %v10825_v41 = vadd.f32 %v7263_v51, %v10692_v11  ;;  %v7266_v60 = vadd.f32 %v7265_v17, %v7264_v3  ;;  %v11472_v51 = vld [vmem:[#allocation40_spill] sm:$0xff] }
 0x64e   : > { %7013 = vmatmul.mubr.msk.bf16.gmra.mrb[60].mxu1 %vm10173_vm6, %v10300_v50 }
 0x64f   : > { %v10831_v21 = vadd.f32 %v7266_v60, %v10694_v39  ;;  %5750 = vmatprep.mubr.bf16.mxu1 %v11460_v24 }
 0x651   : > { %v7267_v44 = vpop.f32.mrb[216].mxu1 }
 0x652   : > { %v7268_v37 = vpop.f32.mrb[217].mxu1 }
 0x653   : > { %v7269_v22 = vadd.f32 %v7268_v37, %v7267_v44  ;;  %v7270_v1 = vpop.f32.mrb[218].mxu1 }
 0x654   : > { %v7271_v5 = vpop.f32.mrb[219].mxu1 }
 0x655   : > { %v10835_v30 = vadd.f32 %v7269_v22, %v10700_v52  ;;  %v7272_v11 = vadd.f32 %v7271_v5, %v7270_v1  ;;  %v6715_v1 = vld [vmem:[%s9031_s7 + $0x26a] sm:$0xff]  ;;  %v6716_v5 = vld [vmem:[%s9031_s7 + $0x272] sm:$0xff] }
 0x656   : > { %7016 = vmatmul.mubr.msk.bf16.gmra.mrb[64].mxu1 %vm10173_vm6, %v10328_v4 }
 0x657   : > { %v10841_v50 = vadd.f32 %v7272_v11, %v10702_v0  ;;  %5758 = vmatprep.mubr.bf16.mxu1 %v10375_v48  ;;  %v11473_v11 = vld [vmem:[#allocation42_spill] sm:$0xff] }
 0x659   : > { %v7273_v39 = vpop.f32.mrb[220].mxu1 }
 0x65a   : > { %v7274_v24 = vpop.f32.mrb[221].mxu1 }
 0x65b   : > { %v7275_v42 = vadd.f32 %v7274_v24, %v7273_v39  ;;  %v7276_v61 = vpop.f32.mrb[222].mxu1  ;;  %v1345_v39 = vpack.c.bf16 %v6716_v5, %v6715_v1 }
 0x65c   : > { %v7277_v31 = vpop.f32.mrb[223].mxu1 }
 0x65d   : > { %v10845_v62 = vadd.f32 %v7275_v42, %v11469_v58  ;;  %v7278_v52 = vadd.f32 %v7277_v31, %v7276_v61  ;;  %7672 = vmatmul.mubr.bf16.gmra.mrb[124].mxu0 %v1345_v39  ;;  %v11475_v58 = vld [vmem:[#allocation52_spill] sm:$0xff] }
 0x65e   : > { %7019 = vmatmul.mubr.msk.bf16.gmra.mrb[68].mxu1 %vm10173_vm6, %v11470_v38 }
 0x65f   : > { %v10851_v4 = vadd.f32 %v7278_v52, %v11471_v45  ;;  %5766 = vmatprep.mubr.bf16.mxu1 %v10399_v47  ;;  %v11476_v45 = vld [vmem:[#allocation44_spill] sm:$0xff] }
 0x661   : > { %v7279_v0 = vpop.f32.mrb[224].mxu1 }
 0x662   : > { %v7280_v48 = vpop.f32.mrb[225].mxu1 }
 0x663   : > { %v7281_v34 = vadd.f32 %v7280_v48, %v7279_v0  ;;  %v7282_v20 = vpop.f32.mrb[226].mxu1  ;;  %v11477_v0 = vld [vmem:[#allocation53_spill] sm:$0xff] }
 0x664   : > { %v7283_v2 = vpop.f32.mrb[227].mxu1 }
 0x665   : > { %v10855_v54 = vadd.f32 %v7281_v34, %v10717_v10  ;;  %v7284_v23 = vadd.f32 %v7283_v2, %v7282_v20 }
 0x666   : > { %7022 = vmatmul.mubr.msk.bf16.gmra.mrb[72].mxu1 %vm10173_vm6, %v11472_v51  ;;  %v11478_v51 = vld [vmem:[#allocation54_spill] sm:$0xff] }
 0x667   : > { %v10861_v3 = vadd.f32 %v7284_v23, %v10719_v6  ;;  %5774 = vmatprep.mubr.bf16.mxu1 %v10430_v28  ;;  %v11474_v6 = vld [vmem:[#allocation35_spill] sm:$0xff] }
 0x669   : > { %v7285_v47 = vpop.f32.mrb[228].mxu1 }
 0x66a   : > { %v7286_v17 = vpop.f32.mrb[229].mxu1 }
 0x66b   : > { %v7287_v60 = vadd.f32 %v7286_v17, %v7285_v47  ;;  %v7288_v44 = vpop.f32.mrb[230].mxu1 }
 0x66c   : > { %v7289_v37 = vpop.f32.mrb[231].mxu1 }
 0x66d   : > { %v10865_v22 = vadd.f32 %v7287_v60, %v10723_v8  ;;  %v7290_v10 = vadd.f32 %v7289_v37, %v7288_v44  ;;  %v11479_v60 = vld [vmem:[#allocation46_spill] sm:$0xff]  ;;  %v11480_v44 = vld [vmem:[#allocation55_spill] sm:$0xff] }
 0x66e   : > { %7025 = vmatmul.mubr.msk.bf16.gmra.mrb[76].mxu1 %vm10173_vm6, %v11473_v11 }
 0x66f   : > { %v10873_v24 = vadd.f32 %v7290_v10, %v11474_v6  ;;  %5782 = vmatprep.mubr.bf16.mxu1 %v10453_v19 }
 0x671   : > { %v7291_v28 = vpop.f32.mrb[232].mxu1 }
 0x672   : > { %v7292_v42 = vpop.f32.mrb[233].mxu1 }
 0x673   : > { %v7293_v61 = vadd.f32 %v7292_v42, %v7291_v28  ;;  %v7294_v31 = vpop.f32.mrb[234].mxu1  ;;  %v11481_v28 = vld [vmem:[#allocation48_spill] sm:$0xff] }
 0x674   : > { %v7295_v8 = vpop.f32.mrb[235].mxu1 }
 0x675   : > { %v10877_v52 = vadd.f32 %v7293_v61, %v11475_v58  ;;  %v7296_v38 = vadd.f32 %v7295_v8, %v7294_v31 }
 0x676   : > { %7028 = vmatmul.mubr.msk.bf16.gmra.mrb[80].mxu1 %vm10173_vm6, %v11476_v45  ;;  %v11482_v45 = vld [vmem:[#allocation51_spill] sm:$0xff] }
 0x677   : > { %v10883_v48 = vadd.f32 %v7296_v38, %v11477_v0  ;;  %5790 = vmatprep.mubr.bf16.mxu1 %v10484_v14 }
 0x679   : > { %v7297_v19 = vpop.f32.mrb[236].mxu1 }
 0x67a   : > { %v7298_v34 = vpop.f32.mrb[237].mxu1 }
 0x67b   : > { %v7299_v20 = vadd.f32 %v7298_v34, %v7297_v19  ;;  %v7300_v2 = vpop.f32.mrb[238].mxu1 }
 0x67c   : > { %v7301_v23 = vpop.f32.mrb[239].mxu1 }
 0x67d   : > { %v10887_v47 = vadd.f32 %v7299_v20, %v11478_v51  ;;  %v7302_v17 = vadd.f32 %v7301_v23, %v7300_v2  ;;  %v11483_v23 = vld [vmem:[#allocation24_spill] sm:$0xff] }
 0x67e   : > { %7031 = vmatmul.mubr.msk.bf16.gmra.mrb[84].mxu1 %vm10173_vm6, %v11479_v60 }
 0x67f   : > { %v10893_v37 = vadd.f32 %v7302_v17, %v11480_v44  ;;  %5798 = vmatprep.mubr.bf16.mxu1 %v11467_v36 }
 0x681   : > { %v7319_v10 = vpop.f32.mrb[240].mxu1 }
 0x682   : > { %v7320_v14 = vpop.f32.mrb[241].mxu1 }
 0x683   : > { %v7321_v1 = vadd.f32 %v7320_v14, %v7319_v10  ;;  %v7322_v5 = vpop.f32.mrb[242].mxu1  ;;  %v11484_v14 = vld [vmem:[#allocation27_spill] sm:$0xff] }
 0x684   : > { %v7323_v11 = vpop.f32.mrb[243].mxu1 }
 0x685   : > { %v10897_v39 = vadd.f32 %v7321_v1, %v10744_v25  ;;  %v7324_v6 = vadd.f32 %v7323_v11, %v7322_v5 }
 0x686   : > { %7034 = vmatmul.mubr.msk.bf16.gmra.mrb[88].mxu1 %vm10173_vm6, %v11481_v28 }
 0x687   : > { %v10903_v42 = vadd.f32 %v7324_v6, %v10748_v9  ;;  %5806 = vmatprep.mubr.bf16.mxu1 %v11468_v12 }
 0x689   : > { %v7325_v61 = vpop.f32.mrb[244].mxu1 }
 0x68a   : > { %v7326_v36 = vpop.f32.mrb[245].mxu1 }
 0x68b   : > { %v7327_v31 = vadd.f32 %v7326_v36, %v7325_v61  ;;  %v7328_v8 = vpop.f32.mrb[246].mxu1  ;;  %v11486_v36 = vmov 0.0|0.0  }
 0x68c   : > { %v7329_v58 = vpop.f32.mrb[247].mxu1 }
 0x68d   : > { %v10907_v38 = vadd.f32 %v7327_v31, %v10752_v40  ;;  %v7330_v25 = vadd.f32 %v7329_v58, %v7328_v8 }
 0x68e   : > { %7037 = vmatmul.mubr.msk.bf16.gmra.mrb[108].mxu1 %vm10173_vm6, %v11482_v45 }
 0x68f   : > { %v10913_v0 = vadd.f32 %v7330_v25, %v10756_v59  ;;  %5814 = vmatprep.mubr.bf16.mxu1 %v10565_v35 }
 0x691   : > { %v7331_v9 = vpop.f32.mrb[248].mxu1 }
 0x692   : > { %v7332_v12 = vpop.f32.mrb[249].mxu1 }
 0x693   : > { %v7333_v19 = vadd.f32 %v7332_v12, %v7331_v9  ;;  %v7334_v34 = vpop.f32.mrb[250].mxu1 }
 0x694   : > { %v7335_v20 = vpop.f32.mrb[251].mxu1 }
 0x695   : > { %v10917_v2 = vadd.f32 %v7333_v19, %v10760_v13  ;;  %v7336_v40 = vadd.f32 %v7335_v20, %v7334_v34  ;;  %v11488_v19 = vld [vmem:[#allocation31_spill] sm:$0xff]  ;;  %v11489_v34 = vld [vmem:[#allocation32_spill] sm:$0xff] }
 0x696   : > { %7040 = vmatmul.mubr.msk.bf16.gmra.mrb[92].mxu1 %vm10173_vm6, %v11483_v23 }
 0x697   : > { %v10923_v51 = vadd.f32 %v7336_v40, %v10764_v49  ;;  %5822 = vmatprep.mubr.bf16.mxu1 %v10596_v7  ;;  %v11485_v49 = vld [vmem:[#allocation22_spill] sm:$0xff] }
 0x699   : > { %v7337_v59 = vpop.f32.mrb[252].mxu1 }
 0x69a   : > { %v7338_v35 = vpop.f32.mrb[253].mxu1 }
 0x69b   : > { %v7339_v17 = vadd.f32 %v7338_v35, %v7337_v59  ;;  %v7340_v60 = vpop.f32.mrb[254].mxu1 }
 0x69c   : > { %v7341_v44 = vpop.f32.mrb[255].mxu1 }
 0x69d   : > { %v10927_v10 = vadd.f32 %v7339_v17, %v10768_v55  ;;  %v7342_v13 = vadd.f32 %v7341_v44, %v7340_v60  ;;  %v11490_v60 = vld [vmem:[#allocation33_spill] sm:$0xff]  ;;  %v11491_v44 = vld [vmem:[#allocation34_spill] sm:$0xff] }
 0x69e   : > { %7043 = vmatmul.mubr.msk.bf16.gmra.mrb[96].mxu1 %vm10173_vm6, %v11484_v14 }
 0x69f   : > { %v10933_v1 = vadd.f32 %v7342_v13, %v10772_v32  ;;  %5830 = vmatprep.mubr.bf16.mxu1 %v11485_v49 }
 0x6a1   : > { %v7343_v5 = vpop.f32.mrb[0].mxu1 }
 0x6a2   : > { %v7344_v7 = vpop.f32.mrb[1].mxu1 }
 0x6a3   : > { %v7345_v11 = vadd.f32 %v7344_v7, %v7343_v5  ;;  %v7346_v6 = vpop.f32.mrb[2].mxu1 }
 0x6a4   : > { %v7347_v28 = vpop.f32.mrb[3].mxu1 }
 0x6a5   : > { %v10937_v61 = vadd.f32 %v7345_v11, %v10776_v57  ;;  %v7348_v55 = vadd.f32 %v7347_v28, %v7346_v6  ;;  %v11492_v6 = vld [vmem:[#allocation36_spill] sm:$0xff]  ;;  %v11493_v28 = vld [vmem:[#allocation39_spill] sm:$0xff] }
 0x6a6   : > { %5831 = vmatmul.mubr.bf16.gmra.mrb[100].mxu1 %v11486_v36 }
 0x6a7   : > { %v10941_v31 = vadd.f32 %v7348_v55, %v10780_v16  ;;  %7691 = vmatprep.mubr.bf16.mxu1 %v11487_v53 }
 0x6a9   : > { %v7349_v32 = vpop.f32.mrb[104].mxu1 }
 0x6aa   : > { %v7350_v8 = vpop.f32.mrb[105].mxu1 }
 0x6ab   : > { %v7351_v58 = vadd.f32 %v7350_v8, %v7349_v32  ;;  %v7352_v25 = vpop.f32.mrb[106].mxu1 }
 0x6ac   : > { %v7353_v45 = vpop.f32.mrb[107].mxu1 }
 0x6ad   : > { %v10945_v9 = vadd.f32 %v7351_v58, %v10784_v43  ;;  %v7354_v12 = vadd.f32 %v7353_v45, %v7352_v25  ;;  %v11494_v25 = vld [vmem:[#allocation41_spill] sm:$0xff]  ;;  %v11495_v45 = vld [vmem:[#allocation43_spill] sm:$0xff] }
 0x6ae   : > { %7692 = vmatmul.mubr.bf16.vlgmr.msra.gmra.mrb[112].mxu1 %v11488_v19 }
 0x6af   : > { %v10949_v57 = vadd.f32 %v7354_v12, %v10790_v29  ;;  %7695 = vmatprep.mubr.bf16.mxu1 %v11489_v34 }
 0x6b1   : > { %v7355_v16 = vpop.f32.mrb[4].mxu1 }
 0x6b2   : > { %v7356_v20 = vpop.f32.mrb[5].mxu1 }
 0x6b3   : > { %v7357_v40 = vadd.f32 %v7356_v20, %v7355_v16  ;;  %v7358_v23 = vpop.f32.mrb[6].mxu1 }
 0x6b4   : > { %v7359_v59 = vpop.f32.mrb[7].mxu1 }
 0x6b5   : > { %v10953_v35 = vadd.f32 %v7357_v40, %v10795_v46  ;;  %v7360_v17 = vadd.f32 %v7359_v59, %v7358_v23  ;;  %v11496_v23 = vld [vmem:[#allocation45_spill] sm:$0xff]  ;;  %v11497_v59 = vld [vmem:[#allocation47_spill] sm:$0xff] }
 0x6b6   : > { %7696 = vmatmul.mubr.bf16.gmra.mrb[116].mxu1 %v11490_v60 }
 0x6b7   : > { %v10957_v43 = vadd.f32 %v7360_v17, %v10801_v27  ;;  %7699 = vmatprep.mubr.bf16.mxu1 %v11491_v44 }
 0x6b9   : > { %v7361_v29 = vpop.f32.mrb[8].mxu1 }
 0x6ba   : > { %v7362_v13 = vpop.f32.mrb[9].mxu1 }
 0x6bb   : > { %v7363_v14 = vadd.f32 %v7362_v13, %v7361_v29  ;;  %v7364_v49 = vpop.f32.mrb[10].mxu1 }
 0x6bc   : > { %v7365_v5 = vpop.f32.mrb[11].mxu1 }
 0x6bd   : > { %v10961_v7 = vadd.f32 %v7363_v14, %v10805_v33  ;;  %v7366_v11 = vadd.f32 %v7365_v5, %v7364_v49  ;;  %v11498_v49 = vld [vmem:[#allocation50_spill] sm:$0xff] }
 0x6be   : > { %7700 = vmatmul.mubr.bf16.gmra.mrb[120].mxu1 %v11492_v6 }
 0x6bf   : > { %v10965_v46 = vadd.f32 %v7366_v11, %v10811_v15  ;;  %7703 = vmatprep.mubr.bf16.mxu1 %v11493_v28 }
 0x6c1   : > { %v7367_v27 = vpop.f32.mrb[12].mxu1 }
 0x6c2   : > { %v7368_v55 = vpop.f32.mrb[13].mxu1 }
 0x6c3   : > { %v7369_v36 = vadd.f32 %v7368_v55, %v7367_v27  ;;  %v7370_v53 = vpop.f32.mrb[14].mxu1 }
 0x6c4   : > { %v7371_v32 = vpop.f32.mrb[15].mxu1 }
 0x6c5   : > { %v10969_v8 = vadd.f32 %v7369_v36, %v10815_v63  ;;  %v7372_v58 = vadd.f32 %v7371_v32, %v7370_v53  ;;  %v11499_v36 = vld [vmem:[#allocation25_spill] sm:$0xff] }
 0x6c6   : > { %7704 = vmatmul.mubr.bf16.gmra.mrb[124].mxu1 %v11494_v25 }
 0x6c7   : > { %v10973_v33 = vadd.f32 %v7372_v58, %v10821_v26  ;;  %7707 = vmatprep.mubr.bf16.mxu1 %v11495_v45 }
 0x6c9   : > { %v7373_v15 = vpop.f32.mrb[16].mxu1 }
 0x6ca   : > { %v7374_v12 = vpop.f32.mrb[17].mxu1 }
 0x6cb   : > { %v7375_v19 = vadd.f32 %v7374_v12, %v7373_v15  ;;  %v7376_v34 = vpop.f32.mrb[18].mxu1  ;;  %v11500_v15 = vld [vmem:[#allocation29_spill] sm:$0xff] }
 0x6cc   : > { %v7377_v16 = vpop.f32.mrb[19].mxu1 }
 0x6cd   : > { %v10977_v20 = vadd.f32 %v7375_v19, %v10825_v41  ;;  %v7378_v40 = vadd.f32 %v7377_v16, %v7376_v34 }
 0x6ce   : > { %7708 = vmatmul.mubr.bf16.gmra.mrb[128].mxu1 %v11496_v23 }
 0x6cf   : > { %v10981_v63 = vadd.f32 %v7378_v40, %v10831_v21  ;;  %7711 = vmatprep.mubr.bf16.mxu1 %v11497_v59 }
 0x6d1   : > { %v7379_v26 = vpop.f32.mrb[20].mxu1 }
 0x6d2   : > { %v7380_v17 = vpop.f32.mrb[21].mxu1 }
 0x6d3   : > { %v7381_v60 = vadd.f32 %v7380_v17, %v7379_v26  ;;  %v7382_v44 = vpop.f32.mrb[22].mxu1 }
 0x6d4   : > { %v7383_v29 = vpop.f32.mrb[23].mxu1 }
 0x6d5   : > { %v10985_v13 = vadd.f32 %v7381_v60, %v10835_v30  ;;  %v7384_v14 = vadd.f32 %v7383_v29, %v7382_v44 }
 0x6d6   : > { %7712 = vmatmul.mubr.bf16.gmra.mrb[132].mxu1 %v11498_v49 }
 0x6d7   : > { %v10989_v41 = vadd.f32 %v7384_v14, %v10841_v50  ;;  %7715 = vmatprep.mubr.bf16.mxu1 %v10544_v18 }
 0x6d9   : > { %v7385_v21 = vpop.f32.mrb[24].mxu1 }
 0x6da   : > { %v7386_v5 = vpop.f32.mrb[25].mxu1 }
 0x6db   : > { %v7387_v11 = vadd.f32 %v7386_v5, %v7385_v21  ;;  %v7388_v6 = vpop.f32.mrb[26].mxu1 }
 0x6dc   : > { %v7389_v28 = vpop.f32.mrb[27].mxu1 }
 0x6dd   : > { %v10993_v27 = vadd.f32 %v7387_v11, %v10845_v62  ;;  %v7390_v55 = vadd.f32 %v7389_v28, %v7388_v6 }
 0x6de   : > { %7716 = vmatmul.mubr.bf16.gmra.mrb[136].mxu1 %v10567_v56 }
 0x6df   : > { %v10997_v30 = vadd.f32 %v7390_v55, %v10851_v4  ;;  %7719 = vmatprep.mubr.bf16.mxu1 %v11499_v36 }
 0x6e1   : > { %v7391_v50 = vpop.f32.mrb[28].mxu1 }
 0x6e2   : > { %v7392_v53 = vpop.f32.mrb[29].mxu1 }
 0x6e3   : > { %v7393_v32 = vadd.f32 %v7392_v53, %v7391_v50  ;;  %v7394_v18 = vpop.f32.mrb[30].mxu1 }
 0x6e4   : > { %v7395_v58 = vpop.f32.mrb[31].mxu1 }
 0x6e5   : > { %v11001_v25 = vadd.f32 %v7393_v32, %v10855_v54  ;;  %v7396_v45 = vadd.f32 %v7395_v58, %v7394_v18 }
 0x6e6   : > { %7720 = vmatmul.mubr.bf16.gmra.mrb[140].mxu1 %v11500_v15 }
 0x6e7   : > { %v11005_v62 = vadd.f32 %v7396_v45, %v10861_v3 }
 0x6e9   : > { %v7397_v56 = vpop.f32.mrb[32].mxu1 }
 0x6ea   : > { %v7398_v12 = vpop.f32.mrb[33].mxu1 }
 0x6eb   : > { %v7399_v4 = vadd.f32 %v7398_v12, %v7397_v56  ;;  %v7400_v19 = vpop.f32.mrb[34].mxu1 }
 0x6ec   : > { %v7401_v34 = vpop.f32.mrb[35].mxu1 }
 0x6ed   : > { %v11008_v16 = vadd.f32 %v7399_v4, %v10865_v22  ;;  %v7402_v40 = vadd.f32 %v7401_v34, %v7400_v19 }
 0x6ef   : > { %v11011_v23 = vadd.f32 %v7402_v40, %v10873_v24 }
 0x6f1   : > { %v7403_v54 = vpop.f32.mrb[36].mxu1 }
 0x6f2   : > { %v7404_v59 = vpop.f32.mrb[37].mxu1 }
 0x6f3   : > { %v7405_v26 = vadd.f32 %v7404_v59, %v7403_v54  ;;  %v7406_v17 = vpop.f32.mrb[38].mxu1 }
 0x6f4   : > { %v7407_v60 = vpop.f32.mrb[39].mxu1 }
 0x6f5   : > { %v11014_v3 = vadd.f32 %v7405_v26, %v10877_v52  ;;  %v7408_v44 = vadd.f32 %v7407_v60, %v7406_v17 }
 0x6f7   : > { %v11017_v29 = vadd.f32 %v7408_v44, %v10883_v48 }
 0x6f9   : > { %v7409_v14 = vpop.f32.mrb[40].mxu1 }
 0x6fa   : > { %v7410_v49 = vpop.f32.mrb[41].mxu1 }
 0x6fb   : > { %v7411_v22 = vadd.f32 %v7410_v49, %v7409_v14  ;;  %v7412_v21 = vpop.f32.mrb[42].mxu1 }
 0x6fc   : > { %v7413_v5 = vpop.f32.mrb[43].mxu1 }
 0x6fd   : > { %v11020_v24 = vadd.f32 %v7411_v22, %v10887_v47  ;;  %v7414_v11 = vadd.f32 %v7413_v5, %v7412_v21 }
 0x6ff   : > { %v11023_v6 = vadd.f32 %v7414_v11, %v10893_v37 }
 0x701   : > { %v7431_v28 = vpop.f32.mrb[44].mxu1 }
 0x702   : > { %v7432_v55 = vpop.f32.mrb[45].mxu1 }
 0x703   : > { %v7433_v52 = vadd.f32 %v7432_v55, %v7431_v28  ;;  %v7434_v36 = vpop.f32.mrb[46].mxu1 }
 0x704   : > { %v7435_v50 = vpop.f32.mrb[47].mxu1 }
 0x705   : > { %v7436_v53 = vadd.f32 %v7435_v50, %v7434_v36  ;;  %v11026_v48 = vadd.f32 %v7433_v52, %v10897_v39 }
 0x707   : > { %v11029_v32 = vadd.f32 %v7436_v53, %v10903_v42 }
 0x709   : > { %v7437_v18 = vpop.f32.mrb[48].mxu1 }
 0x70a   : > { %v7438_v58 = vpop.f32.mrb[49].mxu1 }
 0x70b   : > { %v7439_v47 = vadd.f32 %v7438_v58, %v7437_v18  ;;  %v7440_v45 = vpop.f32.mrb[50].mxu1 }
 0x70c   : > { %v7441_v15 = vpop.f32.mrb[51].mxu1 }
 0x70d   : > { %v7442_v56 = vadd.f32 %v7441_v15, %v7440_v45  ;;  %v11032_v37 = vadd.f32 %v7439_v47, %v10907_v38 }
 0x70f   : > { %v11035_v12 = vadd.f32 %v7442_v56, %v10913_v0 }
 0x711   : > { %v7443_v4 = vpop.f32.mrb[52].mxu1 }
 0x712   : > { %v7444_v19 = vpop.f32.mrb[53].mxu1 }
 0x713   : > { %v7445_v34 = vadd.f32 %v7444_v19, %v7443_v4  ;;  %v7446_v39 = vpop.f32.mrb[54].mxu1 }
 0x714   : > { %v7447_v40 = vpop.f32.mrb[55].mxu1 }
 0x715   : > { %v7448_v54 = vadd.f32 %v7447_v40, %v7446_v39  ;;  %v11038_v42 = vadd.f32 %v7445_v34, %v10917_v2 }
 0x717   : > { %v11041_v59 = vadd.f32 %v7448_v54, %v10923_v51 }
 0x719   : > { %v7449_v26 = vpop.f32.mrb[56].mxu1 }
 0x71a   : > { %v7450_v17 = vpop.f32.mrb[57].mxu1 }
 0x71b   : > { %v7451_v60 = vadd.f32 %v7450_v17, %v7449_v26  ;;  %v7452_v38 = vpop.f32.mrb[58].mxu1 }
 0x71c   : > { %v7453_v44 = vpop.f32.mrb[59].mxu1 }
 0x71d   : > { %v7454_v14 = vadd.f32 %v7453_v44, %v7452_v38  ;;  %v11044_v0 = vadd.f32 %v7451_v60, %v10927_v10 }
 0x71f   : > { %v11047_v49 = vadd.f32 %v7454_v14, %v10933_v1 }
 0x721   : > { %v7455_v22 = vpop.f32.mrb[60].mxu1 }
 0x722   : > { %v7456_v21 = vpop.f32.mrb[61].mxu1 }
 0x723   : > { %v7457_v5 = vadd.f32 %v7456_v21, %v7455_v22  ;;  %v7458_v2 = vpop.f32.mrb[62].mxu1 }
 0x724   : > { %v7459_v11 = vpop.f32.mrb[63].mxu1 }
 0x725   : > { %v7460_v28 = vadd.f32 %v7459_v11, %v7458_v2  ;;  %v11050_v51 = vadd.f32 %v7457_v5, %v10937_v61 }
 0x727   : > { %v11053_v55 = vadd.f32 %v7460_v28, %v10941_v31 }
 0x729   : > { %v7461_v52 = vpop.f32.mrb[64].mxu1 }
 0x72a   : > { %v7462_v36 = vpop.f32.mrb[65].mxu1 }
 0x72b   : > { %v7463_v50 = vadd.f32 %v7462_v36, %v7461_v52  ;;  %v7464_v10 = vpop.f32.mrb[66].mxu1 }
 0x72c   : > { %v7465_v53 = vpop.f32.mrb[67].mxu1 }
 0x72d   : > { %v7466_v18 = vadd.f32 %v7465_v53, %v7464_v10  ;;  %v11056_v1 = vadd.f32 %v7463_v50, %v10945_v9 }
 0x72f   : > { %v11059_v58 = vadd.f32 %v7466_v18, %v10949_v57 }
 0x730   : > { %v3430_v14 = vpop.f32.mrb[124].mxu0 }
 0x731   : > { %v7467_v47 = vpop.f32.mrb[68].mxu1 }
 0x732   : > { %v7468_v45 = vpop.f32.mrb[69].mxu1 }
 0x733   : > { %v7469_v15 = vadd.f32 %v7468_v45, %v7467_v47  ;;  %v7470_v61 = vpop.f32.mrb[70].mxu1 }
 0x734   : > { %v7471_v56 = vpop.f32.mrb[71].mxu1 }
 0x735   : > { %v7472_v4 = vadd.f32 %v7471_v56, %v7470_v61  ;;  %v11062_v31 = vadd.f32 %v7469_v15, %v10953_v35 }
 0x737   : > { %v11065_v19 = vadd.f32 %v7472_v4, %v10957_v43  ;;  %v7673_v43 = vpop.f32.mrb[125].mxu0 }
 0x738   : > { %v3433_v2 = vpop.f32.mrb[126].mxu0 }
 0x739   : > { %v7473_v34 = vpop.f32.mrb[72].mxu1  ;;  %v7674_v11 = vpop.f32.mrb[127].mxu0 }
 0x73a   : > { %v7474_v39 = vpop.f32.mrb[73].mxu1 }
 0x73b   : > { %v7475_v40 = vadd.f32 %v7474_v39, %v7473_v34  ;;  %v7476_v9 = vpop.f32.mrb[74].mxu1 }
 0x73c   : > { %v7477_v54 = vpop.f32.mrb[75].mxu1 }
 0x73d   : > { %v7478_v26 = vadd.f32 %v7477_v54, %v7476_v9  ;;  %v11068_v57 = vadd.f32 %v7475_v40, %v10961_v7 }
 0x73f   : > { %v11071_v17 = vadd.f32 %v7478_v26, %v10965_v46 }
 0x741   : > { %v7479_v60 = vpop.f32.mrb[76].mxu1 }
 0x742   : > { %v7480_v38 = vpop.f32.mrb[77].mxu1 }
 0x743   : > { %v7481_v44 = vadd.f32 %v7480_v38, %v7479_v60  ;;  %v7482_v35 = vpop.f32.mrb[78].mxu1 }
 0x744   : > { %v7483_v22 = vpop.f32.mrb[79].mxu1 }
 0x745   : > { %v7484_v21 = vadd.f32 %v7483_v22, %v7482_v35  ;;  %v11074_v5 = vadd.f32 %v7481_v44, %v10969_v8 }
 0x747   : > { %v11077_v28 = vadd.f32 %v7484_v21, %v10973_v33 }
 0x749   : > { %v7485_v7 = vpop.f32.mrb[80].mxu1 }
 0x74a   : > { %v7486_v52 = vpop.f32.mrb[81].mxu1 }
 0x74b   : > { %v7487_v46 = vadd.f32 %v7486_v52, %v7485_v7  ;;  %v7488_v36 = vpop.f32.mrb[82].mxu1 }
 0x74c   : > { %v7489_v50 = vpop.f32.mrb[83].mxu1 }
 0x74d   : > { %v7490_v10 = vadd.f32 %v7489_v50, %v7488_v36  ;;  %v11080_v53 = vadd.f32 %v7487_v46, %v10977_v20 }
 0x74f   : > { %v11083_v18 = vadd.f32 %v7490_v10, %v10981_v63 }
 0x751   : > { %v7491_v47 = vpop.f32.mrb[84].mxu1 }
 0x752   : > { %v7492_v8 = vpop.f32.mrb[85].mxu1 }
 0x753   : > { %v7493_v45 = vadd.f32 %v7492_v8, %v7491_v47  ;;  %v7494_v15 = vpop.f32.mrb[86].mxu1 }
 0x754   : > { %v7495_v61 = vpop.f32.mrb[87].mxu1 }
 0x755   : > { %v7496_v56 = vadd.f32 %v7495_v61, %v7494_v15  ;;  %v11086_v33 = vadd.f32 %v7493_v45, %v10985_v13 }
 0x757   : > { %v11089_v4 = vadd.f32 %v7496_v56, %v10989_v41 }
 0x759   : > { %v7497_v34 = vpop.f32.mrb[88].mxu1 }
 0x75a   : > { %v7498_v39 = vpop.f32.mrb[89].mxu1 }
 0x75b   : > { %v7499_v40 = vadd.f32 %v7498_v39, %v7497_v34  ;;  %v7500_v20 = vpop.f32.mrb[90].mxu1 }
 0x75c   : > { %v7501_v9 = vpop.f32.mrb[91].mxu1 }
 0x75d   : > { %v7502_v54 = vadd.f32 %v7501_v9, %v7500_v20  ;;  %v11092_v63 = vadd.f32 %v7499_v40, %v10993_v27  ;;  %v11121_v40 = vld [vmem:[#allocation13] ss:$0 sm:$0xff]  ;;  %v11124_v9 = vld [vmem:[#allocation15] ss:$0 sm:$0xff] }
 0x75f   : > { %v11095_v26 = vadd.f32 %v7502_v54, %v10997_v30 }
 0x761   : > { %v7503_v60 = vpop.f32.mrb[108].mxu1 }
 0x762   : > { %v7504_v38 = vpop.f32.mrb[109].mxu1 }
 0x763   : > { %v7505_v44 = vadd.f32 %v7504_v38, %v7503_v60  ;;  %v7506_v13 = vpop.f32.mrb[110].mxu1 }
 0x764   : > { %v7507_v35 = vpop.f32.mrb[111].mxu1 }
 0x765   : > { %v7508_v14 = vadd.f32 %v7507_v35, %v7506_v13  ;;  %v11098_v41 = vadd.f32 %v7505_v44, %v11001_v25  ;;  %v6868_v44 = vld [vmem:[%s9031_s7 + $0x62] sm:$0xff] }
 0x767   : > { %v11101_v22 = vadd.f32 %v7508_v14, %v11005_v62  ;;  %v6866_v14 = vld [vmem:[%s9031_s7 + $0x42] sm:$0xff] }
 0x769   : > { %v7509_v43 = vpop.f32.mrb[92].mxu1 }
 0x76a   : > { %v7510_v21 = vpop.f32.mrb[93].mxu1 }
 0x76b   : > { %v7511_v2 = vadd.f32 %v7510_v21, %v7509_v43  ;;  %v7512_v27 = vpop.f32.mrb[94].mxu1  ;;  %v6869_v21 = vld [vmem:[%s9031_s7 + $0x6a] sm:$0xff] }
 0x76c   : > { %v7513_v11 = vpop.f32.mrb[95].mxu1 }
 0x76d   : > { %v7514_v7 = vadd.f32 %v7513_v11, %v7512_v27  ;;  %v11104_v30 = vadd.f32 %v7511_v2, %v11008_v16  ;;  %v6867_v11 = vld [vmem:[%s9031_s7 + $0x4a] sm:$0xff] }
 0x76f   : > { %v11107_v52 = vadd.f32 %v7514_v7, %v11011_v23 }
 0x771   : > { %v7515_v46 = vpop.f32.mrb[96].mxu1 }
 0x772   : > { %v7516_v36 = vpop.f32.mrb[97].mxu1 }
 0x773   : > { %v7517_v50 = vadd.f32 %v7516_v36, %v7515_v46  ;;  %v7518_v25 = vpop.f32.mrb[98].mxu1 }
 0x774   : > { %v7519_v10 = vpop.f32.mrb[99].mxu1 }
 0x775   : > { %v7520_v47 = vadd.f32 %v7519_v10, %v7518_v25  ;;  %v11110_v62 = vadd.f32 %v7517_v50, %v11014_v3 }
 0x777   : > { %v11113_v8 = vadd.f32 %v7520_v47, %v11017_v29 }
 0x779   : > { %v7521_v45 = vpop.f32.mrb[100].mxu1 }
 0x77a   : > { %v7522_v15 = vpop.f32.mrb[101].mxu1 }
 0x77b   : > { %v7523_v61 = vadd.f32 %v7522_v15, %v7521_v45  ;;  %v7524_v16 = vpop.f32.mrb[102].mxu1 }
 0x77c   : > { %v7525_v56 = vpop.f32.mrb[103].mxu1 }
 0x77d   : > { %v7526_v23 = vadd.f32 %v7525_v56, %v7524_v16  ;;  %v11116_v34 = vadd.f32 %v7523_v61, %v11020_v24 }
 0x77f   : > { %v11119_v39 = vadd.f32 %v7526_v23, %v11023_v6 }
 0x781   : > { %v7693_v3 = vpop.f32.mrb[112].mxu1 }
 0x782   : > { %v5882_v29 = vadd.f32 %v7693_v3, %v11032_v37  ;;  %v5873_v20 = vpop.f32.mrb[113].mxu1 }
 0x783   : > { %v5874_v54 = vadd.f32 %v5873_v20, %v11026_v48  ;;  %v7694_v60 = vpop.f32.mrb[114].mxu1 }
 0x784   : > { %v6041_v24 = vmul.f32 %v11121_v40, %v5882_v29  ;;  %v5885_v38 = vadd.f32 %v7694_v60, %v11035_v12  ;;  %v5876_v6 = vpop.f32.mrb[115].mxu1  ;;  %v6872_v29 = vld [vmem:[%s9031_s7 + $0xa2] sm:$0xff] }
 0x785   : > { %v6039_v13 = vmul.f32 %v11121_v40, %v5874_v54  ;;  %v5877_v35 = vadd.f32 %v5876_v6, %v11029_v32  ;;  %v6870_v60 = vld [vmem:[%s9031_s7 + $0x82] sm:$0xff]  ;;  %v6873_v6 = vld [vmem:[%s9031_s7 + $0xaa] sm:$0xff] }
 0x786   : > { %v6080_v37 = vadd.f32 %v11124_v9, %v6041_v24  ;;  %v6042_v43 = vmul.f32 %v11121_v40, %v5885_v38 }
 0x787   : > { %v6078_v48 = vadd.f32 %v11124_v9, %v6039_v13  ;;  %v6040_v2 = vmul.f32 %v11121_v40, %v5877_v35  ;;  %v6871_v35 = vld [vmem:[%s9031_s7 + $0x8a] sm:$0xff] }
 0x788   : > { %v6112_v27 = vadd.f32 %v6868_v44, %v6080_v37  ;;  %v6081_v12 = vadd.f32 %v11124_v9, %v6042_v43 }
 0x789   : > { %v6110_v7 = vadd.f32 %v6866_v14, %v6078_v48  ;;  %v6079_v46 = vadd.f32 %v11124_v9, %v6040_v2  ;;  %v7697_v36 = vpop.f32.mrb[116].mxu1 }
 0x78a   : > { %v6144_v32 = vmax.f32 %v6112_v27, 0.0  ;;  %v6113_v50 = vadd.f32 %v6869_v21, %v6081_v12  ;;  %v5898_v25 = vadd.f32 %v7697_v36, %v11044_v0  ;;  %v5889_v10 = vpop.f32.mrb[117].mxu1 }
 0x78b   : > { %v6142_v47 = vmax.f32 %v6110_v7, 0.0  ;;  %v6111_v45 = vadd.f32 %v6867_v11, %v6079_v46  ;;  %v5890_v15 = vadd.f32 %v5889_v10, %v11038_v42  ;;  %v7698_v61 = vpop.f32.mrb[118].mxu1 }
 0x78c   : > { %6176 = vst [vmem:[%s11144_s9 + $0x10] sm:$0xff] %v6144_v32  ;;  %v6145_v16 = vmax.f32 %v6113_v50, 0.0  ;;  %v6045_v56 = vmul.f32 %v11121_v40, %v5898_v25  ;;  %v5901_v0 = vadd.f32 %v7698_v61, %v11047_v49  ;;  %v5892_v23 = vpop.f32.mrb[119].mxu1  ;;  %v6876_v25 = vld [vmem:[%s9031_s7 + $0xe2] sm:$0xff] }
 0x78d   : > { %6174 = vst [vmem:[%s11144_s9] sm:$0xff] %v6142_v47  ;;  %v6143_v3 = vmax.f32 %v6111_v45, 0.0  ;;  %v6043_v42 = vmul.f32 %v11121_v40, %v5890_v15  ;;  %v5893_v20 = vadd.f32 %v5892_v23, %v11041_v59  ;;  %v6874_v45 = vld [vmem:[%s9031_s7 + $0xc2] sm:$0xff]  ;;  %v6875_v23 = vld [vmem:[%s9031_s7 + $0xca] sm:$0xff] }
 0x78e   : > { %6177 = vst [vmem:[%s11144_s9 + $0x18] sm:$0xff] %v6145_v16  ;;  %v6084_v54 = vadd.f32 %v11124_v9, %v6045_v56  ;;  %v6046_v24 = vmul.f32 %v11121_v40, %v5901_v0  ;;  %v6877_v16 = vld [vmem:[%s9031_s7 + $0xea] sm:$0xff] }
 0x78f   : > { %6175 = vst [vmem:[%s11144_s9 + $0x8] sm:$0xff] %v6143_v3  ;;  %v6082_v38 = vadd.f32 %v11124_v9, %v6043_v42  ;;  %v6044_v49 = vmul.f32 %v11121_v40, %v5893_v20 }
 0x790   : > { %v6116_v44 = vadd.f32 %v6872_v29, %v6084_v54  ;;  %v6085_v13 = vadd.f32 %v11124_v9, %v6046_v24 }
 0x791   : > { %v6114_v37 = vadd.f32 %v6870_v60, %v6082_v38  ;;  %v6083_v59 = vadd.f32 %v11124_v9, %v6044_v49  ;;  %v7701_v14 = vpop.f32.mrb[120].mxu1 }
 0x792   : > { %v6148_v43 = vmax.f32 %v6116_v44, 0.0  ;;  %v6117_v48 = vadd.f32 %v6873_v6, %v6085_v13  ;;  %v5914_v21 = vadd.f32 %v7701_v14, %v11056_v1  ;;  %v5905_v2 = vpop.f32.mrb[121].mxu1 }
 0x793   : > { %v6146_v27 = vmax.f32 %v6114_v37, 0.0  ;;  %v6115_v12 = vadd.f32 %v6871_v35, %v6083_v59  ;;  %v5906_v11 = vadd.f32 %v5905_v2, %v11050_v51  ;;  %v7702_v7 = vpop.f32.mrb[122].mxu1  ;;  %v6880_v59 = vld [vmem:[%s9031_s7 + $0x122] sm:$0xff] }
 0x794   : > { %6180 = vst [vmem:[%s11144_s9 + $0x30] sm:$0xff] %v6148_v43  ;;  %v6149_v46 = vmax.f32 %v6117_v48, 0.0  ;;  %v6049_v36 = vmul.f32 %v11121_v40, %v5914_v21  ;;  %v5917_v32 = vadd.f32 %v7702_v7, %v11059_v58  ;;  %v5908_v50 = vpop.f32.mrb[123].mxu1  ;;  %v6878_v48 = vld [vmem:[%s9031_s7 + $0x102] sm:$0xff]  ;;  %v6879_v7 = vld [vmem:[%s9031_s7 + $0x10a] sm:$0xff] }
 0x795   : > { %6178 = vst [vmem:[%s11144_s9 + $0x20] sm:$0xff] %v6146_v27  ;;  %v6147_v1 = vmax.f32 %v6115_v12, 0.0  ;;  %v6047_v10 = vmul.f32 %v11121_v40, %v5906_v11  ;;  %v5909_v47 = vadd.f32 %v5908_v50, %v11053_v55  ;;  %v6881_v27 = vld [vmem:[%s9031_s7 + $0x12a] sm:$0xff] }
 0x796   : > { %6181 = vst [vmem:[%s11144_s9 + $0x38] sm:$0xff] %v6149_v46  ;;  %v6088_v51 = vadd.f32 %v11124_v9, %v6049_v36  ;;  %v6050_v15 = vmul.f32 %v11121_v40, %v5917_v32 }
 0x797   : > { %6179 = vst [vmem:[%s11144_s9 + $0x28] sm:$0xff] %v6147_v1  ;;  %v6086_v61 = vadd.f32 %v11124_v9, %v6047_v10  ;;  %v6048_v58 = vmul.f32 %v11121_v40, %v5909_v47 }
 0x798   : > { %v6120_v56 = vadd.f32 %v6876_v25, %v6088_v51  ;;  %v6089_v0 = vadd.f32 %v11124_v9, %v6050_v15 }
 0x799   : > { %v6118_v3 = vadd.f32 %v6874_v45, %v6086_v61  ;;  %v6087_v55 = vadd.f32 %v11124_v9, %v6048_v58  ;;  %v7705_v29 = vpop.f32.mrb[124].mxu1 }
 0x79a   : > { %v6152_v42 = vmax.f32 %v6120_v56, 0.0  ;;  %v6121_v20 = vadd.f32 %v6877_v16, %v6089_v0  ;;  %v5930_v54 = vadd.f32 %v7705_v29, %v11068_v57  ;;  %v5921_v60 = vpop.f32.mrb[125].mxu1  ;;  %v6884_v56 = vld [vmem:[%s9031_s7 + $0x162] sm:$0xff] }
 0x79b   : > { %v6150_v24 = vmax.f32 %v6118_v3, 0.0  ;;  %v6119_v38 = vadd.f32 %v6875_v23, %v6087_v55  ;;  %v5922_v6 = vadd.f32 %v5921_v60, %v11062_v31  ;;  %v7706_v49 = vpop.f32.mrb[126].mxu1  ;;  %v6882_v3 = vld [vmem:[%s9031_s7 + $0x142] sm:$0xff]  ;;  %v6883_v60 = vld [vmem:[%s9031_s7 + $0x14a] sm:$0xff] }
 0x79c   : > { %6184 = vst [vmem:[%s11144_s9 + $0x50] sm:$0xff] %v6152_v42  ;;  %v6153_v44 = vmax.f32 %v6121_v20, 0.0  ;;  %v6053_v13 = vmul.f32 %v11121_v40, %v5930_v54  ;;  %v5933_v35 = vadd.f32 %v7706_v49, %v11071_v17  ;;  %v5924_v37 = vpop.f32.mrb[127].mxu1  ;;  %v6885_v42 = vld [vmem:[%s9031_s7 + $0x16a] sm:$0xff] }
 0x79d   : > { %6182 = vst [vmem:[%s11144_s9 + $0x40] sm:$0xff] %v6150_v24  ;;  %v6151_v57 = vmax.f32 %v6119_v38, 0.0  ;;  %v6051_v14 = vmul.f32 %v11121_v40, %v5922_v6  ;;  %v5925_v43 = vadd.f32 %v5924_v37, %v11065_v19 }
 0x79e   : > { %6185 = vst [vmem:[%s11144_s9 + $0x58] sm:$0xff] %v6153_v44  ;;  %v6092_v31 = vadd.f32 %v11124_v9, %v6053_v13  ;;  %v6054_v21 = vmul.f32 %v11121_v40, %v5933_v35 }
 0x79f   : > { %6183 = vst [vmem:[%s11144_s9 + $0x48] sm:$0xff] %v6151_v57  ;;  %v6090_v2 = vadd.f32 %v11124_v9, %v6051_v14  ;;  %v6052_v17 = vmul.f32 %v11121_v40, %v5925_v43 }
 0x7a0   : > { %v6124_v12 = vadd.f32 %v6880_v59, %v6092_v31  ;;  %v6093_v11 = vadd.f32 %v11124_v9, %v6054_v21  ;;  %v6888_v21 = vld [vmem:[%s9031_s7 + $0x1a2] sm:$0xff] }
 0x7a1   : > { %v6122_v46 = vadd.f32 %v6878_v48, %v6090_v2  ;;  %v6091_v19 = vadd.f32 %v11124_v9, %v6052_v17  ;;  %v7709_v36 = vpop.f32.mrb[128].mxu1  ;;  %v6886_v17 = vld [vmem:[%s9031_s7 + $0x182] sm:$0xff] }
 0x7a2   : > { %v6156_v32 = vmax.f32 %v6124_v12, 0.0  ;;  %v6125_v50 = vadd.f32 %v6881_v27, %v6093_v11  ;;  %v5946_v1 = vadd.f32 %v7709_v36, %v11080_v53  ;;  %v5937_v25 = vpop.f32.mrb[129].mxu1  ;;  %v6887_v36 = vld [vmem:[%s9031_s7 + $0x18a] sm:$0xff] }
 0x7a3   : > { %v6154_v10 = vmax.f32 %v6122_v46, 0.0  ;;  %v6123_v47 = vadd.f32 %v6879_v7, %v6091_v19  ;;  %v5938_v51 = vadd.f32 %v5937_v25, %v11074_v5  ;;  %v7710_v45 = vpop.f32.mrb[130].mxu1  ;;  %v6889_v7 = vld [vmem:[%s9031_s7 + $0x1aa] sm:$0xff] }
 0x7a4   : > { %6188 = vst [vmem:[%s11144_s9 + $0x70] sm:$0xff] %v6156_v32  ;;  %v6157_v15 = vmax.f32 %v6125_v50, 0.0  ;;  %v6057_v61 = vmul.f32 %v11121_v40, %v5946_v1  ;;  %v5949_v16 = vadd.f32 %v7710_v45, %v11083_v18  ;;  %v5940_v58 = vpop.f32.mrb[131].mxu1 }
 0x7a5   : > { %6186 = vst [vmem:[%s11144_s9 + $0x60] sm:$0xff] %v6154_v10  ;;  %v6155_v53 = vmax.f32 %v6123_v47, 0.0  ;;  %v6055_v0 = vmul.f32 %v11121_v40, %v5938_v51  ;;  %v5941_v23 = vadd.f32 %v5940_v58, %v11077_v28 }
 0x7a6   : > { %6189 = vst [vmem:[%s11144_s9 + $0x78] sm:$0xff] %v6157_v15  ;;  %v6096_v5 = vadd.f32 %v11124_v9, %v6057_v61  ;;  %v6058_v55 = vmul.f32 %v11121_v40, %v5949_v16 }
 0x7a7   : > { %6187 = vst [vmem:[%s11144_s9 + $0x68] sm:$0xff] %v6155_v53  ;;  %v6094_v29 = vadd.f32 %v11124_v9, %v6055_v0  ;;  %v6056_v18 = vmul.f32 %v11121_v40, %v5941_v23  ;;  %v6892_v0 = vld [vmem:[%s9031_s7 + $0x1e2] sm:$0xff] }
 0x7a8   : > { %v6128_v20 = vadd.f32 %v6884_v56, %v6096_v5  ;;  %v6097_v54 = vadd.f32 %v11124_v9, %v6058_v55 }
 0x7a9   : > { %v6126_v24 = vadd.f32 %v6882_v3, %v6094_v29  ;;  %v6095_v28 = vadd.f32 %v11124_v9, %v6056_v18  ;;  %v7713_v38 = vpop.f32.mrb[132].mxu1  ;;  %v6890_v3 = vld [vmem:[%s9031_s7 + $0x1c2] sm:$0xff] }
 0x7aa   : > { %v6160_v6 = vmax.f32 %v6128_v20, 0.0  ;;  %v6129_v49 = vadd.f32 %v6885_v42, %v6097_v54  ;;  %v5962_v44 = vadd.f32 %v7713_v38, %v11092_v63  ;;  %v5953_v13 = vpop.f32.mrb[133].mxu1  ;;  %v6893_v42 = vld [vmem:[%s9031_s7 + $0x1ea] sm:$0xff] }
 0x7ab   : > { %v6158_v35 = vmax.f32 %v6126_v24, 0.0  ;;  %v6127_v37 = vadd.f32 %v6883_v60, %v6095_v28  ;;  %v5954_v57 = vadd.f32 %v5953_v13, %v11086_v33  ;;  %v7714_v59 = vpop.f32.mrb[134].mxu1  ;;  %v6891_v54 = vld [vmem:[%s9031_s7 + $0x1ca] sm:$0xff] }
 0x7ac   : > { %6192 = vst [vmem:[%s11144_s9 + $0x90] sm:$0xff] %v6160_v6  ;;  %v6161_v14 = vmax.f32 %v6129_v49, 0.0  ;;  %v6061_v43 = vmul.f32 %v11121_v40, %v5962_v44  ;;  %v5965_v31 = vadd.f32 %v7714_v59, %v11095_v26  ;;  %v5956_v48 = vpop.f32.mrb[135].mxu1 }
 0x7ad   : > { %6190 = vst [vmem:[%s11144_s9 + $0x80] sm:$0xff] %v6158_v35  ;;  %v6159_v63 = vmax.f32 %v6127_v37, 0.0  ;;  %v6059_v2 = vmul.f32 %v11121_v40, %v5954_v57  ;;  %v5957_v27 = vadd.f32 %v5956_v48, %v11089_v4 }
 0x7ae   : > { %6193 = vst [vmem:[%s11144_s9 + $0x98] sm:$0xff] %v6161_v14  ;;  %v6100_v33 = vadd.f32 %v11124_v9, %v6061_v43  ;;  %v6062_v12 = vmul.f32 %v11121_v40, %v5965_v31  ;;  %v6896_v31 = vld [vmem:[%s9031_s7 + $0x222] sm:$0xff] }
 0x7af   : > { %6191 = vst [vmem:[%s11144_s9 + $0x88] sm:$0xff] %v6159_v63  ;;  %v6098_v11 = vadd.f32 %v11124_v9, %v6059_v2  ;;  %v6060_v26 = vmul.f32 %v11121_v40, %v5957_v27  ;;  %v6897_v27 = vld [vmem:[%s9031_s7 + $0x22a] sm:$0xff] }
 0x7b0   : > { %v6132_v46 = vadd.f32 %v6888_v21, %v6100_v33  ;;  %v6101_v19 = vadd.f32 %v11124_v9, %v6062_v12  ;;  %v6894_v21 = vld [vmem:[%s9031_s7 + $0x202] sm:$0xff] }
 0x7b1   : > { %v6130_v32 = vadd.f32 %v6886_v17, %v6098_v11  ;;  %v6099_v4 = vadd.f32 %v11124_v9, %v6060_v26  ;;  %v7717_v50 = vpop.f32.mrb[136].mxu1  ;;  %v6895_v11 = vld [vmem:[%s9031_s7 + $0x20a] sm:$0xff] }
 0x7b2   : > { %v6164_v1 = vmax.f32 %v6132_v46, 0.0  ;;  %v6133_v25 = vadd.f32 %v6889_v7, %v6101_v19  ;;  %v5978_v10 = vadd.f32 %v7717_v50, %v11104_v30  ;;  %v5969_v47 = vpop.f32.mrb[137].mxu1 }
 0x7b3   : > { %v6162_v51 = vmax.f32 %v6130_v32, 0.0  ;;  %v6131_v45 = vadd.f32 %v6887_v36, %v6099_v4  ;;  %v5970_v15 = vadd.f32 %v5969_v47, %v11098_v41  ;;  %v7718_v61 = vpop.f32.mrb[138].mxu1 }
 0x7b4   : > { %6196 = vst [vmem:[%s11144_s9 + $0xb0] sm:$0xff] %v6164_v1  ;;  %v6165_v16 = vmax.f32 %v6133_v25, 0.0  ;;  %v6065_v58 = vmul.f32 %v11121_v40, %v5978_v10  ;;  %v5981_v53 = vadd.f32 %v7718_v61, %v11107_v52  ;;  %v5972_v56 = vpop.f32.mrb[139].mxu1 }
 0x7b5   : > { %6194 = vst [vmem:[%s11144_s9 + $0xa0] sm:$0xff] %v6162_v51  ;;  %v6163_v30 = vmax.f32 %v6131_v45, 0.0  ;;  %v6063_v23 = vmul.f32 %v11121_v40, %v5970_v15  ;;  %v5973_v5 = vadd.f32 %v5972_v56, %v11101_v22 }
 0x7b6   : > { %6197 = vst [vmem:[%s11144_s9 + $0xb8] sm:$0xff] %v6165_v16  ;;  %v6104_v41 = vadd.f32 %v11124_v9, %v6065_v58  ;;  %v6066_v55 = vmul.f32 %v11121_v40, %v5981_v53 }
 0x7b7   : > { %6195 = vst [vmem:[%s11144_s9 + $0xa8] sm:$0xff] %v6163_v30  ;;  %v6102_v29 = vadd.f32 %v11124_v9, %v6063_v23  ;;  %v6064_v52 = vmul.f32 %v11121_v40, %v5973_v5 }
 0x7b8   : > { %v6136_v18 = vadd.f32 %v6892_v0, %v6104_v41  ;;  %v6105_v20 = vadd.f32 %v11124_v9, %v6066_v55 }
 0x7b9   : > { %v6134_v60 = vadd.f32 %v6890_v3, %v6102_v29  ;;  %v6103_v22 = vadd.f32 %v11124_v9, %v6064_v52  ;;  %v7721_v24 = vpop.f32.mrb[140].mxu1 }
 0x7ba   : > { %v6168_v28 = vmax.f32 %v6136_v18, 0.0  ;;  %v6137_v38 = vadd.f32 %v6893_v42, %v6105_v20  ;;  %v5994_v6 = vadd.f32 %v7721_v24, %v11116_v34  ;;  %v5985_v49 = vpop.f32.mrb[141].mxu1 }
 0x7bb   : > { %v6166_v44 = vmax.f32 %v6134_v60, 0.0  ;;  %v6135_v13 = vadd.f32 %v6891_v54, %v6103_v22  ;;  %v5986_v35 = vadd.f32 %v5985_v49, %v11110_v62  ;;  %v7722_v37 = vpop.f32.mrb[142].mxu1 }
 0x7bc   : > { %6200 = vst [vmem:[%s11144_s9 + $0xd0] sm:$0xff] %v6168_v28  ;;  %v6169_v57 = vmax.f32 %v6137_v38, 0.0  ;;  %v6069_v59 = vmul.f32 %v11121_v40, %v5994_v6  ;;  %v5997_v14 = vadd.f32 %v7722_v37, %v11119_v39  ;;  %v5988_v43 = vpop.f32.mrb[143].mxu1 }
 0x7bd   : > { %6198 = vst [vmem:[%s11144_s9 + $0xc0] sm:$0xff] %v6166_v44  ;;  %v6167_v34 = vmax.f32 %v6135_v13, 0.0  ;;  %v6067_v48 = vmul.f32 %v11121_v40, %v5986_v35  ;;  %v5989_v62 = vadd.f32 %v5988_v43, %v11113_v8 }
 0x7be   : > { %6201 = vst [vmem:[%s11144_s9 + $0xd8] sm:$0xff] %v6169_v57  ;;  %v6108_v63 = vadd.f32 %v11124_v9, %v6069_v59  ;;  %v6070_v2 = vmul.f32 %v11121_v40, %v5997_v14 }
 0x7bf   : > { %6199 = vst [vmem:[%s11144_s9 + $0xc8] sm:$0xff] %v6167_v34  ;;  %v6106_v39 = vadd.f32 %v11124_v9, %v6067_v48  ;;  %v6068_v33 = vmul.f32 %v11121_v40, %v5989_v62 }
 0x7c0   : > { %v6140_v17 = vadd.f32 %v6896_v31, %v6108_v63  ;;  %v6109_v12 = vadd.f32 %v11124_v9, %v6070_v2 }
 0x7c1   : > { %v6138_v8 = vadd.f32 %v6894_v21, %v6106_v39  ;;  %v6107_v7 = vadd.f32 %v11124_v9, %v6068_v33 }
 0x7c2   : > { %v6172_v26 = vmax.f32 %v6140_v17, 0.0  ;;  %v6141_v46 = vadd.f32 %v6897_v27, %v6109_v12 }
 0x7c3   : > { %v6170_v19 = vmax.f32 %v6138_v8, 0.0  ;;  %v6139_v36 = vadd.f32 %v6895_v11, %v6107_v7 }
 0x7c4   : > { %6204 = vst [vmem:[%s11144_s9 + $0xf0] sm:$0xff] %v6172_v26  ;;  %v6173_v40 = vmax.f32 %v6141_v46, 0.0 }
 0x7c5   : > { %6202 = vst [vmem:[%s11144_s9 + $0xe0] sm:$0xff] %v6170_v19  ;;  %v6171_v9 = vmax.f32 %v6139_v36, 0.0 }
 0x7c6   : > { %6205 = vst [vmem:[%s11144_s9 + $0xf8] sm:$0xff] %v6173_v40 }
 0x7c7   : > { %6203 = vst [vmem:[%s11144_s9 + $0xe8] sm:$0xff] %v6171_v9 }
 0x7c8   : > { %8613 = shalt.err (!%p8610_p8)
}
 0x7c9   : > { %s8614_s16 = scalar_lea.hbm %s11290_s17, 4096  ;;  %s8618_s8 = scalar_lea.hbm %s11501_s10, 8192 }
 0x7ca   : > { %p8615_p3 = scmp.ne.s32.totalorder %s11290_s17, %s8614_s16  ;;  %p8619_p13 = scmp.lt.u32.totalorder %s11290_s17, %s11501_s10 }
 0x7cb   : > { %p8620_p1 = scmp.lt.u32.totalorder %s8618_s8, %s8614_s16  ;;  %p8622_p2 = scmp.lt.u32.totalorder %s8614_s16, %s11290_s17 }
 0x7cc   : > { %p8616_p11 = pnand %p8615_p3, %p11502_p9 }
 0x7cd   : > { %p8621_p4 = por %p8620_p1, %p8619_p13 }
 0x7ce   : > { %p8617_p6 = pneg %p8616_p11 }
 0x7cf   : > { %p8623_p10 = por %p8622_p2, %p8621_p4 }
 0x7d1   : > { %p8624_p12 = pnand %p8623_p10, %p8617_p6 }
 0x7d3   : > { %8627 = shalt.err (!%p8624_p12)
}
 0x7d4   : > { %s8713_s22 = smov 128   ;;  %s8714_s15 = smov 8  }
 0x7d5   : > { %8132 = dma.vmem_to_hbm [thread:$0]  (%p11502_p9), %s11292_s30, 4096, %s11290_s17, %s6207_s27, %s8713_s22, %s8713_s22, %s8714_s15  }
 0x7d6 PF: > { %s6238_s12 = sand.u32 1, %s8674_s24   ;;  %p11503_p0 = scmp.ne.s32.totalorder %s11409_s14, 0 }
 0x7d7   : > { %p11504_p7 = scmp.ge.s32.totalorder %s8694_s29, 2  ;;  %s6239_s1 = scalar_lea.sflag [#allocation6], %s6238_s12 }
 0x7d9   : > { %p8158_p5 = pnand %p11504_p7, %p11503_p0 }
 0x7db   : > { %8669 = dma.done.wait (!%p8158_p5), %s6239_s1, 4096  }
 0x7dc   : > { %8671 = vsyncadd (!%p8158_p5), %s6239_s1, 4294963200  ;;  %s26_s29 = sadd.s32 1, %s8694_s29   ;;  %s11505_s24 = smov %s8678_s25 }
 0x7dd   : > { %p23_p8 = scmp.ge.s32.totalorder %s26_s29, 4   ;;  %s11506_s25 = smov %s8682_s26 }
 0x7de   : > { %s11507_s26 = smov %s8974_s18  ;;  %s11508_s27 = smov %s8690_s28 }
 0x7df   : > { %s11509_s28 = smov %s11511_s19  ;;  %25 = sbr.rel (!%p23_p8) target bundleno = 13 (0xd), region = 120 }
 0x7e6   :  { %6244 = vsyncpa [#allocation5], 1 }
 0x7e7   :  { %6246 = vsyncpa [#allocation5 + $0x1], 1 }
 0x7e8   :  { %6247 = vsyncpa [#allocation8], 1 }
 0x7e9   :  { %6248 = vsyncpa [#allocation11], 1 }
 0x7ea   :  { %6249 = vsyncpa [#allocation14], 1 }
 0x7eb   :  { %6250 = vsyncpa [#allocation6], 1 }
 0x7ec   :  { %6252 = vsyncpa [#allocation6 + $0x1], 1 }

// kernel: basic_block_forward.1
= control target key start
LH: loop header
LB: loop body
LE: loop exit
PB: predicated region body
PF: predicated region fallthrough
CT: control target
= control target key end

     0   :  { %s11344_s0 = inlined_call_operand.hbm [shape: f32[2,20,26,128], index: 0, kind: input, shape index: {}]   ;;  %s11345_s1 = inlined_call_operand.hbm [shape: bf16[1152,128], index: 1, kind: input, shape index: {}]   ;;  %s11346_s2 = inlined_call_operand.hbm [shape: f32[1,128], index: 2, kind: input, shape index: {}]   ;;  %s11347_s3 = inlined_call_operand.hbm [shape: f32[1,128], index: 3, kind: input, shape index: {}]   ;;  %s11348_s4 = inlined_call_operand.hbm [shape: bf16[1152,128], index: 4, kind: input, shape index: {}]   ;;  %s11349_s5 = inlined_call_operand.hbm [shape: f32[1,128], index: 5, kind: input, shape index: {}]   ;;  %s11350_s6 = inlined_call_operand.hbm [shape: f32[1,128], index: 6, kind: input, shape index: {}]   ;;  %s11351_s7 = inlined_call_operand.hbm [shape: f32[2,16,16,128], index: 7, kind: output, shape index: {}]  }
   0x1   :  { %11394 = sst [smem:[#allocation56_spill]] %s11345_s1 }
   0x2   :  { %11395 = sst [smem:[#allocation57_spill]] %s11346_s2 }
   0x3   :  { %11396 = sst [smem:[#allocation58_spill]] %s11351_s7 }
   0x4   :  { %12 = vsyncpa [#allocation5], 0 }
   0x5   :  { %14 = vsyncpa [#allocation5 + $0x1], 0 }
   0x6   :  { %15 = vsyncpa [#allocation8], 0 }
   0x7   :  { %16 = vsyncpa [#allocation11], 0 }
   0x8   :  { %17 = vsyncpa [#allocation14], 0 }
   0x9   :  { %18 = vsyncpa [#allocation6], 0 }
   0xa   :  { %20 = vsyncpa [#allocation6 + $0x1], 0  ;;  %s8755_s24 = smov 0   ;;  %s8757_s25 = smov 0  }
   0xb   :  { %s8759_s26 = smov 0   ;;  %s8761_s27 = smov 0  }
   0xc   :  { %s8763_s28 = smov 0   ;;  %s8765_s29 = smov 0  }
   0xd LB: > { %s11352_s30 = sadd.s32 4294967295, %s8694_s29   ;;  %p6376_p0 = scmp.ge.s32.totalorder %s8694_s29, 1  ;;  %s8694_s29 = sphi %s8765_s29, %s26_s29   ;;  %s8690_s28 = sphi %s8763_s28, %s11509_s28   ;;  %s8686_s27 = sphi %s8761_s27, %s11508_s27   ;;  %s8682_s26 = sphi %s8759_s26, %s11507_s26   ;;  %s8678_s25 = sphi %s8757_s25, %s11506_s25   ;;  %s8674_s24 = sphi %s8755_s24, %s11505_s24  }
   0xe   : > { %p8789_p1 = scmp.eq.s32.totalorder %s11352_s30, 0  ;;  %p223_p2 = scmp.lt.s32.totalorder %s8694_s29, 3 }
   0xf   : > { %s8696_s10 = smov [#allocation7]   ;;  %s8697_s13 = smov [#allocation10]  }
  0x10   : > { %s11397_s8 = scalar_select %p8789_p1, 1, 0 }
  0x11   : > { %p8794_p3 = pnand %p6376_p0, %p223_p2  ;;  %s235_s11 = sshll.u32 %s8696_s10, 4  ;;  %s8798_s11 = int_to_ptr.vmem [resolvable:$true] %s235_s11 }
  0x12   : > { %s260_s14 = sshll.u32 %s8697_s13, 4  ;;  %s8698_s15 = smov [#allocation13]   ;;  %s8809_s14 = int_to_ptr.vmem [resolvable:$true] %s260_s14 }
  0x13   : > { %s11398_s9 = scalar_select %p8794_p3, 1, 0 }
  0x14   : > { %p8134_p4 = pneg %p8794_p3  ;;  %s8811_s16 = sshll.u32 %s8698_s15, 4  ;;  %s285_s16 = int_to_ptr.vmem [resolvable:$true] %s8811_s16 }
  0x15   : > { %s11400_s1 = sld [smem:[#allocation56_spill]] }
  0x16   : > { %p8805_p6 = pnand %p8134_p4, %p8789_p1 }
  0x18   : > { %p8821_p8 = pneg %p8805_p6 }
  0x1b   : > { %s8402_s19 = scalar_lea.hbm %s11400_s1, 9216 }
  0x1c   : > { %p8403_p7 = scmp.ne.s32.totalorder %s11400_s1, %s8402_s19  ;;  %p8409_p11 = scmp.lt.u32.totalorder %s8402_s19, %s11400_s1 }
  0x1e   : > { %p8405_p9 = pnand %p8821_p8, %p8403_p7 }
  0x20   : > { %p8406_p10 = pneg %p8405_p9 }
  0x22   : > { %p8411_p12 = pnand %p8409_p11, %p8406_p10 }
  0x24   : > { %8414 = shalt.err (!%p8411_p12)
}
  0x25   : > { %s8415_s13 = scalar_lea.vmem %s8798_s11, 9216  ;;  %p8423_p4 = scmp.lt.s32.totalorder %s8798_s11, %s8798_s11 }
  0x26   : > { %p8416_p13 = scmp.ne.s32.totalorder %s8798_s11, %s8415_s13  ;;  %p8424_p5 = scmp.lt.s32.totalorder %s8415_s13, %s8415_s13 }
  0x28   : > { %p8418_p0 = pnand %p8416_p13, %p8821_p8  ;;  %p8425_p7 = por %p8424_p5, %p8423_p4 }
  0x2a   : > { %p8419_p2 = pneg %p8418_p0 }
  0x2c   : > { %p8426_p9 = pnand %p8425_p7, %p8419_p2 }
  0x2e   : > { %8429 = shalt.err (!%p8426_p9)
}
  0x2f   : > { %s11357_s15 = smov 64   ;;  %s8700_s17 = smov 4  }
  0x30   : > { %8137 = dma.hbm_to_vmem [thread:$0]  (!%p8805_p6), %s11400_s1, 9216, %s8798_s11, [#allocation8], %s11357_s15, %s11357_s15, %s8700_s17  }
  0x31   : > { %s8430_s23 = scalar_lea.hbm %s11347_s3, 16 }
  0x32   : > { %p8431_p5 = scmp.ne.s32.totalorder %s11347_s3, %s8430_s23  ;;  %p8437_p12 = scmp.lt.u32.totalorder %s8430_s23, %s11347_s3 }
  0x34   : > { %p8433_p10 = pnand %p8431_p5, %p8821_p8 }
  0x36   : > { %p8434_p11 = pneg %p8433_p10 }
  0x38   : > { %p8439_p13 = pnand %p8437_p12, %p8434_p11 }
  0x3a   : > { %8442 = shalt.err (!%p8439_p13)
}
  0x3b   : > { %s8443_s11 = scalar_lea.vmem %s8809_s14, 16  ;;  %s8450_s18 = scalar_lea.vmem %s8809_s14, 32 }
  0x3c   : > { %p8444_p0 = scmp.ne.s32.totalorder %s8809_s14, %s8443_s11  ;;  %p8451_p7 = scmp.lt.s32.totalorder %s8809_s14, %s8809_s14 }
  0x3d   : > { %p8452_p9 = scmp.lt.s32.totalorder %s8450_s18, %s8443_s11 }
  0x3e   : > { %p8446_p2 = pnand %p8444_p0, %p8821_p8 }
  0x3f   : > { %p8453_p5 = por %p8452_p9, %p8451_p7 }
  0x40   : > { %p8447_p4 = pneg %p8446_p2 }
  0x42   : > { %p8454_p10 = pnand %p8453_p5, %p8447_p4 }
  0x44   : > { %8457 = shalt.err (!%p8454_p10)
}
  0x45   : > { %8143 = dma.hbm_to_vmem [thread:$0]  (!%p8805_p6), %s11347_s3, 16, %s8809_s14, [#allocation11]  }
  0x46   : > { %s8458_s21 = scalar_lea.hbm %s11349_s5, 16 }
  0x47   : > { %p8459_p11 = scmp.ne.s32.totalorder %s11349_s5, %s8458_s21  ;;  %p8465_p0 = scmp.lt.u32.totalorder %s8458_s21, %s11349_s5 }
  0x49   : > { %p8461_p12 = pnand %p8459_p11, %p8821_p8 }
  0x4b   : > { %p8462_p13 = pneg %p8461_p12 }
  0x4d   : > { %p8467_p2 = pnand %p8465_p0, %p8462_p13 }
  0x4f   : > { %8470 = shalt.err (!%p8467_p2)
}
  0x50   : > { %s8471_s18 = scalar_lea.vmem %s285_s16, 16  ;;  %s8478_s14 = scalar_lea.vmem %s285_s16, 32 }
  0x51   : > { %p8472_p4 = scmp.ne.s32.totalorder %s285_s16, %s8471_s18  ;;  %p8479_p5 = scmp.lt.s32.totalorder %s285_s16, %s285_s16 }
  0x52   : > { %p8480_p10 = scmp.lt.s32.totalorder %s8478_s14, %s8471_s18 }
  0x53   : > { %p8474_p7 = pnand %p8472_p4, %p8821_p8 }
  0x54   : > { %p8481_p3 = por %p8480_p10, %p8479_p5 }
  0x55   : > { %p8475_p9 = pneg %p8474_p7 }
  0x57   : > { %p8482_p1 = pnand %p8481_p3, %p8475_p9 }
  0x59   : > { %8485 = shalt.err (!%p8482_p1)
}
  0x5a   : > { %8149 = dma.hbm_to_vmem [thread:$0]  (!%p8805_p6), %s11349_s5, 16, %s285_s16, [#allocation14]  }
  0x5b   : > { %s8701_s19 = smov [#allocation9]   ;;  %s8702_s21 = smov [#allocation12]  }
  0x5c   : > { %s249_s20 = sshll.u32 %s8701_s19, 4  ;;  %s270_s23 = sshll.u32 %s8702_s21, 4  ;;  %s250_s20 = int_to_ptr.vmem [resolvable:$true] %s249_s20  ;;  %s271_s23 = int_to_ptr.vmem [resolvable:$true] %s270_s23 }
  0x5d   : > { %s11402_s2 = sld [smem:[#allocation57_spill]] }
  0x63   : > { %s8486_s11 = scalar_lea.hbm %s11402_s2, 16 }
  0x64   : > { %p8487_p1 = scmp.ne.s32.totalorder %s11402_s2, %s8486_s11  ;;  %p8493_p12 = scmp.lt.u32.totalorder %s8486_s11, %s11402_s2 }
  0x66   : > { %p8489_p3 = pnand %p8487_p1, %p8821_p8 }
  0x68   : > { %p8490_p11 = pneg %p8489_p3 }
  0x6a   : > { %p8495_p13 = pnand %p8493_p12, %p8490_p11 }
  0x6c   : > { %8498 = shalt.err (!%p8495_p13)
}
  0x6d   : > { %s8499_s16 = scalar_lea.vmem %s250_s20, 16  ;;  %s8506_s30 = scalar_lea.vmem %s250_s20, 32 }
  0x6e   : > { %p8500_p0 = scmp.ne.s32.totalorder %s250_s20, %s8499_s16  ;;  %p8507_p7 = scmp.lt.s32.totalorder %s250_s20, %s250_s20 }
  0x6f   : > { %p8508_p9 = scmp.lt.s32.totalorder %s8506_s30, %s8499_s16 }
  0x70   : > { %p8502_p2 = pnand %p8500_p0, %p8821_p8 }
  0x71   : > { %p8509_p5 = por %p8508_p9, %p8507_p7 }
  0x72   : > { %p8503_p4 = pneg %p8502_p2 }
  0x74   : > { %p8510_p10 = pnand %p8509_p5, %p8503_p4 }
  0x76   : > { %8513 = shalt.err (!%p8510_p10)
}
  0x77   : > { %8140 = dma.hbm_to_vmem [thread:$0]  (!%p8805_p6), %s11402_s2, 16, %s250_s20, [#allocation8]  }
  0x78   : > { %s8514_s13 = scalar_lea.hbm %s11348_s4, 9216 }
  0x79   : > { %p8515_p1 = scmp.ne.s32.totalorder %s11348_s4, %s8514_s13  ;;  %p8521_p12 = scmp.lt.u32.totalorder %s8514_s13, %s11348_s4 }
  0x7b   : > { %p8517_p3 = pnand %p8515_p1, %p8821_p8 }
  0x7d   : > { %p8518_p11 = pneg %p8517_p3 }
  0x7f   : > { %p8523_p13 = pnand %p8521_p12, %p8518_p11 }
  0x81   : > { %8526 = shalt.err (!%p8523_p13)
}
  0x82   : > { %s8527_s16 = scalar_lea.vmem %s271_s23, 9216  ;;  %p8535_p7 = scmp.lt.s32.totalorder %s271_s23, %s271_s23 }
  0x83   : > { %p8528_p0 = scmp.ne.s32.totalorder %s271_s23, %s8527_s16  ;;  %p8536_p9 = scmp.lt.s32.totalorder %s8527_s16, %s8527_s16 }
  0x85   : > { %p8530_p2 = pnand %p8528_p0, %p8821_p8  ;;  %p8537_p5 = por %p8536_p9, %p8535_p7 }
  0x87   : > { %p8531_p4 = pneg %p8530_p2 }
  0x89   : > { %p8538_p10 = pnand %p8537_p5, %p8531_p4 }
  0x8b   : > { %8541 = shalt.err (!%p8538_p10)
}
  0x8c   : > { %s11403_s20 = smov 64   ;;  %s8703_s21 = smov [#allocation15]  }
  0x8d   : > { %8146 = dma.hbm_to_vmem [thread:$0]  (!%p8805_p6), %s11348_s4, 9216, %s271_s23, [#allocation11], %s11403_s20, %s11403_s20, %s8700_s17  }
  0x8e   : > { %s295_s15 = sshll.u32 %s8703_s21, 4  ;;  %s8542_s11 = scalar_lea.hbm %s11350_s6, 16  ;;  %s296_s15 = int_to_ptr.vmem [resolvable:$true] %s295_s15 }
  0x8f   : > { %p8543_p1 = scmp.ne.s32.totalorder %s11350_s6, %s8542_s11  ;;  %p8549_p12 = scmp.lt.u32.totalorder %s8542_s11, %s11350_s6 }
  0x91   : > { %p8545_p3 = pnand %p8543_p1, %p8821_p8 }
  0x93   : > { %p8546_p11 = pneg %p8545_p3 }
  0x95   : > { %p8551_p13 = pnand %p8549_p12, %p8546_p11 }
  0x97   : > { %8554 = shalt.err (!%p8551_p13)
}
  0x98   : > { %s8555_s17 = scalar_lea.vmem %s296_s15, 16  ;;  %s8562_s23 = scalar_lea.vmem %s296_s15, 32 }
  0x99   : > { %p8556_p0 = scmp.ne.s32.totalorder %s296_s15, %s8555_s17  ;;  %p8563_p7 = scmp.lt.s32.totalorder %s296_s15, %s296_s15 }
  0x9a   : > { %p8564_p9 = scmp.lt.s32.totalorder %s8562_s23, %s8555_s17 }
  0x9b   : > { %p8558_p2 = pnand %p8556_p0, %p8821_p8 }
  0x9c   : > { %p8565_p5 = por %p8564_p9, %p8563_p7 }
  0x9d   : > { %p8559_p4 = pneg %p8558_p2 }
  0x9f   : > { %p8566_p10 = pnand %p8565_p5, %p8559_p4 }
  0xa1   : > { %8569 = shalt.err (!%p8566_p10)
}
  0xa2   : > { %8152 = dma.hbm_to_vmem [thread:$0]  (!%p8805_p6), %s11350_s6, 16, %s296_s15, [#allocation14]  }
  0xa3   : > { %s6375_s22 = sadd.s32 4294967294, %s8694_s29   ;;  %s38_s19 = sadd.s32 1, %s8690_s28 }
  0xa4   : > { %p40_p8 = scmp.ge.s32.totalorder %s38_s19, 2  ;;  %s45_s12 = sadd.s32 1, %s8682_s26 }
  0xa5   : > { %p52_p1 = scmp.ne.s32.totalorder %s8682_s26, %s8678_s25  ;;  %p53_p3 = scmp.eq.s32.totalorder %s8694_s29, 0 }
  0xa6   : > { %s11511_s19 = smov (%p40_p8, %s38_s19), 0  ;;  %p58_p12 = scmp.ne.s32.totalorder %s8678_s25, %s8674_s24 }
  0xa7   : > { %p8953_p11 = por %p53_p3, %p52_p1  ;;  %s42_s15 = ssub.s32 %s8690_s28, %s11511_s19 }
  0xa8   : > { %s11405_s10 = sadd.s32 4294967295, %s8694_s29   ;;  %p43_p13 = scmp.eq.s32.totalorder %s42_s15, 0 }
  0xa9   : > { %p210_p6 = scmp.eq.s32.totalorder %s11405_s10, 1  ;;  %p11406_p0 = scmp.ne.s32.totalorder %s11397_s8, 0 }
  0xaa   : > { %p216_p7 = scmp.eq.s32.totalorder %s6375_s22, 1  ;;  %p8167_p5 = scmp.lt.s32.totalorder %s8694_s29, 2 }
  0xab   : > { %p8965_p2 = por %p11406_p0, %p58_p12  ;;  %p8969_p4 = por %p210_p6, %p52_p1 }
  0xac   : > { %s8974_s18 = scalar_select %p43_p13, %s8682_s26, %s45_s12  }
  0xad   : > { %s11408_s11 = scalar_select %p8969_p4, 1, 0 }
  0xae   : > { %p8976_p9 = por %p216_p7, %p58_p12  ;;  %s306_s7 = sand.u32 1, %s8682_s26  }
  0xaf   : > { %s8104_s16 = smul.u32 10240, %s8690_s28  ;;  %p8990_p10 = pnand %p8167_p5, %p8953_p11 }
  0xb0   : > { %s11409_s14 = scalar_select %p8976_p9, 1, 0 }
  0xb1   : > { %s8103_s17 = smul.u32 640, %s306_s7  ;;  %s8986_s30 = scalar_lea.hbm %s11344_s0, %s8104_s16 }
  0xb2   : > { %s8996_s10 = scalar_lea.sflag [#allocation5], %s306_s7  ;;  %s8570_s23 = scalar_lea.hbm %s8986_s30, 10240 }
  0xb3   : > { %s310_s12 = scalar_lea.vmem [#allocation4], %s8103_s17  ;;  %p8571_p8 = scmp.ne.s32.totalorder %s8986_s30, %s8570_s23 }
  0xb4   : > { %s317_s15 = sshll.u32 %s310_s12, 4  ;;  %p8572_p1 = pneg %p8990_p10  ;;  %s8994_s15 = int_to_ptr.vmem [resolvable:$true] %s317_s15 }
  0xb5   : > { %s8575_s20 = scalar_lea.hbm %s11344_s0, 20480  ;;  %p8576_p11 = scmp.lt.u32.totalorder %s8986_s30, %s11344_s0 }
  0xb6   : > { %p8573_p3 = pnand %p8572_p1, %p8571_p8  ;;  %p8577_p6 = scmp.lt.u32.totalorder %s8575_s20, %s8570_s23 }
  0xb7   : > { %p8579_p0 = scmp.lt.u32.totalorder %s8570_s23, %s8986_s30 }
  0xb8   : > { %p8574_p12 = pneg %p8573_p3  ;;  %p8578_p13 = por %p8577_p6, %p8576_p11 }
  0xba   : > { %p8580_p7 = por %p8579_p0, %p8578_p13 }
  0xbc   : > { %p8581_p5 = pnand %p8580_p7, %p8574_p12 }
  0xbe   : > { %8584 = shalt.err (!%p8581_p5)
}
  0xbf   : > { %s8585_s7 = scalar_lea.vmem %s8994_s15, 10240  ;;  %s8704_s17 = smov [#allocation4]  }
  0xc0   : > { %p8586_p8 = scmp.ne.s32.totalorder %s8994_s15, %s8585_s7  ;;  %s8590_s12 = sshll.u32 %s8704_s17, 4  ;;  %s8591_s12 = int_to_ptr.vmem [resolvable:$false] %s8590_s12 }
  0xc1   : > { %s8592_s1 = scalar_lea.vmem %s8591_s12, 20480  ;;  %p8593_p4 = scmp.lt.s32.totalorder %s8994_s15, %s8591_s12 }
  0xc2   : > { %p8588_p3 = pnand %p8586_p8, %p8572_p1  ;;  %p8594_p11 = scmp.lt.s32.totalorder %s8592_s1, %s8585_s7 }
  0xc4   : > { %p8589_p9 = pneg %p8588_p3  ;;  %p8595_p6 = por %p8594_p11, %p8593_p4 }
  0xc6   : > { %p8596_p13 = pnand %p8595_p6, %p8589_p9 }
  0xc8   : > { %8599 = shalt.err (!%p8596_p13)
}
  0xc9   : > { %s8705_s2 = smov 128   ;;  %s8706_s23 = smov 8  }
  0xca   : > { %8156 = dma.hbm_to_vmem [thread:$0]  (!%p8990_p10), %s8986_s30, 10240, %s8994_s15, %s8996_s10, %s8705_s2, %s8705_s2, %s8706_s23  }
  0xcb   : > { %p11411_p1 = scmp.ne.s32.totalorder %s11398_s9, 0 }
  0xcd   : > { %329 = sbr.rel (%p11411_p1) target bundleno = 2006 (0x7d6), region = 48 }
  0xd4   : > { %s9027_s21 = sand.u32 1, %s8678_s25  }
  0xd5   : > { %s8105_s16 = smul.u32 640, %s9027_s21  ;;  %s332_s20 = scalar_lea.sflag [#allocation5], %s9027_s21 }
  0xd7   : > { %s9031_s7 = scalar_lea.vmem [#allocation4], %s8105_s16 }
  0xd8   : > { %8653 = dma.done.wait (%p8965_p2), %s332_s20, 10240  }
  0xd9   : > { %8655 = vsyncadd (%p8965_p2), %s332_s20, 4294957056  ;;  %p11412_p4 = scmp.ne.s32.totalorder %s11397_s8, 0 }
  0xdb   : > { %8657 = dma.done.wait (%p11412_p4), [#allocation8], 9232  }
  0xdc   : > { %8659 = vsyncadd (%p11412_p4), [#allocation8], 4294958064 }
  0xdd   : > { %8661 = dma.done.wait (%p11412_p4), [#allocation11], 9232  }
  0xde   : > { %8663 = vsyncadd (%p11412_p4), [#allocation11], 4294958064 }
  0xdf   : > { %8665 = dma.done.wait (%p11412_p4), [#allocation14], 32  }
  0xe0   : > { %8667 = vsyncadd (%p11412_p4), [#allocation14], 4294967264  ;;  %v8707_v0 = vmov 0   ;;  %v8240_v1 = vld [vmem:[#allocation7 + $0x80] sm:$0xff]   ;;  %v8241_v2 = vld [vmem:[#allocation7 + $0x88] sm:$0xff]   ;;  %vm8709_vm0 = vmmov 0  }
  0xe1   : > { %2441 = vmatprep.subr.bf16.mxu0 %v8707_v0  ;;  %2192 = vmatprep.subr.bf16.mxu1 %v8707_v0  ;;  %v8242_v3 = vld [vmem:[#allocation7 + $0x90] sm:$0xff]   ;;  %v8243_v4 = vld [vmem:[#allocation7 + $0x98] sm:$0xff]   ;;  %v8244_v5 = vld [vmem:[#allocation7 + $0xa0] sm:$0xff]   ;;  %vm4049_vm3 = vcmask 1046528   ;;  %vm4194_vm4 = vcmask 1045504   ;;  %vm8711_vm5 = vmmov 1  }
  0xe2   : > { %2442 = vmatpush1.bf16.msra.mxu0 %v8240_v1  ;;  %v6393_v6 = vld [vmem:[%s9031_s7 + $0x20] sm:$0xff]  ;;  %v6394_v7 = vld [vmem:[%s9031_s7 + $0x28] sm:$0xff]  ;;  %v8246_v10 = vld [vmem:[#allocation7 + $0xb0] sm:$0xff]   ;;  %s6392_s8 = sshll.u32 %s9027_s21, 8  ;;  %s6905_s13 = sshll.u32 %s8686_s27, 12 }
  0xe3   : > { %2443 = vmatprep.subr.bf16.mxu0 %v8707_v0  ;;  %v776_v8 = vpack.c.bf16 %v6394_v7, %v6393_v6  ;;  %v8245_v9 = vld [vmem:[#allocation7 + $0xa8] sm:$0xff]   ;;  %v8247_v11 = vld [vmem:[#allocation7 + $0xb8] sm:$0xff]   ;;  %v8248_v12 = vld [vmem:[#allocation7 + $0xc0] sm:$0xff]   ;;  %s11144_s9 = scalar_lea.vmem [#allocation16], %s6392_s8  ;;  %s11501_s10 = sld [smem:[#allocation58_spill]] }
  0xe4   : > { %v8249_v13 = vld [vmem:[#allocation7 + $0xc8] sm:$0xff]   ;;  %v8250_v14 = vld [vmem:[#allocation7 + $0xd0] sm:$0xff]   ;;  %v8251_v15 = vld [vmem:[#allocation7 + $0xd8] sm:$0xff]   ;;  %s6223_s30 = sshll.u32 %s11144_s9, 4  ;;  %s6207_s27 = scalar_lea.sflag [#allocation6], %s9027_s21  ;;  %s11292_s30 = int_to_ptr.vmem [resolvable:$true] %s6223_s30 }
  0xe5   : > { %2473 = vmatprep.mubr.bf16.mxu0 %v776_v8  ;;  %v8252_v16 = vld [vmem:[#allocation7 + $0xe0] sm:$0xff]   ;;  %v8253_v17 = vld [vmem:[#allocation7 + $0xe8] sm:$0xff]   ;;  %v8254_v18 = vld [vmem:[#allocation7 + $0xf0] sm:$0xff]   ;;  %s8600_s12 = scalar_lea.vmem %s11292_s30, 4096  ;;  %p11502_p9 = scmp.ne.s32.totalorder %s11408_s11, 0 }
  0xe6   : > { %2444 = vmatpush1.bf16.msra.mxu0 %v8241_v2  ;;  %v8255_v19 = vld [vmem:[#allocation7 + $0xf8] sm:$0xff]   ;;  %v611_v20 = vld [vmem:[%s9031_s7 + $0x2] sm:$0xff]  ;;  %v612_v21 = vld [vmem:[%s9031_s7 + $0xa] sm:$0xff]  ;;  %p8601_p2 = scmp.ne.s32.totalorder %s11292_s30, %s8600_s12  ;;  %s8712_s1 = smov [#allocation16]  }
  0xe7   : > { %2445 = vmatprep.subr.bf16.mxu0 %v8707_v0  ;;  %v6395_v22 = vld [vmem:[%s9031_s7 + $0x30] sm:$0xff]  ;;  %v6396_v23 = vld [vmem:[%s9031_s7 + $0x40] sm:$0xff]  ;;  %v665_v25 = vpack.c.bf16 %v612_v21, %v611_v20  ;;  %v8257_v29 = vld [vmem:[#allocation7 + $0x108] sm:$0xff]   ;;  %s8604_s2 = sshll.u32 %s8712_s1, 4  ;;  %s8605_s2 = int_to_ptr.vmem [resolvable:$false] %s8604_s2 }
  0xe8   : > { %v8256_v24 = vld [vmem:[#allocation7 + $0x100] sm:$0xff]   ;;  %v777_v26 = vpack.c.bf16 %v6396_v23, %v6395_v22  ;;  %v613_v27 = vld [vmem:[%s9031_s7 + $0x12] sm:$0xff]  ;;  %v6397_v30 = vld [vmem:[%s9031_s7 + $0x48] sm:$0xff]  ;;  %p8602_p10 = pnand %p8601_p2, %p11502_p9  ;;  %s8606_s23 = scalar_lea.vmem %s8605_s2, 8192 }
  0xe9   : > { %v9075_v28 = vld [vmem:[%s9031_s7 + $0x22] sm:$0xff]  ;;  %v6398_v31 = vld [vmem:[%s9031_s7 + $0x50] sm:$0xff]  ;;  %v8259_v39 = vld [vmem:[#allocation7 + $0x118] sm:$0xff]   ;;  %s11290_s17 = scalar_lea.hbm %s11501_s10, %s6905_s13  ;;  %p8607_p0 = scmp.lt.s32.totalorder %s11292_s30, %s8605_s2 }
  0xea   : > { %2446 = vmatpush1.bf16.msra.mxu0 %v8242_v3  ;;  %v8258_v32 = vld [vmem:[#allocation7 + $0x110] sm:$0xff]   ;;  %v666_v33 = vpack.c.bf16 %v9075_v28, %v613_v27  ;;  %v778_v34 = vpack.c.bf16 %v6398_v31, %v6397_v30  ;;  %v6399_v37 = vld [vmem:[%s9031_s7 + $0x60] sm:$0xff]  ;;  %v6400_v38 = vld [vmem:[%s9031_s7 + $0x68] sm:$0xff]  ;;  %p8603_p12 = pneg %p8602_p10  ;;  %p8608_p7 = scmp.lt.s32.totalorder %s8606_s23, %s8600_s12 }
  0xeb   : > { %2447 = vmatprep.subr.bf16.mxu0 %v8707_v0  ;;  %v9083_v35 = vld [vmem:[%s9031_s7 + $0x2a] sm:$0xff]  ;;  %v9086_v36 = vld [vmem:[%s9031_s7 + $0x32] sm:$0xff]  ;;  %v8260_v40 = vld [vmem:[#allocation7 + $0x120] sm:$0xff]   ;;  %v779_v42 = vpack.c.bf16 %v6400_v38, %v6399_v37 }
  0xec   : > { %v667_v41 = vpack.c.bf16 %v9086_v36, %v9083_v35  ;;  %v9095_v43 = vld [vmem:[%s9031_s7 + $0x42] sm:$0xff]  ;;  %v9098_v44 = vld [vmem:[%s9031_s7 + $0x4a] sm:$0xff]  ;;  %v9107_v51 = vld [vmem:[%s9031_s7 + $0x52] sm:$0xff]  ;;  %p8609_p5 = por %p8608_p7, %p8607_p0 }
  0xed   : > { %v6401_v45 = vld [vmem:[%s9031_s7 + $0x70] sm:$0xff]  ;;  %v6402_v46 = vld [vmem:[%s9031_s7 + $0x80] sm:$0xff]  ;;  %v8261_v47 = vld [vmem:[#allocation7 + $0x128] sm:$0xff]   ;;  %v668_v49 = vpack.c.bf16 %v9098_v44, %v9095_v43 }
  0xee   : > { %2448 = vmatpush1.bf16.msra.mxu0 %v8243_v4  ;;  %v8262_v48 = vld [vmem:[#allocation7 + $0x130] sm:$0xff]   ;;  %v780_v50 = vpack.c.bf16 %v6402_v46, %v6401_v45  ;;  %v9110_v52 = vld [vmem:[%s9031_s7 + $0x62] sm:$0xff]  ;;  %v8263_v55 = vld [vmem:[#allocation7 + $0x138] sm:$0xff]   ;;  %p8610_p8 = pnand %p8609_p5, %p8603_p12 }
  0xef   : > { %2449 = vmatprep.subr.bf16.mxu0 %v8707_v0  ;;  %v6403_v53 = vld [vmem:[%s9031_s7 + $0x88] sm:$0xff]  ;;  %v6404_v54 = vld [vmem:[%s9031_s7 + $0x90] sm:$0xff]  ;;  %v8264_v56 = vld [vmem:[#allocation7 + $0x140] sm:$0xff]   ;;  %v669_v57 = vpack.c.bf16 %v9110_v52, %v9107_v51 }
  0xf0   : > { %v781_v58 = vpack.c.bf16 %v6404_v54, %v6403_v53  ;;  %v9119_v59 = vld [vmem:[%s9031_s7 + $0x6a] sm:$0xff]  ;;  %v9122_v60 = vld [vmem:[%s9031_s7 + $0x72] sm:$0xff]  ;;  %v6405_v61 = vld [vmem:[%s9031_s7 + $0xa0] sm:$0xff] }
  0xf1   : > { %v6406_v62 = vld [vmem:[%s9031_s7 + $0xa8] sm:$0xff]  ;;  %v8266_v1 = vld [vmem:[#allocation7 + $0x150] sm:$0xff]   ;;  %v670_v2 = vpack.c.bf16 %v9122_v60, %v9119_v59  ;;  %v6408_v7 = vld [vmem:[%s9031_s7 + $0xc0] sm:$0xff] }
  0xf2   : > { %2450 = vmatpush1.bf16.msra.mxu0 %v8244_v5  ;;  %v8265_v63 = vld [vmem:[#allocation7 + $0x148] sm:$0xff]   ;;  %v782_v3 = vpack.c.bf16 %v6406_v62, %v6405_v61  ;;  %v6407_v6 = vld [vmem:[%s9031_s7 + $0xb0] sm:$0xff]  ;;  %v8267_v8 = vld [vmem:[#allocation7 + $0x158] sm:$0xff]  }
  0xf3   : > { %2451 = vmatprep.subr.bf16.mxu0 %v8707_v0  ;;  %v9131_v4 = vld [vmem:[%s9031_s7 + $0x82] sm:$0xff]  ;;  %v9134_v5 = vld [vmem:[%s9031_s7 + $0x8a] sm:$0xff]  ;;  %v9158_v21 = vld [vmem:[%s9031_s7 + $0xb2] sm:$0xff] }
  0xf4   : > { %v9155_v20 = vld [vmem:[%s9031_s7 + $0xaa] sm:$0xff]  ;;  %v6411_v22 = vld [vmem:[%s9031_s7 + $0xe0] sm:$0xff]  ;;  %v9190_v45 = vld [vmem:[%s9031_s7 + $0xf2] sm:$0xff] }
  0xf5   : > { %v6412_v23 = vld [vmem:[%s9031_s7 + $0xe8] sm:$0xff]  ;;  %v6413_v30 = vld [vmem:[%s9031_s7 + $0xf0] sm:$0xff]  ;;  %v6414_v31 = vld [vmem:[%s9031_s7 + $0x100] sm:$0xff] }
  0xf6   : > { %2452 = vmatpush1.bf16.msra.mxu0 %v8245_v9  ;;  %v8268_v9 = vld [vmem:[#allocation7 + $0x160] sm:$0xff]   ;;  %v6415_v38 = vld [vmem:[%s9031_s7 + $0x108] sm:$0xff]  ;;  %v6419_v54 = vld [vmem:[%s9031_s7 + $0x130] sm:$0xff] }
  0xf7   : > { %2453 = vmatprep.subr.bf16.mxu0 %v8707_v0  ;;  %v9167_v27 = vld [vmem:[%s9031_s7 + $0xc2] sm:$0xff]  ;;  %v9200_v53 = vld [vmem:[%s9031_s7 + $0x10a] sm:$0xff] }
  0xf8   : > { %v9180_v37 = vld [vmem:[%s9031_s7 + $0xe2] sm:$0xff] }
  0xf9   : > { %v6417_v46 = vld [vmem:[%s9031_s7 + $0x120] sm:$0xff]  ;;  %v6421_v62 = vld [vmem:[%s9031_s7 + $0x148] sm:$0xff] }
  0xfa   : > { %2454 = vmatpush1.bf16.msra.mxu0 %v8246_v10  ;;  %v671_v10 = vpack.c.bf16 %v9134_v5, %v9131_v4  ;;  %v9210_v61 = vld [vmem:[%s9031_s7 + $0x122] sm:$0xff] }
  0xfb   : > { %2455 = vmatprep.subr.bf16.mxu0 %v8707_v0 }
  0xfe   : > { %2456 = vmatpush1.bf16.msra.mxu0 %v8247_v11  ;;  %v783_v11 = vpack.c.bf16 %v6408_v7, %v6407_v6  ;;  %v9220_v6 = vld [vmem:[%s9031_s7 + $0x132] sm:$0xff]  ;;  %v6423_v7 = vld [vmem:[%s9031_s7 + $0x160] sm:$0xff] }
  0xff   : > { %2457 = vmatprep.subr.bf16.mxu0 %v8707_v0 }
 0x102   : > { %2458 = vmatpush1.bf16.msra.mxu0 %v8248_v12  ;;  %v9143_v12 = vld [vmem:[%s9031_s7 + $0x92] sm:$0xff] }
 0x103   : > { %2459 = vmatprep.subr.bf16.mxu0 %v8707_v0 }
 0x106   : > { %2460 = vmatpush1.bf16.msra.mxu0 %v8249_v13  ;;  %v9146_v13 = vld [vmem:[%s9031_s7 + $0xa2] sm:$0xff] }
 0x107   : > { %2461 = vmatprep.subr.bf16.mxu0 %v8707_v0 }
 0x10a   : > { %2462 = vmatpush1.bf16.msra.mxu0 %v8250_v14  ;;  %v6409_v14 = vld [vmem:[%s9031_s7 + $0xc8] sm:$0xff] }
 0x10b   : > { %2463 = vmatprep.subr.bf16.mxu0 %v8707_v0 }
 0x10e   : > { %2464 = vmatpush1.bf16.msra.mxu0 %v8251_v15  ;;  %v6410_v15 = vld [vmem:[%s9031_s7 + $0xd0] sm:$0xff] }
 0x10f   : > { %2465 = vmatprep.subr.bf16.mxu0 %v8707_v0 }
 0x112   : > { %2466 = vmatpush1.bf16.msra.mxu0 %v8252_v16  ;;  %v8269_v16 = vld [vmem:[#allocation7 + $0x168] sm:$0xff]  }
 0x113   : > { %2467 = vmatprep.subr.bf16.mxu0 %v8707_v0 }
 0x116   : > { %2468 = vmatpush1.bf16.msra.mxu0 %v8253_v17  ;;  %v8270_v17 = vld [vmem:[#allocation7 + $0x170] sm:$0xff]  }
 0x117   : > { %2469 = vmatprep.subr.bf16.mxu0 %v8707_v0 }
 0x11a   : > { %2470 = vmatpush1.bf16.msra.mxu0 %v8254_v18  ;;  %v672_v18 = vpack.c.bf16 %v9146_v13, %v9143_v12 }
 0x11b   : > { %2471 = vmatprep.subr.bf16.mxu0 %v8707_v0 }
 0x11e   : > { %2472 = vmatpush1.bf16.msra.mxu0 %v8255_v19  ;;  %v784_v19 = vpack.c.bf16 %v6410_v15, %v6409_v14  ;;  %v9230_v14 = vld [vmem:[%s9031_s7 + $0x14a] sm:$0xff] }
 0x11f   : > { %2690 = vmatprep.subr.bf16.mxu0 %v8707_v0  ;;  %v6425_v15 = vld [vmem:[%s9031_s7 + $0x170] sm:$0xff] }
 0x121   : > { %2474 = vmatmul.mubr.bf16.vlgmr.msra.gmra.mrb[0].mxu0 %v665_v25  ;;  %v673_v25 = vpack.c.bf16 %v9158_v21, %v9155_v20 }
 0x122   : > { %2691 = vmatpush1.bf16.msra.mxu0 %v8256_v24  ;;  %2481 = vmatprep.mubr.bf16.mxu0 %v777_v26  ;;  %v8271_v24 = vld [vmem:[#allocation7 + $0x178] sm:$0xff]   ;;  %v785_v26 = vpack.c.bf16 %v6412_v23, %v6411_v22  ;;  %v9240_v22 = vld [vmem:[%s9031_s7 + $0x162] sm:$0xff] }
 0x123   : > { %2692 = vmatprep.subr.bf16.mxu0 %v8707_v0  ;;  %v6427_v23 = vld [vmem:[%s9031_s7 + $0x188] sm:$0xff] }
 0x126   : > { %2693 = vmatpush1.bf16.msra.mxu0 %v8257_v29  ;;  %v9170_v29 = vld [vmem:[%s9031_s7 + $0xca] sm:$0xff] }
 0x127   : > { %2694 = vmatprep.subr.bf16.mxu0 %v8707_v0 }
 0x129   : > { %2482 = vmatmul.mubr.bf16.gmra.mrb[4].mxu0 %v666_v33  ;;  %v786_v33 = vpack.c.bf16 %v6414_v31, %v6413_v30  ;;  %v9247_v30 = vld [vmem:[%s9031_s7 + $0x16a] sm:$0xff]  ;;  %v9250_v31 = vld [vmem:[%s9031_s7 + $0x172] sm:$0xff] }
 0x12a   : > { %2489 = vmatprep.mubr.bf16.mxu0 %v778_v34  ;;  %2695 = vmatpush1.bf16.msra.mxu0 %v8258_v32  ;;  %v674_v32 = vpack.c.bf16 %v9170_v29, %v9167_v27  ;;  %v9177_v34 = vld [vmem:[%s9031_s7 + $0xd2] sm:$0xff] }
 0x12b   : > { %2696 = vmatprep.subr.bf16.mxu0 %v8707_v0 }
 0x12e   : > { %2697 = vmatpush1.bf16.msra.mxu0 %v8259_v39  ;;  %v6416_v39 = vld [vmem:[%s9031_s7 + $0x110] sm:$0xff] }
 0x12f   : > { %2698 = vmatprep.subr.bf16.mxu0 %v8707_v0 }
 0x131   : > { %2490 = vmatmul.mubr.bf16.gmra.mrb[8].mxu0 %v667_v41  ;;  %v787_v41 = vpack.c.bf16 %v6416_v39, %v6415_v38  ;;  %v682_v38 = vpack.c.bf16 %v9250_v31, %v9247_v30 }
 0x132   : > { %2497 = vmatprep.mubr.bf16.mxu0 %v779_v42  ;;  %2699 = vmatpush1.bf16.msra.mxu0 %v8260_v40  ;;  %v675_v40 = vpack.c.bf16 %v9180_v37, %v9177_v34  ;;  %v9187_v42 = vld [vmem:[%s9031_s7 + $0xea] sm:$0xff] }
 0x133   : > { %2700 = vmatprep.subr.bf16.mxu0 %v8707_v0 }
 0x136   : > { %2701 = vmatpush1.bf16.msra.mxu0 %v8261_v47  ;;  %v6418_v47 = vld [vmem:[%s9031_s7 + $0x128] sm:$0xff] }
 0x137   : > { %2702 = vmatprep.subr.bf16.mxu0 %v8707_v0 }
 0x139   : > { %2498 = vmatmul.mubr.bf16.gmra.mrb[12].mxu0 %v668_v49  ;;  %v788_v49 = vpack.c.bf16 %v6418_v47, %v6417_v46  ;;  %v6431_v46 = vld [vmem:[%s9031_s7 + $0x1b0] sm:$0xff]  ;;  %v6432_v47 = vld [vmem:[%s9031_s7 + $0x1c0] sm:$0xff] }
 0x13a   : > { %2505 = vmatprep.mubr.bf16.mxu0 %v780_v50  ;;  %2703 = vmatpush1.bf16.msra.mxu0 %v8262_v48  ;;  %v676_v48 = vpack.c.bf16 %v9190_v45, %v9187_v42  ;;  %v9197_v50 = vld [vmem:[%s9031_s7 + $0x102] sm:$0xff] }
 0x13b   : > { %2704 = vmatprep.subr.bf16.mxu0 %v8707_v0 }
 0x13e   : > { %2705 = vmatpush1.bf16.msra.mxu0 %v8263_v55  ;;  %v6420_v55 = vld [vmem:[%s9031_s7 + $0x140] sm:$0xff] }
 0x13f   : > { %2706 = vmatprep.subr.bf16.mxu0 %v8707_v0 }
 0x141   : > { %2506 = vmatmul.mubr.bf16.gmra.mrb[16].mxu0 %v669_v57  ;;  %v789_v57 = vpack.c.bf16 %v6420_v55, %v6419_v54  ;;  %v9267_v54 = vld [vmem:[%s9031_s7 + $0x192] sm:$0xff]  ;;  %v9270_v55 = vld [vmem:[%s9031_s7 + $0x1a2] sm:$0xff] }
 0x142   : > { %2513 = vmatprep.mubr.bf16.mxu0 %v781_v58  ;;  %2707 = vmatpush1.bf16.msra.mxu0 %v8264_v56  ;;  %v677_v56 = vpack.c.bf16 %v9200_v53, %v9197_v50  ;;  %v9207_v58 = vld [vmem:[%s9031_s7 + $0x112] sm:$0xff] }
 0x143   : > { %2708 = vmatprep.subr.bf16.mxu0 %v8707_v0 }
 0x146   : > { %2709 = vmatpush1.bf16.msra.mxu0 %v8265_v63  ;;  %v6422_v63 = vld [vmem:[%s9031_s7 + $0x150] sm:$0xff] }
 0x147   : > { %2710 = vmatprep.subr.bf16.mxu0 %v8707_v0 }
 0x149   : > { %2514 = vmatmul.mubr.bf16.gmra.mrb[20].mxu0 %v670_v2  ;;  %v790_v2 = vpack.c.bf16 %v6422_v63, %v6421_v62  ;;  %v684_v62 = vpack.c.bf16 %v9270_v55, %v9267_v54 }
 0x14a   : > { %2521 = vmatprep.mubr.bf16.mxu0 %v782_v3  ;;  %2711 = vmatpush1.bf16.msra.mxu0 %v8266_v1  ;;  %v678_v1 = vpack.c.bf16 %v9210_v61, %v9207_v58  ;;  %v9217_v3 = vld [vmem:[%s9031_s7 + $0x12a] sm:$0xff] }
 0x14b   : > { %2712 = vmatprep.subr.bf16.mxu0 %v8707_v0 }
 0x14e   : > { %2713 = vmatpush1.bf16.msra.mxu0 %v8267_v8  ;;  %v6424_v8 = vld [vmem:[%s9031_s7 + $0x168] sm:$0xff] }
 0x14f   : > { %2714 = vmatprep.subr.bf16.mxu0 %v8707_v0 }
 0x151   : > { %2522 = vmatmul.mubr.bf16.gmra.mrb[24].mxu0 %v671_v10  ;;  %v791_v10 = vpack.c.bf16 %v6424_v8, %v6423_v7  ;;  %v6435_v7 = vld [vmem:[%s9031_s7 + $0x1e0] sm:$0xff]  ;;  %v6436_v8 = vld [vmem:[%s9031_s7 + $0x1e8] sm:$0xff] }
 0x152   : > { %2529 = vmatprep.mubr.bf16.mxu0 %v783_v11  ;;  %2715 = vmatpush1.bf16.msra.mxu0 %v8268_v9  ;;  %v679_v9 = vpack.c.bf16 %v9220_v6, %v9217_v3  ;;  %v9227_v11 = vld [vmem:[%s9031_s7 + $0x142] sm:$0xff] }
 0x153   : > { %2716 = vmatprep.subr.bf16.mxu0 %v8707_v0 }
 0x156   : > { %2717 = vmatpush1.bf16.msra.mxu0 %v8269_v16  ;;  %v6426_v16 = vld [vmem:[%s9031_s7 + $0x180] sm:$0xff] }
 0x157   : > { %2718 = vmatprep.subr.bf16.mxu0 %v8707_v0 }
 0x159   : > { %2530 = vmatmul.mubr.bf16.gmra.mrb[28].mxu0 %v672_v18  ;;  %v792_v18 = vpack.c.bf16 %v6426_v16, %v6425_v15  ;;  %v9287_v15 = vld [vmem:[%s9031_s7 + $0x1c2] sm:$0xff]  ;;  %v9290_v16 = vld [vmem:[%s9031_s7 + $0x1ca] sm:$0xff] }
 0x15a   : > { %2537 = vmatprep.mubr.bf16.mxu0 %v784_v19  ;;  %2719 = vmatpush1.bf16.msra.mxu0 %v8270_v17  ;;  %v680_v17 = vpack.c.bf16 %v9230_v14, %v9227_v11  ;;  %v9237_v19 = vld [vmem:[%s9031_s7 + $0x152] sm:$0xff] }
 0x15b   : > { %2720 = vmatprep.subr.bf16.mxu0 %v8707_v0 }
 0x15e   : > { %2721 = vmatpush1.bf16.msra.mxu0 %v8271_v24  ;;  %v6428_v24 = vld [vmem:[%s9031_s7 + $0x190] sm:$0xff] }
 0x15f   : > { %2939 = vmatprep.subr.bf16.mxu0 %v8707_v0 }
 0x161   : > { %2538 = vmatmul.mubr.bf16.gmra.mrb[32].mxu0 %v673_v25  ;;  %v681_v25 = vpack.c.bf16 %v9240_v22, %v9237_v19 }
 0x162   : > { %2545 = vmatprep.mubr.bf16.mxu0 %v785_v26  ;;  %v793_v26 = vpack.c.bf16 %v6428_v24, %v6427_v23  ;;  %v686_v23 = vpack.c.bf16 %v9290_v16, %v9287_v15 }
 0x169   : > { %2546 = vmatmul.mubr.bf16.gmra.mrb[36].mxu0 %v674_v32  ;;  %v6429_v32 = vld [vmem:[%s9031_s7 + $0x1a0] sm:$0xff] }
 0x16a   : > { %2553 = vmatprep.mubr.bf16.mxu0 %v786_v33  ;;  %v6430_v33 = vld [vmem:[%s9031_s7 + $0x1a8] sm:$0xff] }
 0x16b   : > { %v794_v39 = vpack.c.bf16 %v6430_v33, %v6429_v32  ;;  %v992_v33 = vpack.c.bf16 %v9083_v35, %v9075_v28  ;;  %v994_v35 = vpack.c.bf16 %v9107_v51, %v9098_v44  ;;  %v995_v44 = vpack.c.bf16 %v9119_v59, %v9110_v52  ;;  %v8276_v51 = vld [vmem:[#allocation7 + $0x1a0] sm:$0xff]   ;;  %v8278_v59 = vld [vmem:[#allocation7 + $0x1b0] sm:$0xff]  }
 0x16c   : > { %v996_v52 = vpack.c.bf16 %v9131_v4, %v9122_v60 }
 0x171   : > { %2554 = vmatmul.mubr.bf16.gmra.mrb[40].mxu0 %v675_v40  ;;  %v9257_v40 = vld [vmem:[%s9031_s7 + $0x182] sm:$0xff] }
 0x172   : > { %2561 = vmatprep.mubr.bf16.mxu0 %v787_v41  ;;  %v9260_v41 = vld [vmem:[%s9031_s7 + $0x18a] sm:$0xff] }
 0x179   : > { %2562 = vmatmul.mubr.bf16.gmra.mrb[44].mxu0 %v676_v48  ;;  %v683_v48 = vpack.c.bf16 %v9260_v41, %v9257_v40 }
 0x17a   : > { %2569 = vmatprep.mubr.bf16.mxu0 %v788_v49  ;;  %v795_v49 = vpack.c.bf16 %v6432_v47, %v6431_v46  ;;  %v8272_v47 = vld [vmem:[#allocation7 + $0x180] sm:$0xff]  }
 0x181   : > { %2570 = vmatmul.mubr.bf16.gmra.mrb[48].mxu0 %v677_v56  ;;  %v6433_v56 = vld [vmem:[%s9031_s7 + $0x1c8] sm:$0xff] }
 0x182   : > { %2577 = vmatprep.mubr.bf16.mxu0 %v789_v57  ;;  %v6434_v57 = vld [vmem:[%s9031_s7 + $0x1d0] sm:$0xff] }
 0x183   : > { %v796_v63 = vpack.c.bf16 %v6434_v57, %v6433_v56  ;;  %v9312_v56 = vld [vmem:[%s9031_s7 + $0x41] sm:$0xff] }
 0x184   : > { %v8273_v57 = vld [vmem:[#allocation7 + $0x188] sm:$0xff]  }
 0x189   : > { %2578 = vmatmul.mubr.bf16.gmra.mrb[52].mxu0 %v678_v1  ;;  %v9277_v1 = vld [vmem:[%s9031_s7 + $0x1aa] sm:$0xff] }
 0x18a   : > { %2585 = vmatprep.mubr.bf16.mxu0 %v790_v2  ;;  %v9280_v2 = vld [vmem:[%s9031_s7 + $0x1b2] sm:$0xff] }
 0x191   : > { %2586 = vmatmul.mubr.bf16.gmra.mrb[56].mxu0 %v679_v9  ;;  %v685_v9 = vpack.c.bf16 %v9280_v2, %v9277_v1 }
 0x192   : > { %2593 = vmatprep.mubr.bf16.mxu0 %v791_v10  ;;  %v797_v10 = vpack.c.bf16 %v6436_v8, %v6435_v7  ;;  %v9332_v8 = vld [vmem:[%s9031_s7 + $0x61] sm:$0xff] }
 0x199   : > { %2594 = vmatmul.mubr.bf16.gmra.mrb[60].mxu0 %v680_v17  ;;  %v6437_v17 = vld [vmem:[%s9031_s7 + $0x1f0] sm:$0xff] }
 0x19a   : > { %2601 = vmatprep.mubr.bf16.mxu0 %v792_v18  ;;  %v6438_v18 = vld [vmem:[%s9031_s7 + $0x200] sm:$0xff] }
 0x19b   : > { %v798_v24 = vpack.c.bf16 %v6438_v18, %v6437_v17  ;;  %v9344_v18 = vld [vmem:[%s9031_s7 + $0x71] sm:$0xff] }
 0x1a1   : > { %2602 = vmatmul.mubr.bf16.gmra.mrb[64].mxu0 %v681_v25  ;;  %v9297_v25 = vld [vmem:[%s9031_s7 + $0x1d2] sm:$0xff] }
 0x1a2   : > { %2609 = vmatprep.mubr.bf16.mxu0 %v793_v26  ;;  %v9300_v26 = vld [vmem:[%s9031_s7 + $0x1e2] sm:$0xff] }
 0x1a3   : > { %v687_v32 = vpack.c.bf16 %v9300_v26, %v9297_v25 }
 0x1a9   : > { %2610 = vmatmul.mubr.bf16.gmra.mrb[68].mxu0 %v682_v38  ;;  %v6447_v38 = vld [vmem:[%s9031_s7 + $0x21] sm:$0xff] }
 0x1aa   : > { %2617 = vmatprep.mubr.bf16.mxu0 %v794_v39  ;;  %v6448_v39 = vld [vmem:[%s9031_s7 + $0x29] sm:$0xff] }
 0x1ab   : > { %v884_v46 = vpack.c.bf16 %v6448_v39, %v6447_v38  ;;  %v997_v38 = vpack.c.bf16 %v9143_v12, %v9134_v5  ;;  %v8280_v39 = vld [vmem:[#allocation7 + $0x1c0] sm:$0xff]   ;;  %v998_v12 = vpack.c.bf16 %v9155_v20, %v9146_v13  ;;  %v999_v13 = vpack.c.bf16 %v9167_v27, %v9158_v21 }
 0x1ac   : > { %v8284_v20 = vld [vmem:[#allocation7 + $0x1e0] sm:$0xff]   ;;  %v1000_v27 = vpack.c.bf16 %v9177_v34, %v9170_v29  ;;  %v1001_v29 = vpack.c.bf16 %v9187_v42, %v9180_v37  ;;  %v9413_v37 = vld [vmem:[%s9031_s7 + $0xf1] sm:$0xff] }
 0x1ad   : > { %v9403_v34 = vld [vmem:[%s9031_s7 + $0xe1] sm:$0xff] }
 0x1ae   : > { %v9416_v42 = vld [vmem:[%s9031_s7 + $0x101] sm:$0xff] }
 0x1b1   : > { %2618 = vmatmul.mubr.bf16.gmra.mrb[72].mxu0 %v683_v48  ;;  %v993_v48 = vpack.c.bf16 %v9095_v43, %v9086_v36  ;;  %v9320_v36 = vld [vmem:[%s9031_s7 + $0x49] sm:$0xff]  ;;  %v9323_v43 = vld [vmem:[%s9031_s7 + $0x51] sm:$0xff] }
 0x1b2   : > { %2625 = vmatprep.mubr.bf16.mxu0 %v795_v49  ;;  %v6449_v49 = vld [vmem:[%s9031_s7 + $0x31] sm:$0xff]  ;;  %v886_v7 = vpack.c.bf16 %v9323_v43, %v9320_v36 }
 0x1b3   : > { %v885_v28 = vpack.c.bf16 %v9312_v56, %v6449_v49  ;;  %v8281_v49 = vld [vmem:[#allocation7 + $0x1c8] sm:$0xff]  }
 0x1b9   : > { %2626 = vmatmul.mubr.bf16.gmra.mrb[76].mxu0 %v684_v62  ;;  %v8274_v62 = vld [vmem:[#allocation7 + $0x190] sm:$0xff]  }
 0x1ba   : > { %2633 = vmatprep.mubr.bf16.mxu0 %v796_v63  ;;  %v8275_v63 = vld [vmem:[#allocation7 + $0x198] sm:$0xff]  }
 0x1c1   : > { %2634 = vmatmul.mubr.bf16.gmra.mrb[80].mxu0 %v685_v9  ;;  %v9335_v9 = vld [vmem:[%s9031_s7 + $0x69] sm:$0xff] }
 0x1c2   : > { %2641 = vmatprep.mubr.bf16.mxu0 %v797_v10  ;;  %v8277_v10 = vld [vmem:[#allocation7 + $0x1a8] sm:$0xff]   ;;  %v887_v17 = vpack.c.bf16 %v9335_v9, %v9332_v8 }
 0x1c9   : > { %2642 = vmatmul.mubr.bf16.gmra.mrb[84].mxu0 %v686_v23  ;;  %v9347_v23 = vld [vmem:[%s9031_s7 + $0x81] sm:$0xff] }
 0x1ca   : > { %2649 = vmatprep.mubr.bf16.mxu0 %v798_v24  ;;  %v8279_v24 = vld [vmem:[#allocation7 + $0x1b8] sm:$0xff]   ;;  %v888_v60 = vpack.c.bf16 %v9347_v23, %v9344_v18 }
 0x1d1   : > { %2650 = vmatmul.mubr.bf16.gmra.mrb[88].mxu0 %v687_v32 }
 0x1d2   : > { %2722 = vmatprep.mubr.bf16.mxu0 %v992_v33 }
 0x1d9   : > { %2723 = vmatmul.mubr.bf16.vlgmr.msra.gmra.mrb[92].mxu0 %v884_v46 }
 0x1da   : > { %2940 = vmatpush1.bf16.msra.mxu0 %v8272_v47  ;;  %2730 = vmatprep.mubr.bf16.mxu0 %v993_v48  ;;  %v9356_v47 = vld [vmem:[%s9031_s7 + $0x89] sm:$0xff]  ;;  %v9359_v48 = vld [vmem:[%s9031_s7 + $0x91] sm:$0xff] }
 0x1db   : > { %2941 = vmatprep.subr.bf16.mxu0 %v8707_v0  ;;  %v889_v5 = vpack.c.bf16 %v9359_v48, %v9356_v47 }
 0x1de   : > { %2942 = vmatpush1.bf16.msra.mxu0 %v8273_v57  ;;  %v8282_v57 = vld [vmem:[#allocation7 + $0x1d0] sm:$0xff]  }
 0x1df   : > { %2943 = vmatprep.subr.bf16.mxu0 %v8707_v0 }
 0x1e1   : > { %2731 = vmatmul.mubr.bf16.gmra.mrb[4].mxu0 %v885_v28  ;;  %v9368_v28 = vld [vmem:[%s9031_s7 + $0xa1] sm:$0xff] }
 0x1e2   : > { %2738 = vmatprep.mubr.bf16.mxu0 %v994_v35  ;;  %2944 = vmatpush1.bf16.msra.mxu0 %v8274_v62  ;;  %v9371_v35 = vld [vmem:[%s9031_s7 + $0xa9] sm:$0xff]  ;;  %v8283_v62 = vld [vmem:[#allocation7 + $0x1d8] sm:$0xff]  }
 0x1e3   : > { %2945 = vmatprep.subr.bf16.mxu0 %v8707_v0 }
 0x1e6   : > { %2946 = vmatpush1.bf16.msra.mxu0 %v8275_v63  ;;  %v890_v63 = vpack.c.bf16 %v9371_v35, %v9368_v28 }
 0x1e7   : > { %2947 = vmatprep.subr.bf16.mxu0 %v8707_v0 }
 0x1e9   : > { %2739 = vmatmul.mubr.bf16.gmra.mrb[8].mxu0 %v886_v7  ;;  %v9380_v7 = vld [vmem:[%s9031_s7 + $0xb1] sm:$0xff] }
 0x1ea   : > { %2746 = vmatprep.mubr.bf16.mxu0 %v995_v44  ;;  %2948 = vmatpush1.bf16.msra.mxu0 %v8276_v51  ;;  %v9383_v44 = vld [vmem:[%s9031_s7 + $0xc1] sm:$0xff] }
 0x1eb   : > { %2949 = vmatprep.subr.bf16.mxu0 %v8707_v0  ;;  %v8285_v51 = vld [vmem:[#allocation7 + $0x1e8] sm:$0xff]   ;;  %v891_v21 = vpack.c.bf16 %v9383_v44, %v9380_v7 }
 0x1ee   : > { %2950 = vmatpush1.bf16.msra.mxu0 %v8277_v10  ;;  %v8286_v10 = vld [vmem:[#allocation7 + $0x1f0] sm:$0xff]  }
 0x1ef   : > { %2951 = vmatprep.subr.bf16.mxu0 %v8707_v0 }
 0x1f1   : > { %2747 = vmatmul.mubr.bf16.gmra.mrb[12].mxu0 %v887_v17  ;;  %v9392_v17 = vld [vmem:[%s9031_s7 + $0xc9] sm:$0xff] }
 0x1f2   : > { %2754 = vmatprep.mubr.bf16.mxu0 %v996_v52  ;;  %2952 = vmatpush1.bf16.msra.mxu0 %v8278_v59  ;;  %v9395_v52 = vld [vmem:[%s9031_s7 + $0xd1] sm:$0xff] }
 0x1f3   : > { %2953 = vmatprep.subr.bf16.mxu0 %v8707_v0  ;;  %v892_v59 = vpack.c.bf16 %v9395_v52, %v9392_v17 }
 0x1f4   : > { %v2475_v32 = vpop.f32.mrb[0].mxu0 }
 0x1f5   : > { %v2477_v33 = vpop.f32.mrb[1].mxu0 }
 0x1f6   : > { %v2478_v4 = vpop.f32.mrb[2].mxu0  ;;  %2954 = vmatpush1.bf16.msra.mxu0 %v8279_v24  ;;  %v9406_v24 = vld [vmem:[%s9031_s7 + $0xe9] sm:$0xff]  ;;  %v1002_v33 = vpack.c.bf16 %v9197_v50, %v9190_v45  ;;  %v9426_v50 = vld [vmem:[%s9031_s7 + $0x111] sm:$0xff] }
 0x1f7   : > { %v2480_v46 = vpop.f32.mrb[3].mxu0  ;;  %2955 = vmatprep.subr.bf16.mxu0 %v8707_v0  ;;  %v893_v32 = vpack.c.bf16 %v9406_v24, %v9403_v34  ;;  %v894_v4 = vpack.c.bf16 %v9416_v42, %v9413_v37  ;;  %v9423_v45 = vld [vmem:[%s9031_s7 + $0x109] sm:$0xff] }
 0x1f8   : > { %v1004_v46 = vpack.c.bf16 %v9217_v3, %v9210_v61  ;;  %v9444_v61 = vld [vmem:[%s9031_s7 + $0x131] sm:$0xff]  ;;  %v9447_v3 = vld [vmem:[%s9031_s7 + $0x141] sm:$0xff] }
 0x1f9   : > { %2755 = vmatmul.mubr.bf16.gmra.mrb[16].mxu0 %v888_v60  ;;  %v8287_v60 = vld [vmem:[#allocation7 + $0x1f8] sm:$0xff]  }
 0x1fa   : > { %2762 = vmatprep.mubr.bf16.mxu0 %v997_v38  ;;  %2956 = vmatpush1.bf16.msra.mxu0 %v8280_v39  ;;  %v1003_v38 = vpack.c.bf16 %v9207_v58, %v9200_v53  ;;  %v895_v39 = vpack.c.bf16 %v9426_v50, %v9423_v45  ;;  %v9436_v53 = vld [vmem:[%s9031_s7 + $0x129] sm:$0xff]  ;;  %v11360_v58 = vmov 0.0  }
 0x1fb   : > { %2957 = vmatprep.subr.bf16.mxu0 %v8707_v0 }
 0x1fe   : > { %2958 = vmatpush1.bf16.msra.mxu0 %v8281_v49  ;;  %v9433_v49 = vld [vmem:[%s9031_s7 + $0x121] sm:$0xff] }
 0x1ff   : > { %2959 = vmatprep.subr.bf16.mxu0 %v8707_v0 }
 0x201   : > { %2763 = vmatmul.mubr.bf16.gmra.mrb[20].mxu0 %v889_v5  ;;  %v896_v5 = vpack.c.bf16 %v9436_v53, %v9433_v49 }
 0x202   : > { %2770 = vmatprep.mubr.bf16.mxu0 %v998_v12  ;;  %2960 = vmatpush1.bf16.msra.mxu0 %v8282_v57  ;;  %v1005_v12 = vpack.c.bf16 %v9227_v11, %v9220_v6  ;;  %v897_v57 = vpack.c.bf16 %v9447_v3, %v9444_v61  ;;  %v9457_v6 = vld [vmem:[%s9031_s7 + $0x151] sm:$0xff] }
 0x203   : > { %2961 = vmatprep.subr.bf16.mxu0 %v8707_v0 }
 0x206   : > { %2962 = vmatpush1.bf16.msra.mxu0 %v8283_v62  ;;  %v1006_v62 = vpack.c.bf16 %v9237_v19, %v9230_v14  ;;  %v9467_v14 = vld [vmem:[%s9031_s7 + $0x169] sm:$0xff] }
 0x207   : > { %2963 = vmatprep.subr.bf16.mxu0 %v8707_v0 }
 0x209   : > { %2771 = vmatmul.mubr.bf16.gmra.mrb[24].mxu0 %v890_v63  ;;  %v9454_v63 = vld [vmem:[%s9031_s7 + $0x149] sm:$0xff] }
 0x20a   : > { %2778 = vmatprep.mubr.bf16.mxu0 %v999_v13  ;;  %2964 = vmatpush1.bf16.msra.mxu0 %v8284_v20  ;;  %v898_v11 = vpack.c.bf16 %v9457_v6, %v9454_v63  ;;  %v1007_v13 = vpack.c.bf16 %v9247_v30, %v9240_v22  ;;  %v9464_v20 = vld [vmem:[%s9031_s7 + $0x161] sm:$0xff] }
 0x20b   : > { %2965 = vmatprep.subr.bf16.mxu0 %v8707_v0  ;;  %v899_v19 = vpack.c.bf16 %v9467_v14, %v9464_v20  ;;  %v9477_v22 = vld [vmem:[%s9031_s7 + $0x181] sm:$0xff] }
 0x20e   : > { %2966 = vmatpush1.bf16.msra.mxu0 %v8285_v51  ;;  %v1008_v51 = vpack.c.bf16 %v9257_v40, %v9250_v31  ;;  %v9487_v31 = vld [vmem:[%s9031_s7 + $0x191] sm:$0xff] }
 0x20f   : > { %2967 = vmatprep.subr.bf16.mxu0 %v8707_v0 }
 0x211   : > { %2779 = vmatmul.mubr.bf16.gmra.mrb[28].mxu0 %v891_v21  ;;  %v9474_v21 = vld [vmem:[%s9031_s7 + $0x171] sm:$0xff] }
 0x212   : > { %2786 = vmatprep.mubr.bf16.mxu0 %v1000_v27  ;;  %2968 = vmatpush1.bf16.msra.mxu0 %v8286_v10  ;;  %v900_v30 = vpack.c.bf16 %v9477_v22, %v9474_v21  ;;  %v1009_v27 = vpack.c.bf16 %v9267_v54, %v9260_v41  ;;  %v9484_v10 = vld [vmem:[%s9031_s7 + $0x189] sm:$0xff] }
 0x213   : > { %2969 = vmatprep.subr.bf16.mxu0 %v8707_v0  ;;  %v901_v40 = vpack.c.bf16 %v9487_v31, %v9484_v10  ;;  %v9497_v41 = vld [vmem:[%s9031_s7 + $0x1a9] sm:$0xff] }
 0x216   : > { %2970 = vmatpush1.bf16.msra.mxu0 %v8287_v60  ;;  %v1012_v60 = vpack.c.bf16 %v9297_v25, %v9290_v16  ;;  %v9527_v16 = vld [vmem:[%s9031_s7 + $0x1e9] sm:$0xff]  ;;  %v6545_v25 = vld [vmem:[%s9031_s7 + $0x1f2] sm:$0xff] }
 0x217   : > { %7551 = vmatprep.subr.bf16.mxu0 %v11360_v58 }
 0x219   : > { %2787 = vmatmul.mubr.bf16.gmra.mrb[32].mxu0 %v892_v59  ;;  %v1010_v59 = vpack.c.bf16 %v9277_v1, %v9270_v55  ;;  %v9504_v55 = vld [vmem:[%s9031_s7 + $0x1b1] sm:$0xff]  ;;  %v9507_v1 = vld [vmem:[%s9031_s7 + $0x1c1] sm:$0xff] }
 0x21a   : > { %2794 = vmatprep.mubr.bf16.mxu0 %v1001_v29  ;;  %v9494_v29 = vld [vmem:[%s9031_s7 + $0x1a1] sm:$0xff] }
 0x21b   : > { %v902_v54 = vpack.c.bf16 %v9497_v41, %v9494_v29 }
 0x221   : > { %2795 = vmatmul.mubr.bf16.gmra.mrb[36].mxu0 %v893_v32  ;;  %v1011_v32 = vpack.c.bf16 %v9287_v15, %v9280_v2  ;;  %v9517_v2 = vld [vmem:[%s9031_s7 + $0x1d1] sm:$0xff] }
 0x222   : > { %2802 = vmatprep.mubr.bf16.mxu0 %v1002_v33  ;;  %v903_v33 = vpack.c.bf16 %v9507_v1, %v9504_v55  ;;  %v6544_v15 = vld [vmem:[%s9031_s7 + $0x1ea] sm:$0xff] }
 0x229   : > { %2803 = vmatmul.mubr.bf16.gmra.mrb[40].mxu0 %v894_v4  ;;  %v9514_v4 = vld [vmem:[%s9031_s7 + $0x1c9] sm:$0xff] }
 0x22a   : > { %2810 = vmatprep.mubr.bf16.mxu0 %v1003_v38  ;;  %v904_v38 = vpack.c.bf16 %v9517_v2, %v9514_v4 }
 0x231   : > { %2811 = vmatmul.mubr.bf16.gmra.mrb[44].mxu0 %v895_v39  ;;  %v1013_v39 = vpack.c.bf16 %v6544_v15, %v9300_v26  ;;  %v9534_v26 = vld [vmem:[%s9031_s7 + $0x1f1] sm:$0xff] }
 0x232   : > { %2818 = vmatprep.mubr.bf16.mxu0 %v1004_v46  ;;  %v9524_v46 = vld [vmem:[%s9031_s7 + $0x1e1] sm:$0xff] }
 0x239   : > { %2819 = vmatmul.mubr.bf16.gmra.mrb[48].mxu0 %v896_v5  ;;  %v6546_v5 = vld [vmem:[%s9031_s7 + $0x202] sm:$0xff] }
 0x23a   : > { %2826 = vmatprep.mubr.bf16.mxu0 %v1005_v12  ;;  %v905_v12 = vpack.c.bf16 %v9527_v16, %v9524_v46 }
 0x241   : > { %2827 = vmatmul.mubr.bf16.gmra.mrb[52].mxu0 %v897_v57  ;;  %v1014_v57 = vpack.c.bf16 %v6546_v5, %v6545_v25  ;;  %v9560_v25 = vld [vmem:[%s9031_s7 + $0x229] sm:$0xff]  ;;  %v6551_v5 = vld [vmem:[%s9031_s7 + $0x232] sm:$0xff] }
 0x242   : > { %2834 = vmatprep.mubr.bf16.mxu0 %v1006_v62  ;;  %v8292_v62 = vld [vmem:[#allocation7] sm:$0xff]  }
 0x243   : > { %2193 = vmatpush1.bf16.msra.mxu1 %v8292_v62 }
 0x244   : > { %2194 = vmatprep.subr.bf16.mxu1 %v8707_v0 }
 0x249   : > { %2835 = vmatmul.mubr.bf16.gmra.mrb[56].mxu0 %v898_v11  ;;  %v9537_v11 = vld [vmem:[%s9031_s7 + $0x201] sm:$0xff] }
 0x24a   : > { %2842 = vmatprep.mubr.bf16.mxu0 %v1007_v13  ;;  %v6547_v13 = vld [vmem:[%s9031_s7 + $0x20a] sm:$0xff] }
 0x251   : > { %2843 = vmatmul.mubr.bf16.gmra.mrb[60].mxu0 %v899_v19  ;;  %v6548_v19 = vld [vmem:[%s9031_s7 + $0x212] sm:$0xff] }
 0x252   : > { %2850 = vmatprep.mubr.bf16.mxu0 %v1008_v51  ;;  %v906_v51 = vpack.c.bf16 %v9537_v11, %v9534_v26 }
 0x259   : > { %2851 = vmatmul.mubr.bf16.gmra.mrb[64].mxu0 %v900_v30  ;;  %v1015_v30 = vpack.c.bf16 %v6548_v19, %v6547_v13  ;;  %v8297_v19 = vld [vmem:[#allocation7 + $0x28] sm:$0xff]  }
 0x25a   : > { %2858 = vmatprep.mubr.bf16.mxu0 %v1009_v27  ;;  %v8293_v27 = vld [vmem:[#allocation7 + $0x8] sm:$0xff]  }
 0x25b   : > { %2195 = vmatpush1.bf16.msra.mxu1 %v8293_v27  ;;  %v6553_v27 = vld [vmem:[%s9031_s7 + $0x24a] sm:$0xff] }
 0x25c   : > { %2196 = vmatprep.subr.bf16.mxu1 %v8707_v0 }
 0x261   : > { %2859 = vmatmul.mubr.bf16.gmra.mrb[68].mxu0 %v901_v40  ;;  %v9545_v40 = vld [vmem:[%s9031_s7 + $0x209] sm:$0xff] }
 0x262   : > { %2866 = vmatprep.mubr.bf16.mxu0 %v1010_v59  ;;  %v9548_v59 = vld [vmem:[%s9031_s7 + $0x211] sm:$0xff] }
 0x269   : > { %2867 = vmatmul.mubr.bf16.gmra.mrb[72].mxu0 %v902_v54  ;;  %v6549_v54 = vld [vmem:[%s9031_s7 + $0x222] sm:$0xff] }
 0x26a   : > { %2874 = vmatprep.mubr.bf16.mxu0 %v1011_v32  ;;  %v6550_v32 = vld [vmem:[%s9031_s7 + $0x22a] sm:$0xff] }
 0x26b   : > { %v1016_v15 = vpack.c.bf16 %v6550_v32, %v6549_v54  ;;  %v6554_v54 = vld [vmem:[%s9031_s7 + $0x252] sm:$0xff] }
 0x26c   : > { %v8299_v32 = vld [vmem:[#allocation7 + $0x30] sm:$0xff]  }
 0x271   : > { %2875 = vmatmul.mubr.bf16.gmra.mrb[76].mxu0 %v903_v33  ;;  %v8294_v33 = vld [vmem:[#allocation7 + $0x10] sm:$0xff]  }
 0x272   : > { %2882 = vmatprep.mubr.bf16.mxu0 %v1012_v60  ;;  %v907_v60 = vpack.c.bf16 %v9548_v59, %v9545_v40  ;;  %2197 = vmatpush1.bf16.msra.mxu1 %v8294_v33 }
 0x273   : > { %2198 = vmatprep.subr.bf16.mxu1 %v8707_v0 }
 0x279   : > { %2883 = vmatmul.mubr.bf16.gmra.mrb[80].mxu0 %v904_v38  ;;  %v8295_v38 = vld [vmem:[#allocation7 + $0x18] sm:$0xff]  }
 0x27a   : > { %2890 = vmatprep.mubr.bf16.mxu0 %v1013_v39  ;;  %v9557_v39 = vld [vmem:[%s9031_s7 + $0x221] sm:$0xff]  ;;  %2199 = vmatpush1.bf16.msra.mxu1 %v8295_v38  ;;  %v9581_v38 = vld [vmem:[%s9031_s7 + $0x249] sm:$0xff] }
 0x27b   : > { %2200 = vmatprep.subr.bf16.mxu1 %v8707_v0  ;;  %v908_v62 = vpack.c.bf16 %v9560_v25, %v9557_v39 }
 0x281   : > { %2891 = vmatmul.mubr.bf16.gmra.mrb[84].mxu0 %v905_v12  ;;  %v6552_v12 = vld [vmem:[%s9031_s7 + $0x242] sm:$0xff] }
 0x282   : > { %2898 = vmatprep.mubr.bf16.mxu0 %v1014_v57  ;;  %v8296_v57 = vld [vmem:[#allocation7 + $0x20] sm:$0xff]   ;;  %v1017_v13 = vpack.c.bf16 %v6552_v12, %v6551_v5  ;;  %v9584_v5 = vld [vmem:[%s9031_s7 + $0x251] sm:$0xff] }
 0x283   : > { %2201 = vmatpush1.bf16.msra.mxu1 %v8296_v57  ;;  %v8301_v12 = vld [vmem:[#allocation7 + $0x40] sm:$0xff]   ;;  %v910_v57 = vpack.c.bf16 %v9584_v5, %v9581_v38 }
 0x284   : > { %2202 = vmatprep.subr.bf16.mxu1 %v8707_v0 }
 0x287   : > { %2203 = vmatpush1.bf16.msra.mxu1 %v8297_v19  ;;  %v6555_v19 = vld [vmem:[%s9031_s7 + $0x40] sm:$0xff] }
 0x288   : > { %2204 = vmatprep.subr.bf16.mxu1 %v8707_v0 }
 0x289   : > { %2899 = vmatmul.mubr.bf16.gmra.mrb[88].mxu0 %v906_v51  ;;  %v9569_v51 = vld [vmem:[%s9031_s7 + $0x231] sm:$0xff] }
 0x28a   : > { %2906 = vmatprep.mubr.bf16.mxu0 %v1015_v30  ;;  %v9572_v30 = vld [vmem:[%s9031_s7 + $0x241] sm:$0xff] }
 0x28b   : > { %v909_v33 = vpack.c.bf16 %v9572_v30, %v9569_v51  ;;  %2205 = vmatpush1.bf16.msra.mxu1 %v8299_v32 }
 0x28c   : > { %2206 = vmatprep.subr.bf16.mxu1 %v8707_v0 }
 0x291   : > { %2907 = vmatmul.mubr.bf16.gmra.mrb[96].mxu0 %v907_v60  ;;  %v1018_v60 = vpack.c.bf16 %v6554_v54, %v6553_v27  ;;  %v6556_v27 = vld [vmem:[%s9031_s7 + $0x48] sm:$0xff]  ;;  %v8303_v54 = vld [vmem:[#allocation7 + $0x50] sm:$0xff]  }
 0x292   : > { %2914 = vmatprep.mubr.bf16.mxu0 %v1016_v15  ;;  %v8300_v15 = vld [vmem:[#allocation7 + $0x38] sm:$0xff]  }
 0x293   : > { %2207 = vmatpush1.bf16.msra.mxu1 %v8300_v15 }
 0x294   : > { %2208 = vmatprep.subr.bf16.mxu1 %v8707_v0 }
 0x297   : > { %2209 = vmatpush1.bf16.msra.mxu1 %v8301_v12 }
 0x298   : > { %2210 = vmatprep.subr.bf16.mxu1 %v8707_v0 }
 0x299   : > { %2915 = vmatmul.mubr.bf16.gmra.mrb[100].mxu0 %v908_v62  ;;  %v1211_v62 = vpack.c.bf16 %v9320_v36, %v9312_v56  ;;  %v8288_v56 = vld [vmem:[#allocation7 + $0x200] sm:$0xff]   ;;  %v1212_v36 = vpack.c.bf16 %v9332_v8, %v9323_v43  ;;  %v1213_v8 = vpack.c.bf16 %v9344_v18, %v9335_v9  ;;  %v8308_v9 = vld [vmem:[#allocation7 + $0x70] sm:$0xff]  }
 0x29a   : > { %2922 = vmatprep.mubr.bf16.mxu0 %v1017_v13  ;;  %v8302_v13 = vld [vmem:[#allocation7 + $0x48] sm:$0xff]  }
 0x29b   : > { %2211 = vmatpush1.bf16.msra.mxu1 %v8302_v13  ;;  %v6558_v13 = vld [vmem:[%s9031_s7 + $0x60] sm:$0xff] }
 0x29c   : > { %2212 = vmatprep.subr.bf16.mxu1 %v8707_v0 }
 0x29f   : > { %2213 = vmatpush1.bf16.msra.mxu1 %v8303_v54  ;;  %v8307_v54 = vld [vmem:[#allocation7 + $0x68] sm:$0xff]  }
 0x2a0   : > { %2214 = vmatprep.subr.bf16.mxu1 %v8707_v0 }
 0x2a1   : > { %2923 = vmatmul.mubr.bf16.gmra.mrb[104].mxu0 %v909_v33 }
 0x2a2   : > { %2930 = vmatprep.mubr.bf16.mxu0 %v1018_v60  ;;  %v9595_v60 = vpack.c.bf16 %v6556_v27, %v6555_v19  ;;  %v8305_v19 = vld [vmem:[#allocation7 + $0x60] sm:$0xff]   ;;  %v8290_v27 = vld [vmem:[#allocation7 + $0x210] sm:$0xff]  }
 0x2a9   : > { %2931 = vmatmul.mubr.bf16.gmra.mrb[108].mxu0 %v910_v57  ;;  %v8304_v57 = vld [vmem:[#allocation7 + $0x58] sm:$0xff]  }
 0x2aa   : > { %2971 = vmatprep.mubr.bf16.mxu0 %v1211_v62  ;;  %v6557_v62 = vld [vmem:[%s9031_s7 + $0x50] sm:$0xff]  ;;  %2215 = vmatpush1.bf16.msra.mxu1 %v8304_v57  ;;  %v6561_v57 = vld [vmem:[%s9031_s7 + $0x80] sm:$0xff] }
 0x2ab   : > { %2216 = vmatprep.subr.bf16.mxu1 %v8707_v0  ;;  %v9605_v43 = vpack.c.bf16 %v6558_v13, %v6557_v62  ;;  %v6562_v62 = vld [vmem:[%s9031_s7 + $0x88] sm:$0xff]  ;;  %v8309_v13 = vld [vmem:[#allocation7 + $0x78] sm:$0xff]  }
 0x2ac   : > { %v2724_v32 = vpop.f32.mrb[92].mxu0 }
 0x2ad   : > { %v2726_v33 = vpop.f32.mrb[93].mxu0  ;;  %v8289_v32 = vld [vmem:[#allocation7 + $0x208] sm:$0xff]  }
 0x2ae   : > { %v2727_v15 = vpop.f32.mrb[94].mxu0  ;;  %2217 = vmatpush1.bf16.msra.mxu1 %v8305_v19  ;;  %v6559_v33 = vld [vmem:[%s9031_s7 + $0x68] sm:$0xff] }
 0x2af   : > { %v2729_v12 = vpop.f32.mrb[95].mxu0  ;;  %2218 = vmatprep.subr.bf16.mxu1 %v8707_v0  ;;  %v6560_v15 = vld [vmem:[%s9031_s7 + $0x70] sm:$0xff] }
 0x2b0   : > { %v9616_v18 = vpack.c.bf16 %v6560_v15, %v6559_v33  ;;  %v8298_v12 = vld [vmem:[#allocation7 + $0x220] sm:$0xff]   ;;  %v504_v19 = vld [vmem:[%s9031_s7 + $0x9] sm:$0xff]  ;;  %v9631_v33 = vpack.c.bf16 %v6562_v62, %v6561_v57  ;;  %v1215_v15 = vpack.c.bf16 %v9368_v28, %v9359_v48 }
 0x2b1   : > { %2972 = vmatmul.mubr.bf16.vlgmr.msra.gmra.mrb[112].mxu0 %v9595_v60  ;;  %v6563_v57 = vld [vmem:[%s9031_s7 + $0x90] sm:$0xff]  ;;  %v6564_v62 = vld [vmem:[%s9031_s7 + $0xa0] sm:$0xff] }
 0x2b2   : > { %7552 = vmatpush3.bf16.msra.mxu0 %v8288_v56  ;;  %2979 = vmatprep.mubr.bf16.mxu0 %v1212_v36  ;;  %v8291_v56 = vld [vmem:[#allocation7 + $0x218] sm:$0xff]   ;;  %v1214_v36 = vpack.c.bf16 %v9356_v47, %v9347_v23  ;;  %v395_v47 = vld [vmem:[%s9031_s7] sm:$0xff] }
 0x2b3   : > { %7553 = vmatprep.subr.bf16.mxu0 %v11360_v58  ;;  %2219 = vmatpush1.bf16.msra.mxu1 %v8307_v54  ;;  %v398_v48 = vld [vmem:[%s9031_s7 + $0x20] sm:$0xff] }
 0x2b4   : > { %2220 = vmatprep.subr.bf16.mxu1 %v8707_v0 }
 0x2b6   : > { %7554 = vmatpush3.bf16.msra.mxu0 %v8289_v32  ;;  %v503_v32 = vld [vmem:[%s9031_s7 + $0x1] sm:$0xff] }
 0x2b7   : > { %7555 = vmatprep.subr.bf16.mxu0 %v11360_v58  ;;  %2221 = vmatpush1.bf16.msra.mxu1 %v8308_v9  ;;  %v557_v23 = vpack.c.bf16 %v504_v19, %v503_v32  ;;  %v505_v9 = vld [vmem:[%s9031_s7 + $0x11] sm:$0xff]  ;;  %v8385_v32 = vld [vmem:[#allocation7 + $0x88] sm:$0xff]   ;;  %v9645_v19 = vpack.c.bf16 %v6564_v62, %v6563_v57  ;;  %v1217_v62 = vpack.c.bf16 %v9392_v17, %v9383_v44 }
 0x2b8   : > { %2222 = vmatprep.subr.bf16.mxu1 %v8707_v0  ;;  %v1218_v17 = vpack.c.bf16 %v9403_v34, %v9395_v52  ;;  %v1219_v34 = vpack.c.bf16 %v9413_v37, %v9406_v24  ;;  %v8393_v24 = vld [vmem:[#allocation7 + $0xc8] sm:$0xff]  }
 0x2b9   : > { %2980 = vmatmul.mubr.bf16.gmra.mrb[4].mxu0 %v9605_v43  ;;  %2224 = vmatprep.mubr.bf16.mxu1 %v557_v23  ;;  %v8386_v23 = vld [vmem:[#allocation7 + $0x90] sm:$0xff]  }
 0x2ba   : > { %2987 = vmatprep.mubr.bf16.mxu0 %v1213_v8  ;;  %7556 = vmatpush3.bf16.msra.mxu0 %v8290_v27  ;;  %v8306_v8 = vld [vmem:[#allocation7 + $0x228] sm:$0xff]  }
 0x2bb   : > { %7557 = vmatprep.subr.bf16.mxu0 %v11360_v58  ;;  %v396_v27 = vld [vmem:[%s9031_s7 + $0x8] sm:$0xff]  ;;  %2223 = vmatpush1.bf16.msra.mxu1 %v8309_v13 }
 0x2bc   : > { %v449_v54 = vpack.c.bf16 %v396_v27, %v395_v47  ;;  %7723 = vmatprep.subr.bf16.mxu1 %v8707_v0  ;;  %v6565_v47 = vld [vmem:[%s9031_s7 + $0xa8] sm:$0xff]  ;;  %v8310_v27 = vld [vmem:[#allocation7 + $0x230] sm:$0xff]  }
 0x2be   : > { %7558 = vmatpush3.bf16.msra.mxu0 %v8291_v56  ;;  %2225 = vmatmul.mubr.bf16.vlgmr.msra.gmra.mrb[0].mxu1 %v449_v54  ;;  %v8384_v56 = vld [vmem:[#allocation7 + $0x80] sm:$0xff]   ;;  %v507_v54 = vld [vmem:[%s9031_s7 + $0x29] sm:$0xff] }
 0x2bf   : > { %7559 = vmatprep.subr.bf16.mxu0 %v11360_v58  ;;  %7739 = vmatpush1.bf16.msra.mxu1 %v8384_v56  ;;  %v6566_v56 = vld [vmem:[%s9031_s7 + $0xb0] sm:$0xff] }
 0x2c0   : > { %7724 = vmatprep.subr.bf16.mxu1 %v8707_v0  ;;  %v9658_v57 = vpack.c.bf16 %v6566_v56, %v6565_v47  ;;  %v8389_v47 = vld [vmem:[#allocation7 + $0xa8] sm:$0xff]   ;;  %v6569_v56 = vld [vmem:[%s9031_s7 + $0xd0] sm:$0xff] }
 0x2c1   : > { %2988 = vmatmul.mubr.bf16.gmra.mrb[8].mxu0 %v9616_v18 }
 0x2c2   : > { %2995 = vmatprep.mubr.bf16.mxu0 %v1214_v36  ;;  %7560 = vmatpush3.bf16.msra.mxu0 %v8298_v12  ;;  %v506_v36 = vld [vmem:[%s9031_s7 + $0x21] sm:$0xff]  ;;  %v397_v12 = vld [vmem:[%s9031_s7 + $0x10] sm:$0xff] }
 0x2c3   : > { %7561 = vmatprep.subr.bf16.mxu0 %v11360_v58  ;;  %v558_v13 = vpack.c.bf16 %v506_v36, %v505_v9  ;;  %v450_v28 = vpack.c.bf16 %v398_v48, %v397_v12  ;;  %7740 = vmatpush1.bf16.msra.mxu1 %v8385_v32  ;;  %v399_v36 = vld [vmem:[%s9031_s7 + $0x28] sm:$0xff]  ;;  %v400_v12 = vld [vmem:[%s9031_s7 + $0x30] sm:$0xff]  ;;  %v6567_v32 = vld [vmem:[%s9031_s7 + $0xc0] sm:$0xff] }
 0x2c4   : > { %7725 = vmatprep.subr.bf16.mxu1 %v8707_v0  ;;  %v509_v48 = vld [vmem:[%s9031_s7 + $0x41] sm:$0xff] }
 0x2c5   : > { %2232 = vmatprep.mubr.bf16.mxu1 %v558_v13  ;;  %v8388_v13 = vld [vmem:[#allocation7 + $0xa0] sm:$0xff]  }
 0x2c6   : > { %7562 = vmatpush3.bf16.msra.mxu0 %v8306_v8  ;;  %v1216_v8 = vpack.c.bf16 %v9380_v7, %v9371_v35  ;;  %2233 = vmatmul.mubr.bf16.gmra.mrb[4].mxu1 %v450_v28  ;;  %v451_v35 = vpack.c.bf16 %v400_v12, %v399_v36  ;;  %v8387_v7 = vld [vmem:[#allocation7 + $0x98] sm:$0xff]   ;;  %v510_v28 = vld [vmem:[%s9031_s7 + $0x49] sm:$0xff] }
 0x2c7   : > { %7563 = vmatprep.subr.bf16.mxu0 %v11360_v58  ;;  %7741 = vmatpush1.bf16.msra.mxu1 %v8386_v23  ;;  %v560_v23 = vpack.c.bf16 %v510_v28, %v509_v48  ;;  %v8391_v12 = vld [vmem:[#allocation7 + $0xb8] sm:$0xff]   ;;  %v6572_v48 = vld [vmem:[%s9031_s7 + $0xf0] sm:$0xff] }
 0x2c8   : > { %7726 = vmatprep.subr.bf16.mxu1 %v8707_v0 }
 0x2c9   : > { %2996 = vmatmul.mubr.bf16.gmra.mrb[12].mxu0 %v9631_v33 }
 0x2ca   : > { %3003 = vmatprep.mubr.bf16.mxu0 %v1215_v15  ;;  %v508_v15 = vld [vmem:[%s9031_s7 + $0x31] sm:$0xff]  ;;  %7564 = vmatpush3.bf16.msra.mxu0 %v8310_v27 }
 0x2cb   : > { %v559_v9 = vpack.c.bf16 %v508_v15, %v507_v54  ;;  %7742 = vmatpush1.bf16.msra.mxu1 %v8387_v7  ;;  %7565 = vmatprep.subr.bf16.mxu0 %v11360_v58  ;;  %v8390_v27 = vld [vmem:[#allocation7 + $0xb0] sm:$0xff]   ;;  %v512_v15 = vld [vmem:[%s9031_s7 + $0x61] sm:$0xff] }
 0x2cc   : > { %7727 = vmatprep.subr.bf16.mxu1 %v8707_v0  ;;  %v511_v54 = vld [vmem:[%s9031_s7 + $0x51] sm:$0xff] }
 0x2cd   : > { %2240 = vmatprep.mubr.bf16.mxu1 %v559_v9  ;;  %v6570_v9 = vld [vmem:[%s9031_s7 + $0xe0] sm:$0xff]  ;;  %v561_v36 = vpack.c.bf16 %v512_v15, %v511_v54  ;;  %v514_v7 = vld [vmem:[%s9031_s7 + $0x71] sm:$0xff] }
 0x2ce   : > { %2241 = vmatmul.mubr.bf16.gmra.mrb[8].mxu1 %v451_v35  ;;  %v9682_v52 = vpack.c.bf16 %v6570_v9, %v6569_v56  ;;  %v513_v35 = vld [vmem:[%s9031_s7 + $0x69] sm:$0xff]  ;;  %v8395_v54 = vld [vmem:[#allocation7 + $0xd8] sm:$0xff]   ;;  %v6576_v56 = vld [vmem:[%s9031_s7 + $0x120] sm:$0xff] }
 0x2cf   : > { %7743 = vmatpush1.bf16.msra.mxu1 %v8388_v13  ;;  %2248 = vmatprep.mubr.bf16.mxu1 %v560_v23  ;;  %v6571_v13 = vld [vmem:[%s9031_s7 + $0xe8] sm:$0xff]  ;;  %v562_v28 = vpack.c.bf16 %v514_v7, %v513_v35  ;;  %v6575_v15 = vld [vmem:[%s9031_s7 + $0x110] sm:$0xff] }
 0x2d0   : > { %7728 = vmatprep.subr.bf16.mxu1 %v8707_v0  ;;  %v9694_v37 = vpack.c.bf16 %v6572_v48, %v6571_v13  ;;  %v516_v23 = vld [vmem:[%s9031_s7 + $0x89] sm:$0xff]  ;;  %v517_v9 = vld [vmem:[%s9031_s7 + $0x91] sm:$0xff] }
 0x2d1   : > { %3004 = vmatmul.mubr.bf16.gmra.mrb[16].mxu0 %v9645_v19  ;;  %v6578_v35 = vld [vmem:[%s9031_s7 + $0x130] sm:$0xff]  ;;  %v8399_v48 = vld [vmem:[#allocation7 + $0xf8] sm:$0xff]  }
 0x2d2   : > { %3011 = vmatprep.mubr.bf16.mxu0 %v1216_v8  ;;  %v6568_v8 = vld [vmem:[%s9031_s7 + $0xc8] sm:$0xff] }
 0x2d3   : > { %7744 = vmatpush1.bf16.msra.mxu1 %v8389_v47  ;;  %v9670_v44 = vpack.c.bf16 %v6568_v8, %v6567_v32  ;;  %v8394_v32 = vld [vmem:[#allocation7 + $0xd0] sm:$0xff]   ;;  %v515_v8 = vld [vmem:[%s9031_s7 + $0x81] sm:$0xff] }
 0x2d4   : > { %7729 = vmatprep.subr.bf16.mxu1 %v8707_v0  ;;  %v6573_v47 = vld [vmem:[%s9031_s7 + $0x100] sm:$0xff]  ;;  %v519_v7 = vld [vmem:[%s9031_s7 + $0xa9] sm:$0xff] }
 0x2d6   : > { %2249 = vmatmul.mubr.bf16.gmra.mrb[12].mxu1 %v9595_v60  ;;  %v8392_v60 = vld [vmem:[#allocation7 + $0xc0] sm:$0xff]  }
 0x2d7   : > { %7745 = vmatpush1.bf16.msra.mxu1 %v8390_v27  ;;  %2256 = vmatprep.mubr.bf16.mxu1 %v561_v36  ;;  %v563_v27 = vpack.c.bf16 %v516_v23, %v515_v8  ;;  %v518_v36 = vld [vmem:[%s9031_s7 + $0xa1] sm:$0xff]  ;;  %v6581_v8 = vld [vmem:[%s9031_s7 + $0x150] sm:$0xff] }
 0x2d8   : > { %7730 = vmatprep.subr.bf16.mxu1 %v8707_v0  ;;  %v6582_v23 = vld [vmem:[%s9031_s7 + $0x160] sm:$0xff] }
 0x2d9   : > { %3012 = vmatmul.mubr.bf16.gmra.mrb[20].mxu0 %v9658_v57 }
 0x2da   : > { %3019 = vmatprep.mubr.bf16.mxu0 %v1217_v62  ;;  %v8311_v62 = vld [vmem:[#allocation7 + $0x238] sm:$0xff]  }
 0x2db   : > { %7746 = vmatpush1.bf16.msra.mxu1 %v8391_v12  ;;  %7566 = vmatpush3.bf16.msra.mxu0 %v8311_v62  ;;  %v564_v12 = vpack.c.bf16 %v518_v36, %v517_v9  ;;  %v520_v62 = vld [vmem:[%s9031_s7 + $0xb1] sm:$0xff] }
 0x2dc   : > { %7731 = vmatprep.subr.bf16.mxu1 %v8707_v0  ;;  %v565_v13 = vpack.c.bf16 %v520_v62, %v519_v7 }
 0x2de   : > { %2257 = vmatmul.mubr.bf16.gmra.mrb[16].mxu1 %v9605_v43  ;;  %v1220_v43 = vpack.c.bf16 %v9423_v45, %v9416_v42  ;;  %v1221_v45 = vpack.c.bf16 %v9433_v49, %v9426_v50  ;;  %v9718_v50 = vpack.c.bf16 %v6576_v56, %v6575_v15  ;;  %v1222_v49 = vpack.c.bf16 %v9444_v61, %v9436_v53  ;;  %v521_v61 = vld [vmem:[%s9031_s7 + $0xc1] sm:$0xff] }
 0x2df   : > { %7747 = vmatpush1.bf16.msra.mxu1 %v8392_v60  ;;  %2264 = vmatprep.mubr.bf16.mxu1 %v562_v28  ;;  %v6577_v60 = vld [vmem:[%s9031_s7 + $0x128] sm:$0xff]  ;;  %v6579_v28 = vld [vmem:[%s9031_s7 + $0x140] sm:$0xff] }
 0x2e0   : > { %7732 = vmatprep.subr.bf16.mxu1 %v8707_v0  ;;  %v9729_v53 = vpack.c.bf16 %v6578_v35, %v6577_v60  ;;  %v6585_v15 = vld [vmem:[%s9031_s7 + $0x180] sm:$0xff]  ;;  %v6586_v56 = vld [vmem:[%s9031_s7 + $0x188] sm:$0xff]  ;;  %v6590_v35 = vld [vmem:[%s9031_s7 + $0x1b0] sm:$0xff] }
 0x2e1   : > { %3020 = vmatmul.mubr.bf16.gmra.mrb[24].mxu0 %v9670_v44  ;;  %v9769_v36 = vpack.c.bf16 %v6586_v56, %v6585_v15  ;;  %v6589_v60 = vld [vmem:[%s9031_s7 + $0x1a8] sm:$0xff] }
 0x2e2   : > { %3027 = vmatprep.mubr.bf16.mxu0 %v1218_v17  ;;  %v6574_v17 = vld [vmem:[%s9031_s7 + $0x108] sm:$0xff]  ;;  %v9789_v62 = vpack.c.bf16 %v6590_v35, %v6589_v60 }
 0x2e3   : > { %7748 = vmatpush1.bf16.msra.mxu1 %v8393_v24  ;;  %v9706_v42 = vpack.c.bf16 %v6574_v17, %v6573_v47  ;;  %v6580_v24 = vld [vmem:[%s9031_s7 + $0x148] sm:$0xff]  ;;  %v9749_v17 = vpack.c.bf16 %v6582_v23, %v6581_v8 }
 0x2e4   : > { %7733 = vmatprep.subr.bf16.mxu1 %v8707_v0  ;;  %v540_v23 = vld [vmem:[%s9031_s7 + $0x189] sm:$0xff] }
 0x2e5   : > { %v549_v35 = vld [vmem:[%s9031_s7 + $0x1e9] sm:$0xff] }
 0x2e6   : > { %2265 = vmatmul.mubr.bf16.gmra.mrb[20].mxu1 %v9616_v18  ;;  %v8396_v18 = vld [vmem:[#allocation7 + $0xe0] sm:$0xff]  }
 0x2e7   : > { %7749 = vmatpush1.bf16.msra.mxu1 %v8394_v32  ;;  %2272 = vmatprep.mubr.bf16.mxu1 %v563_v27  ;;  %v9739_v32 = vpack.c.bf16 %v6580_v24, %v6579_v28  ;;  %v6583_v27 = vld [vmem:[%s9031_s7 + $0x168] sm:$0xff]  ;;  %v6594_v28 = vld [vmem:[%s9031_s7 + $0x1e0] sm:$0xff] }
 0x2e8   : > { %7734 = vmatprep.subr.bf16.mxu1 %v8707_v0 }
 0x2e9   : > { %3028 = vmatmul.mubr.bf16.gmra.mrb[28].mxu0 %v9682_v52 }
 0x2ea   : > { %3035 = vmatprep.mubr.bf16.mxu0 %v1219_v34  ;;  %v8397_v34 = vld [vmem:[#allocation7 + $0xe8] sm:$0xff]  }
 0x2eb   : > { %7750 = vmatpush1.bf16.msra.mxu1 %v8395_v54  ;;  %v6584_v54 = vld [vmem:[%s9031_s7 + $0x170] sm:$0xff] }
 0x2ec   : > { %7735 = vmatprep.subr.bf16.mxu1 %v8707_v0 }
 0x2ee   : > { %2273 = vmatmul.mubr.bf16.gmra.mrb[24].mxu1 %v9631_v33  ;;  %v8398_v33 = vld [vmem:[#allocation7 + $0xf0] sm:$0xff]  }
 0x2ef   : > { %7751 = vmatpush1.bf16.msra.mxu1 %v8396_v18  ;;  %2280 = vmatprep.mubr.bf16.mxu1 %v564_v12  ;;  %v9759_v18 = vpack.c.bf16 %v6584_v54, %v6583_v27  ;;  %v6587_v12 = vld [vmem:[%s9031_s7 + $0x190] sm:$0xff]  ;;  %v9844_v54 = vld [vmem:[%s9031_s7 + $0x220] sm:$0xff] }
 0x2f0   : > { %7736 = vmatprep.subr.bf16.mxu1 %v8707_v0  ;;  %v9841_v27 = vld [vmem:[%s9031_s7 + $0x210] sm:$0xff] }
 0x2f1   : > { %3036 = vmatmul.mubr.bf16.gmra.mrb[32].mxu0 %v9694_v37 }
 0x2f2   : > { %3043 = vmatprep.mubr.bf16.mxu0 %v1220_v43 }
 0x2f3   : > { %7752 = vmatpush1.bf16.msra.mxu1 %v8397_v34  ;;  %v6588_v34 = vld [vmem:[%s9031_s7 + $0x1a0] sm:$0xff] }
 0x2f4   : > { %7737 = vmatprep.subr.bf16.mxu1 %v8707_v0 }
 0x2f6   : > { %2281 = vmatmul.mubr.bf16.gmra.mrb[28].mxu1 %v9645_v19  ;;  %v522_v19 = vld [vmem:[%s9031_s7 + $0xc9] sm:$0xff] }
 0x2f7   : > { %7753 = vmatpush1.bf16.msra.mxu1 %v8398_v33  ;;  %2288 = vmatprep.mubr.bf16.mxu1 %v565_v13  ;;  %v566_v43 = vpack.c.bf16 %v522_v19, %v521_v61  ;;  %v9779_v33 = vpack.c.bf16 %v6588_v34, %v6587_v12  ;;  %v6591_v13 = vld [vmem:[%s9031_s7 + $0x1c0] sm:$0xff]  ;;  %v6593_v19 = vld [vmem:[%s9031_s7 + $0x1d0] sm:$0xff] }
 0x2f8   : > { %7738 = vmatprep.subr.bf16.mxu1 %v8707_v0  ;;  %v1223_v0 = vpack.c.bf16 %v9454_v63, %v9447_v3  ;;  %v1224_v3 = vpack.c.bf16 %v9464_v20, %v9457_v6  ;;  %v523_v63 = vld [vmem:[%s9031_s7 + $0xd1] sm:$0xff]  ;;  %v1225_v6 = vpack.c.bf16 %v9474_v21, %v9467_v14  ;;  %v525_v20 = vld [vmem:[%s9031_s7 + $0xe9] sm:$0xff]  ;;  %v1226_v14 = vpack.c.bf16 %v9484_v10, %v9477_v22  ;;  %v527_v21 = vld [vmem:[%s9031_s7 + $0x101] sm:$0xff] }
 0x2f9   : > { %3044 = vmatmul.mubr.bf16.gmra.mrb[36].mxu0 %v9706_v42  ;;  %v1227_v22 = vpack.c.bf16 %v9494_v29, %v9487_v31  ;;  %v529_v10 = vld [vmem:[%s9031_s7 + $0x111] sm:$0xff]  ;;  %v1228_v31 = vpack.c.bf16 %v9504_v55, %v9497_v41  ;;  %v531_v29 = vld [vmem:[%s9031_s7 + $0x129] sm:$0xff]  ;;  %v1229_v41 = vpack.c.bf16 %v9514_v4, %v9507_v1  ;;  %v533_v55 = vld [vmem:[%s9031_s7 + $0x141] sm:$0xff]  ;;  %v1230_v1 = vpack.c.bf16 %v9524_v46, %v9517_v2 }
 0x2fa   : > { %3051 = vmatprep.mubr.bf16.mxu0 %v1221_v45  ;;  %v535_v4 = vld [vmem:[%s9031_s7 + $0x151] sm:$0xff]  ;;  %v1231_v2 = vpack.c.bf16 %v9534_v26, %v9527_v16  ;;  %v537_v46 = vld [vmem:[%s9031_s7 + $0x169] sm:$0xff]  ;;  %v1232_v16 = vpack.c.bf16 %v9545_v40, %v9537_v11  ;;  %v539_v26 = vld [vmem:[%s9031_s7 + $0x181] sm:$0xff]  ;;  %v1233_v11 = vpack.c.bf16 %v9557_v39, %v9548_v59  ;;  %v1234_v59 = vpack.c.bf16 %v9569_v51, %v9560_v25 }
 0x2fb   : > { %7754 = vmatpush1.bf16.msra.mxu1 %v8399_v48  ;;  %v6592_v48 = vld [vmem:[%s9031_s7 + $0x1c8] sm:$0xff]  ;;  %v541_v40 = vld [vmem:[%s9031_s7 + $0x191] sm:$0xff]  ;;  %v1235_v25 = vpack.c.bf16 %v9581_v38, %v9572_v30 }
 0x2fc   : > { %v9799_v61 = vpack.c.bf16 %v6592_v48, %v6591_v13  ;;  %v543_v39 = vld [vmem:[%s9031_s7 + $0x1a9] sm:$0xff]  ;;  %v545_v51 = vld [vmem:[%s9031_s7 + $0x1c1] sm:$0xff]  ;;  %v547_v12 = vld [vmem:[%s9031_s7 + $0x1d1] sm:$0xff] }
 0x2fd   : > { %v548_v34 = vld [vmem:[%s9031_s7 + $0x1e1] sm:$0xff] }
 0x2fe   : > { %2289 = vmatmul.mubr.bf16.gmra.mrb[32].mxu1 %v9658_v57  ;;  %v524_v57 = vld [vmem:[%s9031_s7 + $0xe1] sm:$0xff] }
 0x2ff   : > { %2296 = vmatprep.mubr.bf16.mxu1 %v566_v43  ;;  %v567_v47 = vpack.c.bf16 %v524_v57, %v523_v63  ;;  %v9809_v43 = vpack.c.bf16 %v6594_v28, %v6593_v19  ;;  %v6596_v63 = vld [vmem:[%s9031_s7 + $0x1f0] sm:$0xff] }
 0x300   : > { %v6664_v19 = vld [vmem:[%s9031_s7 + $0x4a] sm:$0xff] }
 0x301   : > { %3052 = vmatmul.mubr.bf16.gmra.mrb[40].mxu0 %v9718_v50 }
 0x302   : > { %3059 = vmatprep.mubr.bf16.mxu0 %v1222_v49 }
 0x306   : > { %2297 = vmatmul.mubr.bf16.gmra.mrb[36].mxu1 %v9670_v44  ;;  %v526_v44 = vld [vmem:[%s9031_s7 + $0xf1] sm:$0xff] }
 0x307   : > { %2304 = vmatprep.mubr.bf16.mxu1 %v567_v47  ;;  %v568_v45 = vpack.c.bf16 %v526_v44, %v525_v20  ;;  %v6597_v47 = vld [vmem:[%s9031_s7 + $0x200] sm:$0xff] }
 0x308   : > { %v542_v44 = vld [vmem:[%s9031_s7 + $0x1a1] sm:$0xff] }
 0x309   : > { %3060 = vmatmul.mubr.bf16.gmra.mrb[44].mxu0 %v9729_v53 }
 0x30a   : > { %3067 = vmatprep.mubr.bf16.mxu0 %v1223_v0 }
 0x30e   : > { %2305 = vmatmul.mubr.bf16.gmra.mrb[40].mxu1 %v9682_v52  ;;  %v528_v52 = vld [vmem:[%s9031_s7 + $0x109] sm:$0xff] }
 0x30f   : > { %2312 = vmatprep.mubr.bf16.mxu1 %v568_v45  ;;  %v569_v9 = vpack.c.bf16 %v528_v52, %v527_v21  ;;  %v576_v45 = vpack.c.bf16 %v542_v44, %v541_v40  ;;  %v9857_v21 = vld [vmem:[%s9031_s7 + $0x228] sm:$0xff]  ;;  %v9860_v52 = vld [vmem:[%s9031_s7 + $0x230] sm:$0xff] }
 0x310   : > { %v9864_v56 = vpack.c.bf16 %v9860_v52, %v9857_v21 }
 0x311   : > { %3068 = vmatmul.mubr.bf16.gmra.mrb[48].mxu0 %v9739_v32 }
 0x312   : > { %3075 = vmatprep.mubr.bf16.mxu0 %v1224_v3  ;;  %v6595_v3 = vld [vmem:[%s9031_s7 + $0x1e8] sm:$0xff] }
 0x313   : > { %v9819_v8 = vpack.c.bf16 %v6596_v63, %v6595_v3  ;;  %v553_v3 = vld [vmem:[%s9031_s7 + $0x211] sm:$0xff]  ;;  %v554_v63 = vld [vmem:[%s9031_s7 + $0x221] sm:$0xff] }
 0x316   : > { %2313 = vmatmul.mubr.bf16.gmra.mrb[44].mxu1 %v9694_v37  ;;  %v530_v37 = vld [vmem:[%s9031_s7 + $0x121] sm:$0xff] }
 0x317   : > { %2320 = vmatprep.mubr.bf16.mxu1 %v569_v9  ;;  %v570_v49 = vpack.c.bf16 %v530_v37, %v529_v10  ;;  %v546_v9 = vld [vmem:[%s9031_s7 + $0x1c9] sm:$0xff]  ;;  %v6660_v37 = vld [vmem:[%s9031_s7 + $0x261] sm:$0xff] }
 0x318   : > { %v578_v10 = vpack.c.bf16 %v546_v9, %v545_v51  ;;  %v1236_v38 = vpack.c.bf16 %v6660_v37, %v9584_v5 }
 0x319   : > { %3076 = vmatmul.mubr.bf16.gmra.mrb[52].mxu0 %v9749_v17 }
 0x31a   : > { %3083 = vmatprep.mubr.bf16.mxu0 %v1225_v6  ;;  %v575_v6 = vpack.c.bf16 %v540_v23, %v539_v26  ;;  %v555_v23 = vld [vmem:[%s9031_s7 + $0x229] sm:$0xff] }
 0x31e   : > { %2321 = vmatmul.mubr.bf16.gmra.mrb[48].mxu1 %v9706_v42  ;;  %v532_v42 = vld [vmem:[%s9031_s7 + $0x131] sm:$0xff] }
 0x31f   : > { %2328 = vmatprep.mubr.bf16.mxu1 %v570_v49  ;;  %v571_v7 = vpack.c.bf16 %v532_v42, %v531_v29  ;;  %v9886_v49 = vld [vmem:[%s9031_s7 + $0x250] sm:$0xff] }
 0x320   : > { %v6661_v29 = vld [vmem:[%s9031_s7 + $0x269] sm:$0xff]  ;;  %v6662_v42 = vld [vmem:[%s9031_s7 + $0x271] sm:$0xff] }
 0x321   : > { %3084 = vmatmul.mubr.bf16.gmra.mrb[56].mxu0 %v9759_v18  ;;  %v1237_v5 = vpack.c.bf16 %v6662_v42, %v6661_v29  ;;  %v6673_v29 = vld [vmem:[%s9031_s7 + $0xaa] sm:$0xff]  ;;  %v6674_v42 = vld [vmem:[%s9031_s7 + $0xb2] sm:$0xff] }
 0x322   : > { %3091 = vmatprep.mubr.bf16.mxu0 %v1226_v14  ;;  %v544_v14 = vld [vmem:[%s9031_s7 + $0x1b1] sm:$0xff] }
 0x323   : > { %v577_v15 = vpack.c.bf16 %v544_v14, %v543_v39  ;;  %v6669_v39 = vld [vmem:[%s9031_s7 + $0x82] sm:$0xff]  ;;  %v6670_v14 = vld [vmem:[%s9031_s7 + $0x8a] sm:$0xff] }
 0x324   : > { %v1322_v9 = vpack.c.bf16 %v6670_v14, %v6669_v39  ;;  %v8318_v14 = vld [vmem:[#allocation12 + $0x58] sm:$0xff]  }
 0x326   : > { %2329 = vmatmul.mubr.bf16.gmra.mrb[52].mxu1 %v9718_v50  ;;  %v534_v50 = vld [vmem:[%s9031_s7 + $0x149] sm:$0xff] }
 0x327   : > { %2336 = vmatprep.mubr.bf16.mxu1 %v571_v7  ;;  %v572_v0 = vpack.c.bf16 %v534_v50, %v533_v55  ;;  %v550_v7 = vld [vmem:[%s9031_s7 + $0x1f1] sm:$0xff] }
 0x328   : > { %v580_v55 = vpack.c.bf16 %v550_v7, %v549_v35  ;;  %v6677_v7 = vld [vmem:[%s9031_s7 + $0xd2] sm:$0xff] }
 0x329   : > { %3092 = vmatmul.mubr.bf16.gmra.mrb[60].mxu0 %v9769_v36 }
 0x32a   : > { %3099 = vmatprep.mubr.bf16.mxu0 %v1227_v22  ;;  %v9876_v22 = vld [vmem:[%s9031_s7 + $0x248] sm:$0xff] }
 0x32e   : > { %2337 = vmatmul.mubr.bf16.gmra.mrb[56].mxu1 %v9729_v53  ;;  %v536_v53 = vld [vmem:[%s9031_s7 + $0x161] sm:$0xff] }
 0x32f   : > { %2344 = vmatprep.mubr.bf16.mxu1 %v572_v0  ;;  %v573_v24 = vpack.c.bf16 %v536_v53, %v535_v4  ;;  %v552_v4 = vld [vmem:[%s9031_s7 + $0x209] sm:$0xff] }
 0x330   : > { %v6663_v53 = vld [vmem:[%s9031_s7 + $0x42] sm:$0xff] }
 0x331   : > { %3100 = vmatmul.mubr.bf16.gmra.mrb[64].mxu0 %v9779_v33 }
 0x332   : > { %3107 = vmatprep.mubr.bf16.mxu0 %v1228_v31  ;;  %v579_v31 = vpack.c.bf16 %v548_v34, %v547_v12 }
 0x336   : > { %2345 = vmatmul.mubr.bf16.gmra.mrb[60].mxu1 %v9739_v32  ;;  %v538_v32 = vld [vmem:[%s9031_s7 + $0x171] sm:$0xff] }
 0x337   : > { %2352 = vmatprep.mubr.bf16.mxu1 %v573_v24  ;;  %v574_v57 = vpack.c.bf16 %v538_v32, %v537_v46 }
 0x339   : > { %3108 = vmatmul.mubr.bf16.gmra.mrb[68].mxu0 %v9789_v62 }
 0x33a   : > { %3115 = vmatprep.mubr.bf16.mxu0 %v1229_v41  ;;  %v6608_v41 = vld [vmem:[%s9031_s7 + $0x270] sm:$0xff] }
 0x33e   : > { %2353 = vmatmul.mubr.bf16.gmra.mrb[64].mxu1 %v9749_v17  ;;  %v9829_v17 = vld [vmem:[%s9031_s7 + $0x208] sm:$0xff] }
 0x33f   : > { %2360 = vmatprep.mubr.bf16.mxu1 %v574_v57  ;;  %v9832_v20 = vpack.c.bf16 %v9829_v17, %v6597_v47  ;;  %v6665_v57 = vld [vmem:[%s9031_s7 + $0x52] sm:$0xff]  ;;  %v799_v44 = vpack.c.bf16 %v9841_v27, %v9829_v17  ;;  %v800_v17 = vpack.c.bf16 %v9857_v21, %v9844_v54 }
 0x340   : > { %v556_v47 = vld [vmem:[%s9031_s7 + $0x231] sm:$0xff] }
 0x341   : > { %3116 = vmatmul.mubr.bf16.gmra.mrb[72].mxu0 %v9799_v61  ;;  %v661_v21 = vld [vmem:[%s9031_s7 + $0x212] sm:$0xff] }
 0x342   : > { %3123 = vmatprep.mubr.bf16.mxu0 %v1230_v1  ;;  %v551_v1 = vld [vmem:[%s9031_s7 + $0x201] sm:$0xff] }
 0x343   : > { %v581_v28 = vpack.c.bf16 %v552_v4, %v551_v1  ;;  %v6681_v1 = vld [vmem:[%s9031_s7 + $0x102] sm:$0xff]  ;;  %v6682_v4 = vld [vmem:[%s9031_s7 + $0x10a] sm:$0xff] }
 0x346   : > { %2361 = vmatmul.mubr.bf16.gmra.mrb[68].mxu1 %v9759_v18  ;;  %v9848_v18 = vpack.c.bf16 %v9844_v54, %v9841_v27  ;;  %v659_v27 = vld [vmem:[%s9031_s7 + $0x202] sm:$0xff] }
 0x347   : > { %2368 = vmatprep.mubr.bf16.mxu1 %v575_v6  ;;  %v6667_v6 = vld [vmem:[%s9031_s7 + $0x6a] sm:$0xff] }
 0x349   : > { %3124 = vmatmul.mubr.bf16.gmra.mrb[76].mxu0 %v9809_v43 }
 0x34a   : > { %3131 = vmatprep.mubr.bf16.mxu0 %v1231_v2  ;;  %v1319_v2 = vpack.c.bf16 %v6664_v19, %v6663_v53 }
 0x34e   : > { %2369 = vmatmul.mubr.bf16.gmra.mrb[72].mxu1 %v9769_v36  ;;  %v9873_v36 = vld [vmem:[%s9031_s7 + $0x240] sm:$0xff] }
 0x34f   : > { %2376 = vmatprep.mubr.bf16.mxu1 %v576_v45  ;;  %v1127_v30 = vpack.c.bf16 %v9876_v22, %v9873_v36  ;;  %v657_v45 = vld [vmem:[%s9031_s7 + $0x1ea] sm:$0xff]  ;;  %v801_v54 = vpack.c.bf16 %v9873_v36, %v9860_v52  ;;  %v6675_v52 = vld [vmem:[%s9031_s7 + $0xc2] sm:$0xff] }
 0x350   : > { %v6676_v36 = vld [vmem:[%s9031_s7 + $0xca] sm:$0xff] }
 0x351   : > { %3132 = vmatmul.mubr.bf16.gmra.mrb[80].mxu0 %v9819_v8  ;;  %v1325_v35 = vpack.c.bf16 %v6676_v36, %v6675_v52  ;;  %v802_v52 = vpack.c.bf16 %v9886_v49, %v9876_v22  ;;  %v4050_v22 = vrot.slane %v11360_v58, 1 }
 0x352   : > { %3139 = vmatprep.mubr.bf16.mxu0 %v1232_v16  ;;  %v582_v16 = vpack.c.bf16 %v554_v63, %v553_v3 }
 0x356   : > { %2377 = vmatmul.mubr.bf16.gmra.mrb[76].mxu1 %v9779_v33  ;;  %v6606_v33 = vld [vmem:[%s9031_s7 + $0x260] sm:$0xff] }
 0x357   : > { %2384 = vmatprep.mubr.bf16.mxu1 %v577_v15  ;;  %v1128_v60 = vpack.c.bf16 %v6606_v33, %v9886_v49  ;;  %v6691_v49 = vld [vmem:[%s9031_s7 + $0x16a] sm:$0xff] }
 0x359   : > { %3140 = vmatmul.mubr.bf16.gmra.mrb[84].mxu0 %v9832_v20 }
 0x35a   : > { %3147 = vmatprep.mubr.bf16.mxu0 %v1233_v11  ;;  %v583_v11 = vpack.c.bf16 %v556_v47, %v555_v23  ;;  %v8314_v23 = vld [vmem:[#allocation12 + $0x48] sm:$0xff]  }
 0x35b   : > { %v8315_v47 = vld [vmem:[#allocation12 + $0x8] sm:$0xff]  }
 0x35e   : > { %2385 = vmatmul.mubr.bf16.gmra.mrb[80].mxu1 %v9789_v62  ;;  %v6607_v62 = vld [vmem:[%s9031_s7 + $0x268] sm:$0xff] }
 0x35f   : > { %2392 = vmatprep.mubr.bf16.mxu1 %v578_v10  ;;  %v1129_v48 = vpack.c.bf16 %v6608_v41, %v6607_v62  ;;  %v660_v10 = vld [vmem:[%s9031_s7 + $0x20a] sm:$0xff]  ;;  %v6678_v62 = vld [vmem:[%s9031_s7 + $0xe2] sm:$0xff] }
 0x360   : > { %v9938_v12 = vpack.c.bf16 %v660_v10, %v659_v27  ;;  %v1326_v41 = vpack.c.bf16 %v6678_v62, %v6677_v7  ;;  %v8320_v10 = vld [vmem:[#allocation12 + $0x60] sm:$0xff]   ;;  %v8324_v7 = vld [vmem:[#allocation12 + $0x70] sm:$0xff]  }
 0x361   : > { %3148 = vmatmul.mubr.bf16.gmra.mrb[88].mxu0 %v9848_v18 }
 0x362   : > { %3155 = vmatprep.mubr.bf16.mxu0 %v1234_v59 }
 0x366   : > { %2393 = vmatmul.mubr.bf16.gmra.mrb[84].mxu1 %v9799_v61 }
 0x367   : > { %2400 = vmatprep.mubr.bf16.mxu1 %v579_v31  ;;  %v662_v31 = vld [vmem:[%s9031_s7 + $0x222] sm:$0xff] }
 0x369   : > { %3156 = vmatmul.mubr.bf16.gmra.mrb[96].mxu0 %v9864_v56 }
 0x36a   : > { %3163 = vmatprep.mubr.bf16.mxu0 %v1235_v25 }
 0x36e   : > { %2401 = vmatmul.mubr.bf16.gmra.mrb[88].mxu1 %v9809_v43 }
 0x36f   : > { %2408 = vmatprep.mubr.bf16.mxu1 %v580_v55 }
 0x371   : > { %3164 = vmatmul.mubr.bf16.gmra.mrb[100].mxu0 %v1127_v30  ;;  %v6671_v30 = vld [vmem:[%s9031_s7 + $0x92] sm:$0xff] }
 0x372   : > { %3171 = vmatprep.mubr.bf16.mxu0 %v1236_v38  ;;  %v6672_v38 = vld [vmem:[%s9031_s7 + $0xa2] sm:$0xff] }
 0x373   : > { %v1323_v33 = vpack.c.bf16 %v6672_v38, %v6671_v30  ;;  %v8321_v30 = vld [vmem:[#allocation12 + $0x20] sm:$0xff]   ;;  %v8322_v38 = vld [vmem:[#allocation12 + $0x68] sm:$0xff]  }
 0x376   : > { %2409 = vmatmul.mubr.bf16.gmra.mrb[92].mxu1 %v9819_v8  ;;  %v6666_v8 = vld [vmem:[%s9031_s7 + $0x62] sm:$0xff] }
 0x377   : > { %2416 = vmatprep.mubr.bf16.mxu1 %v581_v28  ;;  %v1320_v26 = vpack.c.bf16 %v6666_v8, %v6665_v57  ;;  %v8312_v57 = vld [vmem:[#allocation12 + $0x40] sm:$0xff]  }
 0x378   : > { %7079 = vmatprep.subr.bf16.mxu1 %v8312_v57 }
 0x379   : > { %3172 = vmatmul.mubr.bf16.gmra.mrb[104].mxu0 %v1128_v60  ;;  %v9949_v60 = vpack.c.bf16 %v662_v31, %v661_v21  ;;  %v8323_v21 = vld [vmem:[#allocation12 + $0x28] sm:$0xff]  }
 0x37a   : > { %3179 = vmatprep.mubr.bf16.mxu0 %v1237_v5  ;;  %v1324_v5 = vpack.c.bf16 %v6674_v42, %v6673_v29  ;;  %v6689_v31 = vld [vmem:[%s9031_s7 + $0x152] sm:$0xff]  ;;  %v6690_v29 = vld [vmem:[%s9031_s7 + $0x162] sm:$0xff] }
 0x37b   : > { %v1332_v62 = vpack.c.bf16 %v6690_v29, %v6689_v31  ;;  %v6701_v29 = vld [vmem:[%s9031_s7 + $0x1d2] sm:$0xff] }
 0x37c   : > { %v2932_v50 = vpop.f32.mrb[108].mxu0 }
 0x37d   : > { %v2934_v13 = vpop.f32.mrb[109].mxu0  ;;  %v6679_v50 = vld [vmem:[%s9031_s7 + $0xea] sm:$0xff] }
 0x37e   : > { %v2935_v0 = vpop.f32.mrb[110].mxu0  ;;  %2417 = vmatmul.mubr.bf16.gmra.mrb[96].mxu1 %v9832_v20  ;;  %v6668_v20 = vld [vmem:[%s9031_s7 + $0x72] sm:$0xff] }
 0x37f   : > { %v2937_v61 = vpop.f32.mrb[111].mxu0  ;;  %2424 = vmatprep.mubr.bf16.mxu1 %v582_v16  ;;  %v1321_v40 = vpack.c.bf16 %v6668_v20, %v6667_v6  ;;  %v6680_v13 = vld [vmem:[%s9031_s7 + $0xf2] sm:$0xff]  ;;  %v8313_v16 = vld [vmem:[#allocation12] sm:$0xff]  }
 0x380   : > { %v1327_v0 = vpack.c.bf16 %v6680_v13, %v6679_v50  ;;  %v8326_v50 = vld [vmem:[#allocation12 + $0x78] sm:$0xff]  }
 0x381   : > { %3180 = vmatmul.mubr.bf16.gmra.mrb[116].mxu0 %v1129_v48 }
 0x382   : > { %7567 = vmatprep.mubr.msk.bf16.mxu0 %vm8709_vm0, %v11360_v58 }
 0x384   : > { %v2973_v24 = vpop.f32.mrb[112].mxu0 }
 0x385   : > { %v2975_v43 = vpop.f32.mrb[113].mxu0  ;;  %v1328_v24 = vpack.c.bf16 %v6682_v4, %v6681_v1 }
 0x386   : > { %v2976_v46 = vpop.f32.mrb[114].mxu0  ;;  %2425 = vmatmul.mubr.bf16.gmra.mrb[100].mxu1 %v9848_v18  ;;  %v658_v18 = vld [vmem:[%s9031_s7 + $0x1f2] sm:$0xff] }
 0x387   : > { %v2978_v32 = vpop.f32.mrb[115].mxu0  ;;  %2432 = vmatprep.mubr.bf16.mxu1 %v583_v11  ;;  %v9927_v15 = vpack.c.bf16 %v658_v18, %v657_v45  ;;  %v6684_v46 = vld [vmem:[%s9031_s7 + $0x122] sm:$0xff]  ;;  %v6685_v11 = vld [vmem:[%s9031_s7 + $0x12a] sm:$0xff]  ;;  %v8316_v45 = vld [vmem:[#allocation12 + $0x50] sm:$0xff]  }
 0x389   : > { %7568 = vmatmul.mubr.bf16.vlgmr.msra.gmra.mrb[120].mxu0 %v1319_v2  ;;  %v6683_v2 = vld [vmem:[%s9031_s7 + $0x112] sm:$0xff] }
 0x38a   : > { %7571 = vmatprep.mubr.msk.bf16.mxu0 %vm8709_vm0, %v11360_v58  ;;  %v1329_v8 = vpack.c.bf16 %v6684_v46, %v6683_v2  ;;  %v11359_v2 = vmov 0.0|0.0  }
 0x38e   : > { %2433 = vmatmul.mubr.bf16.gmra.mrb[104].mxu1 %v9864_v56 }
 0x38f   : > { %2657 = vmatprep.mubr.bf16.mxu1 %v799_v44 }
 0x391   : > { %7572 = vmatmul.mubr.bf16.gmra.mrb[4].mxu0 %v1320_v26  ;;  %v2226_v59 = vpop.f32.mrb[0].mxu1 }
 0x392   : > { %7575 = vmatprep.mubr.msk.bf16.mxu0 %vm8709_vm0, %v11360_v58  ;;  %v2228_v25 = vpop.f32.mrb[1].mxu1  ;;  %v8317_v59 = vld [vmem:[#allocation12 + $0x10] sm:$0xff]  }
 0x393   : > { %v2229_v56 = vpop.f32.mrb[2].mxu1  ;;  %v8319_v25 = vld [vmem:[#allocation12 + $0x18] sm:$0xff]  }
 0x394   : > { %v2231_v51 = vpop.f32.mrb[3].mxu1 }
 0x396   : > { %2658 = vmatmul.mubr.bf16.vlgmr.msra.gmra.mrb[92].mxu1 %v9927_v15 }
 0x397   : > { %2665 = vmatprep.mubr.bf16.mxu1 %v800_v17  ;;  %7080 = vmatpush3.bf16.msra.mxu1 %v8313_v16  ;;  %v6688_v17 = vld [vmem:[%s9031_s7 + $0x14a] sm:$0xff] }
 0x398   : > { %7081 = vmatprep.subr.bf16.mxu1 %v8314_v23 }
 0x399   : > { %7576 = vmatmul.mubr.bf16.gmra.mrb[8].mxu0 %v1321_v40  ;;  %v2234_v37 = vpop.f32.mrb[4].mxu1  ;;  %v6686_v40 = vld [vmem:[%s9031_s7 + $0x132] sm:$0xff] }
 0x39a   : > { %7579 = vmatprep.mubr.msk.bf16.mxu0 %vm8709_vm0, %v11360_v58  ;;  %v2236_v34 = vpop.f32.mrb[5].mxu1  ;;  %v1330_v18 = vpack.c.bf16 %v6686_v40, %v6685_v11  ;;  %v6696_v11 = vld [vmem:[%s9031_s7 + $0x1a2] sm:$0xff] }
 0x39b   : > { %v9960_v55 = vpop.f32.mrb[6].mxu1  ;;  %7082 = vmatpush3.bf16.msra.mxu1 %v8315_v47  ;;  %v6709_v34 = vld [vmem:[%s9031_s7 + $0x22a] sm:$0xff] }
 0x39c   : > { %v2239_v48 = vpop.f32.mrb[7].mxu1  ;;  %7083 = vmatprep.subr.bf16.mxu1 %v8316_v45 }
 0x39d   : > { %v8327_v48 = vld [vmem:[#allocation12 + $0x38] sm:$0xff]  }
 0x39e   : > { %2666 = vmatmul.mubr.bf16.gmra.mrb[96].mxu1 %v9938_v12 }
 0x39f   : > { %2673 = vmatprep.mubr.bf16.mxu1 %v801_v54  ;;  %7084 = vmatpush3.bf16.msra.mxu1 %v8317_v59 }
 0x3a0   : > { %7085 = vmatprep.subr.bf16.mxu1 %v8318_v14  ;;  %v6697_v14 = vld [vmem:[%s9031_s7 + $0x1aa] sm:$0xff] }
 0x3a1   : > { %7580 = vmatmul.mubr.bf16.gmra.mrb[12].mxu0 %v1322_v9  ;;  %v9966_v61 = vpop.f32.mrb[8].mxu1  ;;  %v6687_v9 = vld [vmem:[%s9031_s7 + $0x142] sm:$0xff] }
 0x3a2   : > { %7583 = vmatprep.mubr.msk.bf16.mxu0 %vm8709_vm0, %v11360_v58  ;;  %v2244_v53 = vpop.f32.mrb[9].mxu1  ;;  %v1331_v37 = vpack.c.bf16 %v6688_v17, %v6687_v9 }
 0x3a3   : > { %v9972_v19 = vpop.f32.mrb[10].mxu1  ;;  %7086 = vmatpush3.bf16.msra.mxu1 %v8319_v25  ;;  %v10022_v53 = vpack.c.bf16 %v4050_v22, %v4050_v22  ;;  %v6698_v25 = vld [vmem:[%s9031_s7 + $0x1b2] sm:$0xff] }
 0x3a4   : > { %v2247_v28 = vpop.f32.mrb[11].mxu1  ;;  %7087 = vmatprep.subr.bf16.mxu1 %v8320_v10 }
 0x3a5   : > { %11413 = vst [vmem:[#allocation22_spill] sm:$0xff] %v10022_v53 }
 0x3a6   : > { %2674 = vmatmul.mubr.bf16.gmra.mrb[100].mxu1 %v9949_v60 }
 0x3a7   : > { %7088 = vmatpush3.bf16.msra.mxu1 %v8321_v30  ;;  %2681 = vmatprep.mubr.bf16.mxu1 %v802_v52  ;;  %v6700_v30 = vld [vmem:[%s9031_s7 + $0x1ca] sm:$0xff] }
 0x3a8   : > { %7089 = vmatprep.subr.bf16.mxu1 %v8322_v38 }
 0x3a9   : > { %7584 = vmatmul.mubr.bf16.gmra.mrb[16].mxu0 %v1323_v33  ;;  %v9974_v43 = vpop.f32.mrb[12].mxu1  ;;  %v6710_v33 = vld [vmem:[%s9031_s7 + $0x232] sm:$0xff] }
 0x3aa   : > { %7587 = vmatprep.mubr.msk.bf16.mxu0 %vm8709_vm0, %v11360_v58  ;;  %v2252_v32 = vpop.f32.mrb[13].mxu1  ;;  %v10010_v36 = vpack.c.bf16 %v6710_v33, %v6709_v34 }
 0x3ab   : > { %v9980_v3 = vpop.f32.mrb[14].mxu1  ;;  %7090 = vmatpush3.bf16.msra.mxu1 %v8323_v21  ;;  %v6693_v32 = vld [vmem:[%s9031_s7 + $0x182] sm:$0xff] }
 0x3ac   : > { %v2255_v63 = vpop.f32.mrb[15].mxu1  ;;  %7091 = vmatprep.subr.bf16.mxu1 %v8324_v7 }
 0x3ad   : > { %v6694_v63 = vld [vmem:[%s9031_s7 + $0x18a] sm:$0xff] }
 0x3ae   : > { %2682 = vmatmul.mubr.bf16.gmra.mrb[108].mxu1 %v10010_v36  ;;  %v1334_v23 = vpack.c.bf16 %v6694_v63, %v6693_v32 }
 0x3af   : > { %5227 = vmatprep.mubr.bf16.mxu1 %v10022_v53 }
 0x3b1   : > { %7588 = vmatmul.mubr.bf16.gmra.mrb[20].mxu0 %v1324_v5  ;;  %v9982_v26 = vpop.f32.mrb[16].mxu1 }
 0x3b2   : > { %7591 = vmatprep.mubr.msk.bf16.mxu0 %vm8709_vm0, %v11360_v58  ;;  %v2260_v6 = vpop.f32.mrb[17].mxu1 }
 0x3b3   : > { %v9984_v20 = vpop.f32.mrb[18].mxu1  ;;  %v6695_v6 = vld [vmem:[%s9031_s7 + $0x192] sm:$0xff] }
 0x3b4   : > { %v2263_v44 = vpop.f32.mrb[19].mxu1 }
 0x3b9   : > { %7592 = vmatmul.mubr.bf16.gmra.mrb[24].mxu0 %v1325_v35  ;;  %v9990_v39 = vpop.f32.mrb[20].mxu1 }
 0x3ba   : > { %7595 = vmatprep.mubr.msk.bf16.mxu0 %vm8709_vm0, %v11360_v58  ;;  %v2268_v56 = vpop.f32.mrb[21].mxu1 }
 0x3bb   : > { %v9992_v51 = vpop.f32.mrb[22].mxu1 }
 0x3bc   : > { %v2271_v27 = vpop.f32.mrb[23].mxu1 }
 0x3bd   : > { %v1336_v27 = vpack.c.bf16 %v6698_v25, %v6697_v14 }
 0x3c1   : > { %7596 = vmatmul.mubr.bf16.gmra.mrb[28].mxu0 %v1326_v41  ;;  %v10000_v54 = vpop.f32.mrb[24].mxu1  ;;  %v8325_v41 = vld [vmem:[#allocation12 + $0x30] sm:$0xff]  }
 0x3c2   : > { %7599 = vmatprep.mubr.msk.bf16.mxu0 %vm8709_vm0, %v11360_v58  ;;  %v2276_v42 = vpop.f32.mrb[25].mxu1  ;;  %7092 = vmatpush3.bf16.msra.mxu1 %v8325_v41 }
 0x3c3   : > { %v10006_v5 = vpop.f32.mrb[26].mxu1  ;;  %7093 = vmatprep.subr.bf16.mxu1 %v8326_v50  ;;  %v6702_v42 = vld [vmem:[%s9031_s7 + $0x1e2] sm:$0xff] }
 0x3c4   : > { %v2279_v35 = vpop.f32.mrb[27].mxu1 }
 0x3c6   : > { %7094 = vmatpush3.bf16.msra.mxu1 %v8327_v48 }
 0x3c9   : > { %7600 = vmatmul.mubr.bf16.gmra.mrb[32].mxu0 %v1327_v0  ;;  %v10013_v13 = vpop.f32.mrb[28].mxu1  ;;  %v6692_v0 = vld [vmem:[%s9031_s7 + $0x172] sm:$0xff]  ;;  %5228 = vmatmul.mubr.bf16.vlgmr.msra.gmra.mrb[112].mxu1 %v11359_v2 }
 0x3ca   : > { %7603 = vmatprep.mubr.msk.bf16.mxu0 %vm8709_vm0, %v11360_v58  ;;  %v2284_v1 = vpop.f32.mrb[29].mxu1 }
 0x3cb   : > { %v10020_v4 = vpop.f32.mrb[30].mxu1 }
 0x3cc   : > { %v2287_v28 = vpop.f32.mrb[31].mxu1 }
 0x3d1   : > { %7604 = vmatmul.mubr.bf16.gmra.mrb[36].mxu0 %v1328_v24  ;;  %v1333_v24 = vpack.c.bf16 %v6692_v0, %v6691_v49  ;;  %v10026_v46 = vpop.f32.mrb[32].mxu1 }
 0x3d2   : > { %7607 = vmatprep.mubr.msk.bf16.mxu0 %vm8709_vm0, %v11360_v58  ;;  %v2292_v57 = vpop.f32.mrb[33].mxu1 }
 0x3d3   : > { %v8328_v57 = vld [vmem:[#allocation12 + $0xc0] sm:$0xff]  }
 0x3d4   : > { %7191 = vmatprep.subr.bf16.mxu1 %v8328_v57 }
 0x3d9   : > { %7608 = vmatmul.mubr.bf16.gmra.mrb[40].mxu0 %v1329_v8  ;;  %v10032_v8 = vpop.f32.mrb[34].mxu1 }
 0x3da   : > { %7611 = vmatprep.mubr.msk.bf16.mxu0 %vm8709_vm0, %v11360_v58  ;;  %v2295_v16 = vpop.f32.mrb[35].mxu1 }
 0x3db   : > { %v10034_v47 = vpop.f32.mrb[36].mxu1  ;;  %v8329_v16 = vld [vmem:[#allocation12 + $0x80] sm:$0xff]  }
 0x3dc   : > { %v2300_v40 = vpop.f32.mrb[37].mxu1  ;;  %7192 = vmatpush3.bf16.msra.mxu1 %v8329_v16 }
 0x3dd   : > { %v10040_v44 = vpop.f32.mrb[38].mxu1 }
 0x3de   : > { %v2303_v45 = vpop.f32.mrb[39].mxu1 }
 0x3df   : > { %v6712_v45 = vld [vmem:[%s9031_s7 + $0x24a] sm:$0xff] }
 0x3e1   : > { %7612 = vmatmul.mubr.bf16.gmra.mrb[44].mxu0 %v1330_v18  ;;  %v1335_v18 = vpack.c.bf16 %v6696_v11, %v6695_v6  ;;  %v10042_v59 = vpop.f32.mrb[40].mxu1 }
 0x3e2   : > { %7615 = vmatprep.mubr.msk.bf16.mxu0 %vm8709_vm0, %v11360_v58  ;;  %v2308_v56 = vpop.f32.mrb[41].mxu1 }
 0x3e3   : > { %v10048_v9 = vpop.f32.mrb[42].mxu1 }
 0x3e4   : > { %v2311_v17 = vpop.f32.mrb[43].mxu1 }
 0x3e5   : > { %v8330_v17 = vld [vmem:[#allocation12 + $0xc8] sm:$0xff]  }
 0x3e6   : > { %7193 = vmatprep.subr.bf16.mxu1 %v8330_v17  ;;  %v3632_v17 = vlaneseq }
 0x3e9   : > { %7616 = vmatmul.mubr.bf16.gmra.mrb[48].mxu0 %v1331_v37  ;;  %v10050_v10 = vpop.f32.mrb[44].mxu1  ;;  %v6699_v37 = vld [vmem:[%s9031_s7 + $0x1c2] sm:$0xff] }
 0x3ea   : > { %7619 = vmatprep.mubr.msk.bf16.mxu0 %vm8709_vm0, %v11360_v58  ;;  %v2316_v38 = vpop.f32.mrb[45].mxu1  ;;  %v1337_v21 = vpack.c.bf16 %v6700_v30, %v6699_v37  ;;  %v6713_v37 = vld [vmem:[%s9031_s7 + $0x252] sm:$0xff]  ;;  %v6714_v30 = vld [vmem:[%s9031_s7 + $0x262] sm:$0xff] }
 0x3eb   : > { %v10056_v34 = vpop.f32.mrb[46].mxu1 }
 0x3ec   : > { %v2319_v33 = vpop.f32.mrb[47].mxu1 }
 0x3f1   : > { %7620 = vmatmul.mubr.bf16.gmra.mrb[52].mxu0 %v1332_v62  ;;  %v10058_v31 = vpop.f32.mrb[48].mxu1  ;;  %v1338_v62 = vpack.c.bf16 %v6702_v42, %v6701_v29  ;;  %v1344_v29 = vpack.c.bf16 %v6714_v30, %v6713_v37 }
 0x3f2   : > { %7623 = vmatprep.mubr.msk.bf16.mxu0 %vm8709_vm0, %v11360_v58  ;;  %v2324_v52 = vpop.f32.mrb[49].mxu1 }
 0x3f3   : > { %v10064_v35 = vpop.f32.mrb[50].mxu1 }
 0x3f4   : > { %v2327_v7 = vpop.f32.mrb[51].mxu1 }
 0x3f9   : > { %7624 = vmatmul.mubr.bf16.gmra.mrb[56].mxu0 %v1333_v24  ;;  %v10066_v41 = vpop.f32.mrb[52].mxu1 }
 0x3fa   : > { %7627 = vmatprep.mubr.msk.bf16.mxu0 %vm8709_vm0, %v11360_v58  ;;  %v2332_v50 = vpop.f32.mrb[53].mxu1 }
 0x3fb   : > { %v10070_v48 = vpop.f32.mrb[54].mxu1 }
 0x3fc   : > { %v2335_v22 = vpop.f32.mrb[55].mxu1 }
 0x401   : > { %7628 = vmatmul.mubr.bf16.gmra.mrb[60].mxu0 %v1334_v23  ;;  %v10073_v49 = vpop.f32.mrb[56].mxu1 }
 0x402   : > { %7631 = vmatprep.mubr.msk.bf16.mxu0 %vm8709_vm0, %v11360_v58  ;;  %v2340_v0 = vpop.f32.mrb[57].mxu1 }
 0x403   : > { %v10077_v1 = vpop.f32.mrb[58].mxu1 }
 0x404   : > { %v2343_v28 = vpop.f32.mrb[59].mxu1 }
 0x409   : > { %7632 = vmatmul.mubr.bf16.gmra.mrb[64].mxu0 %v1335_v18  ;;  %v10080_v24 = vpop.f32.mrb[60].mxu1 }
 0x40a   : > { %7635 = vmatprep.mubr.msk.bf16.mxu0 %vm8709_vm0, %v11360_v58  ;;  %v2348_v32 = vpop.f32.mrb[61].mxu1 }
 0x40b   : > { %v10084_v63 = vpop.f32.mrb[62].mxu1  ;;  %v8332_v32 = vld [vmem:[#allocation12 + $0xd0] sm:$0xff]  }
 0x411   : > { %7636 = vmatmul.mubr.bf16.gmra.mrb[68].mxu0 %v1336_v27  ;;  %v8331_v27 = vld [vmem:[#allocation12 + $0x88] sm:$0xff]  }
 0x412   : > { %7639 = vmatprep.mubr.msk.bf16.mxu0 %vm8709_vm0, %v11360_v58  ;;  %7194 = vmatpush3.bf16.msra.mxu1 %v8331_v27 }
 0x413   : > { %7195 = vmatprep.subr.bf16.mxu1 %v8332_v32  ;;  %v8335_v32 = vld [vmem:[#allocation12 + $0x98] sm:$0xff]  }
 0x419   : > { %7640 = vmatmul.mubr.bf16.gmra.mrb[72].mxu0 %v1337_v21 }
 0x41a   : > { %7643 = vmatprep.mubr.msk.bf16.mxu0 %vm8709_vm0, %v11360_v58 }
 0x421   : > { %7644 = vmatmul.mubr.bf16.gmra.mrb[76].mxu0 %v1338_v62 }
 0x422   : > { %7647 = vmatprep.mubr.msk.bf16.mxu0 %vm8709_vm0, %v11360_v58 }
 0x429   : > { %7648 = vmatmul.mubr.bf16.gmra.mrb[80].mxu0 %v9927_v15  ;;  %v2351_v15 = vpop.f32.mrb[63].mxu1 }
 0x42a   : > { %7651 = vmatprep.mubr.msk.bf16.mxu0 %vm8709_vm0, %v11360_v58  ;;  %v10087_v23 = vpop.f32.mrb[64].mxu1  ;;  %v8333_v15 = vld [vmem:[#allocation12 + $0x90] sm:$0xff]  }
 0x42b   : > { %7196 = vmatpush3.bf16.msra.mxu1 %v8333_v15 }
 0x431   : > { %7652 = vmatmul.mubr.bf16.gmra.mrb[84].mxu0 %v9938_v12  ;;  %v2356_v12 = vpop.f32.mrb[65].mxu1 }
 0x432   : > { %7655 = vmatprep.mubr.msk.bf16.mxu0 %vm8709_vm0, %v11360_v58  ;;  %v10091_v6 = vpop.f32.mrb[66].mxu1 }
 0x433   : > { %v2359_v11 = vpop.f32.mrb[67].mxu1 }
 0x434   : > { %v10094_v40 = vpop.f32.mrb[68].mxu1 }
 0x435   : > { %v2364_v18 = vpop.f32.mrb[69].mxu1 }
 0x436   : > { %v10100_v14 = vpop.f32.mrb[70].mxu1 }
 0x437   : > { %v2367_v25 = vpop.f32.mrb[71].mxu1 }
 0x439   : > { %7656 = vmatmul.mubr.bf16.gmra.mrb[88].mxu0 %v9949_v60  ;;  %v6711_v60 = vld [vmem:[%s9031_s7 + $0x242] sm:$0xff] }
 0x43a   : > { %7659 = vmatprep.mubr.msk.bf16.mxu0 %vm8709_vm0, %v11360_v58  ;;  %v1343_v56 = vpack.c.bf16 %v6712_v45, %v6711_v60 }
 0x441   : > { %7660 = vmatmul.mubr.bf16.gmra.mrb[96].mxu0 %v10010_v36  ;;  %v10102_v36 = vpop.f32.mrb[72].mxu1 }
 0x442   : > { %7663 = vmatprep.mubr.msk.bf16.mxu0 %vm8709_vm0, %v11360_v58  ;;  %v2372_v38 = vpop.f32.mrb[73].mxu1 }
 0x443   : > { %v10108_v33 = vpop.f32.mrb[74].mxu1 }
 0x444   : > { %v2375_v21 = vpop.f32.mrb[75].mxu1 }
 0x445   : > { %v10110_v42 = vpop.f32.mrb[76].mxu1 }
 0x446   : > { %v2380_v52 = vpop.f32.mrb[77].mxu1 }
 0x447   : > { %v10114_v7 = vpop.f32.mrb[78].mxu1  ;;  %v10124_v52 = vld [vmem:[#allocation9] ss:$0 sm:$0xff] }
 0x448   : > { %v2383_v50 = vpop.f32.mrb[79].mxu1 }
 0x449   : > { %7664 = vmatmul.mubr.bf16.gmra.mrb[100].mxu0 %v1343_v56  ;;  %v10116_v57 = vpop.f32.mrb[80].mxu1 }
 0x44a   : > { %7667 = vmatprep.mubr.msk.bf16.mxu0 %vm8709_vm0, %v11360_v58  ;;  %v2388_v16 = vpop.f32.mrb[81].mxu1 }
 0x44b   : > { %v10118_v12 = vpop.f32.mrb[82].mxu1 }
 0x44c   : > { %v2391_v60 = vpop.f32.mrb[83].mxu1 }
 0x44d   : > { %v10120_v56 = vpop.f32.mrb[84].mxu1 }
 0x44e   : > { %v2396_v27 = vpop.f32.mrb[85].mxu1 }
 0x44f   : > { %v10122_v37 = vpop.f32.mrb[86].mxu1 }
 0x450   : > { %v2399_v38 = vpop.f32.mrb[87].mxu1 }
 0x451   : > { %7668 = vmatmul.mubr.bf16.gmra.mrb[104].mxu0 %v1344_v29  ;;  %v10130_v16 = vpop.f32.mrb[88].mxu1 }
 0x452   : > { %7671 = vmatprep.mubr.msk.bf16.mxu0 %vm8709_vm0, %v11360_v58  ;;  %v2404_v60 = vpop.f32.mrb[89].mxu1 }
 0x454   : > { %v3181_v62 = vpop.f32.mrb[116].mxu0 }
 0x455   : > { %v3183_v22 = vpop.f32.mrb[117].mxu0  ;;  %v3633_v62 = vshrl.u32 %v3632_v17, 7 }
 0x456   : > { %v3184_v0 = vpop.f32.mrb[118].mxu0 }
 0x457   : > { %v3186_v28 = vpop.f32.mrb[119].mxu0  ;;  %v10127_v0 = vld [vmem:[#allocation10] ss:$0 sm:$0xff] }
 0x458   : > { %v8334_v28 = vld [vmem:[#allocation12 + $0xd8] sm:$0xff]  }
 0x459   : > { %7197 = vmatprep.subr.bf16.mxu1 %v8334_v28 }
 0x45a   : > { %7198 = vmatpush3.bf16.msra.mxu1 %v8335_v32 }
 0x45c   : > { %v3222_v11 = vpop.f32.mrb[120].mxu0 }
 0x45d   : > { %v7569_v45 = vpop.f32.mrb[121].mxu0  ;;  %v10132_v11 = vadd.s32 4294967295, %v3633_v62 }
 0x45e   : > { %v3225_v18 = vpop.f32.mrb[122].mxu0 }
 0x45f   : > { %v7570_v25 = vpop.f32.mrb[123].mxu0  ;;  %v10135_v18 = vpop.f32.mrb[90].mxu1  ;;  %vm3693_vm1 = vcmp.ge.s32.totalorder %v10132_v11, 0 }
 0x460   : > { %v2407_v17 = vpop.f32.mrb[91].mxu1  ;;  %vm10173_vm6 = vmpackc.low %vm8711_vm5, %vm3693_vm1 }
 0x464   : > { %v3230_v30 = vpop.f32.mrb[4].mxu0 }
 0x465   : > { %v7573_v21 = vpop.f32.mrb[5].mxu0 }
 0x466   : > { %v3233_v29 = vpop.f32.mrb[6].mxu0  ;;  %v2434_v21 = vpop.f32.mrb[104].mxu1 }
 0x467   : > { %v7755_v50 = vadd.f32 %v3233_v29, %v9960_v55  ;;  %v7574_v22 = vpop.f32.mrb[7].mxu0  ;;  %v3635_v55 = vadd.s32 16, %v3633_v62 }
 0x469   : > { %v3447_v15 = vmul.f32 %v7755_v50, %v10124_v52  ;;  %v2436_v50 = vpop.f32.mrb[105].mxu1  ;;  %v10141_v60 = vadd.s32 4294967295, %v3635_v55 }
 0x46a   : > { %v2437_v32 = vpop.f32.mrb[106].mxu1 }
 0x46b   : > { %v3508_v45 = vadd.f32 %v10127_v0, %v3447_v15  ;;  %v2439_v2 = vpop.f32.mrb[107].mxu1  ;;  %vm3752_vm2 = vcmp.lt.s32.totalorder %v10141_v60, 16 }
 0x46c   : > { %v3238_v25 = vpop.f32.mrb[8].mxu0 }
 0x46d   : > { %v3562_v27 = vmax.f32 %v3508_v45, 0.0  ;;  %v7756_v30 = vadd.f32 %v3238_v25, %v9966_v61  ;;  %v7577_v38 = vpop.f32.mrb[9].mxu0  ;;  %v10147_v25 = vpop.f32.mrb[92].mxu1 }
 0x46e   : > { %v3241_v29 = vpop.f32.mrb[10].mxu0  ;;  %11414 = vst [vmem:[#allocation23_spill] sm:$0xff] %v10147_v25  ;;  %v2661_v17 = vpop.f32.mrb[93].mxu1 }
 0x46f   : > { %v3448_v22 = vmul.f32 %v7756_v30, %v10124_v52  ;;  %v7757_v28 = vadd.f32 %v3241_v29, %v9972_v19  ;;  %v7578_v15 = vpop.f32.mrb[11].mxu0  ;;  %v3918_v62 = vsel %vm3693_vm1, %v3562_v27, 0.0  ;;  %v10150_v21 = vpop.f32.mrb[94].mxu1  ;;  %v8336_v17 = vld [vmem:[#allocation12 + $0xe0] sm:$0xff]  }
 0x470   : > { %11415 = vst [vmem:[#allocation24_spill] sm:$0xff] %v10150_v21  ;;  %v4055_v19 = vrot.slane %v3918_v62, 1  ;;  %v2664_v2 = vpop.f32.mrb[95].mxu1  ;;  %v4200_v32 = vrot.slane %v3918_v62, 2  ;;  %7199 = vmatprep.subr.bf16.mxu1 %v8336_v17 }
 0x471   : > { %v3509_v61 = vadd.f32 %v10127_v0, %v3448_v22  ;;  %v3449_v45 = vmul.f32 %v7757_v28, %v10124_v52 }
 0x473   : > { %v3563_v38 = vmax.f32 %v3509_v61, 0.0  ;;  %v3510_v30 = vadd.f32 %v10127_v0, %v3449_v45  ;;  %v8337_v45 = vld [vmem:[#allocation12 + $0xa0] sm:$0xff]  }
 0x474   : > { %v3246_v55 = vpop.f32.mrb[12].mxu0  ;;  %7200 = vmatpush3.bf16.msra.mxu1 %v8337_v45 }
 0x475   : > { %v3564_v29 = vmax.f32 %v3510_v30, 0.0  ;;  %v7758_v50 = vadd.f32 %v3246_v55, %v9974_v43  ;;  %v7581_v22 = vpop.f32.mrb[13].mxu0  ;;  %v4056_v28 = vrot.slane %v3563_v38, 1  ;;  %v10154_v15 = vpack.c.bf16 %v3563_v38, %v3562_v27 }
 0x476   : > { %v3249_v61 = vpop.f32.mrb[14].mxu0  ;;  %v4201_v58 = vrot.slane %v3563_v38, 2  ;;  %v10164_v38 = vpop.f32.mrb[96].mxu1 }
 0x477   : > { %11416 = vst [vmem:[#allocation25_spill] sm:$0xff] %v10154_v15  ;;  %v3920_v53 = vsel %vm3752_vm2, %v3564_v29, 0.0  ;;  %v3450_v21 = vmul.f32 %v7758_v50, %v10124_v52  ;;  %v7759_v2 = vadd.f32 %v3249_v61, %v9980_v3  ;;  %v7582_v25 = vpop.f32.mrb[15].mxu0  ;;  %v4057_v30 = vsel %vm4049_vm3, %v4055_v19, %v4056_v28  ;;  %v2669_v50 = vpop.f32.mrb[97].mxu1 }
 0x478   : > { %v4058_v43 = vrot.slane %v3920_v53, 1  ;;  %v4203_v55 = vrot.slane %v3920_v53, 2  ;;  %v4202_v27 = vsel %vm4194_vm4, %v4200_v32, %v4201_v58 }
 0x479   : > { %v3511_v62 = vadd.f32 %v10127_v0, %v3450_v21  ;;  %v3451_v22 = vmul.f32 %v7759_v2, %v10124_v52  ;;  %v10177_v21 = vpop.f32.mrb[98].mxu1 }
 0x47a   : > { %v4059_v29 = vsel %vm4049_vm3, %v4056_v28, %v4058_v43  ;;  %v4204_v3 = vsel %vm4194_vm4, %v4201_v58, %v4203_v55  ;;  %11420 = vst [vmem:[#allocation27_spill] sm:$0xff] %v10177_v21  ;;  %v2672_v17 = vpop.f32.mrb[99].mxu1 }
 0x47b   : > { %v3565_v25 = vmax.f32 %v3511_v62, 0.0  ;;  %v3512_v19 = vadd.f32 %v10127_v0, %v3451_v22  ;;  %v10169_v61 = vpack.c.bf16 %v4059_v29, %v4057_v30  ;;  %v10179_v32 = vpack.c.bf16 %v4204_v3, %v4202_v27 }
 0x47c   : > { %v3254_v28 = vpop.f32.mrb[16].mxu0 }
 0x47d   : > { %11417 = vst [vmem:[#allocation26_spill] sm:$0xff] %v10169_v61  ;;  %11421 = vst [vmem:[#allocation28_spill] sm:$0xff] %v10179_v32  ;;  %v3921_v58 = vsel %vm3693_vm1, %v3565_v25, 0.0  ;;  %v3566_v45 = vmax.f32 %v3512_v19, 0.0  ;;  %v7760_v2 = vadd.f32 %v3254_v28, %v9982_v26  ;;  %v7585_v30 = vpop.f32.mrb[17].mxu0  ;;  %5235 = vmatprep.mubr.bf16.mxu1 %v10169_v61 }
 0x47e   : > { %v4060_v43 = vrot.slane %v3921_v58, 1  ;;  %v4205_v55 = vrot.slane %v3921_v58, 2  ;;  %v3257_v62 = vpop.f32.mrb[18].mxu0  ;;  %6908 = vmatmul.mubr.msk.bf16.gmra.mrb[116].mxu1 %vm10173_vm6, %v10154_v15  ;;  %v10195_v58 = vpop.f32.mrb[100].mxu1 }
 0x47f   : > { %v3452_v27 = vmul.f32 %v7760_v2, %v10124_v52  ;;  %v7761_v22 = vadd.f32 %v3257_v62, %v9984_v20  ;;  %v7586_v29 = vpop.f32.mrb[19].mxu0  ;;  %v4061_v50 = vrot.slane %v3566_v45, 1  ;;  %v10190_v3 = vpack.c.bf16 %v3566_v45, %v3565_v25  ;;  %11422 = vst [vmem:[#allocation29_spill] sm:$0xff] %v10195_v58  ;;  %v2677_v30 = vpop.f32.mrb[101].mxu1  ;;  %v8339_v58 = vld [vmem:[#allocation12 + $0xa8] sm:$0xff]  }
 0x480   : > { %v4206_v19 = vrot.slane %v3566_v45, 2  ;;  %v2678_v20 = vpop.f32.mrb[102].mxu1 }
 0x481   : > { %v3513_v26 = vadd.f32 %v10127_v0, %v3452_v27  ;;  %v3453_v28 = vmul.f32 %v7761_v22, %v10124_v52  ;;  %v4062_v17 = vsel %vm4049_vm3, %v4060_v43, %v4061_v50  ;;  %v2680_v29 = vpop.f32.mrb[103].mxu1 }
 0x482   : > { %v4207_v61 = vsel %vm4194_vm4, %v4205_v55, %v4206_v19  ;;  %v8338_v29 = vld [vmem:[#allocation12 + $0xe8] sm:$0xff]  }
 0x483   : > { %v3567_v32 = vmax.f32 %v3513_v26, 0.0  ;;  %v3514_v2 = vadd.f32 %v10127_v0, %v3453_v28  ;;  %7201 = vmatprep.subr.bf16.mxu1 %v8338_v29 }
 0x484   : > { %v3262_v62 = vpop.f32.mrb[20].mxu0  ;;  %7202 = vmatpush3.bf16.msra.mxu1 %v8339_v58 }
 0x485   : > { %v3923_v25 = vsel %vm3752_vm2, %v3567_v32, 0.0  ;;  %v3568_v45 = vmax.f32 %v3514_v2, 0.0  ;;  %v7762_v27 = vadd.f32 %v3262_v62, %v9990_v39  ;;  %v7589_v22 = vpop.f32.mrb[21].mxu0 }
 0x486   : > { %v4063_v15 = vrot.slane %v3923_v25, 1  ;;  %v4208_v43 = vrot.slane %v3923_v25, 2  ;;  %v3265_v21 = vpop.f32.mrb[22].mxu0 }
 0x487   : > { %v3454_v30 = vmul.f32 %v7762_v27, %v10124_v52  ;;  %v7763_v55 = vadd.f32 %v3265_v21, %v9992_v51  ;;  %v7590_v26 = vpop.f32.mrb[23].mxu0  ;;  %v3924_v28 = vsel %vm3693_vm1, %v3568_v45, 0.0 }
 0x488   : > { %v4064_v20 = vsel %vm4049_vm3, %v4061_v50, %v4063_v15  ;;  %v4209_v32 = vsel %vm4194_vm4, %v4206_v19, %v4208_v43  ;;  %v4065_v15 = vrot.slane %v3924_v28, 1  ;;  %v4210_v43 = vrot.slane %v3924_v28, 2 }
 0x489   : > { %v3515_v39 = vadd.f32 %v10127_v0, %v3454_v30  ;;  %v3455_v2 = vmul.f32 %v7763_v55, %v10124_v52  ;;  %v10210_v62 = vpack.c.bf16 %v4064_v20, %v4062_v17  ;;  %v10212_v25 = vpack.c.bf16 %v4209_v32, %v4207_v61 }
 0x48b   : > { %11423 = vst [vmem:[#allocation30_spill] sm:$0xff] %v10212_v25  ;;  %v3569_v51 = vmax.f32 %v3515_v39, 0.0  ;;  %v3516_v21 = vadd.f32 %v10127_v0, %v3455_v2  ;;  %5243 = vmatprep.mubr.bf16.mxu1 %v10210_v62 }
 0x48c   : > { %v3270_v50 = vpop.f32.mrb[24].mxu0  ;;  %6911 = vmatmul.mubr.msk.bf16.gmra.mrb[120].mxu1 %vm10173_vm6, %v10190_v3 }
 0x48d   : > { %v3570_v19 = vmax.f32 %v3516_v21, 0.0  ;;  %v7764_v27 = vadd.f32 %v3270_v50, %v10000_v54  ;;  %v7593_v17 = vpop.f32.mrb[25].mxu0  ;;  %v4066_v22 = vrot.slane %v3569_v51, 1  ;;  %v10220_v61 = vpack.c.bf16 %v3569_v51, %v3568_v45 }
 0x48e   : > { %v3273_v30 = vpop.f32.mrb[26].mxu0  ;;  %v4211_v55 = vrot.slane %v3569_v51, 2 }
 0x48f   : > { %v3926_v26 = vsel %vm3752_vm2, %v3570_v19, 0.0  ;;  %v3456_v58 = vmul.f32 %v7764_v27, %v10124_v52  ;;  %v7765_v20 = vadd.f32 %v3273_v30, %v10006_v5  ;;  %v7594_v29 = vpop.f32.mrb[27].mxu0  ;;  %v4067_v32 = vsel %vm4049_vm3, %v4065_v15, %v4066_v22 }
 0x490   : > { %v4068_v39 = vrot.slane %v3926_v26, 1  ;;  %v4213_v2 = vrot.slane %v3926_v26, 2  ;;  %v4212_v54 = vsel %vm4194_vm4, %v4210_v43, %v4211_v55 }
 0x491   : > { %v3517_v45 = vadd.f32 %v10127_v0, %v3456_v58  ;;  %v3457_v28 = vmul.f32 %v7765_v20, %v10124_v52 }
 0x492   : > { %v4069_v51 = vsel %vm4049_vm3, %v4066_v22, %v4068_v39  ;;  %v4214_v21 = vsel %vm4194_vm4, %v4211_v55, %v4213_v2  ;;  %v11487_v53 = vld [vmem:[#allocation30_spill] sm:$0xff] }
 0x493   : > { %v3571_v50 = vmax.f32 %v3517_v45, 0.0  ;;  %v3518_v19 = vadd.f32 %v10127_v0, %v3457_v28  ;;  %v10233_v27 = vpack.c.bf16 %v4069_v51, %v4067_v32  ;;  %v10235_v5 = vpack.c.bf16 %v4214_v21, %v4212_v54  ;;  %v8340_v54 = vld [vmem:[#allocation12 + $0xf0] sm:$0xff]  }
 0x494   : > { %v3278_v15 = vpop.f32.mrb[28].mxu0  ;;  %7203 = vmatprep.subr.bf16.mxu1 %v8340_v54 }
 0x495   : > { %11424 = vst [vmem:[#allocation31_spill] sm:$0xff] %v10235_v5  ;;  %v3927_v17 = vsel %vm3693_vm1, %v3571_v50, 0.0  ;;  %v3572_v43 = vmax.f32 %v3518_v19, 0.0  ;;  %v7766_v30 = vadd.f32 %v3278_v15, %v10013_v13  ;;  %v7597_v26 = vpop.f32.mrb[29].mxu0  ;;  %5251 = vmatprep.mubr.bf16.mxu1 %v10233_v27  ;;  %v8341_v13 = vld [vmem:[#allocation12 + $0xb0] sm:$0xff]  }
 0x496   : > { %v4070_v22 = vrot.slane %v3927_v17, 1  ;;  %v4215_v58 = vrot.slane %v3927_v17, 2  ;;  %v3281_v55 = vpop.f32.mrb[30].mxu0  ;;  %6914 = vmatmul.mubr.msk.bf16.gmra.mrb[124].mxu1 %vm10173_vm6, %v10220_v61 }
 0x497   : > { %v3458_v20 = vmul.f32 %v7766_v30, %v10124_v52  ;;  %v7767_v29 = vadd.f32 %v3281_v55, %v10020_v4  ;;  %v7598_v32 = vpop.f32.mrb[31].mxu0  ;;  %v4071_v39 = vrot.slane %v3572_v43, 1  ;;  %v10246_v2 = vpack.c.bf16 %v3572_v43, %v3571_v50  ;;  %7204 = vmatpush3.bf16.msra.mxu1 %v8341_v13 }
 0x498   : > { %v4216_v45 = vrot.slane %v3572_v43, 2 }
 0x499   : > { %v3519_v28 = vadd.f32 %v10127_v0, %v3458_v20  ;;  %v3459_v51 = vmul.f32 %v7767_v29, %v10124_v52  ;;  %v4072_v21 = vsel %vm4049_vm3, %v4070_v22, %v4071_v39 }
 0x49a   : > { %v4217_v19 = vsel %vm4194_vm4, %v4215_v58, %v4216_v45 }
 0x49b   : > { %v3573_v15 = vmax.f32 %v3519_v28, 0.0  ;;  %v3520_v17 = vadd.f32 %v10127_v0, %v3459_v51 }
 0x49c   : > { %v3286_v4 = vpop.f32.mrb[32].mxu0 }
 0x49d   : > { %v3929_v50 = vsel %vm3752_vm2, %v3573_v15, 0.0  ;;  %v3574_v30 = vmax.f32 %v3520_v17, 0.0  ;;  %v7768_v43 = vadd.f32 %v3286_v4, %v10026_v46  ;;  %v7601_v26 = vpop.f32.mrb[33].mxu0 }
 0x49e   : > { %v4073_v55 = vrot.slane %v3929_v50, 1  ;;  %v4218_v20 = vrot.slane %v3929_v50, 2  ;;  %v3289_v29 = vpop.f32.mrb[34].mxu0 }
 0x49f   : > { %v3460_v22 = vmul.f32 %v7768_v43, %v10124_v52  ;;  %v7769_v32 = vadd.f32 %v3289_v29, %v10032_v8  ;;  %v7602_v58 = vpop.f32.mrb[35].mxu0  ;;  %v3930_v54 = vsel %vm3693_vm1, %v3574_v30, 0.0 }
 0x4a0   : > { %v4074_v13 = vsel %vm4049_vm3, %v4071_v39, %v4073_v55  ;;  %v4219_v28 = vsel %vm4194_vm4, %v4216_v45, %v4218_v20  ;;  %v4075_v8 = vrot.slane %v3930_v54, 1 }
 0x4a1   : > { %v3521_v51 = vadd.f32 %v10127_v0, %v3460_v22  ;;  %v3461_v46 = vmul.f32 %v7769_v32, %v10124_v52  ;;  %v10264_v15 = vpack.c.bf16 %v4074_v13, %v4072_v21  ;;  %v10266_v17 = vpack.c.bf16 %v4219_v28, %v4217_v19 }
 0x4a2   : > { %v4220_v19 = vrot.slane %v3930_v54, 2 }
 0x4a3   : > { %11425 = vst [vmem:[#allocation32_spill] sm:$0xff] %v10266_v17  ;;  %v3575_v4 = vmax.f32 %v3521_v51, 0.0  ;;  %v3522_v50 = vadd.f32 %v10127_v0, %v3461_v46  ;;  %5259 = vmatprep.mubr.bf16.mxu1 %v10264_v15 }
 0x4a4   : > { %v3294_v43 = vpop.f32.mrb[36].mxu0  ;;  %6917 = vmatmul.mubr.msk.bf16.gmra.mrb[128].mxu1 %vm10173_vm6, %v10246_v2 }
 0x4a5   : > { %v3576_v39 = vmax.f32 %v3522_v50, 0.0  ;;  %v7770_v45 = vadd.f32 %v3294_v43, %v10034_v47  ;;  %v7605_v26 = vpop.f32.mrb[37].mxu0  ;;  %v4076_v55 = vrot.slane %v3575_v4, 1  ;;  %v10274_v21 = vpack.c.bf16 %v3575_v4, %v3574_v30  ;;  %v8342_v47 = vld [vmem:[#allocation12 + $0xf8] sm:$0xff]  }
 0x4a6   : > { %v3297_v20 = vpop.f32.mrb[38].mxu0  ;;  %v4221_v29 = vrot.slane %v3575_v4, 2  ;;  %v8343_v4 = vld [vmem:[#allocation12 + $0xb8] sm:$0xff]   ;;  %7205 = vmatprep.subr.bf16.mxu1 %v8342_v47 }
 0x4a7   : > { %v3932_v22 = vsel %vm3752_vm2, %v3576_v39, 0.0  ;;  %v3462_v32 = vmul.f32 %v7770_v45, %v10124_v52  ;;  %v7771_v58 = vadd.f32 %v3297_v20, %v10040_v44  ;;  %v7606_v13 = vpop.f32.mrb[39].mxu0  ;;  %v4077_v28 = vsel %vm4049_vm3, %v4075_v8, %v4076_v55  ;;  %7206 = vmatpush3.bf16.msra.mxu1 %v8343_v4 }
 0x4a8   : > { %v4078_v51 = vrot.slane %v3932_v22, 1  ;;  %v4223_v46 = vrot.slane %v3932_v22, 2  ;;  %v4222_v50 = vsel %vm4194_vm4, %v4220_v19, %v4221_v29 }
 0x4a9   : > { %v3523_v30 = vadd.f32 %v10127_v0, %v3462_v32  ;;  %v3463_v54 = vmul.f32 %v7771_v58, %v10124_v52 }
 0x4aa   : > { %v4079_v43 = vsel %vm4049_vm3, %v4076_v55, %v4078_v51  ;;  %v4224_v39 = vsel %vm4194_vm4, %v4221_v29, %v4223_v46 }
 0x4ab   : > { %v3577_v45 = vmax.f32 %v3523_v30, 0.0  ;;  %v3524_v44 = vadd.f32 %v10127_v0, %v3463_v54  ;;  %v10287_v26 = vpack.c.bf16 %v4079_v43, %v4077_v28  ;;  %v10289_v8 = vpack.c.bf16 %v4224_v39, %v4222_v50  ;;  %v8344_v43 = vld [vmem:[#allocation12 + $0x140] sm:$0xff]  }
 0x4ac   : > { %v3302_v20 = vpop.f32.mrb[40].mxu0  ;;  %7303 = vmatprep.subr.bf16.mxu1 %v8344_v43 }
 0x4ad   : > { %11426 = vst [vmem:[#allocation33_spill] sm:$0xff] %v10289_v8  ;;  %v3933_v19 = vsel %vm3693_vm1, %v3577_v45, 0.0  ;;  %v3578_v22 = vmax.f32 %v3524_v44, 0.0  ;;  %v7772_v32 = vadd.f32 %v3302_v20, %v10042_v59  ;;  %v7609_v58 = vpop.f32.mrb[41].mxu0  ;;  %5267 = vmatprep.mubr.bf16.mxu1 %v10287_v26 }
 0x4ae   : > { %v4080_v55 = vrot.slane %v3933_v19, 1  ;;  %v4225_v29 = vrot.slane %v3933_v19, 2  ;;  %v3305_v13 = vpop.f32.mrb[42].mxu0  ;;  %6920 = vmatmul.mubr.msk.bf16.gmra.mrb[132].mxu1 %vm10173_vm6, %v10274_v21 }
 0x4af   : > { %v3464_v28 = vmul.f32 %v7772_v32, %v10124_v52  ;;  %v7773_v51 = vadd.f32 %v3305_v13, %v10048_v9  ;;  %v7610_v46 = vpop.f32.mrb[43].mxu0  ;;  %v4081_v47 = vrot.slane %v3578_v22, 1  ;;  %v10300_v50 = vpack.c.bf16 %v3578_v22, %v3577_v45 }
 0x4b0   : > { %v4226_v30 = vrot.slane %v3578_v22, 2 }
 0x4b1   : > { %v3525_v59 = vadd.f32 %v10127_v0, %v3464_v28  ;;  %v3465_v54 = vmul.f32 %v7773_v51, %v10124_v52  ;;  %v4082_v4 = vsel %vm4049_vm3, %v4080_v55, %v4081_v47 }
 0x4b2   : > { %v4227_v39 = vsel %vm4194_vm4, %v4225_v29, %v4226_v30 }
 0x4b3   : > { %v3579_v44 = vmax.f32 %v3525_v59, 0.0  ;;  %v3526_v20 = vadd.f32 %v10127_v0, %v3465_v54 }
 0x4b4   : > { %v3310_v19 = vpop.f32.mrb[44].mxu0 }
 0x4b5   : > { %v3935_v9 = vsel %vm3752_vm2, %v3579_v44, 0.0  ;;  %v3580_v45 = vmax.f32 %v3526_v20, 0.0  ;;  %v7774_v22 = vadd.f32 %v3310_v19, %v10050_v10  ;;  %v7613_v32 = vpop.f32.mrb[45].mxu0 }
 0x4b6   : > { %v4083_v58 = vrot.slane %v3935_v9, 1  ;;  %v4228_v13 = vrot.slane %v3935_v9, 2  ;;  %v3313_v28 = vpop.f32.mrb[46].mxu0 }
 0x4b7   : > { %v3466_v55 = vmul.f32 %v7774_v22, %v10124_v52  ;;  %v7775_v51 = vadd.f32 %v3313_v28, %v10056_v34  ;;  %v7614_v29 = vpop.f32.mrb[47].mxu0  ;;  %v3936_v46 = vsel %vm3693_vm1, %v3580_v45, 0.0 }
 0x4b8   : > { %v4084_v59 = vsel %vm4049_vm3, %v4081_v47, %v4083_v58  ;;  %v4229_v54 = vsel %vm4194_vm4, %v4226_v30, %v4228_v13  ;;  %v4085_v34 = vrot.slane %v3936_v46, 1 }
 0x4b9   : > { %v3527_v43 = vadd.f32 %v10127_v0, %v3466_v55  ;;  %v3467_v10 = vmul.f32 %v7775_v51, %v10124_v52  ;;  %v10318_v44 = vpack.c.bf16 %v4084_v59, %v4082_v4  ;;  %v10320_v20 = vpack.c.bf16 %v4229_v54, %v4227_v39 }
 0x4ba   : > { %v4230_v39 = vrot.slane %v3936_v46, 2 }
 0x4bb   : > { %11427 = vst [vmem:[#allocation34_spill] sm:$0xff] %v10320_v20  ;;  %v3581_v19 = vmax.f32 %v3527_v43, 0.0  ;;  %v3528_v9 = vadd.f32 %v10127_v0, %v3467_v10  ;;  %5275 = vmatprep.mubr.bf16.mxu1 %v10318_v44 }
 0x4bc   : > { %v3318_v22 = vpop.f32.mrb[48].mxu0  ;;  %6923 = vmatmul.mubr.msk.bf16.gmra.mrb[136].mxu1 %vm10173_vm6, %v10300_v50 }
 0x4bd   : > { %v3582_v47 = vmax.f32 %v3528_v9, 0.0  ;;  %v7776_v30 = vadd.f32 %v3318_v22, %v10058_v31  ;;  %v7617_v32 = vpop.f32.mrb[49].mxu0  ;;  %v4086_v58 = vrot.slane %v3581_v19, 1  ;;  %v10328_v4 = vpack.c.bf16 %v3581_v19, %v3580_v45  ;;  %v2683_v9 = vpop.f32.mrb[108].mxu1 }
 0x4be   : > { %v3321_v13 = vpop.f32.mrb[50].mxu0  ;;  %v4231_v28 = vrot.slane %v3581_v19, 2  ;;  %v2685_v22 = vpop.f32.mrb[109].mxu1 }
 0x4bf   : > { %v3938_v55 = vsel %vm3752_vm2, %v3582_v47, 0.0  ;;  %v3468_v51 = vmul.f32 %v7776_v30, %v10124_v52  ;;  %v7777_v29 = vadd.f32 %v3321_v13, %v10064_v35  ;;  %v7618_v59 = vpop.f32.mrb[51].mxu0  ;;  %v4087_v54 = vsel %vm4049_vm3, %v4085_v34, %v4086_v58  ;;  %v2686_v34 = vpop.f32.mrb[110].mxu1 }
 0x4c0   : > { %v4088_v43 = vrot.slane %v3938_v55, 1  ;;  %v4233_v10 = vrot.slane %v3938_v55, 2  ;;  %v4232_v31 = vsel %vm4194_vm4, %v4230_v39, %v4231_v28  ;;  %v2688_v39 = vpop.f32.mrb[111].mxu1 }
 0x4c1   : > { %v3529_v45 = vadd.f32 %v10127_v0, %v3468_v51  ;;  %v3469_v46 = vmul.f32 %v7777_v29, %v10124_v52 }
 0x4c2   : > { %v4089_v19 = vsel %vm4049_vm3, %v4086_v58, %v4088_v43  ;;  %v4234_v47 = vsel %vm4194_vm4, %v4231_v28, %v4233_v10 }
 0x4c3   : > { %v3583_v30 = vmax.f32 %v3529_v45, 0.0  ;;  %v3530_v35 = vadd.f32 %v10127_v0, %v3469_v46  ;;  %v10341_v32 = vpack.c.bf16 %v4089_v19, %v4087_v54  ;;  %v10343_v13 = vpack.c.bf16 %v4234_v47, %v4232_v31 }
 0x4c4   : > { %v3326_v55 = vpop.f32.mrb[52].mxu0 }
 0x4c5   : > { %11428 = vst [vmem:[#allocation35_spill] sm:$0xff] %v10341_v32  ;;  %11429 = vst [vmem:[#allocation36_spill] sm:$0xff] %v10343_v13  ;;  %v3939_v51 = vsel %vm3693_vm1, %v3583_v30, 0.0  ;;  %v3584_v29 = vmax.f32 %v3530_v35, 0.0  ;;  %v7778_v59 = vadd.f32 %v3326_v55, %v10066_v41  ;;  %v7621_v58 = vpop.f32.mrb[53].mxu0  ;;  %5283 = vmatprep.mubr.bf16.mxu1 %v10341_v32  ;;  %v7095_v35 = vpop.f32.mrb[112].mxu1 }
 0x4c6   : > { %v4090_v28 = vrot.slane %v3939_v51, 1  ;;  %v4235_v43 = vrot.slane %v3939_v51, 2  ;;  %v3329_v10 = vpop.f32.mrb[54].mxu0  ;;  %6926 = vmatmul.mubr.msk.bf16.gmra.mrb[140].mxu1 %vm10173_vm6, %v10328_v4  ;;  %v7096_v34 = vpop.f32.mrb[113].mxu1 }
 0x4c7   : > { %v3470_v54 = vmul.f32 %v7778_v59, %v10124_v52  ;;  %v7779_v31 = vadd.f32 %v3329_v10, %v10070_v48  ;;  %v7622_v45 = vpop.f32.mrb[55].mxu0  ;;  %v4091_v46 = vrot.slane %v3584_v29, 1  ;;  %v10354_v9 = vpack.c.bf16 %v3584_v29, %v3583_v30 }
 0x4c8   : > { %v4236_v19 = vrot.slane %v3584_v29, 2  ;;  %v10361_v59 = vadd.f32 %v7096_v34, %v7095_v35  ;;  %v7098_v45 = vpop.f32.mrb[114].mxu1 }
 0x4c9   : > { %11430 = vst [vmem:[#allocation37_spill] sm:$0xff] %v10354_v9  ;;  %v3531_v41 = vadd.f32 %v10127_v0, %v3470_v54  ;;  %v3471_v22 = vmul.f32 %v7779_v31, %v10124_v52  ;;  %v4092_v47 = vsel %vm4049_vm3, %v4090_v28, %v4091_v46 }
 0x4ca   : > { %v4237_v55 = vsel %vm4194_vm4, %v4235_v43, %v4236_v19 }
 0x4cb   : > { %v3585_v39 = vmax.f32 %v3531_v41, 0.0  ;;  %v3532_v51 = vadd.f32 %v10127_v0, %v3471_v22  ;;  %v7099_v22 = vpop.f32.mrb[115].mxu1 }
 0x4cc   : > { %v3334_v48 = vpop.f32.mrb[56].mxu0 }
 0x4cd   : > { %v3941_v30 = vsel %vm3752_vm2, %v3585_v39, 0.0  ;;  %v3586_v29 = vmax.f32 %v3532_v51, 0.0  ;;  %v7780_v58 = vadd.f32 %v3334_v48, %v10073_v49  ;;  %v7625_v10 = vpop.f32.mrb[57].mxu0  ;;  %v10371_v39 = vadd.f32 %v7099_v22, %v7098_v45 }
 0x4ce   : > { %v4093_v54 = vrot.slane %v3941_v30, 1  ;;  %v4238_v31 = vrot.slane %v3941_v30, 2  ;;  %v3337_v28 = vpop.f32.mrb[58].mxu0 }
 0x4cf   : > { %v3472_v32 = vmul.f32 %v7780_v58, %v10124_v52  ;;  %v7781_v43 = vadd.f32 %v3337_v28, %v10077_v1  ;;  %v7626_v41 = vpop.f32.mrb[59].mxu0  ;;  %v3942_v35 = vsel %vm3693_vm1, %v3586_v29, 0.0  ;;  %11431 = vst [vmem:[#allocation38_spill] sm:$0xff] %v10371_v39 }
 0x4d0   : > { %v4094_v34 = vsel %vm4049_vm3, %v4091_v46, %v4093_v54  ;;  %v4239_v30 = vsel %vm4194_vm4, %v4236_v19, %v4238_v31  ;;  %v4095_v28 = vrot.slane %v3942_v35, 1  ;;  %v4240_v19 = vrot.slane %v3942_v35, 2 }
 0x4d1   : > { %v3533_v49 = vadd.f32 %v10127_v0, %v3472_v32  ;;  %v3473_v51 = vmul.f32 %v7781_v43, %v10124_v52  ;;  %v10375_v48 = vpack.c.bf16 %v4094_v34, %v4092_v47  ;;  %v10378_v58 = vpack.c.bf16 %v4239_v30, %v4237_v55 }
 0x4d3   : > { %11432 = vst [vmem:[#allocation39_spill] sm:$0xff] %v10378_v58  ;;  %v3587_v1 = vmax.f32 %v3533_v49, 0.0  ;;  %v3534_v10 = vadd.f32 %v10127_v0, %v3473_v51  ;;  %5291 = vmatprep.mubr.bf16.mxu1 %v10375_v48 }
 0x4d4   : > { %v3342_v41 = vpop.f32.mrb[60].mxu0  ;;  %6929 = vmatmul.mubr.msk.bf16.gmra.mrb[144].mxu1 %vm10173_vm6, %v10354_v9 }
 0x4d5   : > { %v3588_v32 = vmax.f32 %v3534_v10, 0.0  ;;  %v7782_v46 = vadd.f32 %v3342_v41, %v10080_v24  ;;  %v7629_v47 = vpop.f32.mrb[61].mxu0  ;;  %v4096_v54 = vrot.slane %v3587_v1, 1  ;;  %v10386_v45 = vpack.c.bf16 %v3587_v1, %v3586_v29 }
 0x4d6   : > { %v3345_v55 = vpop.f32.mrb[62].mxu0  ;;  %v4241_v31 = vrot.slane %v3587_v1, 2 }
 0x4d7   : > { %11433 = vst [vmem:[#allocation40_spill] sm:$0xff] %v10386_v45  ;;  %v3944_v43 = vsel %vm3752_vm2, %v3588_v32, 0.0  ;;  %v3474_v22 = vmul.f32 %v7782_v46, %v10124_v52  ;;  %v7783_v34 = vadd.f32 %v3345_v55, %v10084_v63  ;;  %v7630_v49 = vpop.f32.mrb[63].mxu0  ;;  %v4097_v51 = vsel %vm4049_vm3, %v4095_v28, %v4096_v54 }
 0x4d8   : > { %v4098_v30 = vrot.slane %v3944_v43, 1  ;;  %v4243_v10 = vrot.slane %v3944_v43, 2  ;;  %v4242_v24 = vsel %vm4194_vm4, %v4240_v19, %v4241_v31 }
 0x4d9   : > { %v3535_v29 = vadd.f32 %v10127_v0, %v3474_v22  ;;  %v3475_v35 = vmul.f32 %v7783_v34, %v10124_v52 }
 0x4da   : > { %v4099_v1 = vsel %vm4049_vm3, %v4096_v54, %v4098_v30  ;;  %v4244_v41 = vsel %vm4194_vm4, %v4241_v31, %v4243_v10 }
 0x4db   : > { %v3589_v32 = vmax.f32 %v3535_v29, 0.0  ;;  %v3536_v46 = vadd.f32 %v10127_v0, %v3475_v35  ;;  %v10399_v47 = vpack.c.bf16 %v4099_v1, %v4097_v51  ;;  %v10401_v63 = vpack.c.bf16 %v4244_v41, %v4242_v24 }
 0x4dc   : > { %v3350_v28 = vpop.f32.mrb[64].mxu0 }
 0x4dd   : > { %11434 = vst [vmem:[#allocation41_spill] sm:$0xff] %v10401_v63  ;;  %v3945_v55 = vsel %vm3693_vm1, %v3589_v32, 0.0  ;;  %v3590_v19 = vmax.f32 %v3536_v46, 0.0  ;;  %v7784_v43 = vadd.f32 %v3350_v28, %v10087_v23  ;;  %v7633_v22 = vpop.f32.mrb[65].mxu0  ;;  %5299 = vmatprep.mubr.bf16.mxu1 %v10399_v47 }
 0x4de   : > { %v4100_v54 = vrot.slane %v3945_v55, 1  ;;  %v4245_v34 = vrot.slane %v3945_v55, 2  ;;  %v3353_v31 = vpop.f32.mrb[66].mxu0  ;;  %6932 = vmatmul.mubr.msk.bf16.gmra.mrb[148].mxu1 %vm10173_vm6, %v10386_v45 }
 0x4df   : > { %v3476_v49 = vmul.f32 %v7784_v43, %v10124_v52  ;;  %v7785_v51 = vadd.f32 %v3353_v31, %v10091_v6  ;;  %v7634_v30 = vpop.f32.mrb[67].mxu0  ;;  %v4101_v10 = vrot.slane %v3590_v19, 1  ;;  %v10412_v24 = vpack.c.bf16 %v3590_v19, %v3589_v32 }
 0x4e0   : > { %v4246_v29 = vrot.slane %v3590_v19, 2 }
 0x4e1   : > { %11435 = vst [vmem:[#allocation42_spill] sm:$0xff] %v10412_v24  ;;  %v3537_v23 = vadd.f32 %v10127_v0, %v3476_v49  ;;  %v3477_v35 = vmul.f32 %v7785_v51, %v10124_v52  ;;  %v4102_v1 = vsel %vm4049_vm3, %v4100_v54, %v4101_v10 }
 0x4e2   : > { %v4247_v41 = vsel %vm4194_vm4, %v4245_v34, %v4246_v29 }
 0x4e3   : > { %v3591_v46 = vmax.f32 %v3537_v23, 0.0  ;;  %v3538_v28 = vadd.f32 %v10127_v0, %v3477_v35 }
 0x4e4   : > { %v3358_v55 = vpop.f32.mrb[68].mxu0 }
 0x4e5   : > { %v3947_v6 = vsel %vm3752_vm2, %v3591_v46, 0.0  ;;  %v3592_v43 = vmax.f32 %v3538_v28, 0.0  ;;  %v7786_v32 = vadd.f32 %v3358_v55, %v10094_v40  ;;  %v7637_v22 = vpop.f32.mrb[69].mxu0 }
 0x4e6   : > { %v4103_v19 = vrot.slane %v3947_v6, 1  ;;  %v4248_v31 = vrot.slane %v3947_v6, 2  ;;  %v3361_v49 = vpop.f32.mrb[70].mxu0 }
 0x4e7   : > { %v3478_v51 = vmul.f32 %v7786_v32, %v10124_v52  ;;  %v7787_v54 = vadd.f32 %v3361_v49, %v10100_v14  ;;  %v7638_v30 = vpop.f32.mrb[71].mxu0  ;;  %v3948_v34 = vsel %vm3693_vm1, %v3592_v43, 0.0 }
 0x4e8   : > { %v4104_v23 = vsel %vm4049_vm3, %v4101_v10, %v4103_v19  ;;  %v4249_v35 = vsel %vm4194_vm4, %v4246_v29, %v4248_v31  ;;  %v4105_v14 = vrot.slane %v3948_v34, 1 }
 0x4e9   : > { %v3539_v46 = vadd.f32 %v10127_v0, %v3478_v51  ;;  %v3479_v40 = vmul.f32 %v7787_v54, %v10124_v52  ;;  %v10430_v28 = vpack.c.bf16 %v4104_v23, %v4102_v1  ;;  %v10432_v55 = vpack.c.bf16 %v4249_v35, %v4247_v41 }
 0x4ea   : > { %v4250_v41 = vrot.slane %v3948_v34, 2 }
 0x4eb   : > { %11436 = vst [vmem:[#allocation43_spill] sm:$0xff] %v10432_v55  ;;  %v3593_v6 = vmax.f32 %v3539_v46, 0.0  ;;  %v3540_v32 = vadd.f32 %v10127_v0, %v3479_v40  ;;  %5307 = vmatprep.mubr.bf16.mxu1 %v10430_v28 }
 0x4ec   : > { %v3366_v22 = vpop.f32.mrb[72].mxu0  ;;  %6935 = vmatmul.mubr.msk.bf16.gmra.mrb[152].mxu1 %vm10173_vm6, %v10412_v24 }
 0x4ed   : > { %v3594_v10 = vmax.f32 %v3540_v32, 0.0  ;;  %v7788_v29 = vadd.f32 %v3366_v22, %v10102_v36  ;;  %v7641_v19 = vpop.f32.mrb[73].mxu0  ;;  %v4106_v31 = vrot.slane %v3593_v6, 1  ;;  %v10440_v1 = vpack.c.bf16 %v3593_v6, %v3592_v43 }
 0x4ee   : > { %v3369_v49 = vpop.f32.mrb[74].mxu0  ;;  %v4251_v51 = vrot.slane %v3593_v6, 2 }
 0x4ef   : > { %11437 = vst [vmem:[#allocation44_spill] sm:$0xff] %v10440_v1  ;;  %v3950_v54 = vsel %vm3752_vm2, %v3594_v10, 0.0  ;;  %v3480_v30 = vmul.f32 %v7788_v29, %v10124_v52  ;;  %v7789_v23 = vadd.f32 %v3369_v49, %v10108_v33  ;;  %v7642_v35 = vpop.f32.mrb[75].mxu0  ;;  %v4107_v46 = vsel %vm4049_vm3, %v4105_v14, %v4106_v31 }
 0x4f0   : > { %v4108_v40 = vrot.slane %v3950_v54, 1  ;;  %v4253_v32 = vrot.slane %v3950_v54, 2  ;;  %v4252_v36 = vsel %vm4194_vm4, %v4250_v41, %v4251_v51 }
 0x4f1   : > { %v3541_v43 = vadd.f32 %v10127_v0, %v3480_v30  ;;  %v3481_v34 = vmul.f32 %v7789_v23, %v10124_v52 }
 0x4f2   : > { %v4109_v6 = vsel %vm4049_vm3, %v4106_v31, %v4108_v40  ;;  %v4254_v22 = vsel %vm4194_vm4, %v4251_v51, %v4253_v32 }
 0x4f3   : > { %v3595_v10 = vmax.f32 %v3541_v43, 0.0  ;;  %v3542_v29 = vadd.f32 %v10127_v0, %v3481_v34  ;;  %v10453_v19 = vpack.c.bf16 %v4109_v6, %v4107_v46  ;;  %v10455_v33 = vpack.c.bf16 %v4254_v22, %v4252_v36 }
 0x4f4   : > { %v3374_v14 = vpop.f32.mrb[76].mxu0 }
 0x4f5   : > { %11438 = vst [vmem:[#allocation45_spill] sm:$0xff] %v10455_v33  ;;  %v3951_v49 = vsel %vm3693_vm1, %v3595_v10, 0.0  ;;  %v3596_v41 = vmax.f32 %v3542_v29, 0.0  ;;  %v7790_v54 = vadd.f32 %v3374_v14, %v10110_v42  ;;  %v7645_v30 = vpop.f32.mrb[77].mxu0  ;;  %5315 = vmatprep.mubr.bf16.mxu1 %v10453_v19 }
 0x4f6   : > { %v4110_v31 = vrot.slane %v3951_v49, 1  ;;  %v4255_v23 = vrot.slane %v3951_v49, 2  ;;  %v3377_v51 = vpop.f32.mrb[78].mxu0  ;;  %6938 = vmatmul.mubr.msk.bf16.gmra.mrb[156].mxu1 %vm10173_vm6, %v10440_v1 }
 0x4f7   : > { %v3482_v35 = vmul.f32 %v7790_v54, %v10124_v52  ;;  %v7791_v46 = vadd.f32 %v3377_v51, %v10114_v7  ;;  %v7646_v40 = vpop.f32.mrb[79].mxu0  ;;  %v4111_v32 = vrot.slane %v3596_v41, 1  ;;  %v10466_v36 = vpack.c.bf16 %v3596_v41, %v3595_v10 }
 0x4f8   : > { %v4256_v43 = vrot.slane %v3596_v41, 2 }
 0x4f9   : > { %11439 = vst [vmem:[#allocation46_spill] sm:$0xff] %v10466_v36  ;;  %v3543_v42 = vadd.f32 %v10127_v0, %v3482_v35  ;;  %v3483_v34 = vmul.f32 %v7791_v46, %v10124_v52  ;;  %v4112_v6 = vsel %vm4049_vm3, %v4110_v31, %v4111_v32 }
 0x4fa   : > { %v4257_v22 = vsel %vm4194_vm4, %v4255_v23, %v4256_v43 }
 0x4fb   : > { %v3597_v29 = vmax.f32 %v3543_v42, 0.0  ;;  %v3544_v14 = vadd.f32 %v10127_v0, %v3483_v34 }
 0x4fc   : > { %v3382_v49 = vpop.f32.mrb[80].mxu0 }
 0x4fd   : > { %v3953_v7 = vsel %vm3752_vm2, %v3597_v29, 0.0  ;;  %v3598_v54 = vmax.f32 %v3544_v14, 0.0  ;;  %v7792_v10 = vadd.f32 %v3382_v49, %v10116_v57  ;;  %v7649_v30 = vpop.f32.mrb[81].mxu0 }
 0x4fe   : > { %v4113_v41 = vrot.slane %v3953_v7, 1  ;;  %v4258_v51 = vrot.slane %v3953_v7, 2  ;;  %v3385_v35 = vpop.f32.mrb[82].mxu0 }
 0x4ff   : > { %v3484_v46 = vmul.f32 %v7792_v10, %v10124_v52  ;;  %v7793_v31 = vadd.f32 %v3385_v35, %v10118_v12  ;;  %v7650_v40 = vpop.f32.mrb[83].mxu0  ;;  %v3954_v23 = vsel %vm3693_vm1, %v3598_v54, 0.0 }
 0x500   : > { %v4114_v42 = vsel %vm4049_vm3, %v4111_v32, %v4113_v41  ;;  %v4259_v34 = vsel %vm4194_vm4, %v4256_v43, %v4258_v51  ;;  %v4115_v12 = vrot.slane %v3954_v23, 1 }
 0x501   : > { %v3545_v29 = vadd.f32 %v10127_v0, %v3484_v46  ;;  %v3485_v57 = vmul.f32 %v7793_v31, %v10124_v52  ;;  %v10484_v14 = vpack.c.bf16 %v4114_v42, %v4112_v6  ;;  %v10486_v49 = vpack.c.bf16 %v4259_v34, %v4257_v22  ;;  %v10498_v46 = vld [vmem:[#allocation9] ss:$0 sm:$0xff] }
 0x502   : > { %v4260_v22 = vrot.slane %v3954_v23, 2 }
 0x503   : > { %11440 = vst [vmem:[#allocation47_spill] sm:$0xff] %v10486_v49  ;;  %v3599_v7 = vmax.f32 %v3545_v29, 0.0  ;;  %v3546_v10 = vadd.f32 %v10127_v0, %v3485_v57  ;;  %5323 = vmatprep.mubr.bf16.mxu1 %v10484_v14  ;;  %v10504_v57 = vld [vmem:[#allocation10] ss:$0 sm:$0xff] }
 0x504   : > { %v3390_v30 = vpop.f32.mrb[84].mxu0  ;;  %6941 = vmatmul.mubr.msk.bf16.gmra.mrb[160].mxu1 %vm10173_vm6, %v10466_v36 }
 0x505   : > { %v3600_v32 = vmax.f32 %v3546_v10, 0.0  ;;  %v7794_v43 = vadd.f32 %v3390_v30, %v10120_v56  ;;  %v7653_v41 = vpop.f32.mrb[85].mxu0  ;;  %v4116_v52 = vrot.slane %v3599_v7, 1  ;;  %v10494_v6 = vpack.c.bf16 %v3599_v7, %v3598_v54 }
 0x506   : > { %v3393_v51 = vpop.f32.mrb[86].mxu0  ;;  %v4261_v35 = vrot.slane %v3599_v7, 2 }
 0x507   : > { %11441 = vst [vmem:[#allocation48_spill] sm:$0xff] %v10494_v6  ;;  %v3956_v0 = vsel %vm3752_vm2, %v3600_v32, 0.0  ;;  %v3486_v31 = vmul.f32 %v10498_v46, %v7794_v43  ;;  %v7795_v40 = vadd.f32 %v3393_v51, %v10122_v37  ;;  %v7654_v42 = vpop.f32.mrb[87].mxu0  ;;  %v4117_v34 = vsel %vm4049_vm3, %v4115_v12, %v4116_v52 }
 0x508   : > { %v4118_v56 = vrot.slane %v3956_v0, 1  ;;  %v4263_v29 = vrot.slane %v3956_v0, 2  ;;  %v4262_v54 = vsel %vm4194_vm4, %v4260_v22, %v4261_v35 }
 0x509   : > { %v3547_v23 = vadd.f32 %v10504_v57, %v3486_v31  ;;  %v3487_v7 = vmul.f32 %v10498_v46, %v7795_v40 }
 0x50a   : > { %v4119_v10 = vsel %vm4049_vm3, %v4116_v52, %v4118_v56  ;;  %v4264_v30 = vsel %vm4194_vm4, %v4261_v35, %v4263_v29 }
 0x50b   : > { %v3601_v32 = vmax.f32 %v3547_v23, 0.0  ;;  %v3548_v37 = vadd.f32 %v10504_v57, %v3487_v7  ;;  %v10511_v43 = vpack.c.bf16 %v4119_v10, %v4117_v34  ;;  %v10513_v12 = vpack.c.bf16 %v4264_v30, %v4262_v54 }
 0x50c   : > { %v3398_v41 = vpop.f32.mrb[88].mxu0 }
 0x50d   : > { %11442 = vst [vmem:[#allocation49_spill] sm:$0xff] %v10511_v43  ;;  %11443 = vst [vmem:[#allocation50_spill] sm:$0xff] %v10513_v12  ;;  %v3957_v22 = vsel %vm3693_vm1, %v3601_v32, 0.0  ;;  %v3602_v51 = vmax.f32 %v3548_v37, 0.0  ;;  %v7796_v0 = vadd.f32 %v3398_v41, %v10130_v16  ;;  %v7657_v31 = vpop.f32.mrb[89].mxu0  ;;  %5331 = vmatprep.mubr.bf16.mxu1 %v10511_v43  ;;  %v11446_v43 = vld [vmem:[#allocation24_spill] sm:$0xff] }
 0x50e   : > { %v4120_v52 = vrot.slane %v3957_v22, 1  ;;  %v4265_v40 = vrot.slane %v3957_v22, 2  ;;  %v3401_v35 = vpop.f32.mrb[90].mxu0  ;;  %6944 = vmatmul.mubr.msk.bf16.gmra.mrb[164].mxu1 %vm10173_vm6, %v10494_v6  ;;  %v11445_v31 = vld [vmem:[#allocation23_spill] sm:$0xff] }
 0x50f   : > { %v3488_v42 = vmul.f32 %v10498_v46, %v7796_v0  ;;  %v7797_v34 = vadd.f32 %v3401_v35, %v10135_v18  ;;  %v7658_v56 = vpop.f32.mrb[91].mxu0  ;;  %v4121_v29 = vrot.slane %v3602_v51, 1  ;;  %v10524_v54 = vpack.c.bf16 %v3602_v51, %v3601_v32 }
 0x510   : > { %v4266_v23 = vrot.slane %v3602_v51, 2 }
 0x511   : > { %11444 = vst [vmem:[#allocation51_spill] sm:$0xff] %v10524_v54  ;;  %v3549_v16 = vadd.f32 %v10504_v57, %v3488_v42  ;;  %v3489_v7 = vmul.f32 %v10498_v46, %v7797_v34  ;;  %v4122_v10 = vsel %vm4049_vm3, %v4120_v52, %v4121_v29 }
 0x512   : > { %v4267_v30 = vsel %vm4194_vm4, %v4265_v40, %v4266_v23 }
 0x513   : > { %v3603_v37 = vmax.f32 %v3549_v16, 0.0  ;;  %v3550_v41 = vadd.f32 %v10504_v57, %v3489_v7 }
 0x514   : > { %v3406_v22 = vpop.f32.mrb[96].mxu0 }
 0x515   : > { %v3959_v18 = vsel %vm3752_vm2, %v3603_v37, 0.0  ;;  %v3604_v0 = vmax.f32 %v3550_v41, 0.0  ;;  %v7798_v32 = vadd.f32 %v3406_v22, %v11445_v31  ;;  %v7661_v35 = vpop.f32.mrb[97].mxu0 }
 0x516   : > { %v4123_v51 = vrot.slane %v3959_v18, 1  ;;  %v4268_v56 = vrot.slane %v3959_v18, 2  ;;  %v3409_v42 = vpop.f32.mrb[98].mxu0 }
 0x517   : > { %v3490_v34 = vmul.f32 %v10498_v46, %v7798_v32  ;;  %v7799_v52 = vadd.f32 %v3409_v42, %v11446_v43  ;;  %v7662_v39 = vpop.f32.mrb[99].mxu0  ;;  %v3960_v40 = vsel %vm3693_vm1, %v3604_v0, 0.0 }
 0x518   : > { %v4124_v16 = vsel %vm4049_vm3, %v4121_v29, %v4123_v51  ;;  %v4269_v7 = vsel %vm4194_vm4, %v4266_v23, %v4268_v56  ;;  %v4125_v39 = vrot.slane %v3960_v40, 1 }
 0x519   : > { %v3551_v37 = vadd.f32 %v10504_v57, %v3490_v34  ;;  %v3491_v41 = vmul.f32 %v10498_v46, %v7799_v52  ;;  %v10542_v22 = vpack.c.bf16 %v4124_v16, %v4122_v10  ;;  %v10544_v18 = vpack.c.bf16 %v4269_v7, %v4267_v30  ;;  %v11449_v16 = vld [vmem:[#allocation27_spill] sm:$0xff] }
 0x51a   : > { %v4270_v30 = vrot.slane %v3960_v40, 2 }
 0x51b   : > { %11447 = vst [vmem:[#allocation23_spill] sm:$0xff] %v10542_v22  ;;  %v3605_v31 = vmax.f32 %v3551_v37, 0.0  ;;  %v3552_v32 = vadd.f32 %v10504_v57, %v3491_v41  ;;  %5339 = vmatprep.mubr.bf16.mxu1 %v10542_v22 }
 0x51c   : > { %v3414_v43 = vpop.f32.mrb[100].mxu0  ;;  %6947 = vmatmul.mubr.msk.bf16.gmra.mrb[168].mxu1 %vm10173_vm6, %v10524_v54 }
 0x51d   : > { %v3606_v29 = vmax.f32 %v3552_v32, 0.0  ;;  %v7800_v23 = vadd.f32 %v3414_v43, %v10164_v38  ;;  %v7665_v35 = vpop.f32.mrb[101].mxu0  ;;  %v4126_v51 = vrot.slane %v3605_v31, 1  ;;  %v10552_v10 = vpack.c.bf16 %v3605_v31, %v3604_v0 }
 0x51e   : > { %v3417_v56 = vpop.f32.mrb[102].mxu0  ;;  %v4271_v42 = vrot.slane %v3605_v31, 2 }
 0x51f   : > { %11448 = vst [vmem:[#allocation24_spill] sm:$0xff] %v10552_v10  ;;  %v3962_v34 = vsel %vm3752_vm2, %v3606_v29, 0.0  ;;  %v3492_v52 = vmul.f32 %v10498_v46, %v7800_v23  ;;  %v7801_v7 = vadd.f32 %v3417_v56, %v11449_v16  ;;  %v7666_v37 = vpop.f32.mrb[103].mxu0  ;;  %v4127_v41 = vsel %vm4049_vm3, %v4125_v39, %v4126_v51  ;;  %v11450_v16 = vld [vmem:[#allocation29_spill] sm:$0xff] }
 0x520   : > { %v4128_v32 = vrot.slane %v3962_v34, 1  ;;  %v4273_v22 = vrot.slane %v3962_v34, 2  ;;  %v4272_v38 = vsel %vm4194_vm4, %v4270_v30, %v4271_v42 }
 0x521   : > { %v3553_v0 = vadd.f32 %v10504_v57, %v3492_v52  ;;  %v3493_v40 = vmul.f32 %v10498_v46, %v7801_v7 }
 0x522   : > { %v4129_v31 = vsel %vm4049_vm3, %v4126_v51, %v4128_v32  ;;  %v4274_v43 = vsel %vm4194_vm4, %v4271_v42, %v4273_v22  ;;  %v11451_v42 = vmov 0.0  }
 0x523   : > { %v3607_v29 = vmax.f32 %v3553_v0, 0.0  ;;  %v3554_v23 = vadd.f32 %v10504_v57, %v3493_v40  ;;  %v10565_v35 = vpack.c.bf16 %v4129_v31, %v4127_v41  ;;  %v10567_v56 = vpack.c.bf16 %v4274_v43, %v4272_v38  ;;  %v11452_v0 = vld [vmem:[#allocation25_spill] sm:$0xff] }
 0x524   : > { %v3422_v39 = vpop.f32.mrb[104].mxu0  ;;  %v4195_v41 = vrot.slane %v11451_v42, 2 }
 0x525   : > { %v3963_v34 = vsel %vm3693_vm1, %v3607_v29, 0.0  ;;  %v3608_v30 = vmax.f32 %v3554_v23, 0.0  ;;  %v7802_v52 = vadd.f32 %v3422_v39, %v11450_v16  ;;  %v7669_v37 = vpop.f32.mrb[105].mxu0  ;;  %5347 = vmatprep.mubr.bf16.mxu1 %v10565_v35 }
 0x526   : > { %v4359_v51 = vrot.slane %v3963_v34, 1  ;;  %v4383_v7 = vrot.slane %v3963_v34, 2  ;;  %v3425_v22 = vpop.f32.mrb[106].mxu0  ;;  %6950 = vmatmul.mubr.msk.bf16.gmra.mrb[172].mxu1 %vm10173_vm6, %v10552_v10  ;;  %v10586_v34 = vpack.c.bf16 %v4195_v41, %v4195_v41  ;;  %v8345_v37 = vld [vmem:[#allocation12 + $0x100] sm:$0xff]   ;;  %v8349_v41 = vld [vmem:[#allocation12 + $0x110] sm:$0xff]  }
 0x527   : > { %v4360_v32 = vrot.slane %v3608_v30, 1  ;;  %v3494_v38 = vmul.f32 %v10498_v46, %v7802_v52  ;;  %v7670_v11 = vpop.f32.mrb[107].mxu0  ;;  %6953 = vmatprep.mubr.msk.bf16.mxu1 %vm10173_vm6, %v11452_v0  ;;  %v10581_v40 = vpack.c.bf16 %v3608_v30, %v3607_v29  ;;  %v4384_v31 = vrot.slane %v3608_v30, 2  ;;  %v8346_v22 = vld [vmem:[#allocation12 + $0x148] sm:$0xff]   ;;  %v8348_v30 = vld [vmem:[#allocation12 + $0x150] sm:$0xff]   ;;  %v8352_v0 = vld [vmem:[#allocation12 + $0x160] sm:$0xff]  }
 0x528   : > { %11454 = vst [vmem:[#allocation29_spill] sm:$0xff] %v10586_v34  ;;  %v11456_v11 = vld [vmem:[#allocation28_spill] sm:$0xff] }
 0x529   : > { %11453 = vst [vmem:[#allocation27_spill] sm:$0xff] %v10581_v40  ;;  %v4361_v43 = vsel %vm4049_vm3, %v4359_v51, %v4360_v32  ;;  %v3555_v23 = vadd.f32 %v10504_v57, %v3494_v38  ;;  %v4385_v39 = vsel %vm4194_vm4, %v4383_v7, %v4384_v31  ;;  %v8347_v57 = vld [vmem:[#allocation12 + $0x108] sm:$0xff]   ;;  %v8350_v38 = vld [vmem:[#allocation12 + $0x158] sm:$0xff]  }
 0x52b   : > { %v3609_v16 = vmax.f32 %v3555_v23, 0.0  ;;  %v8355_v23 = vld [vmem:[#allocation12 + $0x128] sm:$0xff]  }
 0x52d   : > { %v3965_v46 = vsel %vm3752_vm2, %v3609_v16, 0.0  ;;  %v8357_v16 = vld [vmem:[#allocation12 + $0x130] sm:$0xff]  }
 0x52e   : > { %v4362_v52 = vrot.slane %v3965_v46, 1  ;;  %v4386_v42 = vrot.slane %v3965_v46, 2  ;;  %5389 = vmatmul.mubr.bf16.vlgmr.msra.gmra.mrb[176].mxu1 %v10586_v34  ;;  %v8360_v46 = vld [vmem:[#allocation12 + $0x1c0] sm:$0xff]  }
 0x52f   : > { %6956 = vmatprep.mubr.msk.bf16.mxu1 %vm10173_vm6, %v10190_v3  ;;  %7304 = vmatpush3.bf16.msra.mxu1 %v8345_v37  ;;  %v8358_v37 = vld [vmem:[#allocation12 + $0x178] sm:$0xff]  }
 0x530   : > { %v4363_v29 = vsel %vm4049_vm3, %v4360_v32, %v4362_v52  ;;  %7305 = vmatprep.subr.bf16.mxu1 %v8346_v22  ;;  %v4387_v51 = vsel %vm4194_vm4, %v4384_v31, %v4386_v42  ;;  %v8351_v32 = vld [vmem:[#allocation12 + $0x118] sm:$0xff]   ;;  %v8353_v31 = vld [vmem:[#allocation12 + $0x120] sm:$0xff]  }
 0x531   : > { %v10596_v7 = vpack.c.bf16 %v4363_v29, %v4361_v43  ;;  %v10598_v60 = vpack.c.bf16 %v4387_v51, %v4385_v39  ;;  %v8354_v43 = vld [vmem:[#allocation12 + $0x168] sm:$0xff]   ;;  %v8356_v39 = vld [vmem:[#allocation12 + $0x170] sm:$0xff]   ;;  %v8359_v22 = vld [vmem:[#allocation12 + $0x138] sm:$0xff]  }
 0x533   : > { %11455 = vst [vmem:[#allocation25_spill] sm:$0xff] %v10598_v60  ;;  %7306 = vmatpush3.bf16.msra.mxu1 %v8347_v57 }
 0x534   : > { %7307 = vmatprep.subr.bf16.mxu1 %v8348_v30 }
 0x536   : > { %5397 = vmatmul.mubr.bf16.gmra.mrb[180].mxu1 %v11456_v11 }
 0x537   : > { %6959 = vmatprep.mubr.msk.bf16.mxu1 %vm10173_vm6, %v10220_v61  ;;  %7308 = vmatpush3.bf16.msra.mxu1 %v8349_v41 }
 0x538   : > { %7309 = vmatprep.subr.bf16.mxu1 %v8350_v38 }
 0x53b   : > { %7310 = vmatpush3.bf16.msra.mxu1 %v8351_v32 }
 0x53c   : > { %7311 = vmatprep.subr.bf16.mxu1 %v8352_v0 }
 0x53e   : > { %5405 = vmatmul.mubr.bf16.gmra.mrb[184].mxu1 %v10212_v25 }
 0x53f   : > { %6962 = vmatprep.mubr.msk.bf16.mxu1 %vm10173_vm6, %v10246_v2  ;;  %7312 = vmatpush3.bf16.msra.mxu1 %v8353_v31 }
 0x540   : > { %7313 = vmatprep.subr.bf16.mxu1 %v8354_v43 }
 0x543   : > { %7314 = vmatpush3.bf16.msra.mxu1 %v8355_v23 }
 0x544   : > { %7315 = vmatprep.subr.bf16.mxu1 %v8356_v39 }
 0x546   : > { %5413 = vmatmul.mubr.bf16.gmra.mrb[188].mxu1 %v10235_v5 }
 0x547   : > { %6965 = vmatprep.mubr.msk.bf16.mxu1 %vm10173_vm6, %v10274_v21  ;;  %7316 = vmatpush3.bf16.msra.mxu1 %v8357_v16 }
 0x548   : > { %7317 = vmatprep.subr.bf16.mxu1 %v8358_v37 }
 0x54b   : > { %7318 = vmatpush3.bf16.msra.mxu1 %v8359_v22 }
 0x54c   : > { %7415 = vmatprep.subr.bf16.mxu1 %v8360_v46 }
 0x54e   : > { %5421 = vmatmul.mubr.bf16.gmra.mrb[192].mxu1 %v10266_v17 }
 0x54f   : > { %6968 = vmatprep.mubr.msk.bf16.mxu1 %vm10173_vm6, %v10300_v50 }
 0x551   : > { %v7101_v52 = vpop.f32.mrb[116].mxu1 }
 0x552   : > { %v7102_v42 = vpop.f32.mrb[117].mxu1 }
 0x553   : > { %v10616_v57 = vadd.f32 %v7102_v42, %v7101_v52  ;;  %v7104_v29 = vpop.f32.mrb[118].mxu1 }
 0x554   : > { %v7105_v30 = vpop.f32.mrb[119].mxu1 }
 0x555   : > { %v10618_v51 = vadd.f32 %v7105_v30, %v7104_v29 }
 0x556   : > { %5429 = vmatmul.mubr.bf16.gmra.mrb[196].mxu1 %v10289_v8 }
 0x557   : > { %6971 = vmatprep.mubr.msk.bf16.mxu1 %vm10173_vm6, %v10328_v4 }
 0x55e   : > { %5437 = vmatmul.mubr.bf16.gmra.mrb[200].mxu1 %v10320_v20 }
 0x55f   : > { %v7107_v41 = vpop.f32.mrb[120].mxu1  ;;  %6974 = vmatprep.mubr.msk.bf16.mxu1 %vm10173_vm6, %v10354_v9 }
 0x560   : > { %v7108_v38 = vpop.f32.mrb[121].mxu1 }
 0x561   : > { %v10628_v32 = vadd.f32 %v7108_v38, %v7107_v41  ;;  %v7110_v0 = vpop.f32.mrb[122].mxu1 }
 0x562   : > { %v7111_v31 = vpop.f32.mrb[123].mxu1 }
 0x563   : > { %v10630_v43 = vadd.f32 %v7111_v31, %v7110_v0 }
 0x566   : > { %5445 = vmatmul.mubr.bf16.gmra.mrb[204].mxu1 %v10343_v13 }
 0x567   : > { %6977 = vmatprep.mubr.msk.bf16.mxu1 %vm10173_vm6, %v10386_v45 }
 0x569   : > { %v7113_v23 = vpop.f32.mrb[124].mxu1 }
 0x56a   : > { %v7114_v39 = vpop.f32.mrb[125].mxu1 }
 0x56b   : > { %v10636_v16 = vadd.f32 %v7114_v39, %v7113_v23  ;;  %v7116_v37 = vpop.f32.mrb[126].mxu1 }
 0x56c   : > { %v7117_v22 = vpop.f32.mrb[127].mxu1 }
 0x56d   : > { %v10638_v46 = vadd.f32 %v7117_v22, %v7116_v37 }
 0x56e   : > { %5453 = vmatmul.mubr.bf16.gmra.mrb[208].mxu1 %v10378_v58 }
 0x56f   : > { %6980 = vmatprep.mubr.msk.bf16.mxu1 %vm10173_vm6, %v10412_v24 }
 0x576   : > { %5461 = vmatmul.mubr.bf16.gmra.mrb[212].mxu1 %v10401_v63 }
 0x577   : > { %v7119_v52 = vpop.f32.mrb[128].mxu1  ;;  %6983 = vmatprep.mubr.msk.bf16.mxu1 %vm10173_vm6, %v10440_v1  ;;  %v8364_v1 = vld [vmem:[#allocation12 + $0x1d0] sm:$0xff]  }
 0x578   : > { %v7120_v42 = vpop.f32.mrb[129].mxu1 }
 0x579   : > { %v10648_v29 = vadd.f32 %v7120_v42, %v7119_v52  ;;  %v7122_v30 = vpop.f32.mrb[130].mxu1 }
 0x57a   : > { %v7123_v41 = vpop.f32.mrb[131].mxu1 }
 0x57b   : > { %v10650_v38 = vadd.f32 %v7123_v41, %v7122_v30 }
 0x57e   : > { %5469 = vmatmul.mubr.bf16.gmra.mrb[216].mxu1 %v10432_v55 }
 0x57f   : > { %6986 = vmatprep.mubr.msk.bf16.mxu1 %vm10173_vm6, %v10466_v36 }
 0x581   : > { %v7125_v0 = vpop.f32.mrb[132].mxu1 }
 0x582   : > { %v7126_v31 = vpop.f32.mrb[133].mxu1 }
 0x583   : > { %v10656_v23 = vadd.f32 %v7126_v31, %v7125_v0  ;;  %v7128_v39 = vpop.f32.mrb[134].mxu1 }
 0x584   : > { %v7129_v37 = vpop.f32.mrb[135].mxu1 }
 0x585   : > { %v10658_v22 = vadd.f32 %v7129_v37, %v7128_v39 }
 0x586   : > { %5477 = vmatmul.mubr.bf16.gmra.mrb[220].mxu1 %v10455_v33 }
 0x587   : > { %6989 = vmatprep.mubr.msk.bf16.mxu1 %vm10173_vm6, %v10494_v6 }
 0x58e   : > { %5485 = vmatmul.mubr.bf16.gmra.mrb[224].mxu1 %v10486_v49 }
 0x58f   : > { %v7131_v52 = vpop.f32.mrb[136].mxu1  ;;  %6992 = vmatprep.mubr.msk.bf16.mxu1 %vm10173_vm6, %v10524_v54 }
 0x590   : > { %v7132_v42 = vpop.f32.mrb[137].mxu1 }
 0x591   : > { %v10668_v30 = vadd.f32 %v7132_v42, %v7131_v52  ;;  %v7134_v41 = vpop.f32.mrb[138].mxu1 }
 0x592   : > { %v7135_v0 = vpop.f32.mrb[139].mxu1 }
 0x593   : > { %v10670_v31 = vadd.f32 %v7135_v0, %v7134_v41 }
 0x596   : > { %5493 = vmatmul.mubr.bf16.gmra.mrb[228].mxu1 %v10513_v12 }
 0x597   : > { %6995 = vmatprep.mubr.msk.bf16.mxu1 %vm10173_vm6, %v10552_v10  ;;  %v11457_v10 = vld [vmem:[#allocation26_spill] sm:$0xff] }
 0x599   : > { %v7137_v39 = vpop.f32.mrb[140].mxu1 }
 0x59a   : > { %v7138_v37 = vpop.f32.mrb[141].mxu1 }
 0x59b   : > { %v10676_v34 = vadd.f32 %v7138_v37, %v7137_v39  ;;  %v7140_v6 = vpop.f32.mrb[142].mxu1 }
 0x59c   : > { %v7141_v36 = vpop.f32.mrb[143].mxu1 }
 0x59d   : > { %v10678_v54 = vadd.f32 %v7141_v36, %v7140_v6  ;;  %v8361_v36 = vld [vmem:[#allocation12 + $0x180] sm:$0xff]   ;;  %v8362_v6 = vld [vmem:[#allocation12 + $0x1c8] sm:$0xff]  }
 0x59e   : > { %5501 = vmatmul.mubr.bf16.gmra.mrb[232].mxu1 %v10544_v18 }
 0x59f   : > { %6998 = vmatprep.mubr.msk.bf16.mxu1 %vm10173_vm6, %v10581_v40  ;;  %v8363_v40 = vld [vmem:[#allocation12 + $0x188] sm:$0xff]  }
 0x5a6   : > { %5509 = vmatmul.mubr.bf16.gmra.mrb[236].mxu1 %v10567_v56 }
 0x5a7   : > { %v7143_v52 = vpop.f32.mrb[144].mxu1  ;;  %5549 = vmatprep.mubr.bf16.mxu1 %v11456_v11 }
 0x5a8   : > { %v7144_v42 = vpop.f32.mrb[145].mxu1 }
 0x5a9   : > { %v10686_v41 = vadd.f32 %v7144_v42, %v7143_v52  ;;  %v7146_v0 = vpop.f32.mrb[146].mxu1  ;;  %v8365_v42 = vld [vmem:[#allocation12 + $0x190] sm:$0xff]  }
 0x5aa   : > { %v7147_v39 = vpop.f32.mrb[147].mxu1 }
 0x5ab   : > { %v10688_v37 = vadd.f32 %v7147_v39, %v7146_v0  ;;  %v8366_v0 = vld [vmem:[#allocation12 + $0x1d8] sm:$0xff]  }
 0x5ae   : > { %5550 = vmatmul.mubr.bf16.vlgmr.msra.gmra.mrb[240].mxu1 %v11457_v10  ;;  %v8367_v10 = vld [vmem:[#allocation12 + $0x198] sm:$0xff]  }
 0x5af   : > { %5557 = vmatprep.mubr.bf16.mxu1 %v10212_v25  ;;  %7416 = vmatpush3.bf16.msra.mxu1 %v8361_v36  ;;  %v8368_v36 = vld [vmem:[#allocation12 + $0x1e0] sm:$0xff]  }
 0x5b0   : > { %7417 = vmatprep.subr.bf16.mxu1 %v8362_v6  ;;  %v8369_v6 = vld [vmem:[#allocation12 + $0x1a0] sm:$0xff]  }
 0x5b1   : > { %v7149_v24 = vpop.f32.mrb[148].mxu1 }
 0x5b2   : > { %v7150_v45 = vpop.f32.mrb[149].mxu1 }
 0x5b3   : > { %v10692_v11 = vadd.f32 %v7150_v45, %v7149_v24  ;;  %v7152_v52 = vpop.f32.mrb[150].mxu1  ;;  %7418 = vmatpush3.bf16.msra.mxu1 %v8363_v40  ;;  %v8370_v45 = vld [vmem:[#allocation12 + $0x1e8] sm:$0xff]   ;;  %v8372_v40 = vld [vmem:[#allocation12 + $0x1f0] sm:$0xff]  }
 0x5b4   : > { %v7153_v9 = vpop.f32.mrb[151].mxu1  ;;  %7419 = vmatprep.subr.bf16.mxu1 %v8364_v1 }
 0x5b5   : > { %v10694_v39 = vadd.f32 %v7153_v9, %v7152_v52  ;;  %v8371_v9 = vld [vmem:[#allocation12 + $0x1a8] sm:$0xff]  }
 0x5b6   : > { %5558 = vmatmul.mubr.bf16.gmra.mrb[244].mxu1 %v10210_v62 }
 0x5b7   : > { %5565 = vmatprep.mubr.bf16.mxu1 %v10235_v5  ;;  %7420 = vmatpush3.bf16.msra.mxu1 %v8365_v42 }
 0x5b8   : > { %7421 = vmatprep.subr.bf16.mxu1 %v8366_v0 }
 0x5bb   : > { %7422 = vmatpush3.bf16.msra.mxu1 %v8367_v10  ;;  %v8373_v10 = vld [vmem:[#allocation12 + $0x1b0] sm:$0xff]  }
 0x5bc   : > { %7423 = vmatprep.subr.bf16.mxu1 %v8368_v36  ;;  %v8374_v36 = vld [vmem:[#allocation12 + $0x1f8] sm:$0xff]  }
 0x5be   : > { %5566 = vmatmul.mubr.bf16.gmra.mrb[248].mxu1 %v10233_v27 }
 0x5bf   : > { %v7155_v24 = vpop.f32.mrb[152].mxu1  ;;  %5573 = vmatprep.mubr.bf16.mxu1 %v10266_v17  ;;  %7424 = vmatpush3.bf16.msra.mxu1 %v8369_v6  ;;  %v8375_v6 = vld [vmem:[#allocation12 + $0x1b8] sm:$0xff]   ;;  %v10706_v17 = vld [vmem:[#allocation12 + $0x200] sm:$0xff]  }
 0x5c0   : > { %v7156_v1 = vpop.f32.mrb[153].mxu1  ;;  %7425 = vmatprep.subr.bf16.mxu1 %v8370_v45 }
 0x5c1   : > { %v10700_v52 = vadd.f32 %v7156_v1, %v7155_v24  ;;  %v7158_v42 = vpop.f32.mrb[154].mxu1 }
 0x5c2   : > { %v7159_v5 = vpop.f32.mrb[155].mxu1 }
 0x5c3   : > { %v10702_v0 = vadd.f32 %v7159_v5, %v7158_v42  ;;  %7426 = vmatpush3.bf16.msra.mxu1 %v8371_v9 }
 0x5c4   : > { %7427 = vmatprep.subr.bf16.mxu1 %v8372_v40 }
 0x5c6   : > { %5574 = vmatmul.mubr.bf16.gmra.mrb[252].mxu1 %v10264_v15 }
 0x5c7   : > { %5581 = vmatprep.mubr.bf16.mxu1 %v10289_v8  ;;  %7428 = vmatpush3.bf16.msra.mxu1 %v8373_v10 }
 0x5c8   : > { %7429 = vmatprep.subr.bf16.mxu1 %v8374_v36 }
 0x5c9   : > { %v7161_v45 = vpop.f32.mrb[156].mxu1 }
 0x5ca   : > { %v7162_v24 = vpop.f32.mrb[157].mxu1 }
 0x5cb   : > { %v10708_v1 = vadd.f32 %v7162_v24, %v7161_v45  ;;  %v7164_v25 = vpop.f32.mrb[158].mxu1  ;;  %7430 = vmatpush3.bf16.msra.mxu1 %v8375_v6  ;;  %v11460_v24 = vld [vmem:[#allocation35_spill] sm:$0xff] }
 0x5cc   : > { %v7165_v5 = vpop.f32.mrb[159].mxu1  ;;  %7675 = vmatprep.subr.bf16.mxu1 %v10706_v17 }
 0x5cd   : > { %11458 = vst [vmem:[#allocation28_spill] sm:$0xff] %v10708_v1  ;;  %v10711_v9 = vadd.f32 %v7165_v5, %v7164_v25 }
 0x5ce   : > { %5582 = vmatmul.mubr.bf16.gmra.mrb[0].mxu1 %v10287_v26 }
 0x5cf   : > { %11459 = vst [vmem:[#allocation26_spill] sm:$0xff] %v10711_v9  ;;  %5589 = vmatprep.mubr.bf16.mxu1 %v10320_v20 }
 0x5d6   : > { %5590 = vmatmul.mubr.bf16.gmra.mrb[104].mxu1 %v10318_v44 }
 0x5d7   : > { %v7167_v40 = vpop.f32.mrb[160].mxu1  ;;  %5597 = vmatprep.mubr.bf16.mxu1 %v10343_v13 }
 0x5d8   : > { %v7168_v42 = vpop.f32.mrb[161].mxu1 }
 0x5d9   : > { %v10717_v10 = vadd.f32 %v7168_v42, %v7167_v40  ;;  %v7170_v36 = vpop.f32.mrb[162].mxu1 }
 0x5da   : > { %v7171_v45 = vpop.f32.mrb[163].mxu1 }
 0x5db   : > { %v10719_v6 = vadd.f32 %v7171_v45, %v7170_v36 }
 0x5de   : > { %5598 = vmatmul.mubr.bf16.gmra.mrb[4].mxu1 %v11460_v24 }
 0x5df   : > { %5605 = vmatprep.mubr.bf16.mxu1 %v10378_v58 }
 0x5e1   : > { %v7173_v25 = vpop.f32.mrb[164].mxu1 }
 0x5e2   : > { %v7174_v5 = vpop.f32.mrb[165].mxu1 }
 0x5e3   : > { %v10723_v8 = vadd.f32 %v7174_v5, %v7173_v25  ;;  %v7176_v20 = vpop.f32.mrb[166].mxu1 }
 0x5e4   : > { %v7177_v9 = vpop.f32.mrb[167].mxu1 }
 0x5e5   : > { %v10725_v1 = vadd.f32 %v7177_v9, %v7176_v20 }
 0x5e6   : > { %5606 = vmatmul.mubr.bf16.gmra.mrb[8].mxu1 %v10375_v48 }
 0x5e7   : > { %11461 = vst [vmem:[#allocation35_spill] sm:$0xff] %v10725_v1  ;;  %5613 = vmatprep.mubr.bf16.mxu1 %v10401_v63 }
 0x5ee   : > { %5614 = vmatmul.mubr.bf16.gmra.mrb[12].mxu1 %v10399_v47 }
 0x5ef   : > { %v7179_v40 = vpop.f32.mrb[168].mxu1  ;;  %5621 = vmatprep.mubr.bf16.mxu1 %v10432_v55 }
 0x5f0   : > { %v7180_v42 = vpop.f32.mrb[169].mxu1 }
 0x5f1   : > { %v10731_v36 = vadd.f32 %v7180_v42, %v7179_v40  ;;  %v7182_v45 = vpop.f32.mrb[170].mxu1 }
 0x5f2   : > { %v7183_v58 = vpop.f32.mrb[171].mxu1 }
 0x5f3   : > { %11462 = vst [vmem:[#allocation52_spill] sm:$0xff] %v10731_v36  ;;  %v10733_v25 = vadd.f32 %v7183_v58, %v7182_v45  ;;  %v11467_v36 = vld [vmem:[#allocation49_spill] sm:$0xff] }
 0x5f5   : > { %11463 = vst [vmem:[#allocation53_spill] sm:$0xff] %v10733_v25 }
 0x5f6   : > { %5622 = vmatmul.mubr.bf16.gmra.mrb[16].mxu1 %v10430_v28 }
 0x5f7   : > { %5629 = vmatprep.mubr.bf16.mxu1 %v10455_v33 }
 0x5f9   : > { %v7185_v20 = vpop.f32.mrb[172].mxu1 }
 0x5fa   : > { %v7186_v9 = vpop.f32.mrb[173].mxu1 }
 0x5fb   : > { %v10737_v5 = vadd.f32 %v7186_v9, %v7185_v20  ;;  %v7188_v63 = vpop.f32.mrb[174].mxu1  ;;  %v11466_v20 = vld [vmem:[#allocation38_spill] sm:$0xff] }
 0x5fc   : > { %v7189_v13 = vpop.f32.mrb[175].mxu1 }
 0x5fd   : > { %11464 = vst [vmem:[#allocation54_spill] sm:$0xff] %v10737_v5  ;;  %v10739_v1 = vadd.f32 %v7189_v13, %v7188_v63 }
 0x5fe   : > { %5630 = vmatmul.mubr.bf16.gmra.mrb[20].mxu1 %v10453_v19 }
 0x5ff   : > { %11465 = vst [vmem:[#allocation55_spill] sm:$0xff] %v10739_v1  ;;  %5637 = vmatprep.mubr.bf16.mxu1 %v10486_v49 }
 0x601   : > { %v7207_v40 = vpop.f32.mrb[176].mxu1 }
 0x602   : > { %v7208_v42 = vpop.f32.mrb[177].mxu1 }
 0x603   : > { %v7209_v58 = vadd.f32 %v7208_v42, %v7207_v40  ;;  %v7210_v45 = vpop.f32.mrb[178].mxu1 }
 0x604   : > { %v7211_v55 = vpop.f32.mrb[179].mxu1 }
 0x605   : > { %v10744_v25 = vadd.f32 %v7209_v58, %v10361_v59  ;;  %v7212_v33 = vadd.f32 %v7211_v55, %v7210_v45 }
 0x606   : > { %5638 = vmatmul.mubr.bf16.gmra.mrb[24].mxu1 %v10484_v14 }
 0x607   : > { %v10748_v9 = vadd.f32 %v7212_v33, %v11466_v20  ;;  %5645 = vmatprep.mubr.bf16.mxu1 %v10513_v12  ;;  %v11468_v12 = vld [vmem:[#allocation23_spill] sm:$0xff] }
 0x609   : > { %v7213_v13 = vpop.f32.mrb[180].mxu1 }
 0x60a   : > { %v7214_v63 = vpop.f32.mrb[181].mxu1 }
 0x60b   : > { %v7215_v1 = vadd.f32 %v7214_v63, %v7213_v13  ;;  %v7216_v49 = vpop.f32.mrb[182].mxu1 }
 0x60c   : > { %v7217_v5 = vpop.f32.mrb[183].mxu1 }
 0x60d   : > { %v10752_v40 = vadd.f32 %v7215_v1, %v10616_v57  ;;  %v7218_v42 = vadd.f32 %v7217_v5, %v7216_v49 }
 0x60e   : > { %5646 = vmatmul.mubr.bf16.gmra.mrb[28].mxu1 %v11467_v36 }
 0x60f   : > { %v10756_v59 = vadd.f32 %v7218_v42, %v10618_v51  ;;  %5653 = vmatprep.mubr.bf16.mxu1 %v10544_v18 }
 0x611   : > { %v7219_v55 = vpop.f32.mrb[184].mxu1 }
 0x612   : > { %v7220_v33 = vpop.f32.mrb[185].mxu1 }
 0x613   : > { %v7221_v58 = vadd.f32 %v7220_v33, %v7219_v55  ;;  %v7222_v45 = vpop.f32.mrb[186].mxu1 }
 0x614   : > { %v7223_v20 = vpop.f32.mrb[187].mxu1 }
 0x615   : > { %v10760_v13 = vadd.f32 %v7221_v58, %v10628_v32  ;;  %v7224_v63 = vadd.f32 %v7223_v20, %v7222_v45 }
 0x616   : > { %5654 = vmatmul.mubr.bf16.gmra.mrb[32].mxu1 %v11468_v12 }
 0x617   : > { %v10764_v49 = vadd.f32 %v7224_v63, %v10630_v43  ;;  %5661 = vmatprep.mubr.bf16.mxu1 %v10567_v56 }
 0x619   : > { %v7225_v57 = vpop.f32.mrb[188].mxu1 }
 0x61a   : > { %v7226_v51 = vpop.f32.mrb[189].mxu1 }
 0x61b   : > { %v7227_v1 = vadd.f32 %v7226_v51, %v7225_v57  ;;  %v7228_v5 = vpop.f32.mrb[190].mxu1 }
 0x61c   : > { %v7229_v42 = vpop.f32.mrb[191].mxu1 }
 0x61d   : > { %v10768_v55 = vadd.f32 %v7227_v1, %v10636_v16  ;;  %v7230_v33 = vadd.f32 %v7229_v42, %v7228_v5 }
 0x61e   : > { %5662 = vmatmul.mubr.bf16.gmra.mrb[36].mxu1 %v10565_v35 }
 0x61f   : > { %v10772_v32 = vadd.f32 %v7230_v33, %v10638_v46  ;;  %5669 = vmatprep.mubr.bf16.mxu1 %v10598_v60  ;;  %v8377_v60 = vld [vmem:[#allocation12 + $0x208] sm:$0xff]  }
 0x621   : > { %v7231_v43 = vpop.f32.mrb[192].mxu1 }
 0x622   : > { %v7232_v58 = vpop.f32.mrb[193].mxu1 }
 0x623   : > { %v7233_v45 = vadd.f32 %v7232_v58, %v7231_v43  ;;  %v7234_v20 = vpop.f32.mrb[194].mxu1 }
 0x624   : > { %v7235_v63 = vpop.f32.mrb[195].mxu1 }
 0x625   : > { %v10776_v57 = vadd.f32 %v7233_v45, %v10648_v29  ;;  %v7236_v51 = vadd.f32 %v7235_v63, %v7234_v20 }
 0x626   : > { %5670 = vmatmul.mubr.bf16.gmra.mrb[40].mxu1 %v10596_v7 }
 0x627   : > { %v10780_v16 = vadd.f32 %v7236_v51, %v10650_v38  ;;  %5710 = vmatprep.mubr.bf16.mxu1 %v10210_v62  ;;  %v8378_v62 = vld [vmem:[#allocation12 + $0x210] sm:$0xff]   ;;  %v8379_v51 = vld [vmem:[#allocation12 + $0x218] sm:$0xff]  }
 0x629   : > { %v7237_v46 = vpop.f32.mrb[196].mxu1 }
 0x62a   : > { %v7238_v1 = vpop.f32.mrb[197].mxu1 }
 0x62b   : > { %v7239_v5 = vadd.f32 %v7238_v1, %v7237_v46  ;;  %v7240_v42 = vpop.f32.mrb[198].mxu1 }
 0x62c   : > { %v7241_v33 = vpop.f32.mrb[199].mxu1 }
 0x62d   : > { %v10784_v43 = vadd.f32 %v7239_v5, %v10656_v23  ;;  %v7242_v58 = vadd.f32 %v7241_v33, %v7240_v42  ;;  %v8381_v42 = vld [vmem:[#allocation12 + $0x228] sm:$0xff]  }
 0x62e   : > { %7001 = vmatmul.mubr.msk.bf16.vlgmr.msra.gmra.mrb[44].mxu1 %vm10173_vm6, %v10190_v3 }
 0x62f   : > { %v10790_v29 = vadd.f32 %v7242_v58, %v10658_v22  ;;  %5718 = vmatprep.mubr.bf16.mxu1 %v10233_v27  ;;  %7676 = vmatpush3.bf16.msra.mxu1 %v10706_v17  ;;  %v8380_v17 = vld [vmem:[#allocation12 + $0x220] sm:$0xff]  }
 0x630   : > { %7677 = vmatprep.subr.bf16.mxu1 %v8377_v60 }
 0x631   : > { %v7243_v38 = vpop.f32.mrb[200].mxu1 }
 0x632   : > { %v7244_v45 = vpop.f32.mrb[201].mxu1 }
 0x633   : > { %v7245_v20 = vadd.f32 %v7244_v45, %v7243_v38  ;;  %v7246_v63 = vpop.f32.mrb[202].mxu1  ;;  %7678 = vmatpush3.bf16.msra.mxu1 %v8377_v60 }
 0x634   : > { %v7247_v23 = vpop.f32.mrb[203].mxu1  ;;  %7679 = vmatprep.subr.bf16.mxu1 %v8378_v62 }
 0x635   : > { %v10795_v46 = vadd.f32 %v7245_v20, %v10668_v30  ;;  %v7248_v3 = vadd.f32 %v7247_v23, %v7246_v63  ;;  %v8383_v20 = vld [vmem:[#allocation12 + $0x238] sm:$0xff]  }
 0x636   : > { %7004 = vmatmul.mubr.msk.bf16.gmra.mrb[48].mxu1 %vm10173_vm6, %v10220_v61 }
 0x637   : > { %v10801_v27 = vadd.f32 %v7248_v3, %v10670_v31  ;;  %5726 = vmatprep.mubr.bf16.mxu1 %v10264_v15  ;;  %7680 = vmatpush3.bf16.msra.mxu1 %v8378_v62  ;;  %v8382_v31 = vld [vmem:[#allocation12 + $0x230] sm:$0xff]  }
 0x638   : > { %7681 = vmatprep.subr.bf16.mxu1 %v8379_v51 }
 0x639   : > { %v7249_v60 = vpop.f32.mrb[204].mxu1 }
 0x63a   : > { %v7250_v22 = vpop.f32.mrb[205].mxu1 }
 0x63b   : > { %v7251_v1 = vadd.f32 %v7250_v22, %v7249_v60  ;;  %v7252_v5 = vpop.f32.mrb[206].mxu1  ;;  %7682 = vmatpush3.bf16.msra.mxu1 %v8379_v51 }
 0x63c   : > { %v7253_v30 = vpop.f32.mrb[207].mxu1  ;;  %7683 = vmatprep.subr.bf16.mxu1 %v8380_v17 }
 0x63d   : > { %v10805_v33 = vadd.f32 %v7251_v1, %v10676_v34  ;;  %v7254_v61 = vadd.f32 %v7253_v30, %v7252_v5 }
 0x63e   : > { %7007 = vmatmul.mubr.msk.bf16.gmra.mrb[52].mxu1 %vm10173_vm6, %v10246_v2 }
 0x63f   : > { %v10811_v15 = vadd.f32 %v7254_v61, %v10678_v54  ;;  %5734 = vmatprep.mubr.bf16.mxu1 %v10287_v26  ;;  %7684 = vmatpush3.bf16.msra.mxu1 %v8380_v17 }
 0x640   : > { %7685 = vmatprep.subr.bf16.mxu1 %v8381_v42 }
 0x641   : > { %v7255_v58 = vpop.f32.mrb[208].mxu1 }
 0x642   : > { %v7256_v62 = vpop.f32.mrb[209].mxu1 }
 0x643   : > { %v7257_v38 = vadd.f32 %v7256_v62, %v7255_v58  ;;  %v7258_v45 = vpop.f32.mrb[210].mxu1  ;;  %7686 = vmatpush3.bf16.msra.mxu1 %v8381_v42  ;;  %v11469_v58 = vld [vmem:[#allocation28_spill] sm:$0xff] }
 0x644   : > { %v7259_v34 = vpop.f32.mrb[211].mxu1  ;;  %7687 = vmatprep.subr.bf16.mxu1 %v8382_v31 }
 0x645   : > { %v10815_v63 = vadd.f32 %v7257_v38, %v10686_v41  ;;  %v7260_v2 = vadd.f32 %v7259_v34, %v7258_v45  ;;  %v11470_v38 = vld [vmem:[#allocation37_spill] sm:$0xff]  ;;  %v11471_v45 = vld [vmem:[#allocation26_spill] sm:$0xff] }
 0x646   : > { %7010 = vmatmul.mubr.msk.bf16.gmra.mrb[56].mxu1 %vm10173_vm6, %v10274_v21 }
 0x647   : > { %v10821_v26 = vadd.f32 %v7260_v2, %v10688_v37  ;;  %5742 = vmatprep.mubr.bf16.mxu1 %v10318_v44  ;;  %7688 = vmatpush3.bf16.msra.mxu1 %v8382_v31 }
 0x648   : > { %7689 = vmatprep.subr.bf16.mxu1 %v8383_v20 }
 0x649   : > { %v7261_v54 = vpop.f32.mrb[212].mxu1 }
 0x64a   : > { %v7262_v23 = vpop.f32.mrb[213].mxu1 }
 0x64b   : > { %v7263_v51 = vadd.f32 %v7262_v23, %v7261_v54  ;;  %v7264_v3 = vpop.f32.mrb[214].mxu1  ;;  %7690 = vmatpush3.bf16.msra.mxu1 %v8383_v20 }
 0x64c   : > { %v7265_v17 = vpop.f32.mrb[215].mxu1 }
 0x64d   : > { %v10825_v41 = vadd.f32 %v7263_v51, %v10692_v11  ;;  %v7266_v60 = vadd.f32 %v7265_v17, %v7264_v3  ;;  %v11472_v51 = vld [vmem:[#allocation40_spill] sm:$0xff] }
 0x64e   : > { %7013 = vmatmul.mubr.msk.bf16.gmra.mrb[60].mxu1 %vm10173_vm6, %v10300_v50 }
 0x64f   : > { %v10831_v21 = vadd.f32 %v7266_v60, %v10694_v39  ;;  %5750 = vmatprep.mubr.bf16.mxu1 %v11460_v24 }
 0x651   : > { %v7267_v44 = vpop.f32.mrb[216].mxu1 }
 0x652   : > { %v7268_v37 = vpop.f32.mrb[217].mxu1 }
 0x653   : > { %v7269_v22 = vadd.f32 %v7268_v37, %v7267_v44  ;;  %v7270_v1 = vpop.f32.mrb[218].mxu1 }
 0x654   : > { %v7271_v5 = vpop.f32.mrb[219].mxu1 }
 0x655   : > { %v10835_v30 = vadd.f32 %v7269_v22, %v10700_v52  ;;  %v7272_v11 = vadd.f32 %v7271_v5, %v7270_v1  ;;  %v6715_v1 = vld [vmem:[%s9031_s7 + $0x26a] sm:$0xff]  ;;  %v6716_v5 = vld [vmem:[%s9031_s7 + $0x272] sm:$0xff] }
 0x656   : > { %7016 = vmatmul.mubr.msk.bf16.gmra.mrb[64].mxu1 %vm10173_vm6, %v10328_v4 }
 0x657   : > { %v10841_v50 = vadd.f32 %v7272_v11, %v10702_v0  ;;  %5758 = vmatprep.mubr.bf16.mxu1 %v10375_v48  ;;  %v11473_v11 = vld [vmem:[#allocation42_spill] sm:$0xff] }
 0x659   : > { %v7273_v39 = vpop.f32.mrb[220].mxu1 }
 0x65a   : > { %v7274_v24 = vpop.f32.mrb[221].mxu1 }
 0x65b   : > { %v7275_v42 = vadd.f32 %v7274_v24, %v7273_v39  ;;  %v7276_v61 = vpop.f32.mrb[222].mxu1  ;;  %v1345_v39 = vpack.c.bf16 %v6716_v5, %v6715_v1 }
 0x65c   : > { %v7277_v31 = vpop.f32.mrb[223].mxu1 }
 0x65d   : > { %v10845_v62 = vadd.f32 %v7275_v42, %v11469_v58  ;;  %v7278_v52 = vadd.f32 %v7277_v31, %v7276_v61  ;;  %7672 = vmatmul.mubr.bf16.gmra.mrb[124].mxu0 %v1345_v39  ;;  %v11475_v58 = vld [vmem:[#allocation52_spill] sm:$0xff] }
 0x65e   : > { %7019 = vmatmul.mubr.msk.bf16.gmra.mrb[68].mxu1 %vm10173_vm6, %v11470_v38 }
 0x65f   : > { %v10851_v4 = vadd.f32 %v7278_v52, %v11471_v45  ;;  %5766 = vmatprep.mubr.bf16.mxu1 %v10399_v47  ;;  %v11476_v45 = vld [vmem:[#allocation44_spill] sm:$0xff] }
 0x661   : > { %v7279_v0 = vpop.f32.mrb[224].mxu1 }
 0x662   : > { %v7280_v48 = vpop.f32.mrb[225].mxu1 }
 0x663   : > { %v7281_v34 = vadd.f32 %v7280_v48, %v7279_v0  ;;  %v7282_v20 = vpop.f32.mrb[226].mxu1  ;;  %v11477_v0 = vld [vmem:[#allocation53_spill] sm:$0xff] }
 0x664   : > { %v7283_v2 = vpop.f32.mrb[227].mxu1 }
 0x665   : > { %v10855_v54 = vadd.f32 %v7281_v34, %v10717_v10  ;;  %v7284_v23 = vadd.f32 %v7283_v2, %v7282_v20 }
 0x666   : > { %7022 = vmatmul.mubr.msk.bf16.gmra.mrb[72].mxu1 %vm10173_vm6, %v11472_v51  ;;  %v11478_v51 = vld [vmem:[#allocation54_spill] sm:$0xff] }
 0x667   : > { %v10861_v3 = vadd.f32 %v7284_v23, %v10719_v6  ;;  %5774 = vmatprep.mubr.bf16.mxu1 %v10430_v28  ;;  %v11474_v6 = vld [vmem:[#allocation35_spill] sm:$0xff] }
 0x669   : > { %v7285_v47 = vpop.f32.mrb[228].mxu1 }
 0x66a   : > { %v7286_v17 = vpop.f32.mrb[229].mxu1 }
 0x66b   : > { %v7287_v60 = vadd.f32 %v7286_v17, %v7285_v47  ;;  %v7288_v44 = vpop.f32.mrb[230].mxu1 }
 0x66c   : > { %v7289_v37 = vpop.f32.mrb[231].mxu1 }
 0x66d   : > { %v10865_v22 = vadd.f32 %v7287_v60, %v10723_v8  ;;  %v7290_v10 = vadd.f32 %v7289_v37, %v7288_v44  ;;  %v11479_v60 = vld [vmem:[#allocation46_spill] sm:$0xff]  ;;  %v11480_v44 = vld [vmem:[#allocation55_spill] sm:$0xff] }
 0x66e   : > { %7025 = vmatmul.mubr.msk.bf16.gmra.mrb[76].mxu1 %vm10173_vm6, %v11473_v11 }
 0x66f   : > { %v10873_v24 = vadd.f32 %v7290_v10, %v11474_v6  ;;  %5782 = vmatprep.mubr.bf16.mxu1 %v10453_v19 }
 0x671   : > { %v7291_v28 = vpop.f32.mrb[232].mxu1 }
 0x672   : > { %v7292_v42 = vpop.f32.mrb[233].mxu1 }
 0x673   : > { %v7293_v61 = vadd.f32 %v7292_v42, %v7291_v28  ;;  %v7294_v31 = vpop.f32.mrb[234].mxu1  ;;  %v11481_v28 = vld [vmem:[#allocation48_spill] sm:$0xff] }
 0x674   : > { %v7295_v8 = vpop.f32.mrb[235].mxu1 }
 0x675   : > { %v10877_v52 = vadd.f32 %v7293_v61, %v11475_v58  ;;  %v7296_v38 = vadd.f32 %v7295_v8, %v7294_v31 }
 0x676   : > { %7028 = vmatmul.mubr.msk.bf16.gmra.mrb[80].mxu1 %vm10173_vm6, %v11476_v45  ;;  %v11482_v45 = vld [vmem:[#allocation51_spill] sm:$0xff] }
 0x677   : > { %v10883_v48 = vadd.f32 %v7296_v38, %v11477_v0  ;;  %5790 = vmatprep.mubr.bf16.mxu1 %v10484_v14 }
 0x679   : > { %v7297_v19 = vpop.f32.mrb[236].mxu1 }
 0x67a   : > { %v7298_v34 = vpop.f32.mrb[237].mxu1 }
 0x67b   : > { %v7299_v20 = vadd.f32 %v7298_v34, %v7297_v19  ;;  %v7300_v2 = vpop.f32.mrb[238].mxu1 }
 0x67c   : > { %v7301_v23 = vpop.f32.mrb[239].mxu1 }
 0x67d   : > { %v10887_v47 = vadd.f32 %v7299_v20, %v11478_v51  ;;  %v7302_v17 = vadd.f32 %v7301_v23, %v7300_v2  ;;  %v11483_v23 = vld [vmem:[#allocation24_spill] sm:$0xff] }
 0x67e   : > { %7031 = vmatmul.mubr.msk.bf16.gmra.mrb[84].mxu1 %vm10173_vm6, %v11479_v60 }
 0x67f   : > { %v10893_v37 = vadd.f32 %v7302_v17, %v11480_v44  ;;  %5798 = vmatprep.mubr.bf16.mxu1 %v11467_v36 }
 0x681   : > { %v7319_v10 = vpop.f32.mrb[240].mxu1 }
 0x682   : > { %v7320_v14 = vpop.f32.mrb[241].mxu1 }
 0x683   : > { %v7321_v1 = vadd.f32 %v7320_v14, %v7319_v10  ;;  %v7322_v5 = vpop.f32.mrb[242].mxu1  ;;  %v11484_v14 = vld [vmem:[#allocation27_spill] sm:$0xff] }
 0x684   : > { %v7323_v11 = vpop.f32.mrb[243].mxu1 }
 0x685   : > { %v10897_v39 = vadd.f32 %v7321_v1, %v10744_v25  ;;  %v7324_v6 = vadd.f32 %v7323_v11, %v7322_v5 }
 0x686   : > { %7034 = vmatmul.mubr.msk.bf16.gmra.mrb[88].mxu1 %vm10173_vm6, %v11481_v28 }
 0x687   : > { %v10903_v42 = vadd.f32 %v7324_v6, %v10748_v9  ;;  %5806 = vmatprep.mubr.bf16.mxu1 %v11468_v12 }
 0x689   : > { %v7325_v61 = vpop.f32.mrb[244].mxu1 }
 0x68a   : > { %v7326_v36 = vpop.f32.mrb[245].mxu1 }
 0x68b   : > { %v7327_v31 = vadd.f32 %v7326_v36, %v7325_v61  ;;  %v7328_v8 = vpop.f32.mrb[246].mxu1  ;;  %v11486_v36 = vmov 0.0|0.0  }
 0x68c   : > { %v7329_v58 = vpop.f32.mrb[247].mxu1 }
 0x68d   : > { %v10907_v38 = vadd.f32 %v7327_v31, %v10752_v40  ;;  %v7330_v25 = vadd.f32 %v7329_v58, %v7328_v8 }
 0x68e   : > { %7037 = vmatmul.mubr.msk.bf16.gmra.mrb[108].mxu1 %vm10173_vm6, %v11482_v45 }
 0x68f   : > { %v10913_v0 = vadd.f32 %v7330_v25, %v10756_v59  ;;  %5814 = vmatprep.mubr.bf16.mxu1 %v10565_v35 }
 0x691   : > { %v7331_v9 = vpop.f32.mrb[248].mxu1 }
 0x692   : > { %v7332_v12 = vpop.f32.mrb[249].mxu1 }
 0x693   : > { %v7333_v19 = vadd.f32 %v7332_v12, %v7331_v9  ;;  %v7334_v34 = vpop.f32.mrb[250].mxu1 }
 0x694   : > { %v7335_v20 = vpop.f32.mrb[251].mxu1 }
 0x695   : > { %v10917_v2 = vadd.f32 %v7333_v19, %v10760_v13  ;;  %v7336_v40 = vadd.f32 %v7335_v20, %v7334_v34  ;;  %v11488_v19 = vld [vmem:[#allocation31_spill] sm:$0xff]  ;;  %v11489_v34 = vld [vmem:[#allocation32_spill] sm:$0xff] }
 0x696   : > { %7040 = vmatmul.mubr.msk.bf16.gmra.mrb[92].mxu1 %vm10173_vm6, %v11483_v23 }
 0x697   : > { %v10923_v51 = vadd.f32 %v7336_v40, %v10764_v49  ;;  %5822 = vmatprep.mubr.bf16.mxu1 %v10596_v7  ;;  %v11485_v49 = vld [vmem:[#allocation22_spill] sm:$0xff] }
 0x699   : > { %v7337_v59 = vpop.f32.mrb[252].mxu1 }
 0x69a   : > { %v7338_v35 = vpop.f32.mrb[253].mxu1 }
 0x69b   : > { %v7339_v17 = vadd.f32 %v7338_v35, %v7337_v59  ;;  %v7340_v60 = vpop.f32.mrb[254].mxu1 }
 0x69c   : > { %v7341_v44 = vpop.f32.mrb[255].mxu1 }
 0x69d   : > { %v10927_v10 = vadd.f32 %v7339_v17, %v10768_v55  ;;  %v7342_v13 = vadd.f32 %v7341_v44, %v7340_v60  ;;  %v11490_v60 = vld [vmem:[#allocation33_spill] sm:$0xff]  ;;  %v11491_v44 = vld [vmem:[#allocation34_spill] sm:$0xff] }
 0x69e   : > { %7043 = vmatmul.mubr.msk.bf16.gmra.mrb[96].mxu1 %vm10173_vm6, %v11484_v14 }
 0x69f   : > { %v10933_v1 = vadd.f32 %v7342_v13, %v10772_v32  ;;  %5830 = vmatprep.mubr.bf16.mxu1 %v11485_v49 }
 0x6a1   : > { %v7343_v5 = vpop.f32.mrb[0].mxu1 }
 0x6a2   : > { %v7344_v7 = vpop.f32.mrb[1].mxu1 }
 0x6a3   : > { %v7345_v11 = vadd.f32 %v7344_v7, %v7343_v5  ;;  %v7346_v6 = vpop.f32.mrb[2].mxu1 }
 0x6a4   : > { %v7347_v28 = vpop.f32.mrb[3].mxu1 }
 0x6a5   : > { %v10937_v61 = vadd.f32 %v7345_v11, %v10776_v57  ;;  %v7348_v55 = vadd.f32 %v7347_v28, %v7346_v6  ;;  %v11492_v6 = vld [vmem:[#allocation36_spill] sm:$0xff]  ;;  %v11493_v28 = vld [vmem:[#allocation39_spill] sm:$0xff] }
 0x6a6   : > { %5831 = vmatmul.mubr.bf16.gmra.mrb[100].mxu1 %v11486_v36 }
 0x6a7   : > { %v10941_v31 = vadd.f32 %v7348_v55, %v10780_v16  ;;  %7691 = vmatprep.mubr.bf16.mxu1 %v11487_v53 }
 0x6a9   : > { %v7349_v32 = vpop.f32.mrb[104].mxu1 }
 0x6aa   : > { %v7350_v8 = vpop.f32.mrb[105].mxu1 }
 0x6ab   : > { %v7351_v58 = vadd.f32 %v7350_v8, %v7349_v32  ;;  %v7352_v25 = vpop.f32.mrb[106].mxu1 }
 0x6ac   : > { %v7353_v45 = vpop.f32.mrb[107].mxu1 }
 0x6ad   : > { %v10945_v9 = vadd.f32 %v7351_v58, %v10784_v43  ;;  %v7354_v12 = vadd.f32 %v7353_v45, %v7352_v25  ;;  %v11494_v25 = vld [vmem:[#allocation41_spill] sm:$0xff]  ;;  %v11495_v45 = vld [vmem:[#allocation43_spill] sm:$0xff] }
 0x6ae   : > { %7692 = vmatmul.mubr.bf16.vlgmr.msra.gmra.mrb[112].mxu1 %v11488_v19 }
 0x6af   : > { %v10949_v57 = vadd.f32 %v7354_v12, %v10790_v29  ;;  %7695 = vmatprep.mubr.bf16.mxu1 %v11489_v34 }
 0x6b1   : > { %v7355_v16 = vpop.f32.mrb[4].mxu1 }
 0x6b2   : > { %v7356_v20 = vpop.f32.mrb[5].mxu1 }
 0x6b3   : > { %v7357_v40 = vadd.f32 %v7356_v20, %v7355_v16  ;;  %v7358_v23 = vpop.f32.mrb[6].mxu1 }
 0x6b4   : > { %v7359_v59 = vpop.f32.mrb[7].mxu1 }
 0x6b5   : > { %v10953_v35 = vadd.f32 %v7357_v40, %v10795_v46  ;;  %v7360_v17 = vadd.f32 %v7359_v59, %v7358_v23  ;;  %v11496_v23 = vld [vmem:[#allocation45_spill] sm:$0xff]  ;;  %v11497_v59 = vld [vmem:[#allocation47_spill] sm:$0xff] }
 0x6b6   : > { %7696 = vmatmul.mubr.bf16.gmra.mrb[116].mxu1 %v11490_v60 }
 0x6b7   : > { %v10957_v43 = vadd.f32 %v7360_v17, %v10801_v27  ;;  %7699 = vmatprep.mubr.bf16.mxu1 %v11491_v44 }
 0x6b9   : > { %v7361_v29 = vpop.f32.mrb[8].mxu1 }
 0x6ba   : > { %v7362_v13 = vpop.f32.mrb[9].mxu1 }
 0x6bb   : > { %v7363_v14 = vadd.f32 %v7362_v13, %v7361_v29  ;;  %v7364_v49 = vpop.f32.mrb[10].mxu1 }
 0x6bc   : > { %v7365_v5 = vpop.f32.mrb[11].mxu1 }
 0x6bd   : > { %v10961_v7 = vadd.f32 %v7363_v14, %v10805_v33  ;;  %v7366_v11 = vadd.f32 %v7365_v5, %v7364_v49  ;;  %v11498_v49 = vld [vmem:[#allocation50_spill] sm:$0xff] }
 0x6be   : > { %7700 = vmatmul.mubr.bf16.gmra.mrb[120].mxu1 %v11492_v6 }
 0x6bf   : > { %v10965_v46 = vadd.f32 %v7366_v11, %v10811_v15  ;;  %7703 = vmatprep.mubr.bf16.mxu1 %v11493_v28 }
 0x6c1   : > { %v7367_v27 = vpop.f32.mrb[12].mxu1 }
 0x6c2   : > { %v7368_v55 = vpop.f32.mrb[13].mxu1 }
 0x6c3   : > { %v7369_v36 = vadd.f32 %v7368_v55, %v7367_v27  ;;  %v7370_v53 = vpop.f32.mrb[14].mxu1 }
 0x6c4   : > { %v7371_v32 = vpop.f32.mrb[15].mxu1 }
 0x6c5   : > { %v10969_v8 = vadd.f32 %v7369_v36, %v10815_v63  ;;  %v7372_v58 = vadd.f32 %v7371_v32, %v7370_v53  ;;  %v11499_v36 = vld [vmem:[#allocation25_spill] sm:$0xff] }
 0x6c6   : > { %7704 = vmatmul.mubr.bf16.gmra.mrb[124].mxu1 %v11494_v25 }
 0x6c7   : > { %v10973_v33 = vadd.f32 %v7372_v58, %v10821_v26  ;;  %7707 = vmatprep.mubr.bf16.mxu1 %v11495_v45 }
 0x6c9   : > { %v7373_v15 = vpop.f32.mrb[16].mxu1 }
 0x6ca   : > { %v7374_v12 = vpop.f32.mrb[17].mxu1 }
 0x6cb   : > { %v7375_v19 = vadd.f32 %v7374_v12, %v7373_v15  ;;  %v7376_v34 = vpop.f32.mrb[18].mxu1  ;;  %v11500_v15 = vld [vmem:[#allocation29_spill] sm:$0xff] }
 0x6cc   : > { %v7377_v16 = vpop.f32.mrb[19].mxu1 }
 0x6cd   : > { %v10977_v20 = vadd.f32 %v7375_v19, %v10825_v41  ;;  %v7378_v40 = vadd.f32 %v7377_v16, %v7376_v34 }
 0x6ce   : > { %7708 = vmatmul.mubr.bf16.gmra.mrb[128].mxu1 %v11496_v23 }
 0x6cf   : > { %v10981_v63 = vadd.f32 %v7378_v40, %v10831_v21  ;;  %7711 = vmatprep.mubr.bf16.mxu1 %v11497_v59 }
 0x6d1   : > { %v7379_v26 = vpop.f32.mrb[20].mxu1 }
 0x6d2   : > { %v7380_v17 = vpop.f32.mrb[21].mxu1 }
 0x6d3   : > { %v7381_v60 = vadd.f32 %v7380_v17, %v7379_v26  ;;  %v7382_v44 = vpop.f32.mrb[22].mxu1 }
 0x6d4   : > { %v7383_v29 = vpop.f32.mrb[23].mxu1 }
 0x6d5   : > { %v10985_v13 = vadd.f32 %v7381_v60, %v10835_v30  ;;  %v7384_v14 = vadd.f32 %v7383_v29, %v7382_v44 }
 0x6d6   : > { %7712 = vmatmul.mubr.bf16.gmra.mrb[132].mxu1 %v11498_v49 }
 0x6d7   : > { %v10989_v41 = vadd.f32 %v7384_v14, %v10841_v50  ;;  %7715 = vmatprep.mubr.bf16.mxu1 %v10544_v18 }
 0x6d9   : > { %v7385_v21 = vpop.f32.mrb[24].mxu1 }
 0x6da   : > { %v7386_v5 = vpop.f32.mrb[25].mxu1 }
 0x6db   : > { %v7387_v11 = vadd.f32 %v7386_v5, %v7385_v21  ;;  %v7388_v6 = vpop.f32.mrb[26].mxu1 }
 0x6dc   : > { %v7389_v28 = vpop.f32.mrb[27].mxu1 }
 0x6dd   : > { %v10993_v27 = vadd.f32 %v7387_v11, %v10845_v62  ;;  %v7390_v55 = vadd.f32 %v7389_v28, %v7388_v6 }
 0x6de   : > { %7716 = vmatmul.mubr.bf16.gmra.mrb[136].mxu1 %v10567_v56 }
 0x6df   : > { %v10997_v30 = vadd.f32 %v7390_v55, %v10851_v4  ;;  %7719 = vmatprep.mubr.bf16.mxu1 %v11499_v36 }
 0x6e1   : > { %v7391_v50 = vpop.f32.mrb[28].mxu1 }
 0x6e2   : > { %v7392_v53 = vpop.f32.mrb[29].mxu1 }
 0x6e3   : > { %v7393_v32 = vadd.f32 %v7392_v53, %v7391_v50  ;;  %v7394_v18 = vpop.f32.mrb[30].mxu1 }
 0x6e4   : > { %v7395_v58 = vpop.f32.mrb[31].mxu1 }
 0x6e5   : > { %v11001_v25 = vadd.f32 %v7393_v32, %v10855_v54  ;;  %v7396_v45 = vadd.f32 %v7395_v58, %v7394_v18 }
 0x6e6   : > { %7720 = vmatmul.mubr.bf16.gmra.mrb[140].mxu1 %v11500_v15 }
 0x6e7   : > { %v11005_v62 = vadd.f32 %v7396_v45, %v10861_v3 }
 0x6e9   : > { %v7397_v56 = vpop.f32.mrb[32].mxu1 }
 0x6ea   : > { %v7398_v12 = vpop.f32.mrb[33].mxu1 }
 0x6eb   : > { %v7399_v4 = vadd.f32 %v7398_v12, %v7397_v56  ;;  %v7400_v19 = vpop.f32.mrb[34].mxu1 }
 0x6ec   : > { %v7401_v34 = vpop.f32.mrb[35].mxu1 }
 0x6ed   : > { %v11008_v16 = vadd.f32 %v7399_v4, %v10865_v22  ;;  %v7402_v40 = vadd.f32 %v7401_v34, %v7400_v19 }
 0x6ef   : > { %v11011_v23 = vadd.f32 %v7402_v40, %v10873_v24 }
 0x6f1   : > { %v7403_v54 = vpop.f32.mrb[36].mxu1 }
 0x6f2   : > { %v7404_v59 = vpop.f32.mrb[37].mxu1 }
 0x6f3   : > { %v7405_v26 = vadd.f32 %v7404_v59, %v7403_v54  ;;  %v7406_v17 = vpop.f32.mrb[38].mxu1 }
 0x6f4   : > { %v7407_v60 = vpop.f32.mrb[39].mxu1 }
 0x6f5   : > { %v11014_v3 = vadd.f32 %v7405_v26, %v10877_v52  ;;  %v7408_v44 = vadd.f32 %v7407_v60, %v7406_v17 }
 0x6f7   : > { %v11017_v29 = vadd.f32 %v7408_v44, %v10883_v48 }
 0x6f9   : > { %v7409_v14 = vpop.f32.mrb[40].mxu1 }
 0x6fa   : > { %v7410_v49 = vpop.f32.mrb[41].mxu1 }
 0x6fb   : > { %v7411_v22 = vadd.f32 %v7410_v49, %v7409_v14  ;;  %v7412_v21 = vpop.f32.mrb[42].mxu1 }
 0x6fc   : > { %v7413_v5 = vpop.f32.mrb[43].mxu1 }
 0x6fd   : > { %v11020_v24 = vadd.f32 %v7411_v22, %v10887_v47  ;;  %v7414_v11 = vadd.f32 %v7413_v5, %v7412_v21 }
 0x6ff   : > { %v11023_v6 = vadd.f32 %v7414_v11, %v10893_v37 }
 0x701   : > { %v7431_v28 = vpop.f32.mrb[44].mxu1 }
 0x702   : > { %v7432_v55 = vpop.f32.mrb[45].mxu1 }
 0x703   : > { %v7433_v52 = vadd.f32 %v7432_v55, %v7431_v28  ;;  %v7434_v36 = vpop.f32.mrb[46].mxu1 }
 0x704   : > { %v7435_v50 = vpop.f32.mrb[47].mxu1 }
 0x705   : > { %v7436_v53 = vadd.f32 %v7435_v50, %v7434_v36  ;;  %v11026_v48 = vadd.f32 %v7433_v52, %v10897_v39 }
 0x707   : > { %v11029_v32 = vadd.f32 %v7436_v53, %v10903_v42 }
 0x709   : > { %v7437_v18 = vpop.f32.mrb[48].mxu1 }
 0x70a   : > { %v7438_v58 = vpop.f32.mrb[49].mxu1 }
 0x70b   : > { %v7439_v47 = vadd.f32 %v7438_v58, %v7437_v18  ;;  %v7440_v45 = vpop.f32.mrb[50].mxu1 }
 0x70c   : > { %v7441_v15 = vpop.f32.mrb[51].mxu1 }
 0x70d   : > { %v7442_v56 = vadd.f32 %v7441_v15, %v7440_v45  ;;  %v11032_v37 = vadd.f32 %v7439_v47, %v10907_v38 }
 0x70f   : > { %v11035_v12 = vadd.f32 %v7442_v56, %v10913_v0 }
 0x711   : > { %v7443_v4 = vpop.f32.mrb[52].mxu1 }
 0x712   : > { %v7444_v19 = vpop.f32.mrb[53].mxu1 }
 0x713   : > { %v7445_v34 = vadd.f32 %v7444_v19, %v7443_v4  ;;  %v7446_v39 = vpop.f32.mrb[54].mxu1 }
 0x714   : > { %v7447_v40 = vpop.f32.mrb[55].mxu1 }
 0x715   : > { %v7448_v54 = vadd.f32 %v7447_v40, %v7446_v39  ;;  %v11038_v42 = vadd.f32 %v7445_v34, %v10917_v2 }
 0x717   : > { %v11041_v59 = vadd.f32 %v7448_v54, %v10923_v51 }
 0x719   : > { %v7449_v26 = vpop.f32.mrb[56].mxu1 }
 0x71a   : > { %v7450_v17 = vpop.f32.mrb[57].mxu1 }
 0x71b   : > { %v7451_v60 = vadd.f32 %v7450_v17, %v7449_v26  ;;  %v7452_v38 = vpop.f32.mrb[58].mxu1 }
 0x71c   : > { %v7453_v44 = vpop.f32.mrb[59].mxu1 }
 0x71d   : > { %v7454_v14 = vadd.f32 %v7453_v44, %v7452_v38  ;;  %v11044_v0 = vadd.f32 %v7451_v60, %v10927_v10 }
 0x71f   : > { %v11047_v49 = vadd.f32 %v7454_v14, %v10933_v1 }
 0x721   : > { %v7455_v22 = vpop.f32.mrb[60].mxu1 }
 0x722   : > { %v7456_v21 = vpop.f32.mrb[61].mxu1 }
 0x723   : > { %v7457_v5 = vadd.f32 %v7456_v21, %v7455_v22  ;;  %v7458_v2 = vpop.f32.mrb[62].mxu1 }
 0x724   : > { %v7459_v11 = vpop.f32.mrb[63].mxu1 }
 0x725   : > { %v7460_v28 = vadd.f32 %v7459_v11, %v7458_v2  ;;  %v11050_v51 = vadd.f32 %v7457_v5, %v10937_v61 }
 0x727   : > { %v11053_v55 = vadd.f32 %v7460_v28, %v10941_v31 }
 0x729   : > { %v7461_v52 = vpop.f32.mrb[64].mxu1 }
 0x72a   : > { %v7462_v36 = vpop.f32.mrb[65].mxu1 }
 0x72b   : > { %v7463_v50 = vadd.f32 %v7462_v36, %v7461_v52  ;;  %v7464_v10 = vpop.f32.mrb[66].mxu1 }
 0x72c   : > { %v7465_v53 = vpop.f32.mrb[67].mxu1 }
 0x72d   : > { %v7466_v18 = vadd.f32 %v7465_v53, %v7464_v10  ;;  %v11056_v1 = vadd.f32 %v7463_v50, %v10945_v9 }
 0x72f   : > { %v11059_v58 = vadd.f32 %v7466_v18, %v10949_v57 }
 0x730   : > { %v3430_v14 = vpop.f32.mrb[124].mxu0 }
 0x731   : > { %v7467_v47 = vpop.f32.mrb[68].mxu1 }
 0x732   : > { %v7468_v45 = vpop.f32.mrb[69].mxu1 }
 0x733   : > { %v7469_v15 = vadd.f32 %v7468_v45, %v7467_v47  ;;  %v7470_v61 = vpop.f32.mrb[70].mxu1 }
 0x734   : > { %v7471_v56 = vpop.f32.mrb[71].mxu1 }
 0x735   : > { %v7472_v4 = vadd.f32 %v7471_v56, %v7470_v61  ;;  %v11062_v31 = vadd.f32 %v7469_v15, %v10953_v35 }
 0x737   : > { %v11065_v19 = vadd.f32 %v7472_v4, %v10957_v43  ;;  %v7673_v43 = vpop.f32.mrb[125].mxu0 }
 0x738   : > { %v3433_v2 = vpop.f32.mrb[126].mxu0 }
 0x739   : > { %v7473_v34 = vpop.f32.mrb[72].mxu1  ;;  %v7674_v11 = vpop.f32.mrb[127].mxu0 }
 0x73a   : > { %v7474_v39 = vpop.f32.mrb[73].mxu1 }
 0x73b   : > { %v7475_v40 = vadd.f32 %v7474_v39, %v7473_v34  ;;  %v7476_v9 = vpop.f32.mrb[74].mxu1 }
 0x73c   : > { %v7477_v54 = vpop.f32.mrb[75].mxu1 }
 0x73d   : > { %v7478_v26 = vadd.f32 %v7477_v54, %v7476_v9  ;;  %v11068_v57 = vadd.f32 %v7475_v40, %v10961_v7 }
 0x73f   : > { %v11071_v17 = vadd.f32 %v7478_v26, %v10965_v46 }
 0x741   : > { %v7479_v60 = vpop.f32.mrb[76].mxu1 }
 0x742   : > { %v7480_v38 = vpop.f32.mrb[77].mxu1 }
 0x743   : > { %v7481_v44 = vadd.f32 %v7480_v38, %v7479_v60  ;;  %v7482_v35 = vpop.f32.mrb[78].mxu1 }
 0x744   : > { %v7483_v22 = vpop.f32.mrb[79].mxu1 }
 0x745   : > { %v7484_v21 = vadd.f32 %v7483_v22, %v7482_v35  ;;  %v11074_v5 = vadd.f32 %v7481_v44, %v10969_v8 }
 0x747   : > { %v11077_v28 = vadd.f32 %v7484_v21, %v10973_v33 }
 0x749   : > { %v7485_v7 = vpop.f32.mrb[80].mxu1 }
 0x74a   : > { %v7486_v52 = vpop.f32.mrb[81].mxu1 }
 0x74b   : > { %v7487_v46 = vadd.f32 %v7486_v52, %v7485_v7  ;;  %v7488_v36 = vpop.f32.mrb[82].mxu1 }
 0x74c   : > { %v7489_v50 = vpop.f32.mrb[83].mxu1 }
 0x74d   : > { %v7490_v10 = vadd.f32 %v7489_v50, %v7488_v36  ;;  %v11080_v53 = vadd.f32 %v7487_v46, %v10977_v20 }
 0x74f   : > { %v11083_v18 = vadd.f32 %v7490_v10, %v10981_v63 }
 0x751   : > { %v7491_v47 = vpop.f32.mrb[84].mxu1 }
 0x752   : > { %v7492_v8 = vpop.f32.mrb[85].mxu1 }
 0x753   : > { %v7493_v45 = vadd.f32 %v7492_v8, %v7491_v47  ;;  %v7494_v15 = vpop.f32.mrb[86].mxu1 }
 0x754   : > { %v7495_v61 = vpop.f32.mrb[87].mxu1 }
 0x755   : > { %v7496_v56 = vadd.f32 %v7495_v61, %v7494_v15  ;;  %v11086_v33 = vadd.f32 %v7493_v45, %v10985_v13 }
 0x757   : > { %v11089_v4 = vadd.f32 %v7496_v56, %v10989_v41 }
 0x759   : > { %v7497_v34 = vpop.f32.mrb[88].mxu1 }
 0x75a   : > { %v7498_v39 = vpop.f32.mrb[89].mxu1 }
 0x75b   : > { %v7499_v40 = vadd.f32 %v7498_v39, %v7497_v34  ;;  %v7500_v20 = vpop.f32.mrb[90].mxu1 }
 0x75c   : > { %v7501_v9 = vpop.f32.mrb[91].mxu1 }
 0x75d   : > { %v7502_v54 = vadd.f32 %v7501_v9, %v7500_v20  ;;  %v11092_v63 = vadd.f32 %v7499_v40, %v10993_v27  ;;  %v11121_v40 = vld [vmem:[#allocation13] ss:$0 sm:$0xff]  ;;  %v11124_v9 = vld [vmem:[#allocation15] ss:$0 sm:$0xff] }
 0x75f   : > { %v11095_v26 = vadd.f32 %v7502_v54, %v10997_v30 }
 0x761   : > { %v7503_v60 = vpop.f32.mrb[108].mxu1 }
 0x762   : > { %v7504_v38 = vpop.f32.mrb[109].mxu1 }
 0x763   : > { %v7505_v44 = vadd.f32 %v7504_v38, %v7503_v60  ;;  %v7506_v13 = vpop.f32.mrb[110].mxu1 }
 0x764   : > { %v7507_v35 = vpop.f32.mrb[111].mxu1 }
 0x765   : > { %v7508_v14 = vadd.f32 %v7507_v35, %v7506_v13  ;;  %v11098_v41 = vadd.f32 %v7505_v44, %v11001_v25  ;;  %v6868_v44 = vld [vmem:[%s9031_s7 + $0x62] sm:$0xff] }
 0x767   : > { %v11101_v22 = vadd.f32 %v7508_v14, %v11005_v62  ;;  %v6866_v14 = vld [vmem:[%s9031_s7 + $0x42] sm:$0xff] }
 0x769   : > { %v7509_v43 = vpop.f32.mrb[92].mxu1 }
 0x76a   : > { %v7510_v21 = vpop.f32.mrb[93].mxu1 }
 0x76b   : > { %v7511_v2 = vadd.f32 %v7510_v21, %v7509_v43  ;;  %v7512_v27 = vpop.f32.mrb[94].mxu1  ;;  %v6869_v21 = vld [vmem:[%s9031_s7 + $0x6a] sm:$0xff] }
 0x76c   : > { %v7513_v11 = vpop.f32.mrb[95].mxu1 }
 0x76d   : > { %v7514_v7 = vadd.f32 %v7513_v11, %v7512_v27  ;;  %v11104_v30 = vadd.f32 %v7511_v2, %v11008_v16  ;;  %v6867_v11 = vld [vmem:[%s9031_s7 + $0x4a] sm:$0xff] }
 0x76f   : > { %v11107_v52 = vadd.f32 %v7514_v7, %v11011_v23 }
 0x771   : > { %v7515_v46 = vpop.f32.mrb[96].mxu1 }
 0x772   : > { %v7516_v36 = vpop.f32.mrb[97].mxu1 }
 0x773   : > { %v7517_v50 = vadd.f32 %v7516_v36, %v7515_v46  ;;  %v7518_v25 = vpop.f32.mrb[98].mxu1 }
 0x774   : > { %v7519_v10 = vpop.f32.mrb[99].mxu1 }
 0x775   : > { %v7520_v47 = vadd.f32 %v7519_v10, %v7518_v25  ;;  %v11110_v62 = vadd.f32 %v7517_v50, %v11014_v3 }
 0x777   : > { %v11113_v8 = vadd.f32 %v7520_v47, %v11017_v29 }
 0x779   : > { %v7521_v45 = vpop.f32.mrb[100].mxu1 }
 0x77a   : > { %v7522_v15 = vpop.f32.mrb[101].mxu1 }
 0x77b   : > { %v7523_v61 = vadd.f32 %v7522_v15, %v7521_v45  ;;  %v7524_v16 = vpop.f32.mrb[102].mxu1 }
 0x77c   : > { %v7525_v56 = vpop.f32.mrb[103].mxu1 }
 0x77d   : > { %v7526_v23 = vadd.f32 %v7525_v56, %v7524_v16  ;;  %v11116_v34 = vadd.f32 %v7523_v61, %v11020_v24 }
 0x77f   : > { %v11119_v39 = vadd.f32 %v7526_v23, %v11023_v6 }
 0x781   : > { %v7693_v3 = vpop.f32.mrb[112].mxu1 }
 0x782   : > { %v5882_v29 = vadd.f32 %v7693_v3, %v11032_v37  ;;  %v5873_v20 = vpop.f32.mrb[113].mxu1 }
 0x783   : > { %v5874_v54 = vadd.f32 %v5873_v20, %v11026_v48  ;;  %v7694_v60 = vpop.f32.mrb[114].mxu1 }
 0x784   : > { %v6041_v24 = vmul.f32 %v11121_v40, %v5882_v29  ;;  %v5885_v38 = vadd.f32 %v7694_v60, %v11035_v12  ;;  %v5876_v6 = vpop.f32.mrb[115].mxu1  ;;  %v6872_v29 = vld [vmem:[%s9031_s7 + $0xa2] sm:$0xff] }
 0x785   : > { %v6039_v13 = vmul.f32 %v11121_v40, %v5874_v54  ;;  %v5877_v35 = vadd.f32 %v5876_v6, %v11029_v32  ;;  %v6870_v60 = vld [vmem:[%s9031_s7 + $0x82] sm:$0xff]  ;;  %v6873_v6 = vld [vmem:[%s9031_s7 + $0xaa] sm:$0xff] }
 0x786   : > { %v6080_v37 = vadd.f32 %v11124_v9, %v6041_v24  ;;  %v6042_v43 = vmul.f32 %v11121_v40, %v5885_v38 }
 0x787   : > { %v6078_v48 = vadd.f32 %v11124_v9, %v6039_v13  ;;  %v6040_v2 = vmul.f32 %v11121_v40, %v5877_v35  ;;  %v6871_v35 = vld [vmem:[%s9031_s7 + $0x8a] sm:$0xff] }
 0x788   : > { %v6112_v27 = vadd.f32 %v6868_v44, %v6080_v37  ;;  %v6081_v12 = vadd.f32 %v11124_v9, %v6042_v43 }
 0x789   : > { %v6110_v7 = vadd.f32 %v6866_v14, %v6078_v48  ;;  %v6079_v46 = vadd.f32 %v11124_v9, %v6040_v2  ;;  %v7697_v36 = vpop.f32.mrb[116].mxu1 }
 0x78a   : > { %v6144_v32 = vmax.f32 %v6112_v27, 0.0  ;;  %v6113_v50 = vadd.f32 %v6869_v21, %v6081_v12  ;;  %v5898_v25 = vadd.f32 %v7697_v36, %v11044_v0  ;;  %v5889_v10 = vpop.f32.mrb[117].mxu1 }
 0x78b   : > { %v6142_v47 = vmax.f32 %v6110_v7, 0.0  ;;  %v6111_v45 = vadd.f32 %v6867_v11, %v6079_v46  ;;  %v5890_v15 = vadd.f32 %v5889_v10, %v11038_v42  ;;  %v7698_v61 = vpop.f32.mrb[118].mxu1 }
 0x78c   : > { %6176 = vst [vmem:[%s11144_s9 + $0x10] sm:$0xff] %v6144_v32  ;;  %v6145_v16 = vmax.f32 %v6113_v50, 0.0  ;;  %v6045_v56 = vmul.f32 %v11121_v40, %v5898_v25  ;;  %v5901_v0 = vadd.f32 %v7698_v61, %v11047_v49  ;;  %v5892_v23 = vpop.f32.mrb[119].mxu1  ;;  %v6876_v25 = vld [vmem:[%s9031_s7 + $0xe2] sm:$0xff] }
 0x78d   : > { %6174 = vst [vmem:[%s11144_s9] sm:$0xff] %v6142_v47  ;;  %v6143_v3 = vmax.f32 %v6111_v45, 0.0  ;;  %v6043_v42 = vmul.f32 %v11121_v40, %v5890_v15  ;;  %v5893_v20 = vadd.f32 %v5892_v23, %v11041_v59  ;;  %v6874_v45 = vld [vmem:[%s9031_s7 + $0xc2] sm:$0xff]  ;;  %v6875_v23 = vld [vmem:[%s9031_s7 + $0xca] sm:$0xff] }
 0x78e   : > { %6177 = vst [vmem:[%s11144_s9 + $0x18] sm:$0xff] %v6145_v16  ;;  %v6084_v54 = vadd.f32 %v11124_v9, %v6045_v56  ;;  %v6046_v24 = vmul.f32 %v11121_v40, %v5901_v0  ;;  %v6877_v16 = vld [vmem:[%s9031_s7 + $0xea] sm:$0xff] }
 0x78f   : > { %6175 = vst [vmem:[%s11144_s9 + $0x8] sm:$0xff] %v6143_v3  ;;  %v6082_v38 = vadd.f32 %v11124_v9, %v6043_v42  ;;  %v6044_v49 = vmul.f32 %v11121_v40, %v5893_v20 }
 0x790   : > { %v6116_v44 = vadd.f32 %v6872_v29, %v6084_v54  ;;  %v6085_v13 = vadd.f32 %v11124_v9, %v6046_v24 }
 0x791   : > { %v6114_v37 = vadd.f32 %v6870_v60, %v6082_v38  ;;  %v6083_v59 = vadd.f32 %v11124_v9, %v6044_v49  ;;  %v7701_v14 = vpop.f32.mrb[120].mxu1 }
 0x792   : > { %v6148_v43 = vmax.f32 %v6116_v44, 0.0  ;;  %v6117_v48 = vadd.f32 %v6873_v6, %v6085_v13  ;;  %v5914_v21 = vadd.f32 %v7701_v14, %v11056_v1  ;;  %v5905_v2 = vpop.f32.mrb[121].mxu1 }
 0x793   : > { %v6146_v27 = vmax.f32 %v6114_v37, 0.0  ;;  %v6115_v12 = vadd.f32 %v6871_v35, %v6083_v59  ;;  %v5906_v11 = vadd.f32 %v5905_v2, %v11050_v51  ;;  %v7702_v7 = vpop.f32.mrb[122].mxu1  ;;  %v6880_v59 = vld [vmem:[%s9031_s7 + $0x122] sm:$0xff] }
 0x794   : > { %6180 = vst [vmem:[%s11144_s9 + $0x30] sm:$0xff] %v6148_v43  ;;  %v6149_v46 = vmax.f32 %v6117_v48, 0.0  ;;  %v6049_v36 = vmul.f32 %v11121_v40, %v5914_v21  ;;  %v5917_v32 = vadd.f32 %v7702_v7, %v11059_v58  ;;  %v5908_v50 = vpop.f32.mrb[123].mxu1  ;;  %v6878_v48 = vld [vmem:[%s9031_s7 + $0x102] sm:$0xff]  ;;  %v6879_v7 = vld [vmem:[%s9031_s7 + $0x10a] sm:$0xff] }
 0x795   : > { %6178 = vst [vmem:[%s11144_s9 + $0x20] sm:$0xff] %v6146_v27  ;;  %v6147_v1 = vmax.f32 %v6115_v12, 0.0  ;;  %v6047_v10 = vmul.f32 %v11121_v40, %v5906_v11  ;;  %v5909_v47 = vadd.f32 %v5908_v50, %v11053_v55  ;;  %v6881_v27 = vld [vmem:[%s9031_s7 + $0x12a] sm:$0xff] }
 0x796   : > { %6181 = vst [vmem:[%s11144_s9 + $0x38] sm:$0xff] %v6149_v46  ;;  %v6088_v51 = vadd.f32 %v11124_v9, %v6049_v36  ;;  %v6050_v15 = vmul.f32 %v11121_v40, %v5917_v32 }
 0x797   : > { %6179 = vst [vmem:[%s11144_s9 + $0x28] sm:$0xff] %v6147_v1  ;;  %v6086_v61 = vadd.f32 %v11124_v9, %v6047_v10  ;;  %v6048_v58 = vmul.f32 %v11121_v40, %v5909_v47 }
 0x798   : > { %v6120_v56 = vadd.f32 %v6876_v25, %v6088_v51  ;;  %v6089_v0 = vadd.f32 %v11124_v9, %v6050_v15 }
 0x799   : > { %v6118_v3 = vadd.f32 %v6874_v45, %v6086_v61  ;;  %v6087_v55 = vadd.f32 %v11124_v9, %v6048_v58  ;;  %v7705_v29 = vpop.f32.mrb[124].mxu1 }
 0x79a   : > { %v6152_v42 = vmax.f32 %v6120_v56, 0.0  ;;  %v6121_v20 = vadd.f32 %v6877_v16, %v6089_v0  ;;  %v5930_v54 = vadd.f32 %v7705_v29, %v11068_v57  ;;  %v5921_v60 = vpop.f32.mrb[125].mxu1  ;;  %v6884_v56 = vld [vmem:[%s9031_s7 + $0x162] sm:$0xff] }
 0x79b   : > { %v6150_v24 = vmax.f32 %v6118_v3, 0.0  ;;  %v6119_v38 = vadd.f32 %v6875_v23, %v6087_v55  ;;  %v5922_v6 = vadd.f32 %v5921_v60, %v11062_v31  ;;  %v7706_v49 = vpop.f32.mrb[126].mxu1  ;;  %v6882_v3 = vld [vmem:[%s9031_s7 + $0x142] sm:$0xff]  ;;  %v6883_v60 = vld [vmem:[%s9031_s7 + $0x14a] sm:$0xff] }
 0x79c   : > { %6184 = vst [vmem:[%s11144_s9 + $0x50] sm:$0xff] %v6152_v42  ;;  %v6153_v44 = vmax.f32 %v6121_v20, 0.0  ;;  %v6053_v13 = vmul.f32 %v11121_v40, %v5930_v54  ;;  %v5933_v35 = vadd.f32 %v7706_v49, %v11071_v17  ;;  %v5924_v37 = vpop.f32.mrb[127].mxu1  ;;  %v6885_v42 = vld [vmem:[%s9031_s7 + $0x16a] sm:$0xff] }
 0x79d   : > { %6182 = vst [vmem:[%s11144_s9 + $0x40] sm:$0xff] %v6150_v24  ;;  %v6151_v57 = vmax.f32 %v6119_v38, 0.0  ;;  %v6051_v14 = vmul.f32 %v11121_v40, %v5922_v6  ;;  %v5925_v43 = vadd.f32 %v5924_v37, %v11065_v19 }
 0x79e   : > { %6185 = vst [vmem:[%s11144_s9 + $0x58] sm:$0xff] %v6153_v44  ;;  %v6092_v31 = vadd.f32 %v11124_v9, %v6053_v13  ;;  %v6054_v21 = vmul.f32 %v11121_v40, %v5933_v35 }
 0x79f   : > { %6183 = vst [vmem:[%s11144_s9 + $0x48] sm:$0xff] %v6151_v57  ;;  %v6090_v2 = vadd.f32 %v11124_v9, %v6051_v14  ;;  %v6052_v17 = vmul.f32 %v11121_v40, %v5925_v43 }
 0x7a0   : > { %v6124_v12 = vadd.f32 %v6880_v59, %v6092_v31  ;;  %v6093_v11 = vadd.f32 %v11124_v9, %v6054_v21  ;;  %v6888_v21 = vld [vmem:[%s9031_s7 + $0x1a2] sm:$0xff] }
 0x7a1   : > { %v6122_v46 = vadd.f32 %v6878_v48, %v6090_v2  ;;  %v6091_v19 = vadd.f32 %v11124_v9, %v6052_v17  ;;  %v7709_v36 = vpop.f32.mrb[128].mxu1  ;;  %v6886_v17 = vld [vmem:[%s9031_s7 + $0x182] sm:$0xff] }
 0x7a2   : > { %v6156_v32 = vmax.f32 %v6124_v12, 0.0  ;;  %v6125_v50 = vadd.f32 %v6881_v27, %v6093_v11  ;;  %v5946_v1 = vadd.f32 %v7709_v36, %v11080_v53  ;;  %v5937_v25 = vpop.f32.mrb[129].mxu1  ;;  %v6887_v36 = vld [vmem:[%s9031_s7 + $0x18a] sm:$0xff] }
 0x7a3   : > { %v6154_v10 = vmax.f32 %v6122_v46, 0.0  ;;  %v6123_v47 = vadd.f32 %v6879_v7, %v6091_v19  ;;  %v5938_v51 = vadd.f32 %v5937_v25, %v11074_v5  ;;  %v7710_v45 = vpop.f32.mrb[130].mxu1  ;;  %v6889_v7 = vld [vmem:[%s9031_s7 + $0x1aa] sm:$0xff] }
 0x7a4   : > { %6188 = vst [vmem:[%s11144_s9 + $0x70] sm:$0xff] %v6156_v32  ;;  %v6157_v15 = vmax.f32 %v6125_v50, 0.0  ;;  %v6057_v61 = vmul.f32 %v11121_v40, %v5946_v1  ;;  %v5949_v16 = vadd.f32 %v7710_v45, %v11083_v18  ;;  %v5940_v58 = vpop.f32.mrb[131].mxu1 }
 0x7a5   : > { %6186 = vst [vmem:[%s11144_s9 + $0x60] sm:$0xff] %v6154_v10  ;;  %v6155_v53 = vmax.f32 %v6123_v47, 0.0  ;;  %v6055_v0 = vmul.f32 %v11121_v40, %v5938_v51  ;;  %v5941_v23 = vadd.f32 %v5940_v58, %v11077_v28 }
 0x7a6   : > { %6189 = vst [vmem:[%s11144_s9 + $0x78] sm:$0xff] %v6157_v15  ;;  %v6096_v5 = vadd.f32 %v11124_v9, %v6057_v61  ;;  %v6058_v55 = vmul.f32 %v11121_v40, %v5949_v16 }
 0x7a7   : > { %6187 = vst [vmem:[%s11144_s9 + $0x68] sm:$0xff] %v6155_v53  ;;  %v6094_v29 = vadd.f32 %v11124_v9, %v6055_v0  ;;  %v6056_v18 = vmul.f32 %v11121_v40, %v5941_v23  ;;  %v6892_v0 = vld [vmem:[%s9031_s7 + $0x1e2] sm:$0xff] }
 0x7a8   : > { %v6128_v20 = vadd.f32 %v6884_v56, %v6096_v5  ;;  %v6097_v54 = vadd.f32 %v11124_v9, %v6058_v55 }
 0x7a9   : > { %v6126_v24 = vadd.f32 %v6882_v3, %v6094_v29  ;;  %v6095_v28 = vadd.f32 %v11124_v9, %v6056_v18  ;;  %v7713_v38 = vpop.f32.mrb[132].mxu1  ;;  %v6890_v3 = vld [vmem:[%s9031_s7 + $0x1c2] sm:$0xff] }
 0x7aa   : > { %v6160_v6 = vmax.f32 %v6128_v20, 0.0  ;;  %v6129_v49 = vadd.f32 %v6885_v42, %v6097_v54  ;;  %v5962_v44 = vadd.f32 %v7713_v38, %v11092_v63  ;;  %v5953_v13 = vpop.f32.mrb[133].mxu1  ;;  %v6893_v42 = vld [vmem:[%s9031_s7 + $0x1ea] sm:$0xff] }
 0x7ab   : > { %v6158_v35 = vmax.f32 %v6126_v24, 0.0  ;;  %v6127_v37 = vadd.f32 %v6883_v60, %v6095_v28  ;;  %v5954_v57 = vadd.f32 %v5953_v13, %v11086_v33  ;;  %v7714_v59 = vpop.f32.mrb[134].mxu1  ;;  %v6891_v54 = vld [vmem:[%s9031_s7 + $0x1ca] sm:$0xff] }
 0x7ac   : > { %6192 = vst [vmem:[%s11144_s9 + $0x90] sm:$0xff] %v6160_v6  ;;  %v6161_v14 = vmax.f32 %v6129_v49, 0.0  ;;  %v6061_v43 = vmul.f32 %v11121_v40, %v5962_v44  ;;  %v5965_v31 = vadd.f32 %v7714_v59, %v11095_v26  ;;  %v5956_v48 = vpop.f32.mrb[135].mxu1 }
 0x7ad   : > { %6190 = vst [vmem:[%s11144_s9 + $0x80] sm:$0xff] %v6158_v35  ;;  %v6159_v63 = vmax.f32 %v6127_v37, 0.0  ;;  %v6059_v2 = vmul.f32 %v11121_v40, %v5954_v57  ;;  %v5957_v27 = vadd.f32 %v5956_v48, %v11089_v4 }
 0x7ae   : > { %6193 = vst [vmem:[%s11144_s9 + $0x98] sm:$0xff] %v6161_v14  ;;  %v6100_v33 = vadd.f32 %v11124_v9, %v6061_v43  ;;  %v6062_v12 = vmul.f32 %v11121_v40, %v5965_v31  ;;  %v6896_v31 = vld [vmem:[%s9031_s7 + $0x222] sm:$0xff] }
 0x7af   : > { %6191 = vst [vmem:[%s11144_s9 + $0x88] sm:$0xff] %v6159_v63  ;;  %v6098_v11 = vadd.f32 %v11124_v9, %v6059_v2  ;;  %v6060_v26 = vmul.f32 %v11121_v40, %v5957_v27  ;;  %v6897_v27 = vld [vmem:[%s9031_s7 + $0x22a] sm:$0xff] }
 0x7b0   : > { %v6132_v46 = vadd.f32 %v6888_v21, %v6100_v33  ;;  %v6101_v19 = vadd.f32 %v11124_v9, %v6062_v12  ;;  %v6894_v21 = vld [vmem:[%s9031_s7 + $0x202] sm:$0xff] }
 0x7b1   : > { %v6130_v32 = vadd.f32 %v6886_v17, %v6098_v11  ;;  %v6099_v4 = vadd.f32 %v11124_v9, %v6060_v26  ;;  %v7717_v50 = vpop.f32.mrb[136].mxu1  ;;  %v6895_v11 = vld [vmem:[%s9031_s7 + $0x20a] sm:$0xff] }
 0x7b2   : > { %v6164_v1 = vmax.f32 %v6132_v46, 0.0  ;;  %v6133_v25 = vadd.f32 %v6889_v7, %v6101_v19  ;;  %v5978_v10 = vadd.f32 %v7717_v50, %v11104_v30  ;;  %v5969_v47 = vpop.f32.mrb[137].mxu1 }
 0x7b3   : > { %v6162_v51 = vmax.f32 %v6130_v32, 0.0  ;;  %v6131_v45 = vadd.f32 %v6887_v36, %v6099_v4  ;;  %v5970_v15 = vadd.f32 %v5969_v47, %v11098_v41  ;;  %v7718_v61 = vpop.f32.mrb[138].mxu1 }
 0x7b4   : > { %6196 = vst [vmem:[%s11144_s9 + $0xb0] sm:$0xff] %v6164_v1  ;;  %v6165_v16 = vmax.f32 %v6133_v25, 0.0  ;;  %v6065_v58 = vmul.f32 %v11121_v40, %v5978_v10  ;;  %v5981_v53 = vadd.f32 %v7718_v61, %v11107_v52  ;;  %v5972_v56 = vpop.f32.mrb[139].mxu1 }
 0x7b5   : > { %6194 = vst [vmem:[%s11144_s9 + $0xa0] sm:$0xff] %v6162_v51  ;;  %v6163_v30 = vmax.f32 %v6131_v45, 0.0  ;;  %v6063_v23 = vmul.f32 %v11121_v40, %v5970_v15  ;;  %v5973_v5 = vadd.f32 %v5972_v56, %v11101_v22 }
 0x7b6   : > { %6197 = vst [vmem:[%s11144_s9 + $0xb8] sm:$0xff] %v6165_v16  ;;  %v6104_v41 = vadd.f32 %v11124_v9, %v6065_v58  ;;  %v6066_v55 = vmul.f32 %v11121_v40, %v5981_v53 }
 0x7b7   : > { %6195 = vst [vmem:[%s11144_s9 + $0xa8] sm:$0xff] %v6163_v30  ;;  %v6102_v29 = vadd.f32 %v11124_v9, %v6063_v23  ;;  %v6064_v52 = vmul.f32 %v11121_v40, %v5973_v5 }
 0x7b8   : > { %v6136_v18 = vadd.f32 %v6892_v0, %v6104_v41  ;;  %v6105_v20 = vadd.f32 %v11124_v9, %v6066_v55 }
 0x7b9   : > { %v6134_v60 = vadd.f32 %v6890_v3, %v6102_v29  ;;  %v6103_v22 = vadd.f32 %v11124_v9, %v6064_v52  ;;  %v7721_v24 = vpop.f32.mrb[140].mxu1 }
 0x7ba   : > { %v6168_v28 = vmax.f32 %v6136_v18, 0.0  ;;  %v6137_v38 = vadd.f32 %v6893_v42, %v6105_v20  ;;  %v5994_v6 = vadd.f32 %v7721_v24, %v11116_v34  ;;  %v5985_v49 = vpop.f32.mrb[141].mxu1 }
 0x7bb   : > { %v6166_v44 = vmax.f32 %v6134_v60, 0.0  ;;  %v6135_v13 = vadd.f32 %v6891_v54, %v6103_v22  ;;  %v5986_v35 = vadd.f32 %v5985_v49, %v11110_v62  ;;  %v7722_v37 = vpop.f32.mrb[142].mxu1 }
 0x7bc   : > { %6200 = vst [vmem:[%s11144_s9 + $0xd0] sm:$0xff] %v6168_v28  ;;  %v6169_v57 = vmax.f32 %v6137_v38, 0.0  ;;  %v6069_v59 = vmul.f32 %v11121_v40, %v5994_v6  ;;  %v5997_v14 = vadd.f32 %v7722_v37, %v11119_v39  ;;  %v5988_v43 = vpop.f32.mrb[143].mxu1 }
 0x7bd   : > { %6198 = vst [vmem:[%s11144_s9 + $0xc0] sm:$0xff] %v6166_v44  ;;  %v6167_v34 = vmax.f32 %v6135_v13, 0.0  ;;  %v6067_v48 = vmul.f32 %v11121_v40, %v5986_v35  ;;  %v5989_v62 = vadd.f32 %v5988_v43, %v11113_v8 }
 0x7be   : > { %6201 = vst [vmem:[%s11144_s9 + $0xd8] sm:$0xff] %v6169_v57  ;;  %v6108_v63 = vadd.f32 %v11124_v9, %v6069_v59  ;;  %v6070_v2 = vmul.f32 %v11121_v40, %v5997_v14 }
 0x7bf   : > { %6199 = vst [vmem:[%s11144_s9 + $0xc8] sm:$0xff] %v6167_v34  ;;  %v6106_v39 = vadd.f32 %v11124_v9, %v6067_v48  ;;  %v6068_v33 = vmul.f32 %v11121_v40, %v5989_v62 }
 0x7c0   : > { %v6140_v17 = vadd.f32 %v6896_v31, %v6108_v63  ;;  %v6109_v12 = vadd.f32 %v11124_v9, %v6070_v2 }
 0x7c1   : > { %v6138_v8 = vadd.f32 %v6894_v21, %v6106_v39  ;;  %v6107_v7 = vadd.f32 %v11124_v9, %v6068_v33 }
 0x7c2   : > { %v6172_v26 = vmax.f32 %v6140_v17, 0.0  ;;  %v6141_v46 = vadd.f32 %v6897_v27, %v6109_v12 }
 0x7c3   : > { %v6170_v19 = vmax.f32 %v6138_v8, 0.0  ;;  %v6139_v36 = vadd.f32 %v6895_v11, %v6107_v7 }
 0x7c4   : > { %6204 = vst [vmem:[%s11144_s9 + $0xf0] sm:$0xff] %v6172_v26  ;;  %v6173_v40 = vmax.f32 %v6141_v46, 0.0 }
 0x7c5   : > { %6202 = vst [vmem:[%s11144_s9 + $0xe0] sm:$0xff] %v6170_v19  ;;  %v6171_v9 = vmax.f32 %v6139_v36, 0.0 }
 0x7c6   : > { %6205 = vst [vmem:[%s11144_s9 + $0xf8] sm:$0xff] %v6173_v40 }
 0x7c7   : > { %6203 = vst [vmem:[%s11144_s9 + $0xe8] sm:$0xff] %v6171_v9 }
 0x7c8   : > { %8613 = shalt.err (!%p8610_p8)
}
 0x7c9   : > { %s8614_s16 = scalar_lea.hbm %s11290_s17, 4096  ;;  %s8618_s8 = scalar_lea.hbm %s11501_s10, 8192 }
 0x7ca   : > { %p8615_p3 = scmp.ne.s32.totalorder %s11290_s17, %s8614_s16  ;;  %p8619_p13 = scmp.lt.u32.totalorder %s11290_s17, %s11501_s10 }
 0x7cb   : > { %p8620_p1 = scmp.lt.u32.totalorder %s8618_s8, %s8614_s16  ;;  %p8622_p2 = scmp.lt.u32.totalorder %s8614_s16, %s11290_s17 }
 0x7cc   : > { %p8616_p11 = pnand %p8615_p3, %p11502_p9 }
 0x7cd   : > { %p8621_p4 = por %p8620_p1, %p8619_p13 }
 0x7ce   : > { %p8617_p6 = pneg %p8616_p11 }
 0x7cf   : > { %p8623_p10 = por %p8622_p2, %p8621_p4 }
 0x7d1   : > { %p8624_p12 = pnand %p8623_p10, %p8617_p6 }
 0x7d3   : > { %8627 = shalt.err (!%p8624_p12)
}
 0x7d4   : > { %s8713_s22 = smov 128   ;;  %s8714_s15 = smov 8  }
 0x7d5   : > { %8132 = dma.vmem_to_hbm [thread:$0]  (%p11502_p9), %s11292_s30, 4096, %s11290_s17, %s6207_s27, %s8713_s22, %s8713_s22, %s8714_s15  }
 0x7d6 PF: > { %s6238_s12 = sand.u32 1, %s8674_s24   ;;  %p11503_p0 = scmp.ne.s32.totalorder %s11409_s14, 0 }
 0x7d7   : > { %p11504_p7 = scmp.ge.s32.totalorder %s8694_s29, 2  ;;  %s6239_s1 = scalar_lea.sflag [#allocation6], %s6238_s12 }
 0x7d9   : > { %p8158_p5 = pnand %p11504_p7, %p11503_p0 }
 0x7db   : > { %8669 = dma.done.wait (!%p8158_p5), %s6239_s1, 4096  }
 0x7dc   : > { %8671 = vsyncadd (!%p8158_p5), %s6239_s1, 4294963200  ;;  %s26_s29 = sadd.s32 1, %s8694_s29   ;;  %s11505_s24 = smov %s8678_s25 }
 0x7dd   : > { %p23_p8 = scmp.ge.s32.totalorder %s26_s29, 4   ;;  %s11506_s25 = smov %s8682_s26 }
 0x7de   : > { %s11507_s26 = smov %s8974_s18  ;;  %s11508_s27 = smov %s8690_s28 }
 0x7df   : > { %s11509_s28 = smov %s11511_s19  ;;  %25 = sbr.rel (!%p23_p8) target bundleno = 13 (0xd), region = 120 }
 0x7e6   :  { %6244 = vsyncpa [#allocation5], 1 }
 0x7e7   :  { %6246 = vsyncpa [#allocation5 + $0x1], 1 }
 0x7e8   :  { %6247 = vsyncpa [#allocation8], 1 }
 0x7e9   :  { %6248 = vsyncpa [#allocation11], 1 }
 0x7ea   :  { %6249 = vsyncpa [#allocation14], 1 }
 0x7eb   :  { %6250 = vsyncpa [#allocation6], 1 }
 0x7ec   :  { %6252 = vsyncpa [#allocation6 + $0x1], 1 }

</bundles_post_ra>
